<compile_context>
chip_gen: v5e
topology: v5e:2x2
jax: 0.10.0
libtpu: 0.0.40
codegen_flags: <defaults>
</compile_context>

<pallas_src>
from functools import partial

import jax
import jax.numpy as jnp
from jax import lax
from jax.experimental import pallas as pl
from jax.experimental.pallas import tpu as pltpu

E = 200          # logical embedding dim
EP = 256         # embedding dim padded to 2 lane blocks
H = 50           # logical LSTM hidden dim (matches PyTorch)
HP = 128         # hidden dim padded to one 128-lane block
G = 4 * HP       # padded gate width; gate k occupies lanes [k*128, (k+1)*128)


def _round_up(n, m):
    return -(-n // m) * m


# ----------------------------------------------------------------------------
# Kernel 1: two-layer LSTM recurrence over one time block.
# ----------------------------------------------------------------------------
def lstm_recurrence_kernel(emb_ref,                       # (rows_blk, EP) rows t*BP+b
                           wih0_ref, whh0_ref, b0_ref,    # (EP,G), (HP,G), (1,G)
                           w1cat_ref, b1_ref,             # (2*HP,G), (1,G)
                           h1_out_ref,                    # (rows_blk, HP)
                           gin0_ref,                      # scratch (rows_blk, G)
                           h0, c0, h1, c1):               # scratch (BP, HP) each
    # Reset carried state at the first time block; scratch persists across the
    # sequential ("arbitrary") time-block grid.
    @pl.when(pl.program_id(0) == 0)
    def _init():
        h0[...] = jnp.zeros_like(h0)
        c0[...] = jnp.zeros_like(c0)
        h1[...] = jnp.zeros_like(h1)
        c1[...] = jnp.zeros_like(c1)

    rows = emb_ref.shape[0]
    bp = h0.shape[0]
    t_blk = rows // bp

    # Hoisted layer-0 input projection (+ bias) for the whole time block:
    # one big MXU matmul instead of T tiny ones on the serial critical path.
    gin0_ref[...] = (
        jnp.dot(emb_ref[...], wih0_ref[...], preferred_element_type=jnp.float32)
        + b0_ref[...])

    # Hoist the layer-1 bias broadcast out of the loop (JAX does not CSE it).
    b1b = jnp.broadcast_to(b1_ref[...], (bp, G))

    def _sigmoid(x):
        # Exact identity sigmoid(x) = 0.5*tanh(0.5*x)+0.5: one EUP push/gate.
        return 0.5 * jnp.tanh(0.5 * x) + 0.5

    def gate_math(gates, c_prev):
        # Lane-aligned gate slices: each gate is one full 128-lane block.
        i = _sigmoid(gates[:, 0 * HP:1 * HP])
        f = _sigmoid(gates[:, 1 * HP:2 * HP])
        g = jnp.tanh(gates[:, 2 * HP:3 * HP])
        o = _sigmoid(gates[:, 3 * HP:4 * HP])
        c_new = f * c_prev + i * g            # padded lanes stay exactly 0
        h_new = o * jnp.tanh(c_new)
        return h_new, c_new

    def step(t):
        r0 = pl.multiple_of(t * bp, bp)       # aligned (8,128) loads/stores
        # Layer 0: input part precomputed; only the small recurrent matmul left.
        gates0 = gin0_ref[pl.ds(r0, bp), :] + jnp.dot(
            h0[...], whh0_ref[...], preferred_element_type=jnp.float32)
        h0n, c0n = gate_math(gates0, c0[...])
        h0[...] = h0n
        c0[...] = c0n

        # Layer 1: ONE fused matmul over the concatenated [wih1; whh1] weight.
        x1 = jnp.concatenate([h0n, h1[...]], axis=-1)          # (bp, 2*HP)
        gates1 = jnp.dot(x1, w1cat_ref[...],
                         preferred_element_type=jnp.float32) + b1b
        h1n, c1n = gate_math(gates1, c1[...])
        h1[...] = h1n
        c1[...] = c1n

        h1_out_ref[pl.ds(r0, bp), :] = h1n    # unmasked (8,128) store

    # Partial unroll: outer fori_loop over groups of UNROLL timesteps, inner
    # steps Python-unrolled (short straight-line body for the LLO scheduler
    # without blowing up code size / vreg pressure at large t_blk).
    UNROLL = 8
    if t_blk % UNROLL == 0 and t_blk > UNROLL:
        n_groups, inner = t_blk // UNROLL, UNROLL
    else:
        n_groups, inner = 1, t_blk

    def group(g, carry):
        base = g * inner
        for u in range(inner):
            step(base + u)
        return carry

    if n_groups == 1:
        group(0, 0)
    else:
        lax.fori_loop(0, n_groups, group, 0, unroll=False)


# ----------------------------------------------------------------------------
# Kernel 2: final Linear as a lane-dense, (rows, vocab)-tiled matmul.
# ----------------------------------------------------------------------------
def fc_kernel(h_ref, w_ref, b_ref, out_ref):
    out_ref[...] = (jnp.dot(h_ref[...], w_ref[...],
                            preferred_element_type=jnp.float32)
                    + b_ref[...])


# ----------------------------------------------------------------------------
# Tiling helpers.
# ----------------------------------------------------------------------------
def _pick_time_block(T, cap=32):
    """Largest time-block <= cap that divides T."""
    for tb in range(min(T, cap), 0, -1):
        if T % tb == 0:
            return tb
    return T


def _pick_row_block(rows, cap=512):
    for rb in (cap, 256, 128, 64, 32, 16, 8):
        if rb <= rows and rows % rb == 0:
            return rb
    return rows


def _pick_vocab_block(vp, cap=2048):
    for vb in (cap, 1024, 512, 256, 128):
        if vb <= vp and vp % vb == 0:
            return vb
    return vp


# ----------------------------------------------------------------------------
# Parameter padding: lane-aligned layout the kernels expect.
# ----------------------------------------------------------------------------
def _pad_gate_cols(w):
    """(..., 4*H) -> (..., 4*HP): each gate padded to its own 128-lane block."""
    parts = jnp.split(w, 4, axis=-1)
    pad = [(0, 0)] * (w.ndim - 1) + [(0, HP - H)]
    return jnp.concatenate([jnp.pad(p, pad) for p in parts], axis=-1)


def pad_params(params):
    V = params["wfc"].shape[1]
    VP = _round_up(V, 128)
    pad_h_rows = ((0, HP - H), (0, 0))
    wih1 = _pad_gate_cols(jnp.pad(params["wih1"], pad_h_rows))   # (HP, G)
    whh1 = _pad_gate_cols(jnp.pad(params["whh1"], pad_h_rows))   # (HP, G)
    return {
        "emb":  jnp.pad(params["emb"], ((0, 0), (0, EP - E))),            # (Voc, EP)
        "wih0": _pad_gate_cols(jnp.pad(params["wih0"],
                                       ((0, EP - E), (0, 0)))),           # (EP, G)
        "whh0": _pad_gate_cols(jnp.pad(params["whh0"], pad_h_rows)),      # (HP, G)
        "b0":   _pad_gate_cols(params["b0"]),                             # (1, G)
        "w1cat": jnp.concatenate([wih1, whh1], axis=0),                   # (2*HP, G)
        "b1":   _pad_gate_cols(params["b1"]),                             # (1, G)
        "wfc":  jnp.pad(params["wfc"], ((0, HP - H), (0, VP - V))),       # (HP, VP)
        "bfc":  jnp.pad(params["bfc"], ((0, 0), (0, VP - V))),            # (1, VP)
    }


# ----------------------------------------------------------------------------
# Forward pass.
# ----------------------------------------------------------------------------
def text_generator_forward(x, kp, *, vocab_size):
    """x: (B, T) int32 token ids; kp: padded params. Returns (B, T, V) f32."""
    B, T = x.shape
    VP = kp["wfc"].shape[1]
    BP = _round_up(max(B, 1), 8)                       # kernel-side batch pad

    # Embedding lookup (glue), gathered time-major so the float path needs no
    # large transpose; batch padded with zero rows to BP sublanes.
    emb_tm = jnp.take(kp["emb"], x.T, axis=0)          # (T, B, EP)
    if BP != B:
        emb_tm = jnp.pad(emb_tm, ((0, 0), (0, BP - B), (0, 0)))
    emb_2d = emb_tm.reshape(T * BP, EP)                # rows ordered t*BP + b

    t_blk = _pick_time_block(T)
    rows_blk = t_blk * BP
    n_tblk = T // t_blk

    def full(shape):
        return pl.BlockSpec(shape, lambda t, _s=len(shape): (0,) * _s)

    h1_tm = pl.pallas_call(
        lstm_recurrence_kernel,
        out_shape=jax.ShapeDtypeStruct((T * BP, HP), jnp.float32),
        grid_spec=pltpu.PrefetchScalarGridSpec(
            num_scalar_prefetch=0,
            grid=(n_tblk,),
            in_specs=[
                pl.BlockSpec((rows_blk, EP), lambda t: (t, 0)),  # streamed input
                full((EP, G)), full((HP, G)), full((1, G)),      # layer-0 weights
                full((2 * HP, G)), full((1, G)),                 # fused layer-1
            ],
            out_specs=pl.BlockSpec((rows_blk, HP), lambda t: (t, 0)),
            scratch_shapes=[
                pltpu.VMEM((rows_blk, G), jnp.float32),   # hoisted input gates
                pltpu.VMEM((BP, HP), jnp.float32),        # h0
                pltpu.VMEM((BP, HP), jnp.float32),        # c0
                pltpu.VMEM((BP, HP), jnp.float32),        # h1
                pltpu.VMEM((BP, HP), jnp.float32),        # c1
            ]),
        compiler_params=pltpu.CompilerParams(
            dimension_semantics=("arbitrary",),           # sequential recurrence
            vmem_limit_bytes=64 * 1024 * 1024),
    )(emb_2d, kp["wih0"], kp["whh0"], kp["b0"], kp["w1cat"], kp["b1"])

    # Reorder only the SMALL hidden tensor (drop batch padding + go batch-major)
    # so the large logits tensor is produced directly in (B, T, V) order.
    h_bm = jnp.transpose(h1_tm.reshape(T, BP, HP)[:, :B], (1, 0, 2))
    h_bm = h_bm.reshape(B * T, HP)

    rows = B * T
    r_blk = _pick_row_block(rows)
    v_blk = _pick_vocab_block(VP)
    logits_2d = pl.pallas_call(
        fc_kernel,
        out_shape=jax.ShapeDtypeStruct((rows, VP), jnp.float32),
        grid_spec=pltpu.PrefetchScalarGridSpec(
            num_scalar_prefetch=0,
            grid=(rows // r_blk, VP // v_blk),
            in_specs=[
                pl.BlockSpec((r_blk, HP), lambda r, v: (r, 0)),
                pl.BlockSpec((HP, v_blk), lambda r, v: (0, v)),
                pl.BlockSpec((1, v_blk), lambda r, v: (0, v)),
            ],
            out_specs=pl.BlockSpec((r_blk, v_blk), lambda r, v: (r, v))),
        compiler_params=pltpu.CompilerParams(
            dimension_semantics=("parallel", "parallel"),
            vmem_limit_bytes=64 * 1024 * 1024),
    )(h_bm, kp["wfc"], kp["bfc"])

    return logits_2d.reshape(B, T, VP)[..., :vocab_size]


# ----------------------------------------------------------------------------
# Parameters & pure-JAX reference (PyTorch LSTM gate order i, f, g, o).
# ----------------------------------------------------------------------------
def make_params(key, vocab_size):
    ks = jax.random.split(key, 10)
    scale = 0.1
    return {
        "emb":  scale * jax.random.normal(ks[0], (vocab_size, E), jnp.float32),
        "wih0": scale * jax.random.normal(ks[1], (E, 4 * H), jnp.float32),
        "whh0": scale * jax.random.normal(ks[2], (H, 4 * H), jnp.float32),
        "b0":   scale * jax.random.normal(ks[3], (1, 4 * H), jnp.float32),
        "wih1": scale * jax.random.normal(ks[4], (H, 4 * H), jnp.float32),
        "whh1": scale * jax.random.normal(ks[5], (H, 4 * H), jnp.float32),
        "b1":   scale * jax.random.normal(ks[6], (1, 4 * H), jnp.float32),
        "wfc":  scale * jax.random.normal(ks[7], (H, vocab_size), jnp.float32),
        "bfc":  scale * jax.random.normal(ks[8], (1, vocab_size), jnp.float32),
    }


def reference_forward(x, params):
    emb = jnp.take(params["emb"], x, axis=0)   # (B, T, E)
    B, T, _ = emb.shape

    def cell(x_t, h, c, wih, whh, b):
        gates = x_t @ wih + h @ whh + b
        i = jax.nn.sigmoid(gates[:, 0 * H:1 * H])
        f = jax.nn.sigmoid(gates[:, 1 * H:2 * H])
        g = jnp.tanh(gates[:, 2 * H:3 * H])
        o = jax.nn.sigmoid(gates[:, 3 * H:4 * H])
        c_new = f * c + i * g
        return o * jnp.tanh(c_new), c_new

    def scan_fn(carry, x_t):
        h0, c0, h1, c1 = carry
        h0, c0 = cell(x_t, h0, c0, params["wih0"], params["whh0"], params["b0"])
        h1, c1 = cell(h0, h1, c1, params["wih1"], params["whh1"], params["b1"])
        logits_t = h1 @ params["wfc"] + params["bfc"]
        return (h0, c0, h1, c1), logits_t

    init = tuple(jnp.zeros((B, H), jnp.float32) for _ in range(4))
    _, out_tm = lax.scan(scan_fn, init, jnp.transpose(emb, (1, 0, 2)))
    return jnp.transpose(out_tm, (1, 0, 2))    # (B, T, V)


if __name__ == "__main__":
    vocab_size = 32
    B, T = 2, 16

    key = jax.random.PRNGKey(0)
    k_param, k_x = jax.random.split(key)
    params = make_params(k_param, vocab_size)
    x = jax.random.randint(k_x, (B, T), 0, vocab_size, dtype=jnp.int32)

    kp = pad_params(params)                    # one-time lane-aligned padding
    fwd = jax.jit(text_generator_forward, static_argnames=("vocab_size",))
    logits = jax.block_until_ready(fwd(x, kp, vocab_size=vocab_size))
    assert logits.shape == (B, T, vocab_size), logits.shape

    ref = jax.block_until_ready(reference_forward(x, params))
    max_err = float(jnp.max(jnp.abs(logits - ref)))
    assert jnp.allclose(logits, ref, atol=1e-3, rtol=1e-3), max_err

    print("KERNEL_OK")
</pallas_src>

<mosaic_0001>
module attributes {stable_mosaic.version = 11 : i64} {
  func.func @fc_kernel(%arg0: i32, %arg1: i32, %arg2: memref<32x128xf32, #tpu.memory_space<vmem>>, %arg3: memref<128x128xf32, #tpu.memory_space<vmem>>, %arg4: memref<1x128xf32, #tpu.memory_space<vmem>>, %arg5: memref<32x128xf32, #tpu.memory_space<vmem>>) attributes {dimension_semantics = [#tpu.dimension_semantics<parallel>, #tpu.dimension_semantics<parallel>], iteration_bounds = array<i64: 1, 1>, scalar_prefetch = 0 : i64, scratch_operands = 0 : i64, tpu.core_type = #tpu.core_type<tc>, window_params = [{transform_indices = @transform_0, window_bounds = array<i64: 32, 128>}, {transform_indices = @transform_1, window_bounds = array<i64: 128, 128>}, {transform_indices = @transform_2, window_bounds = array<i64: 1, 128>}, {transform_indices = @transform_3, window_bounds = array<i64: 32, 128>}]} {
    %c0 = arith.constant 0 : index
    %c0_0 = arith.constant 0 : index
    %0 = vector.load %arg2[%c0, %c0_0] : memref<32x128xf32, #tpu.memory_space<vmem>>, vector<32x128xf32>
    %c0_1 = arith.constant 0 : index
    %c0_2 = arith.constant 0 : index
    %1 = vector.load %arg3[%c0_1, %c0_2] : memref<128x128xf32, #tpu.memory_space<vmem>>, vector<128x128xf32>
    %cst = arith.constant dense<0.000000e+00> : vector<32x128xf32>
    %2 = tpu.matmul %0, %1, %cst {dimension_numbers = #tpu.dot_dimension_numbers<[1], [0], [0], [1], [0, 0, 1, 1], [], []>} : vector<32x128xf32>, vector<128x128xf32>, vector<32x128xf32> -> vector<32x128xf32>
    %c0_3 = arith.constant 0 : index
    %c0_4 = arith.constant 0 : index
    %3 = vector.load %arg4[%c0_3, %c0_4] : memref<1x128xf32, #tpu.memory_space<vmem>>, vector<1x128xf32>
    %4 = vector.broadcast %3 : vector<1x128xf32> to vector<32x128xf32>
    %5 = arith.addf %2, %4 : vector<32x128xf32>
    %c0_5 = arith.constant 0 : index
    %c0_6 = arith.constant 0 : index
    %6 = vector.load %arg5[%c0_5, %c0_6] : memref<32x128xf32, #tpu.memory_space<vmem>>, vector<32x128xf32>
    tpu.vector_store %arg5[%c0_5, %c0_6], %5 {strides = array<i32>} : memref<32x128xf32, #tpu.memory_space<vmem>>, vector<32x128xf32>,
    return
  }
  func.func @transform_0(%arg0: i32, %arg1: i32) -> (i32, i32) {
    %c0_i32 = arith.constant 0 : i32
    %c0_i32_0 = arith.constant 0 : i32
    return %arg0, %c0_i32 : i32, i32
  }
  func.func @transform_1(%arg0: i32, %arg1: i32) -> (i32, i32) {
    %c0_i32 = arith.constant 0 : i32
    %c0_i32_0 = arith.constant 0 : i32
    return %c0_i32, %arg1 : i32, i32
  }
  func.func @transform_2(%arg0: i32, %arg1: i32) -> (i32, i32) {
    %c0_i32 = arith.constant 0 : i32
    %c0_i32_0 = arith.constant 0 : i32
    return %c0_i32, %arg1 : i32, i32
  }
  func.func @transform_3(%arg0: i32, %arg1: i32) -> (i32, i32) {
    %c0_i32 = arith.constant 0 : i32
    return %arg0, %arg1 : i32, i32
  }
}

module attributes {stable_mosaic.version = 11 : i64} {
  func.func @lstm_recurrence_kernel(%arg0: i32, %arg1: memref<128x256xf32, #tpu.memory_space<vmem>>, %arg2: memref<256x512xf32, #tpu.memory_space<vmem>>, %arg3: memref<128x512xf32, #tpu.memory_space<vmem>>, %arg4: memref<1x512xf32, #tpu.memory_space<vmem>>, %arg5: memref<256x512xf32, #tpu.memory_space<vmem>>, %arg6: memref<1x512xf32, #tpu.memory_space<vmem>>, %arg7: memref<128x128xf32, #tpu.memory_space<vmem>>, %arg8: memref<128x512xf32, #tpu.memory_space<vmem>>, %arg9: memref<8x128xf32, #tpu.memory_space<vmem>>, %arg10: memref<8x128xf32, #tpu.memory_space<vmem>>, %arg11: memref<8x128xf32, #tpu.memory_space<vmem>>, %arg12: memref<8x128xf32, #tpu.memory_space<vmem>>) attributes {dimension_semantics = [#tpu.dimension_semantics<arbitrary>], iteration_bounds = array<i64: 1>, scalar_prefetch = 0 : i64, scratch_operands = 5 : i64, tpu.core_type = #tpu.core_type<tc>, window_params = [{transform_indices = @transform_0, window_bounds = array<i64: 128, 256>}, {pipeline_mode = #tpu.pipeline_mode<synchronous>, transform_indices = @transform_1, window_bounds = array<i64: 256, 512>}, {pipeline_mode = #tpu.pipeline_mode<synchronous>, transform_indices = @transform_2, window_bounds = array<i64: 128, 512>}, {pipeline_mode = #tpu.pipeline_mode<synchronous>, transform_indices = @transform_3, window_bounds = array<i64: 1, 512>}, {pipeline_mode = #tpu.pipeline_mode<synchronous>, transform_indices = @transform_4, window_bounds = array<i64: 256, 512>}, {pipeline_mode = #tpu.pipeline_mode<synchronous>, transform_indices = @transform_5, window_bounds = array<i64: 1, 512>}, {transform_indices = @transform_6, window_bounds = array<i64: 128, 128>}]} {
    %c0_i32 = arith.constant 0 : i32
    %0 = arith.cmpi eq, %arg0, %c0_i32 : i32
    %1 = arith.extui %0 : i1 to i32
    %c0_i32_0 = arith.constant 0 : i32
    %2 = arith.cmpi ne, %1, %c0_i32_0 : i32
    scf.if %2 {
      %cst_12 = arith.constant 0.000000e+00 : f32
      %14 = vector.broadcast %cst_12 : f32 to vector<8x128xf32>
      %c0_13 = arith.constant 0 : index
      %c0_14 = arith.constant 0 : index
      %15 = vector.load %arg9[%c0_13, %c0_14] : memref<8x128xf32, #tpu.memory_space<vmem>>, vector<8x128xf32>
      tpu.vector_store %arg9[%c0_13, %c0_14], %14 {strides = array<i32>} : memref<8x128xf32, #tpu.memory_space<vmem>>, vector<8x128xf32>,
      %cst_15 = arith.constant 0.000000e+00 : f32
      %16 = vector.broadcast %cst_15 : f32 to vector<8x128xf32>
      %c0_16 = arith.constant 0 : index
      %c0_17 = arith.constant 0 : index
      %17 = vector.load %arg10[%c0_16, %c0_17] : memref<8x128xf32, #tpu.memory_space<vmem>>, vector<8x128xf32>
      tpu.vector_store %arg10[%c0_16, %c0_17], %16 {strides = array<i32>} : memref<8x128xf32, #tpu.memory_space<vmem>>, vector<8x128xf32>,
      %cst_18 = arith.constant 0.000000e+00 : f32
      %18 = vector.broadcast %cst_18 : f32 to vector<8x128xf32>
      %c0_19 = arith.constant 0 : index
      %c0_20 = arith.constant 0 : index
      %19 = vector.load %arg11[%c0_19, %c0_20] : memref<8x128xf32, #tpu.memory_space<vmem>>, vector<8x128xf32>
      tpu.vector_store %arg11[%c0_19, %c0_20], %18 {strides = array<i32>} : memref<8x128xf32, #tpu.memory_space<vmem>>, vector<8x128xf32>,
      %cst_21 = arith.constant 0.000000e+00 : f32
      %20 = vector.broadcast %cst_21 : f32 to vector<8x128xf32>
      %c0_22 = arith.constant 0 : index
      %c0_23 = arith.constant 0 : index
      %21 = vector.load %arg12[%c0_22, %c0_23] : memref<8x128xf32, #tpu.memory_space<vmem>>, vector<8x128xf32>
      tpu.vector_store %arg12[%c0_22, %c0_23], %20 {strides = array<i32>} : memref<8x128xf32, #tpu.memory_space<vmem>>, vector<8x128xf32>,
    } else {
    }
    %c0 = arith.constant 0 : index
    %c0_1 = arith.constant 0 : index
    %3 = vector.load %arg1[%c0, %c0_1] : memref<128x256xf32, #tpu.memory_space<vmem>>, vector<128x256xf32>
    %c0_2 = arith.constant 0 : index
    %c0_3 = arith.constant 0 : index
    %4 = vector.load %arg2[%c0_2, %c0_3] : memref<256x512xf32, #tpu.memory_space<vmem>>, vector<256x512xf32>
    %cst = arith.constant dense<0.000000e+00> : vector<128x512xf32>
    %5 = tpu.matmul %3, %4, %cst {dimension_numbers = #tpu.dot_dimension_numbers<[1], [0], [0], [1], [0, 0, 1, 1], [], []>} : vector<128x256xf32>, vector<256x512xf32>, vector<128x512xf32> -> vector<128x512xf32>
    %c0_4 = arith.constant 0 : index
    %c0_5 = arith.constant 0 : index
    %6 = vector.load %arg4[%c0_4, %c0_5] : memref<1x512xf32, #tpu.memory_space<vmem>>, vector<1x512xf32>
    %7 = vector.broadcast %6 : vector<1x512xf32> to vector<128x512xf32>
    %8 = arith.addf %5, %7 : vector<128x512xf32>
    %c0_6 = arith.constant 0 : index
    %c0_7 = arith.constant 0 : index
    %9 = vector.load %arg8[%c0_6, %c0_7] : memref<128x512xf32, #tpu.memory_space<vmem>>, vector<128x512xf32>
    tpu.vector_store %arg8[%c0_6, %c0_7], %8 {strides = array<i32>} : memref<128x512xf32, #tpu.memory_space<vmem>>, vector<128x512xf32>,
    %c0_8 = arith.constant 0 : index
    %c0_9 = arith.constant 0 : index
    %10 = vector.load %arg6[%c0_8, %c0_9] : memref<1x512xf32, #tpu.memory_space<vmem>>, vector<1x512xf32>
    %11 = vector.shape_cast %10 : vector<1x512xf32> to vector<1x512xf32>
    %12 = vector.broadcast %11 : vector<1x512xf32> to vector<8x512xf32>
    %c0_i32_10 = arith.constant 0 : i32
    %c2_i32 = arith.constant 2 : i32
    %13 = arith.addi %c0_i32_10, %c2_i32 : i32
    %c1_i32 = arith.constant 1 : i32
    scf.for %arg13 = %c0_i32_10 to %13 step %c1_i32  : i32 {
      %c8_i32 = arith.constant 8 : i32
      %14 = arith.muli %arg13, %c8_i32 : i32
      %c0_i32_12 = arith.constant 0 : i32
      %15 = arith.addi %14, %c0_i32_12 : i32
      %c8_i32_13 = arith.constant 8 : i32
      %16 = arith.muli %15, %c8_i32_13 : i32
      %17 = tpu.assume_multiple %16, 8 : i32
      %18 = arith.index_cast %17 : i32 to index
      %c0_14 = arith.constant 0 : index
      %19 = vector.load %arg8[%18, %c0_14] : memref<128x512xf32, #tpu.memory_space<vmem>>, vector<8x512xf32>
      %c0_15 = arith.constant 0 : index
      %c0_16 = arith.constant 0 : index
      %20 = vector.load %arg9[%c0_15, %c0_16] : memref<8x128xf32, #tpu.memory_space<vmem>>, vector<8x128xf32>
      %c0_17 = arith.constant 0 : index
      %c0_18 = arith.constant 0 : index
      %21 = vector.load %arg3[%c0_17, %c0_18] : memref<128x512xf32, #tpu.memory_space<vmem>>, vector<128x512xf32>
      %cst_19 = arith.constant dense<0.000000e+00> : vector<8x512xf32>
      %22 = tpu.matmul %20, %21, %cst_19 {dimension_numbers = #tpu.dot_dimension_numbers<[1], [0], [0], [1], [0, 0, 1, 1], [], []>} : vector<8x128xf32>, vector<128x512xf32>, vector<8x512xf32> -> vector<8x512xf32>
      %23 = arith.addf %19, %22 : vector<8x512xf32>
      %c0_20 = arith.constant 0 : index
      %c0_21 = arith.constant 0 : index
      %24 = vector.load %arg10[%c0_20, %c0_21] : memref<8x128xf32, #tpu.memory_space<vmem>>, vector<8x128xf32>
      %25 = vector.extract_strided_slice %23 {offsets = [0, 0], sizes = [8, 128], strides = [1, 1]} : vector<8x512xf32> to vector<8x128xf32>
      %cst_22 = arith.constant 5.000000e-01 : f32
      %26 = vector.broadcast %cst_22 : f32 to vector<8x128xf32>
      %27 = arith.mulf %26, %25 : vector<8x128xf32>
      %28 = math.tanh %27 : vector<8x128xf32>
      %cst_23 = arith.constant 5.000000e-01 : f32
      %29 = vector.broadcast %cst_23 : f32 to vector<8x128xf32>
      %30 = arith.mulf %29, %28 : vector<8x128xf32>
      %cst_24 = arith.constant 5.000000e-01 : f32
      %31 = vector.broadcast %cst_24 : f32 to vector<8x128xf32>
      %32 = arith.addf %30, %31 : vector<8x128xf32>
      %33 = vector.extract_strided_slice %23 {offsets = [0, 128], sizes = [8, 128], strides = [1, 1]} : vector<8x512xf32> to vector<8x128xf32>
      %cst_25 = arith.constant 5.000000e-01 : f32
      %34 = vector.broadcast %cst_25 : f32 to vector<8x128xf32>
      %35 = arith.mulf %34, %33 : vector<8x128xf32>
      %36 = math.tanh %35 : vector<8x128xf32>
      %cst_26 = arith.constant 5.000000e-01 : f32
      %37 = vector.broadcast %cst_26 : f32 to vector<8x128xf32>
      %38 = arith.mulf %37, %36 : vector<8x128xf32>
      %cst_27 = arith.constant 5.000000e-01 : f32
      %39 = vector.broadcast %cst_27 : f32 to vector<8x128xf32>
      %40 = arith.addf %38, %39 : vector<8x128xf32>
      %41 = vector.extract_strided_slice %23 {offsets = [0, 256], sizes = [8, 128], strides = [1, 1]} : vector<8x512xf32> to vector<8x128xf32>
      %42 = math.tanh %41 : vector<8x128xf32>
      %43 = vector.extract_strided_slice %23 {offsets = [0, 384], sizes = [8, 128], strides = [1, 1]} : vector<8x512xf32> to vector<8x128xf32>
      %cst_28 = arith.constant 5.000000e-01 : f32
      %44 = vector.broadcast %cst_28 : f32 to vector<8x128xf32>
      %45 = arith.mulf %44, %43 : vector<8x128xf32>
      %46 = math.tanh %45 : vector<8x128xf32>
      %cst_29 = arith.constant 5.000000e-01 : f32
      %47 = vector.broadcast %cst_29 : f32 to vector<8x128xf32>
      %48 = arith.mulf %47, %46 : vector<8x128xf32>
      %cst_30 = arith.constant 5.000000e-01 : f32
      %49 = vector.broadcast %cst_30 : f32 to vector<8x128xf32>
      %50 = arith.addf %48, %49 : vector<8x128xf32>
      %51 = arith.mulf %40, %24 : vector<8x128xf32>
      %52 = arith.mulf %32, %42 : vector<8x128xf32>
      %53 = arith.addf %51, %52 : vector<8x128xf32>
      %54 = math.tanh %53 : vector<8x128xf32>
      %55 = arith.mulf %50, %54 : vector<8x128xf32>
      %c0_31 = arith.constant 0 : index
      %c0_32 = arith.constant 0 : index
      %56 = vector.load %arg9[%c0_31, %c0_32] : memref<8x128xf32, #tpu.memory_space<vmem>>, vector<8x128xf32>
      tpu.vector_store %arg9[%c0_31, %c0_32], %55 {strides = array<i32>} : memref<8x128xf32, #tpu.memory_space<vmem>>, vector<8x128xf32>,
      %c0_33 = arith.constant 0 : index
      %c0_34 = arith.constant 0 : index
      %57 = vector.load %arg10[%c0_33, %c0_34] : memref<8x128xf32, #tpu.memory_space<vmem>>, vector<8x128xf32>
      tpu.vector_store %arg10[%c0_33, %c0_34], %53 {strides = array<i32>} : memref<8x128xf32, #tpu.memory_space<vmem>>, vector<8x128xf32>,
      %c0_35 = arith.constant 0 : index
      %c0_36 = arith.constant 0 : index
      %58 = vector.load %arg11[%c0_35, %c0_36] : memref<8x128xf32, #tpu.memory_space<vmem>>, vector<8x128xf32>
      %59 = tpu.concatenate %55, %58 in 1 : vector<8x128xf32>, vector<8x128xf32> -> vector<8x256xf32>
      %c0_37 = arith.constant 0 : index
      %c0_38 = arith.constant 0 : index
      %60 = vector.load %arg5[%c0_37, %c0_38] : memref<256x512xf32, #tpu.memory_space<vmem>>, vector<256x512xf32>
      %cst_39 = arith.constant dense<0.000000e+00> : vector<8x512xf32>
      %61 = tpu.matmul %59, %60, %cst_39 {dimension_numbers = #tpu.dot_dimension_numbers<[1], [0], [0], [1], [0, 0, 1, 1], [], []>} : vector<8x256xf32>, vector<256x512xf32>, vector<8x512xf32> -> vector<8x512xf32>
      %62 = arith.addf %61, %12 : vector<8x512xf32>
      %c0_40 = arith.constant 0 : index
      %c0_41 = arith.constant 0 : index
      %63 = vector.load %arg12[%c0_40, %c0_41] : memref<8x128xf32, #tpu.memory_space<vmem>>, vector<8x128xf32>
      %64 = vector.extract_strided_slice %62 {offsets = [0, 0], sizes = [8, 128], strides = [1, 1]} : vector<8x512xf32> to vector<8x128xf32>
      %cst_42 = arith.constant 5.000000e-01 : f32
      %65 = vector.broadcast %cst_42 : f32 to vector<8x128xf32>
      %66 = arith.mulf %65, %64 : vector<8x128xf32>
      %67 = math.tanh %66 : vector<8x128xf32>
      %cst_43 = arith.constant 5.000000e-01 : f32
      %68 = vector.broadcast %cst_43 : f32 to vector<8x128xf32>
      %69 = arith.mulf %68, %67 : vector<8x128xf32>
      %cst_44 = arith.constant 5.000000e-01 : f32
      %70 = vector.broadcast %cst_44 : f32 to vector<8x128xf32>
      %71 = arith.addf %69, %70 : vector<8x128xf32>
      %72 = vector.extract_strided_slice %62 {offsets = [0, 128], sizes = [8, 128], strides = [1, 1]} : vector<8x512xf32> to vector<8x128xf32>
      %cst_45 = arith.constant 5.000000e-01 : f32
      %73 = vector.broadcast %cst_45 : f32 to vector<8x128xf32>
      %74 = arith.mulf %73, %72 : vector<8x128xf32>
      %75 = math.tanh %74 : vector<8x128xf32>
      %cst_46 = arith.constant 5.000000e-01 : f32
      %76 = vector.broadcast %cst_46 : f32 to vector<8x128xf32>
      %77 = arith.mulf %76, %75 : vector<8x128xf32>
      %cst_47 = arith.constant 5.000000e-01 : f32
      %78 = vector.broadcast %cst_47 : f32 to vector<8x128xf32>
      %79 = arith.addf %77, %78 : vector<8x128xf32>
      %80 = vector.extract_strided_slice %62 {offsets = [0, 256], sizes = [8, 128], strides = [1, 1]} : vector<8x512xf32> to vector<8x128xf32>
      %81 = math.tanh %80 : vector<8x128xf32>
      %82 = vector.extract_strided_slice %62 {offsets = [0, 384], sizes = [8, 128], strides = [1, 1]} : vector<8x512xf32> to vector<8x128xf32>
      %cst_48 = arith.constant 5.000000e-01 : f32
      %83 = vector.broadcast %cst_48 : f32 to vector<8x128xf32>
      %84 = arith.mulf %83, %82 : vector<8x128xf32>
      %85 = math.tanh %84 : vector<8x128xf32>
      %cst_49 = arith.constant 5.000000e-01 : f32
      %86 = vector.broadcast %cst_49 : f32 to vector<8x128xf32>
      %87 = arith.mulf %86, %85 : vector<8x128xf32>
      %cst_50 = arith.constant 5.000000e-01 : f32
      %88 = vector.broadcast %cst_50 : f32 to vector<8x128xf32>
      %89 = arith.addf %87, %88 : vector<8x128xf32>
      %90 = arith.mulf %79, %63 : vector<8x128xf32>
      %91 = arith.mulf %71, %81 : vector<8x128xf32>
      %92 = arith.addf %90, %91 : vector<8x128xf32>
      %93 = math.tanh %92 : vector<8x128xf32>
      %94 = arith.mulf %89, %93 : vector<8x128xf32>
      %c0_51 = arith.constant 0 : index
      %c0_52 = arith.constant 0 : index
      %95 = vector.load %arg11[%c0_51, %c0_52] : memref<8x128xf32, #tpu.memory_space<vmem>>, vector<8x128xf32>
      tpu.vector_store %arg11[%c0_51, %c0_52], %94 {strides = array<i32>} : memref<8x128xf32, #tpu.memory_space<vmem>>, vector<8x128xf32>,
      %c0_53 = arith.constant 0 : index
      %c0_54 = arith.constant 0 : index
      %96 = vector.load %arg12[%c0_53, %c0_54] : memref<8x128xf32, #tpu.memory_space<vmem>>, vector<8x128xf32>
      tpu.vector_store %arg12[%c0_53, %c0_54], %92 {strides = array<i32>} : memref<8x128xf32, #tpu.memory_space<vmem>>, vector<8x128xf32>,
      %97 = arith.index_cast %17 : i32 to index
      %c0_55 = arith.constant 0 : index
      %98 = vector.load %arg7[%97, %c0_55] : memref<128x128xf32, #tpu.memory_space<vmem>>, vector<8x128xf32>
      tpu.vector_store %arg7[%97, %c0_55], %94 {strides = array<i32>} : memref<128x128xf32, #tpu.memory_space<vmem>>, vector<8x128xf32>,
      %c1_i32_56 = arith.constant 1 : i32
      %99 = arith.addi %14, %c1_i32_56 : i32
      %c8_i32_57 = arith.constant 8 : i32
      %100 = arith.muli %99, %c8_i32_57 : i32
      %101 = tpu.assume_multiple %100, 8 : i32
      %102 = arith.index_cast %101 : i32 to index
      %c0_58 = arith.constant 0 : index
      %103 = vector.load %arg8[%102, %c0_58] : memref<128x512xf32, #tpu.memory_space<vmem>>, vector<8x512xf32>
      %c0_59 = arith.constant 0 : index
      %c0_60 = arith.constant 0 : index
      %104 = vector.load %arg9[%c0_59, %c0_60] : memref<8x128xf32, #tpu.memory_space<vmem>>, vector<8x128xf32>
      %c0_61 = arith.constant 0 : index
      %c0_62 = arith.constant 0 : index
      %105 = vector.load %arg3[%c0_61, %c0_62] : memref<128x512xf32, #tpu.memory_space<vmem>>, vector<128x512xf32>
      %cst_63 = arith.constant dense<0.000000e+00> : vector<8x512xf32>
      %106 = tpu.matmul %104, %105, %cst_63 {dimension_numbers = #tpu.dot_dimension_numbers<[1], [0], [0], [1], [0, 0, 1, 1], [], []>} : vector<8x128xf32>, vector<128x512xf32>, vector<8x512xf32> -> vector<8x512xf32>
      %107 = arith.addf %103, %106 : vector<8x512xf32>
      %c0_64 = arith.constant 0 : index
      %c0_65 = arith.constant 0 : index
      %108 = vector.load %arg10[%c0_64, %c0_65] : memref<8x128xf32, #tpu.memory_space<vmem>>, vector<8x128xf32>
      %109 = vector.extract_strided_slice %107 {offsets = [0, 0], sizes = [8, 128], strides = [1, 1]} : vector<8x512xf32> to vector<8x128xf32>
      %cst_66 = arith.constant 5.000000e-01 : f32
      %110 = vector.broadcast %cst_66 : f32 to vector<8x128xf32>
      %111 = arith.mulf %110, %109 : vector<8x128xf32>
      %112 = math.tanh %111 : vector<8x128xf32>
      %cst_67 = arith.constant 5.000000e-01 : f32
      %113 = vector.broadcast %cst_67 : f32 to vector<8x128xf32>
      %114 = arith.mulf %113, %112 : vector<8x128xf32>
      %cst_68 = arith.constant 5.000000e-01 : f32
      %115 = vector.broadcast %cst_68 : f32 to vector<8x128xf32>
      %116 = arith.addf %114, %115 : vector<8x128xf32>
      %117 = vector.extract_strided_slice %107 {offsets = [0, 128], sizes = [8, 128], strides = [1, 1]} : vector<8x512xf32> to vector<8x128xf32>
      %cst_69 = arith.constant 5.000000e-01 : f32
      %118 = vector.broadcast %cst_69 : f32 to vector<8x128xf32>
      %119 = arith.mulf %118, %117 : vector<8x128xf32>
      %120 = math.tanh %119 : vector<8x128xf32>
      %cst_70 = arith.constant 5.000000e-01 : f32
      %121 = vector.broadcast %cst_70 : f32 to vector<8x128xf32>
      %122 = arith.mulf %121, %120 : vector<8x128xf32>
      %cst_71 = arith.constant 5.000000e-01 : f32
      %123 = vector.broadcast %cst_71 : f32 to vector<8x128xf32>
      %124 = arith.addf %122, %123 : vector<8x128xf32>
      %125 = vector.extract_strided_slice %107 {offsets = [0, 256], sizes = [8, 128], strides = [1, 1]} : vector<8x512xf32> to vector<8x128xf32>
      %126 = math.tanh %125 : vector<8x128xf32>
      %127 = vector.extract_strided_slice %107 {offsets = [0, 384], sizes = [8, 128], strides = [1, 1]} : vector<8x512xf32> to vector<8x128xf32>
      %cst_72 = arith.constant 5.000000e-01 : f32
      %128 = vector.broadcast %cst_72 : f32 to vector<8x128xf32>
      %129 = arith.mulf %128, %127 : vector<8x128xf32>
      %130 = math.tanh %129 : vector<8x128xf32>
      %cst_73 = arith.constant 5.000000e-01 : f32
      %131 = vector.broadcast %cst_73 : f32 to vector<8x128xf32>
      %132 = arith.mulf %131, %130 : vector<8x128xf32>
      %cst_74 = arith.constant 5.000000e-01 : f32
      %133 = vector.broadcast %cst_74 : f32 to vector<8x128xf32>
      %134 = arith.addf %132, %133 : vector<8x128xf32>
      %135 = arith.mulf %124, %108 : vector<8x128xf32>
      %136 = arith.mulf %116, %126 : vector<8x128xf32>
      %137 = arith.addf %135, %136 : vector<8x128xf32>
      %138 = math.tanh %137 : vector<8x128xf32>
      %139 = arith.mulf %134, %138 : vector<8x128xf32>
      %c0_75 = arith.constant 0 : index
      %c0_76 = arith.constant 0 : index
      %140 = vector.load %arg9[%c0_75, %c0_76] : memref<8x128xf32, #tpu.memory_space<vmem>>, vector<8x128xf32>
      tpu.vector_store %arg9[%c0_75, %c0_76], %139 {strides = array<i32>} : memref<8x128xf32, #tpu.memory_space<vmem>>, vector<8x128xf32>,
      %c0_77 = arith.constant 0 : index
      %c0_78 = arith.constant 0 : index
      %141 = vector.load %arg10[%c0_77, %c0_78] : memref<8x128xf32, #tpu.memory_space<vmem>>, vector<8x128xf32>
      tpu.vector_store %arg10[%c0_77, %c0_78], %137 {strides = array<i32>} : memref<8x128xf32, #tpu.memory_space<vmem>>, vector<8x128xf32>,
      %c0_79 = arith.constant 0 : index
      %c0_80 = arith.constant 0 : index
      %142 = vector.load %arg11[%c0_79, %c0_80] : memref<8x128xf32, #tpu.memory_space<vmem>>, vector<8x128xf32>
      %143 = tpu.concatenate %139, %142 in 1 : vector<8x128xf32>, vector<8x128xf32> -> vector<8x256xf32>
      %c0_81 = arith.constant 0 : index
      %c0_82 = arith.constant 0 : index
      %144 = vector.load %arg5[%c0_81, %c0_82] : memref<256x512xf32, #tpu.memory_space<vmem>>, vector<256x512xf32>
      %cst_83 = arith.constant dense<0.000000e+00> : vector<8x512xf32>
      %145 = tpu.matmul %143, %144, %cst_83 {dimension_numbers = #tpu.dot_dimension_numbers<[1], [0], [0], [1], [0, 0, 1, 1], [], []>} : vector<8x256xf32>, vector<256x512xf32>, vector<8x512xf32> -> vector<8x512xf32>
      %146 = arith.addf %145, %12 : vector<8x512xf32>
      %c0_84 = arith.constant 0 : index
      %c0_85 = arith.constant 0 : index
      %147 = vector.load %arg12[%c0_84, %c0_85] : memref<8x128xf32, #tpu.memory_space<vmem>>, vector<8x128xf32>
      %148 = vector.extract_strided_slice %146 {offsets = [0, 0], sizes = [8, 128], strides = [1, 1]} : vector<8x512xf32> to vector<8x128xf32>
      %cst_86 = arith.constant 5.000000e-01 : f32
      %149 = vector.broadcast %cst_86 : f32 to vector<8x128xf32>
      %150 = arith.mulf %149, %148 : vector<8x128xf32>
      %151 = math.tanh %150 : vector<8x128xf32>
      %cst_87 = arith.constant 5.000000e-01 : f32
      %152 = vector.broadcast %cst_87 : f32 to vector<8x128xf32>
      %153 = arith.mulf %152, %151 : vector<8x128xf32>
      %cst_88 = arith.constant 5.000000e-01 : f32
      %154 = vector.broadcast %cst_88 : f32 to vector<8x128xf32>
      %155 = arith.addf %153, %154 : vector<8x128xf32>
      %156 = vector.extract_strided_slice %146 {offsets = [0, 128], sizes = [8, 128], strides = [1, 1]} : vector<8x512xf32> to vector<8x128xf32>
      %cst_89 = arith.constant 5.000000e-01 : f32
      %157 = vector.broadcast %cst_89 : f32 to vector<8x128xf32>
      %158 = arith.mulf %157, %156 : vector<8x128xf32>
      %159 = math.tanh %158 : vector<8x128xf32>
      %cst_90 = arith.constant 5.000000e-01 : f32
      %160 = vector.broadcast %cst_90 : f32 to vector<8x128xf32>
      %161 = arith.mulf %160, %159 : vector<8x128xf32>
      %cst_91 = arith.constant 5.000000e-01 : f32
      %162 = vector.broadcast %cst_91 : f32 to vector<8x128xf32>
      %163 = arith.addf %161, %162 : vector<8x128xf32>
      %164 = vector.extract_strided_slice %146 {offsets = [0, 256], sizes = [8, 128], strides = [1, 1]} : vector<8x512xf32> to vector<8x128xf32>
      %165 = math.tanh %164 : vector<8x128xf32>
      %166 = vector.extract_strided_slice %146 {offsets = [0, 384], sizes = [8, 128], strides = [1, 1]} : vector<8x512xf32> to vector<8x128xf32>
      %cst_92 = arith.constant 5.000000e-01 : f32
      %167 = vector.broadcast %cst_92 : f32 to vector<8x128xf32>
      %168 = arith.mulf %167, %166 : vector<8x128xf32>
      %169 = math.tanh %168 : vector<8x128xf32>
      %cst_93 = arith.constant 5.000000e-01 : f32
      %170 = vector.broadcast %cst_93 : f32 to vector<8x128xf32>
      %171 = arith.mulf %170, %169 : vector<8x128xf32>
      %cst_94 = arith.constant 5.000000e-01 : f32
      %172 = vector.broadcast %cst_94 : f32 to vector<8x128xf32>
      %173 = arith.addf %171, %172 : vector<8x128xf32>
      %174 = arith.mulf %163, %147 : vector<8x128xf32>
      %175 = arith.mulf %155, %165 : vector<8x128xf32>
      %176 = arith.addf %174, %175 : vector<8x128xf32>
      %177 = math.tanh %176 : vector<8x128xf32>
      %178 = arith.mulf %173, %177 : vector<8x128xf32>
      %c0_95 = arith.constant 0 : index
      %c0_96 = arith.constant 0 : index
      %179 = vector.load %arg11[%c0_95, %c0_96] : memref<8x128xf32, #tpu.memory_space<vmem>>, vector<8x128xf32>
      tpu.vector_store %arg11[%c0_95, %c0_96], %178 {strides = array<i32>} : memref<8x128xf32, #tpu.memory_space<vmem>>, vector<8x128xf32>,
      %c0_97 = arith.constant 0 : index
      %c0_98 = arith.constant 0 : index
      %180 = vector.load %arg12[%c0_97, %c0_98] : memref<8x128xf32, #tpu.memory_space<vmem>>, vector<8x128xf32>
      tpu.vector_store %arg12[%c0_97, %c0_98], %176 {strides = array<i32>} : memref<8x128xf32, #tpu.memory_space<vmem>>, vector<8x128xf32>,
      %181 = arith.index_cast %101 : i32 to index
      %c0_99 = arith.constant 0 : index
      %182 = vector.load %arg7[%181, %c0_99] : memref<128x128xf32, #tpu.memory_space<vmem>>, vector<8x128xf32>
      tpu.vector_store %arg7[%181, %c0_99], %178 {strides = array<i32>} : memref<128x128xf32, #tpu.memory_space<vmem>>, vector<8x128xf32>,
      %c2_i32_100 = arith.constant 2 : i32
      %183 = arith.addi %14, %c2_i32_100 : i32
      %c8_i32_101 = arith.constant 8 : i32
      %184 = arith.muli %183, %c8_i32_101 : i32
      %185 = tpu.assume_multiple %184, 8 : i32
      %186 = arith.index_cast %185 : i32 to index
      %c0_102 = arith.constant 0 : index
      %187 = vector.load %arg8[%186, %c0_102] : memref<128x512xf32, #tpu.memory_space<vmem>>, vector<8x512xf32>
      %c0_103 = arith.constant 0 : index
      %c0_104 = arith.constant 0 : index
      %188 = vector.load %arg9[%c0_103, %c0_104] : memref<8x128xf32, #tpu.memory_space<vmem>>, vector<8x128xf32>
      %c0_105 = arith.constant 0 : index
      %c0_106 = arith.constant 0 : index
      %189 = vector.load %arg3[%c0_105, %c0_106] : memref<128x512xf32, #tpu.memory_space<vmem>>, vector<128x512xf32>
      %cst_107 = arith.constant dense<0.000000e+00> : vector<8x512xf32>
      %190 = tpu.matmul %188, %189, %cst_107 {dimension_numbers = #tpu.dot_dimension_numbers<[1], [0], [0], [1], [0, 0, 1, 1], [], []>} : vector<8x128xf32>, vector<128x512xf32>, vector<8x512xf32> -> vector<8x512xf32>
      %191 = arith.addf %187, %190 : vector<8x512xf32>
      %c0_108 = arith.constant 0 : index
      %c0_109 = arith.constant 0 : index
      %192 = vector.load %arg10[%c0_108, %c0_109] : memref<8x128xf32, #tpu.memory_space<vmem>>, vector<8x128xf32>
      %193 = vector.extract_strided_slice %191 {offsets = [0, 0], sizes = [8, 128], strides = [1, 1]} : vector<8x512xf32> to vector<8x128xf32>
      %cst_110 = arith.constant 5.000000e-01 : f32
      %194 = vector.broadcast %cst_110 : f32 to vector<8x128xf32>
      %195 = arith.mulf %194, %193 : vector<8x128xf32>
      %196 = math.tanh %195 : vector<8x128xf32>
      %cst_111 = arith.constant 5.000000e-01 : f32
      %197 = vector.broadcast %cst_111 : f32 to vector<8x128xf32>
      %198 = arith.mulf %197, %196 : vector<8x128xf32>
      %cst_112 = arith.constant 5.000000e-01 : f32
      %199 = vector.broadcast %cst_112 : f32 to vector<8x128xf32>
      %200 = arith.addf %198, %199 : vector<8x128xf32>
      %201 = vector.extract_strided_slice %191 {offsets = [0, 128], sizes = [8, 128], strides = [1, 1]} : vector<8x512xf32> to vector<8x128xf32>
      %cst_113 = arith.constant 5.000000e-01 : f32
      %202 = vector.broadcast %cst_113 : f32 to vector<8x128xf32>
      %203 = arith.mulf %202, %201 : vector<8x128xf32>
      %204 = math.tanh %203 : vector<8x128xf32>
      %cst_114 = arith.constant 5.000000e-01 : f32
      %205 = vector.broadcast %cst_114 : f32 to vector<8x128xf32>
      %206 = arith.mulf %205, %204 : vector<8x128xf32>
      %cst_115 = arith.constant 5.000000e-01 : f32
      %207 = vector.broadcast %cst_115 : f32 to vector<8x128xf32>
      %208 = arith.addf %206, %207 : vector<8x128xf32>
      %209 = vector.extract_strided_slice %191 {offsets = [0, 256], sizes = [8, 128], strides = [1, 1]} : vector<8x512xf32> to vector<8x128xf32>
      %210 = math.tanh %209 : vector<8x128xf32>
      %211 = vector.extract_strided_slice %191 {offsets = [0, 384], sizes = [8, 128], strides = [1, 1]} : vector<8x512xf32> to vector<8x128xf32>
      %cst_116 = arith.constant 5.000000e-01 : f32
      %212 = vector.broadcast %cst_116 : f32 to vector<8x128xf32>
      %213 = arith.mulf %212, %211 : vector<8x128xf32>
      %214 = math.tanh %213 : vector<8x128xf32>
      %cst_117 = arith.constant 5.000000e-01 : f32
      %215 = vector.broadcast %cst_117 : f32 to vector<8x128xf32>
      %216 = arith.mulf %215, %214 : vector<8x128xf32>
      %cst_118 = arith.constant 5.000000e-01 : f32
      %217 = vector.broadcast %cst_118 : f32 to vector<8x128xf32>
      %218 = arith.addf %216, %217 : vector<8x128xf32>
      %219 = arith.mulf %208, %192 : vector<8x128xf32>
      %220 = arith.mulf %200, %210 : vector<8x128xf32>
      %221 = arith.addf %219, %220 : vector<8x128xf32>
      %222 = math.tanh %221 : vector<8x128xf32>
      %223 = arith.mulf %218, %222 : vector<8x128xf32>
      %c0_119 = arith.constant 0 : index
      %c0_120 = arith.constant 0 : index
      %224 = vector.load %arg9[%c0_119, %c0_120] : memref<8x128xf32, #tpu.memory_space<vmem>>, vector<8x128xf32>
      tpu.vector_store %arg9[%c0_119, %c0_120], %223 {strides = array<i32>} : memref<8x128xf32, #tpu.memory_space<vmem>>, vector<8x128xf32>,
      %c0_121 = arith.constant 0 : index
      %c0_122 = arith.constant 0 : index
      %225 = vector.load %arg10[%c0_121, %c0_122] : memref<8x128xf32, #tpu.memory_space<vmem>>, vector<8x128xf32>
      tpu.vector_store %arg10[%c0_121, %c0_122], %221 {strides = array<i32>} : memref<8x128xf32, #tpu.memory_space<vmem>>, vector<8x128xf32>,
      %c0_123 = arith.constant 0 : index
      %c0_124 = arith.constant 0 : index
      %226 = vector.load %arg11[%c0_123, %c0_124] : memref<8x128xf32, #tpu.memory_space<vmem>>, vector<8x128xf32>
      %227 = tpu.concatenate %223, %226 in 1 : vector<8x128xf32>, vector<8x128xf32> -> vector<8x256xf32>
      %c0_125 = arith.constant 0 : index
      %c0_126 = arith.constant 0 : index
      %228 = vector.load %arg5[%c0_125, %c0_126] : memref<256x512xf32, #tpu.memory_space<vmem>>, vector<256x512xf32>
      %cst_127 = arith.constant dense<0.000000e+00> : vector<8x512xf32>
      %229 = tpu.matmul %227, %228, %cst_127 {dimension_numbers = #tpu.dot_dimension_numbers<[1], [0], [0], [1], [0, 0, 1, 1], [], []>} : vector<8x256xf32>, vector<256x512xf32>, vector<8x512xf32> -> vector<8x512xf32>
      %230 = arith.addf %229, %12 : vector<8x512xf32>
      %c0_128 = arith.constant 0 : index
      %c0_129 = arith.constant 0 : index
      %231 = vector.load %arg12[%c0_128, %c0_129] : memref<8x128xf32, #tpu.memory_space<vmem>>, vector<8x128xf32>
      %232 = vector.extract_strided_slice %230 {offsets = [0, 0], sizes = [8, 128], strides = [1, 1]} : vector<8x512xf32> to vector<8x128xf32>
      %cst_130 = arith.constant 5.000000e-01 : f32
      %233 = vector.broadcast %cst_130 : f32 to vector<8x128xf32>
      %234 = arith.mulf %233, %232 : vector<8x128xf32>
      %235 = math.tanh %234 : vector<8x128xf32>
      %cst_131 = arith.constant 5.000000e-01 : f32
      %236 = vector.broadcast %cst_131 : f32 to vector<8x128xf32>
      %237 = arith.mulf %236, %235 : vector<8x128xf32>
      %cst_132 = arith.constant 5.000000e-01 : f32
      %238 = vector.broadcast %cst_132 : f32 to vector<8x128xf32>
      %239 = arith.addf %237, %238 : vector<8x128xf32>
      %240 = vector.extract_strided_slice %230 {offsets = [0, 128], sizes = [8, 128], strides = [1, 1]} : vector<8x512xf32> to vector<8x128xf32>
      %cst_133 = arith.constant 5.000000e-01 : f32
      %241 = vector.broadcast %cst_133 : f32 to vector<8x128xf32>
      %242 = arith.mulf %241, %240 : vector<8x128xf32>
      %243 = math.tanh %242 : vector<8x128xf32>
      %cst_134 = arith.constant 5.000000e-01 : f32
      %244 = vector.broadcast %cst_134 : f32 to vector<8x128xf32>
      %245 = arith.mulf %244, %243 : vector<8x128xf32>
      %cst_135 = arith.constant 5.000000e-01 : f32
      %246 = vector.broadcast %cst_135 : f32 to vector<8x128xf32>
      %247 = arith.addf %245, %246 : vector<8x128xf32>
      %248 = vector.extract_strided_slice %230 {offsets = [0, 256], sizes = [8, 128], strides = [1, 1]} : vector<8x512xf32> to vector<8x128xf32>
      %249 = math.tanh %248 : vector<8x128xf32>
      %250 = vector.extract_strided_slice %230 {offsets = [0, 384], sizes = [8, 128], strides = [1, 1]} : vector<8x512xf32> to vector<8x128xf32>
      %cst_136 = arith.constant 5.000000e-01 : f32
      %251 = vector.broadcast %cst_136 : f32 to vector<8x128xf32>
      %252 = arith.mulf %251, %250 : vector<8x128xf32>
      %253 = math.tanh %252 : vector<8x128xf32>
      %cst_137 = arith.constant 5.000000e-01 : f32
      %254 = vector.broadcast %cst_137 : f32 to vector<8x128xf32>
      %255 = arith.mulf %254, %253 : vector<8x128xf32>
      %cst_138 = arith.constant 5.000000e-01 : f32
      %256 = vector.broadcast %cst_138 : f32 to vector<8x128xf32>
      %257 = arith.addf %255, %256 : vector<8x128xf32>
      %258 = arith.mulf %247, %231 : vector<8x128xf32>
      %259 = arith.mulf %239, %249 : vector<8x128xf32>
      %260 = arith.addf %258, %259 : vector<8x128xf32>
      %261 = math.tanh %260 : vector<8x128xf32>
      %262 = arith.mulf %257, %261 : vector<8x128xf32>
      %c0_139 = arith.constant 0 : index
      %c0_140 = arith.constant 0 : index
      %263 = vector.load %arg11[%c0_139, %c0_140] : memref<8x128xf32, #tpu.memory_space<vmem>>, vector<8x128xf32>
      tpu.vector_store %arg11[%c0_139, %c0_140], %262 {strides = array<i32>} : memref<8x128xf32, #tpu.memory_space<vmem>>, vector<8x128xf32>,
      %c0_141 = arith.constant 0 : index
      %c0_142 = arith.constant 0 : index
      %264 = vector.load %arg12[%c0_141, %c0_142] : memref<8x128xf32, #tpu.memory_space<vmem>>, vector<8x128xf32>
      tpu.vector_store %arg12[%c0_141, %c0_142], %260 {strides = array<i32>} : memref<8x128xf32, #tpu.memory_space<vmem>>, vector<8x128xf32>,
      %265 = arith.index_cast %185 : i32 to index
      %c0_143 = arith.constant 0 : index
      %266 = vector.load %arg7[%265, %c0_143] : memref<128x128xf32, #tpu.memory_space<vmem>>, vector<8x128xf32>
      tpu.vector_store %arg7[%265, %c0_143], %262 {strides = array<i32>} : memref<128x128xf32, #tpu.memory_space<vmem>>, vector<8x128xf32>,
      %c3_i32 = arith.constant 3 : i32
      %267 = arith.addi %14, %c3_i32 : i32
      %c8_i32_144 = arith.constant 8 : i32
      %268 = arith.muli %267, %c8_i32_144 : i32
      %269 = tpu.assume_multiple %268, 8 : i32
      %270 = arith.index_cast %269 : i32 to index
      %c0_145 = arith.constant 0 : index
      %271 = vector.load %arg8[%270, %c0_145] : memref<128x512xf32, #tpu.memory_space<vmem>>, vector<8x512xf32>
      %c0_146 = arith.constant 0 : index
      %c0_147 = arith.constant 0 : index
      %272 = vector.load %arg9[%c0_146, %c0_147] : memref<8x128xf32, #tpu.memory_space<vmem>>, vector<8x128xf32>
      %c0_148 = arith.constant 0 : index
      %c0_149 = arith.constant 0 : index
      %273 = vector.load %arg3[%c0_148, %c0_149] : memref<128x512xf32, #tpu.memory_space<vmem>>, vector<128x512xf32>
      %cst_150 = arith.constant dense<0.000000e+00> : vector<8x512xf32>
      %274 = tpu.matmul %272, %273, %cst_150 {dimension_numbers = #tpu.dot_dimension_numbers<[1], [0], [0], [1], [0, 0, 1, 1], [], []>} : vector<8x128xf32>, vector<128x512xf32>, vector<8x512xf32> -> vector<8x512xf32>
      %275 = arith.addf %271, %274 : vector<8x512xf32>
      %c0_151 = arith.constant 0 : index
      %c0_152 = arith.constant 0 : index
      %276 = vector.load %arg10[%c0_151, %c0_152] : memref<8x128xf32, #tpu.memory_space<vmem>>, vector<8x128xf32>
      %277 = vector.extract_strided_slice %275 {offsets = [0, 0], sizes = [8, 128], strides = [1, 1]} : vector<8x512xf32> to vector<8x128xf32>
      %cst_153 = arith.constant 5.000000e-01 : f32
      %278 = vector.broadcast %cst_153 : f32 to vector<8x128xf32>
      %279 = arith.mulf %278, %277 : vector<8x128xf32>
      %280 = math.tanh %279 : vector<8x128xf32>
      %cst_154 = arith.constant 5.000000e-01 : f32
      %281 = vector.broadcast %cst_154 : f32 to vector<8x128xf32>
      %282 = arith.mulf %281, %280 : vector<8x128xf32>
      %cst_155 = arith.constant 5.000000e-01 : f32
      %283 = vector.broadcast %cst_155 : f32 to vector<8x128xf32>
      %284 = arith.addf %282, %283 : vector<8x128xf32>
      %285 = vector.extract_strided_slice %275 {offsets = [0, 128], sizes = [8, 128], strides = [1, 1]} : vector<8x512xf32> to vector<8x128xf32>
      %cst_156 = arith.constant 5.000000e-01 : f32
      %286 = vector.broadcast %cst_156 : f32 to vector<8x128xf32>
      %287 = arith.mulf %286, %285 : vector<8x128xf32>
      %288 = math.tanh %287 : vector<8x128xf32>
      %cst_157 = arith.constant 5.000000e-01 : f32
      %289 = vector.broadcast %cst_157 : f32 to vector<8x128xf32>
      %290 = arith.mulf %289, %288 : vector<8x128xf32>
      %cst_158 = arith.constant 5.000000e-01 : f32
      %291 = vector.broadcast %cst_158 : f32 to vector<8x128xf32>
      %292 = arith.addf %290, %291 : vector<8x128xf32>
      %293 = vector.extract_strided_slice %275 {offsets = [0, 256], sizes = [8, 128], strides = [1, 1]} : vector<8x512xf32> to vector<8x128xf32>
      %294 = math.tanh %293 : vector<8x128xf32>
      %295 = vector.extract_strided_slice %275 {offsets = [0, 384], sizes = [8, 128], strides = [1, 1]} : vector<8x512xf32> to vector<8x128xf32>
      %cst_159 = arith.constant 5.000000e-01 : f32
      %296 = vector.broadcast %cst_159 : f32 to vector<8x128xf32>
      %297 = arith.mulf %296, %295 : vector<8x128xf32>
      %298 = math.tanh %297 : vector<8x128xf32>
      %cst_160 = arith.constant 5.000000e-01 : f32
      %299 = vector.broadcast %cst_160 : f32 to vector<8x128xf32>
      %300 = arith.mulf %299, %298 : vector<8x128xf32>
      %cst_161 = arith.constant 5.000000e-01 : f32
      %301 = vector.broadcast %cst_161 : f32 to vector<8x128xf32>
      %302 = arith.addf %300, %301 : vector<8x128xf32>
      %303 = arith.mulf %292, %276 : vector<8x128xf32>
      %304 = arith.mulf %284, %294 : vector<8x128xf32>
      %305 = arith.addf %303, %304 : vector<8x128xf32>
      %306 = math.tanh %305 : vector<8x128xf32>
      %307 = arith.mulf %302, %306 : vector<8x128xf32>
      %c0_162 = arith.constant 0 : index
      %c0_163 = arith.constant 0 : index
      %308 = vector.load %arg9[%c0_162, %c0_163] : memref<8x128xf32, #tpu.memory_space<vmem>>, vector<8x128xf32>
      tpu.vector_store %arg9[%c0_162, %c0_163], %307 {strides = array<i32>} : memref<8x128xf32, #tpu.memory_space<vmem>>, vector<8x128xf32>,
      %c0_164 = arith.constant 0 : index
      %c0_165 = arith.constant 0 : index
      %309 = vector.load %arg10[%c0_164, %c0_165] : memref<8x128xf32, #tpu.memory_space<vmem>>, vector<8x128xf32>
      tpu.vector_store %arg10[%c0_164, %c0_165], %305 {strides = array<i32>} : memref<8x128xf32, #tpu.memory_space<vmem>>, vector<8x128xf32>,
      %c0_166 = arith.constant 0 : index
      %c0_167 = arith.constant 0 : index
      %310 = vector.load %arg11[%c0_166, %c0_167] : memref<8x128xf32, #tpu.memory_space<vmem>>, vector<8x128xf32>
      %311 = tpu.concatenate %307, %310 in 1 : vector<8x128xf32>, vector<8x128xf32> -> vector<8x256xf32>
      %c0_168 = arith.constant 0 : index
      %c0_169 = arith.constant 0 : index
      %312 = vector.load %arg5[%c0_168, %c0_169] : memref<256x512xf32, #tpu.memory_space<vmem>>, vector<256x512xf32>
      %cst_170 = arith.constant dense<0.000000e+00> : vector<8x512xf32>
      %313 = tpu.matmul %311, %312, %cst_170 {dimension_numbers = #tpu.dot_dimension_numbers<[1], [0], [0], [1], [0, 0, 1, 1], [], []>} : vector<8x256xf32>, vector<256x512xf32>, vector<8x512xf32> -> vector<8x512xf32>
      %314 = arith.addf %313, %12 : vector<8x512xf32>
      %c0_171 = arith.constant 0 : index
      %c0_172 = arith.constant 0 : index
      %315 = vector.load %arg12[%c0_171, %c0_172] : memref<8x128xf32, #tpu.memory_space<vmem>>, vector<8x128xf32>
      %316 = vector.extract_strided_slice %314 {offsets = [0, 0], sizes = [8, 128], strides = [1, 1]} : vector<8x512xf32> to vector<8x128xf32>
      %cst_173 = arith.constant 5.000000e-01 : f32
      %317 = vector.broadcast %cst_173 : f32 to vector<8x128xf32>
      %318 = arith.mulf %317, %316 : vector<8x128xf32>
      %319 = math.tanh %318 : vector<8x128xf32>
      %cst_174 = arith.constant 5.000000e-01 : f32
      %320 = vector.broadcast %cst_174 : f32 to vector<8x128xf32>
      %321 = arith.mulf %320, %319 : vector<8x128xf32>
      %cst_175 = arith.constant 5.000000e-01 : f32
      %322 = vector.broadcast %cst_175 : f32 to vector<8x128xf32>
      %323 = arith.addf %321, %322 : vector<8x128xf32>
      %324 = vector.extract_strided_slice %314 {offsets = [0, 128], sizes = [8, 128], strides = [1, 1]} : vector<8x512xf32> to vector<8x128xf32>
      %cst_176 = arith.constant 5.000000e-01 : f32
      %325 = vector.broadcast %cst_176 : f32 to vector<8x128xf32>
      %326 = arith.mulf %325, %324 : vector<8x128xf32>
      %327 = math.tanh %326 : vector<8x128xf32>
      %cst_177 = arith.constant 5.000000e-01 : f32
      %328 = vector.broadcast %cst_177 : f32 to vector<8x128xf32>
      %329 = arith.mulf %328, %327 : vector<8x128xf32>
      %cst_178 = arith.constant 5.000000e-01 : f32
      %330 = vector.broadcast %cst_178 : f32 to vector<8x128xf32>
      %331 = arith.addf %329, %330 : vector<8x128xf32>
      %332 = vector.extract_strided_slice %314 {offsets = [0, 256], sizes = [8, 128], strides = [1, 1]} : vector<8x512xf32> to vector<8x128xf32>
      %333 = math.tanh %332 : vector<8x128xf32>
      %334 = vector.extract_strided_slice %314 {offsets = [0, 384], sizes = [8, 128], strides = [1, 1]} : vector<8x512xf32> to vector<8x128xf32>
      %cst_179 = arith.constant 5.000000e-01 : f32
      %335 = vector.broadcast %cst_179 : f32 to vector<8x128xf32>
      %336 = arith.mulf %335, %334 : vector<8x128xf32>
      %337 = math.tanh %336 : vector<8x128xf32>
      %cst_180 = arith.constant 5.000000e-01 : f32
      %338 = vector.broadcast %cst_180 : f32 to vector<8x128xf32>
      %339 = arith.mulf %338, %337 : vector<8x128xf32>
      %cst_181 = arith.constant 5.000000e-01 : f32
      %340 = vector.broadcast %cst_181 : f32 to vector<8x128xf32>
      %341 = arith.addf %339, %340 : vector<8x128xf32>
      %342 = arith.mulf %331, %315 : vector<8x128xf32>
      %343 = arith.mulf %323, %333 : vector<8x128xf32>
      %344 = arith.addf %342, %343 : vector<8x128xf32>
      %345 = math.tanh %344 : vector<8x128xf32>
      %346 = arith.mulf %341, %345 : vector<8x128xf32>
      %c0_182 = arith.constant 0 : index
      %c0_183 = arith.constant 0 : index
      %347 = vector.load %arg11[%c0_182, %c0_183] : memref<8x128xf32, #tpu.memory_space<vmem>>, vector<8x128xf32>
      tpu.vector_store %arg11[%c0_182, %c0_183], %346 {strides = array<i32>} : memref<8x128xf32, #tpu.memory_space<vmem>>, vector<8x128xf32>,
      %c0_184 = arith.constant 0 : index
      %c0_185 = arith.constant 0 : index
      %348 = vector.load %arg12[%c0_184, %c0_185] : memref<8x128xf32, #tpu.memory_space<vmem>>, vector<8x128xf32>
      tpu.vector_store %arg12[%c0_184, %c0_185], %344 {strides = array<i32>} : memref<8x128xf32, #tpu.memory_space<vmem>>, vector<8x128xf32>,
      %349 = arith.index_cast %269 : i32 to index
      %c0_186 = arith.constant 0 : index
      %350 = vector.load %arg7[%349, %c0_186] : memref<128x128xf32, #tpu.memory_space<vmem>>, vector<8x128xf32>
      tpu.vector_store %arg7[%349, %c0_186], %346 {strides = array<i32>} : memref<128x128xf32, #tpu.memory_space<vmem>>, vector<8x128xf32>,
      %c4_i32 = arith.constant 4 : i32
      %351 = arith.addi %14, %c4_i32 : i32
      %c8_i32_187 = arith.constant 8 : i32
      %352 = arith.muli %351, %c8_i32_187 : i32
      %353 = tpu.assume_multiple %352, 8 : i32
      %354 = arith.index_cast %353 : i32 to index
      %c0_188 = arith.constant 0 : index
      %355 = vector.load %arg8[%354, %c0_188] : memref<128x512xf32, #tpu.memory_space<vmem>>, vector<8x512xf32>
      %c0_189 = arith.constant 0 : index
      %c0_190 = arith.constant 0 : index
      %356 = vector.load %arg9[%c0_189, %c0_190] : memref<8x128xf32, #tpu.memory_space<vmem>>, vector<8x128xf32>
      %c0_191 = arith.constant 0 : index
      %c0_192 = arith.constant 0 : index
      %357 = vector.load %arg3[%c0_191, %c0_192] : memref<128x512xf32, #tpu.memory_space<vmem>>, vector<128x512xf32>
      %cst_193 = arith.constant dense<0.000000e+00> : vector<8x512xf32>
      %358 = tpu.matmul %356, %357, %cst_193 {dimension_numbers = #tpu.dot_dimension_numbers<[1], [0], [0], [1], [0, 0, 1, 1], [], []>} : vector<8x128xf32>, vector<128x512xf32>, vector<8x512xf32> -> vector<8x512xf32>
      %359 = arith.addf %355, %358 : vector<8x512xf32>
      %c0_194 = arith.constant 0 : index
      %c0_195 = arith.constant 0 : index
      %360 = vector.load %arg10[%c0_194, %c0_195] : memref<8x128xf32, #tpu.memory_space<vmem>>, vector<8x128xf32>
      %361 = vector.extract_strided_slice %359 {offsets = [0, 0], sizes = [8, 128], strides = [1, 1]} : vector<8x512xf32> to vector<8x128xf32>
      %cst_196 = arith.constant 5.000000e-01 : f32
      %362 = vector.broadcast %cst_196 : f32 to vector<8x128xf32>
      %363 = arith.mulf %362, %361 : vector<8x128xf32>
      %364 = math.tanh %363 : vector<8x128xf32>
      %cst_197 = arith.constant 5.000000e-01 : f32
      %365 = vector.broadcast %cst_197 : f32 to vector<8x128xf32>
      %366 = arith.mulf %365, %364 : vector<8x128xf32>
      %cst_198 = arith.constant 5.000000e-01 : f32
      %367 = vector.broadcast %cst_198 : f32 to vector<8x128xf32>
      %368 = arith.addf %366, %367 : vector<8x128xf32>
      %369 = vector.extract_strided_slice %359 {offsets = [0, 128], sizes = [8, 128], strides = [1, 1]} : vector<8x512xf32> to vector<8x128xf32>
      %cst_199 = arith.constant 5.000000e-01 : f32
      %370 = vector.broadcast %cst_199 : f32 to vector<8x128xf32>
      %371 = arith.mulf %370, %369 : vector<8x128xf32>
      %372 = math.tanh %371 : vector<8x128xf32>
      %cst_200 = arith.constant 5.000000e-01 : f32
      %373 = vector.broadcast %cst_200 : f32 to vector<8x128xf32>
      %374 = arith.mulf %373, %372 : vector<8x128xf32>
      %cst_201 = arith.constant 5.000000e-01 : f32
      %375 = vector.broadcast %cst_201 : f32 to vector<8x128xf32>
      %376 = arith.addf %374, %375 : vector<8x128xf32>
      %377 = vector.extract_strided_slice %359 {offsets = [0, 256], sizes = [8, 128], strides = [1, 1]} : vector<8x512xf32> to vector<8x128xf32>
      %378 = math.tanh %377 : vector<8x128xf32>
      %379 = vector.extract_strided_slice %359 {offsets = [0, 384], sizes = [8, 128], strides = [1, 1]} : vector<8x512xf32> to vector<8x128xf32>
      %cst_202 = arith.constant 5.000000e-01 : f32
      %380 = vector.broadcast %cst_202 : f32 to vector<8x128xf32>
      %381 = arith.mulf %380, %379 : vector<8x128xf32>
      %382 = math.tanh %381 : vector<8x128xf32>
      %cst_203 = arith.constant 5.000000e-01 : f32
      %383 = vector.broadcast %cst_203 : f32 to vector<8x128xf32>
      %384 = arith.mulf %383, %382 : vector<8x128xf32>
      %cst_204 = arith.constant 5.000000e-01 : f32
      %385 = vector.broadcast %cst_204 : f32 to vector<8x128xf32>
      %386 = arith.addf %384, %385 : vector<8x128xf32>
      %387 = arith.mulf %376, %360 : vector<8x128xf32>
      %388 = arith.mulf %368, %378 : vector<8x128xf32>
      %389 = arith.addf %387, %388 : vector<8x128xf32>
      %390 = math.tanh %389 : vector<8x128xf32>
      %391 = arith.mulf %386, %390 : vector<8x128xf32>
      %c0_205 = arith.constant 0 : index
      %c0_206 = arith.constant 0 : index
      %392 = vector.load %arg9[%c0_205, %c0_206] : memref<8x128xf32, #tpu.memory_space<vmem>>, vector<8x128xf32>
      tpu.vector_store %arg9[%c0_205, %c0_206], %391 {strides = array<i32>} : memref<8x128xf32, #tpu.memory_space<vmem>>, vector<8x128xf32>,
      %c0_207 = arith.constant 0 : index
      %c0_208 = arith.constant 0 : index
      %393 = vector.load %arg10[%c0_207, %c0_208] : memref<8x128xf32, #tpu.memory_space<vmem>>, vector<8x128xf32>
      tpu.vector_store %arg10[%c0_207, %c0_208], %389 {strides = array<i32>} : memref<8x128xf32, #tpu.memory_space<vmem>>, vector<8x128xf32>,
      %c0_209 = arith.constant 0 : index
      %c0_210 = arith.constant 0 : index
      %394 = vector.load %arg11[%c0_209, %c0_210] : memref<8x128xf32, #tpu.memory_space<vmem>>, vector<8x128xf32>
      %395 = tpu.concatenate %391, %394 in 1 : vector<8x128xf32>, vector<8x128xf32> -> vector<8x256xf32>
      %c0_211 = arith.constant 0 : index
      %c0_212 = arith.constant 0 : index
      %396 = vector.load %arg5[%c0_211, %c0_212] : memref<256x512xf32, #tpu.memory_space<vmem>>, vector<256x512xf32>
      %cst_213 = arith.constant dense<0.000000e+00> : vector<8x512xf32>
      %397 = tpu.matmul %395, %396, %cst_213 {dimension_numbers = #tpu.dot_dimension_numbers<[1], [0], [0], [1], [0, 0, 1, 1], [], []>} : vector<8x256xf32>, vector<256x512xf32>, vector<8x512xf32> -> vector<8x512xf32>
      %398 = arith.addf %397, %12 : vector<8x512xf32>
      %c0_214 = arith.constant 0 : index
      %c0_215 = arith.constant 0 : index
      %399 = vector.load %arg12[%c0_214, %c0_215] : memref<8x128xf32, #tpu.memory_space<vmem>>, vector<8x128xf32>
      %400 = vector.extract_strided_slice %398 {offsets = [0, 0], sizes = [8, 128], strides = [1, 1]} : vector<8x512xf32> to vector<8x128xf32>
      %cst_216 = arith.constant 5.000000e-01 : f32
      %401 = vector.broadcast %cst_216 : f32 to vector<8x128xf32>
      %402 = arith.mulf %401, %400 : vector<8x128xf32>
      %403 = math.tanh %402 : vector<8x128xf32>
      %cst_217 = arith.constant 5.000000e-01 : f32
      %404 = vector.broadcast %cst_217 : f32 to vector<8x128xf32>
      %405 = arith.mulf %404, %403 : vector<8x128xf32>
      %cst_218 = arith.constant 5.000000e-01 : f32
      %406 = vector.broadcast %cst_218 : f32 to vector<8x128xf32>
      %407 = arith.addf %405, %406 : vector<8x128xf32>
      %408 = vector.extract_strided_slice %398 {offsets = [0, 128], sizes = [8, 128], strides = [1, 1]} : vector<8x512xf32> to vector<8x128xf32>
      %cst_219 = arith.constant 5.000000e-01 : f32
      %409 = vector.broadcast %cst_219 : f32 to vector<8x128xf32>
      %410 = arith.mulf %409, %408 : vector<8x128xf32>
      %411 = math.tanh %410 : vector<8x128xf32>
      %cst_220 = arith.constant 5.000000e-01 : f32
      %412 = vector.broadcast %cst_220 : f32 to vector<8x128xf32>
      %413 = arith.mulf %412, %411 : vector<8x128xf32>
      %cst_221 = arith.constant 5.000000e-01 : f32
      %414 = vector.broadcast %cst_221 : f32 to vector<8x128xf32>
      %415 = arith.addf %413, %414 : vector<8x128xf32>
      %416 = vector.extract_strided_slice %398 {offsets = [0, 256], sizes = [8, 128], strides = [1, 1]} : vector<8x512xf32> to vector<8x128xf32>
      %417 = math.tanh %416 : vector<8x128xf32>
      %418 = vector.extract_strided_slice %398 {offsets = [0, 384], sizes = [8, 128], strides = [1, 1]} : vector<8x512xf32> to vector<8x128xf32>
      %cst_222 = arith.constant 5.000000e-01 : f32
      %419 = vector.broadcast %cst_222 : f32 to vector<8x128xf32>
      %420 = arith.mulf %419, %418 : vector<8x128xf32>
      %421 = math.tanh %420 : vector<8x128xf32>
      %cst_223 = arith.constant 5.000000e-01 : f32
      %422 = vector.broadcast %cst_223 : f32 to vector<8x128xf32>
      %423 = arith.mulf %422, %421 : vector<8x128xf32>
      %cst_224 = arith.constant 5.000000e-01 : f32
      %424 = vector.broadcast %cst_224 : f32 to vector<8x128xf32>
      %425 = arith.addf %423, %424 : vector<8x128xf32>
      %426 = arith.mulf %415, %399 : vector<8x128xf32>
      %427 = arith.mulf %407, %417 : vector<8x128xf32>
      %428 = arith.addf %426, %427 : vector<8x128xf32>
      %429 = math.tanh %428 : vector<8x128xf32>
      %430 = arith.mulf %425, %429 : vector<8x128xf32>
      %c0_225 = arith.constant 0 : index
      %c0_226 = arith.constant 0 : index
      %431 = vector.load %arg11[%c0_225, %c0_226] : memref<8x128xf32, #tpu.memory_space<vmem>>, vector<8x128xf32>
      tpu.vector_store %arg11[%c0_225, %c0_226], %430 {strides = array<i32>} : memref<8x128xf32, #tpu.memory_space<vmem>>, vector<8x128xf32>,
      %c0_227 = arith.constant 0 : index
      %c0_228 = arith.constant 0 : index
      %432 = vector.load %arg12[%c0_227, %c0_228] : memref<8x128xf32, #tpu.memory_space<vmem>>, vector<8x128xf32>
      tpu.vector_store %arg12[%c0_227, %c0_228], %428 {strides = array<i32>} : memref<8x128xf32, #tpu.memory_space<vmem>>, vector<8x128xf32>,
      %433 = arith.index_cast %353 : i32 to index
      %c0_229 = arith.constant 0 : index
      %434 = vector.load %arg7[%433, %c0_229] : memref<128x128xf32, #tpu.memory_space<vmem>>, vector<8x128xf32>
      tpu.vector_store %arg7[%433, %c0_229], %430 {strides = array<i32>} : memref<128x128xf32, #tpu.memory_space<vmem>>, vector<8x128xf32>,
      %c5_i32 = arith.constant 5 : i32
      %435 = arith.addi %14, %c5_i32 : i32
      %c8_i32_230 = arith.constant 8 : i32
      %436 = arith.muli %435, %c8_i32_230 : i32
      %437 = tpu.assume_multiple %436, 8 : i32
      %438 = arith.index_cast %437 : i32 to index
      %c0_231 = arith.constant 0 : index
      %439 = vector.load %arg8[%438, %c0_231] : memref<128x512xf32, #tpu.memory_space<vmem>>, vector<8x512xf32>
      %c0_232 = arith.constant 0 : index
      %c0_233 = arith.constant 0 : index
      %440 = vector.load %arg9[%c0_232, %c0_233] : memref<8x128xf32, #tpu.memory_space<vmem>>, vector<8x128xf32>
      %c0_234 = arith.constant 0 : index
      %c0_235 = arith.constant 0 : index
      %441 = vector.load %arg3[%c0_234, %c0_235] : memref<128x512xf32, #tpu.memory_space<vmem>>, vector<128x512xf32>
      %cst_236 = arith.constant dense<0.000000e+00> : vector<8x512xf32>
      %442 = tpu.matmul %440, %441, %cst_236 {dimension_numbers = #tpu.dot_dimension_numbers<[1], [0], [0], [1], [0, 0, 1, 1], [], []>} : vector<8x128xf32>, vector<128x512xf32>, vector<8x512xf32> -> vector<8x512xf32>
      %443 = arith.addf %439, %442 : vector<8x512xf32>
      %c0_237 = arith.constant 0 : index
      %c0_238 = arith.constant 0 : index
      %444 = vector.load %arg10[%c0_237, %c0_238] : memref<8x128xf32, #tpu.memory_space<vmem>>, vector<8x128xf32>
      %445 = vector.extract_strided_slice %443 {offsets = [0, 0], sizes = [8, 128], strides = [1, 1]} : vector<8x512xf32> to vector<8x128xf32>
      %cst_239 = arith.constant 5.000000e-01 : f32
      %446 = vector.broadcast %cst_239 : f32 to vector<8x128xf32>
      %447 = arith.mulf %446, %445 : vector<8x128xf32>
      %448 = math.tanh %447 : vector<8x128xf32>
      %cst_240 = arith.constant 5.000000e-01 : f32
      %449 = vector.broadcast %cst_240 : f32 to vector<8x128xf32>
      %450 = arith.mulf %449, %448 : vector<8x128xf32>
      %cst_241 = arith.constant 5.000000e-01 : f32
      %451 = vector.broadcast %cst_241 : f32 to vector<8x128xf32>
      %452 = arith.addf %450, %451 : vector<8x128xf32>
      %453 = vector.extract_strided_slice %443 {offsets = [0, 128], sizes = [8, 128], strides = [1, 1]} : vector<8x512xf32> to vector<8x128xf32>
      %cst_242 = arith.constant 5.000000e-01 : f32
      %454 = vector.broadcast %cst_242 : f32 to vector<8x128xf32>
      %455 = arith.mulf %454, %453 : vector<8x128xf32>
      %456 = math.tanh %455 : vector<8x128xf32>
      %cst_243 = arith.constant 5.000000e-01 : f32
      %457 = vector.broadcast %cst_243 : f32 to vector<8x128xf32>
      %458 = arith.mulf %457, %456 : vector<8x128xf32>
      %cst_244 = arith.constant 5.000000e-01 : f32
      %459 = vector.broadcast %cst_244 : f32 to vector<8x128xf32>
      %460 = arith.addf %458, %459 : vector<8x128xf32>
      %461 = vector.extract_strided_slice %443 {offsets = [0, 256], sizes = [8, 128], strides = [1, 1]} : vector<8x512xf32> to vector<8x128xf32>
      %462 = math.tanh %461 : vector<8x128xf32>
      %463 = vector.extract_strided_slice %443 {offsets = [0, 384], sizes = [8, 128], strides = [1, 1]} : vector<8x512xf32> to vector<8x128xf32>
      %cst_245 = arith.constant 5.000000e-01 : f32
      %464 = vector.broadcast %cst_245 : f32 to vector<8x128xf32>
      %465 = arith.mulf %464, %463 : vector<8x128xf32>
      %466 = math.tanh %465 : vector<8x128xf32>
      %cst_246 = arith.constant 5.000000e-01 : f32
      %467 = vector.broadcast %cst_246 : f32 to vector<8x128xf32>
      %468 = arith.mulf %467, %466 : vector<8x128xf32>
      %cst_247 = arith.constant 5.000000e-01 : f32
      %469 = vector.broadcast %cst_247 : f32 to vector<8x128xf32>
      %470 = arith.addf %468, %469 : vector<8x128xf32>
      %471 = arith.mulf %460, %444 : vector<8x128xf32>
      %472 = arith.mulf %452, %462 : vector<8x128xf32>
      %473 = arith.addf %471, %472 : vector<8x128xf32>
      %474 = math.tanh %473 : vector<8x128xf32>
      %475 = arith.mulf %470, %474 : vector<8x128xf32>
      %c0_248 = arith.constant 0 : index
      %c0_249 = arith.constant 0 : index
      %476 = vector.load %arg9[%c0_248, %c0_249] : memref<8x128xf32, #tpu.memory_space<vmem>>, vector<8x128xf32>
      tpu.vector_store %arg9[%c0_248, %c0_249], %475 {strides = array<i32>} : memref<8x128xf32, #tpu.memory_space<vmem>>, vector<8x128xf32>,
      %c0_250 = arith.constant 0 : index
      %c0_251 = arith.constant 0 : index
      %477 = vector.load %arg10[%c0_250, %c0_251] : memref<8x128xf32, #tpu.memory_space<vmem>>, vector<8x128xf32>
      tpu.vector_store %arg10[%c0_250, %c0_251], %473 {strides = array<i32>} : memref<8x128xf32, #tpu.memory_space<vmem>>, vector<8x128xf32>,
      %c0_252 = arith.constant 0 : index
      %c0_253 = arith.constant 0 : index
      %478 = vector.load %arg11[%c0_252, %c0_253] : memref<8x128xf32, #tpu.memory_space<vmem>>, vector<8x128xf32>
      %479 = tpu.concatenate %475, %478 in 1 : vector<8x128xf32>, vector<8x128xf32> -> vector<8x256xf32>
      %c0_254 = arith.constant 0 : index
      %c0_255 = arith.constant 0 : index
      %480 = vector.load %arg5[%c0_254, %c0_255] : memref<256x512xf32, #tpu.memory_space<vmem>>, vector<256x512xf32>
      %cst_256 = arith.constant dense<0.000000e+00> : vector<8x512xf32>
      %481 = tpu.matmul %479, %480, %cst_256 {dimension_numbers = #tpu.dot_dimension_numbers<[1], [0], [0], [1], [0, 0, 1, 1], [], []>} : vector<8x256xf32>, vector<256x512xf32>, vector<8x512xf32> -> vector<8x512xf32>
      %482 = arith.addf %481, %12 : vector<8x512xf32>
      %c0_257 = arith.constant 0 : index
      %c0_258 = arith.constant 0 : index
      %483 = vector.load %arg12[%c0_257, %c0_258] : memref<8x128xf32, #tpu.memory_space<vmem>>, vector<8x128xf32>
      %484 = vector.extract_strided_slice %482 {offsets = [0, 0], sizes = [8, 128], strides = [1, 1]} : vector<8x512xf32> to vector<8x128xf32>
      %cst_259 = arith.constant 5.000000e-01 : f32
      %485 = vector.broadcast %cst_259 : f32 to vector<8x128xf32>
      %486 = arith.mulf %485, %484 : vector<8x128xf32>
      %487 = math.tanh %486 : vector<8x128xf32>
      %cst_260 = arith.constant 5.000000e-01 : f32
      %488 = vector.broadcast %cst_260 : f32 to vector<8x128xf32>
      %489 = arith.mulf %488, %487 : vector<8x128xf32>
      %cst_261 = arith.constant 5.000000e-01 : f32
      %490 = vector.broadcast %cst_261 : f32 to vector<8x128xf32>
      %491 = arith.addf %489, %490 : vector<8x128xf32>
      %492 = vector.extract_strided_slice %482 {offsets = [0, 128], sizes = [8, 128], strides = [1, 1]} : vector<8x512xf32> to vector<8x128xf32>
      %cst_262 = arith.constant 5.000000e-01 : f32
      %493 = vector.broadcast %cst_262 : f32 to vector<8x128xf32>
      %494 = arith.mulf %493, %492 : vector<8x128xf32>
      %495 = math.tanh %494 : vector<8x128xf32>
      %cst_263 = arith.constant 5.000000e-01 : f32
      %496 = vector.broadcast %cst_263 : f32 to vector<8x128xf32>
      %497 = arith.mulf %496, %495 : vector<8x128xf32>
      %cst_264 = arith.constant 5.000000e-01 : f32
      %498 = vector.broadcast %cst_264 : f32 to vector<8x128xf32>
      %499 = arith.addf %497, %498 : vector<8x128xf32>
      %500 = vector.extract_strided_slice %482 {offsets = [0, 256], sizes = [8, 128], strides = [1, 1]} : vector<8x512xf32> to vector<8x128xf32>
      %501 = math.tanh %500 : vector<8x128xf32>
      %502 = vector.extract_strided_slice %482 {offsets = [0, 384], sizes = [8, 128], strides = [1, 1]} : vector<8x512xf32> to vector<8x128xf32>
      %cst_265 = arith.constant 5.000000e-01 : f32
      %503 = vector.broadcast %cst_265 : f32 to vector<8x128xf32>
      %504 = arith.mulf %503, %502 : vector<8x128xf32>
      %505 = math.tanh %504 : vector<8x128xf32>
      %cst_266 = arith.constant 5.000000e-01 : f32
      %506 = vector.broadcast %cst_266 : f32 to vector<8x128xf32>
      %507 = arith.mulf %506, %505 : vector<8x128xf32>
      %cst_267 = arith.constant 5.000000e-01 : f32
      %508 = vector.broadcast %cst_267 : f32 to vector<8x128xf32>
      %509 = arith.addf %507, %508 : vector<8x128xf32>
      %510 = arith.mulf %499, %483 : vector<8x128xf32>
      %511 = arith.mulf %491, %501 : vector<8x128xf32>
      %512 = arith.addf %510, %511 : vector<8x128xf32>
      %513 = math.tanh %512 : vector<8x128xf32>
      %514 = arith.mulf %509, %513 : vector<8x128xf32>
      %c0_268 = arith.constant 0 : index
      %c0_269 = arith.constant 0 : index
      %515 = vector.load %arg11[%c0_268, %c0_269] : memref<8x128xf32, #tpu.memory_space<vmem>>, vector<8x128xf32>
      tpu.vector_store %arg11[%c0_268, %c0_269], %514 {strides = array<i32>} : memref<8x128xf32, #tpu.memory_space<vmem>>, vector<8x128xf32>,
      %c0_270 = arith.constant 0 : index
      %c0_271 = arith.constant 0 : index
      %516 = vector.load %arg12[%c0_270, %c0_271] : memref<8x128xf32, #tpu.memory_space<vmem>>, vector<8x128xf32>
      tpu.vector_store %arg12[%c0_270, %c0_271], %512 {strides = array<i32>} : memref<8x128xf32, #tpu.memory_space<vmem>>, vector<8x128xf32>,
      %517 = arith.index_cast %437 : i32 to index
      %c0_272 = arith.constant 0 : index
      %518 = vector.load %arg7[%517, %c0_272] : memref<128x128xf32, #tpu.memory_space<vmem>>, vector<8x128xf32>
      tpu.vector_store %arg7[%517, %c0_272], %514 {strides = array<i32>} : memref<128x128xf32, #tpu.memory_space<vmem>>, vector<8x128xf32>,
      %c6_i32 = arith.constant 6 : i32
      %519 = arith.addi %14, %c6_i32 : i32
      %c8_i32_273 = arith.constant 8 : i32
      %520 = arith.muli %519, %c8_i32_273 : i32
      %521 = tpu.assume_multiple %520, 8 : i32
      %522 = arith.index_cast %521 : i32 to index
      %c0_274 = arith.constant 0 : index
      %523 = vector.load %arg8[%522, %c0_274] : memref<128x512xf32, #tpu.memory_space<vmem>>, vector<8x512xf32>
      %c0_275 = arith.constant 0 : index
      %c0_276 = arith.constant 0 : index
      %524 = vector.load %arg9[%c0_275, %c0_276] : memref<8x128xf32, #tpu.memory_space<vmem>>, vector<8x128xf32>
      %c0_277 = arith.constant 0 : index
      %c0_278 = arith.constant 0 : index
      %525 = vector.load %arg3[%c0_277, %c0_278] : memref<128x512xf32, #tpu.memory_space<vmem>>, vector<128x512xf32>
      %cst_279 = arith.constant dense<0.000000e+00> : vector<8x512xf32>
      %526 = tpu.matmul %524, %525, %cst_279 {dimension_numbers = #tpu.dot_dimension_numbers<[1], [0], [0], [1], [0, 0, 1, 1], [], []>} : vector<8x128xf32>, vector<128x512xf32>, vector<8x512xf32> -> vector<8x512xf32>
      %527 = arith.addf %523, %526 : vector<8x512xf32>
      %c0_280 = arith.constant 0 : index
      %c0_281 = arith.constant 0 : index
      %528 = vector.load %arg10[%c0_280, %c0_281] : memref<8x128xf32, #tpu.memory_space<vmem>>, vector<8x128xf32>
      %529 = vector.extract_strided_slice %527 {offsets = [0, 0], sizes = [8, 128], strides = [1, 1]} : vector<8x512xf32> to vector<8x128xf32>
      %cst_282 = arith.constant 5.000000e-01 : f32
      %530 = vector.broadcast %cst_282 : f32 to vector<8x128xf32>
      %531 = arith.mulf %530, %529 : vector<8x128xf32>
      %532 = math.tanh %531 : vector<8x128xf32>
      %cst_283 = arith.constant 5.000000e-01 : f32
      %533 = vector.broadcast %cst_283 : f32 to vector<8x128xf32>
      %534 = arith.mulf %533, %532 : vector<8x128xf32>
      %cst_284 = arith.constant 5.000000e-01 : f32
      %535 = vector.broadcast %cst_284 : f32 to vector<8x128xf32>
      %536 = arith.addf %534, %535 : vector<8x128xf32>
      %537 = vector.extract_strided_slice %527 {offsets = [0, 128], sizes = [8, 128], strides = [1, 1]} : vector<8x512xf32> to vector<8x128xf32>
      %cst_285 = arith.constant 5.000000e-01 : f32
      %538 = vector.broadcast %cst_285 : f32 to vector<8x128xf32>
      %539 = arith.mulf %538, %537 : vector<8x128xf32>
      %540 = math.tanh %539 : vector<8x128xf32>
      %cst_286 = arith.constant 5.000000e-01 : f32
      %541 = vector.broadcast %cst_286 : f32 to vector<8x128xf32>
      %542 = arith.mulf %541, %540 : vector<8x128xf32>
      %cst_287 = arith.constant 5.000000e-01 : f32
      %543 = vector.broadcast %cst_287 : f32 to vector<8x128xf32>
      %544 = arith.addf %542, %543 : vector<8x128xf32>
      %545 = vector.extract_strided_slice %527 {offsets = [0, 256], sizes = [8, 128], strides = [1, 1]} : vector<8x512xf32> to vector<8x128xf32>
      %546 = math.tanh %545 : vector<8x128xf32>
      %547 = vector.extract_strided_slice %527 {offsets = [0, 384], sizes = [8, 128], strides = [1, 1]} : vector<8x512xf32> to vector<8x128xf32>
      %cst_288 = arith.constant 5.000000e-01 : f32
      %548 = vector.broadcast %cst_288 : f32 to vector<8x128xf32>
      %549 = arith.mulf %548, %547 : vector<8x128xf32>
      %550 = math.tanh %549 : vector<8x128xf32>
      %cst_289 = arith.constant 5.000000e-01 : f32
      %551 = vector.broadcast %cst_289 : f32 to vector<8x128xf32>
      %552 = arith.mulf %551, %550 : vector<8x128xf32>
      %cst_290 = arith.constant 5.000000e-01 : f32
      %553 = vector.broadcast %cst_290 : f32 to vector<8x128xf32>
      %554 = arith.addf %552, %553 : vector<8x128xf32>
      %555 = arith.mulf %544, %528 : vector<8x128xf32>
      %556 = arith.mulf %536, %546 : vector<8x128xf32>
      %557 = arith.addf %555, %556 : vector<8x128xf32>
      %558 = math.tanh %557 : vector<8x128xf32>
      %559 = arith.mulf %554, %558 : vector<8x128xf32>
      %c0_291 = arith.constant 0 : index
      %c0_292 = arith.constant 0 : index
      %560 = vector.load %arg9[%c0_291, %c0_292] : memref<8x128xf32, #tpu.memory_space<vmem>>, vector<8x128xf32>
      tpu.vector_store %arg9[%c0_291, %c0_292], %559 {strides = array<i32>} : memref<8x128xf32, #tpu.memory_space<vmem>>, vector<8x128xf32>,
      %c0_293 = arith.constant 0 : index
      %c0_294 = arith.constant 0 : index
      %561 = vector.load %arg10[%c0_293, %c0_294] : memref<8x128xf32, #tpu.memory_space<vmem>>, vector<8x128xf32>
      tpu.vector_store %arg10[%c0_293, %c0_294], %557 {strides = array<i32>} : memref<8x128xf32, #tpu.memory_space<vmem>>, vector<8x128xf32>,
      %c0_295 = arith.constant 0 : index
      %c0_296 = arith.constant 0 : index
      %562 = vector.load %arg11[%c0_295, %c0_296] : memref<8x128xf32, #tpu.memory_space<vmem>>, vector<8x128xf32>
      %563 = tpu.concatenate %559, %562 in 1 : vector<8x128xf32>, vector<8x128xf32> -> vector<8x256xf32>
      %c0_297 = arith.constant 0 : index
      %c0_298 = arith.constant 0 : index
      %564 = vector.load %arg5[%c0_297, %c0_298] : memref<256x512xf32, #tpu.memory_space<vmem>>, vector<256x512xf32>
      %cst_299 = arith.constant dense<0.000000e+00> : vector<8x512xf32>
      %565 = tpu.matmul %563, %564, %cst_299 {dimension_numbers = #tpu.dot_dimension_numbers<[1], [0], [0], [1], [0, 0, 1, 1], [], []>} : vector<8x256xf32>, vector<256x512xf32>, vector<8x512xf32> -> vector<8x512xf32>
      %566 = arith.addf %565, %12 : vector<8x512xf32>
      %c0_300 = arith.constant 0 : index
      %c0_301 = arith.constant 0 : index
      %567 = vector.load %arg12[%c0_300, %c0_301] : memref<8x128xf32, #tpu.memory_space<vmem>>, vector<8x128xf32>
      %568 = vector.extract_strided_slice %566 {offsets = [0, 0], sizes = [8, 128], strides = [1, 1]} : vector<8x512xf32> to vector<8x128xf32>
      %cst_302 = arith.constant 5.000000e-01 : f32
      %569 = vector.broadcast %cst_302 : f32 to vector<8x128xf32>
      %570 = arith.mulf %569, %568 : vector<8x128xf32>
      %571 = math.tanh %570 : vector<8x128xf32>
      %cst_303 = arith.constant 5.000000e-01 : f32
      %572 = vector.broadcast %cst_303 : f32 to vector<8x128xf32>
      %573 = arith.mulf %572, %571 : vector<8x128xf32>
      %cst_304 = arith.constant 5.000000e-01 : f32
      %574 = vector.broadcast %cst_304 : f32 to vector<8x128xf32>
      %575 = arith.addf %573, %574 : vector<8x128xf32>
      %576 = vector.extract_strided_slice %566 {offsets = [0, 128], sizes = [8, 128], strides = [1, 1]} : vector<8x512xf32> to vector<8x128xf32>
      %cst_305 = arith.constant 5.000000e-01 : f32
      %577 = vector.broadcast %cst_305 : f32 to vector<8x128xf32>
      %578 = arith.mulf %577, %576 : vector<8x128xf32>
      %579 = math.tanh %578 : vector<8x128xf32>
      %cst_306 = arith.constant 5.000000e-01 : f32
      %580 = vector.broadcast %cst_306 : f32 to vector<8x128xf32>
      %581 = arith.mulf %580, %579 : vector<8x128xf32>
      %cst_307 = arith.constant 5.000000e-01 : f32
      %582 = vector.broadcast %cst_307 : f32 to vector<8x128xf32>
      %583 = arith.addf %581, %582 : vector<8x128xf32>
      %584 = vector.extract_strided_slice %566 {offsets = [0, 256], sizes = [8, 128], strides = [1, 1]} : vector<8x512xf32> to vector<8x128xf32>
      %585 = math.tanh %584 : vector<8x128xf32>
      %586 = vector.extract_strided_slice %566 {offsets = [0, 384], sizes = [8, 128], strides = [1, 1]} : vector<8x512xf32> to vector<8x128xf32>
      %cst_308 = arith.constant 5.000000e-01 : f32
      %587 = vector.broadcast %cst_308 : f32 to vector<8x128xf32>
      %588 = arith.mulf %587, %586 : vector<8x128xf32>
      %589 = math.tanh %588 : vector<8x128xf32>
      %cst_309 = arith.constant 5.000000e-01 : f32
      %590 = vector.broadcast %cst_309 : f32 to vector<8x128xf32>
      %591 = arith.mulf %590, %589 : vector<8x128xf32>
      %cst_310 = arith.constant 5.000000e-01 : f32
      %592 = vector.broadcast %cst_310 : f32 to vector<8x128xf32>
      %593 = arith.addf %591, %592 : vector<8x128xf32>
      %594 = arith.mulf %583, %567 : vector<8x128xf32>
      %595 = arith.mulf %575, %585 : vector<8x128xf32>
      %596 = arith.addf %594, %595 : vector<8x128xf32>
      %597 = math.tanh %596 : vector<8x128xf32>
      %598 = arith.mulf %593, %597 : vector<8x128xf32>
      %c0_311 = arith.constant 0 : index
      %c0_312 = arith.constant 0 : index
      %599 = vector.load %arg11[%c0_311, %c0_312] : memref<8x128xf32, #tpu.memory_space<vmem>>, vector<8x128xf32>
      tpu.vector_store %arg11[%c0_311, %c0_312], %598 {strides = array<i32>} : memref<8x128xf32, #tpu.memory_space<vmem>>, vector<8x128xf32>,
      %c0_313 = arith.constant 0 : index
      %c0_314 = arith.constant 0 : index
      %600 = vector.load %arg12[%c0_313, %c0_314] : memref<8x128xf32, #tpu.memory_space<vmem>>, vector<8x128xf32>
      tpu.vector_store %arg12[%c0_313, %c0_314], %596 {strides = array<i32>} : memref<8x128xf32, #tpu.memory_space<vmem>>, vector<8x128xf32>,
      %601 = arith.index_cast %521 : i32 to index
      %c0_315 = arith.constant 0 : index
      %602 = vector.load %arg7[%601, %c0_315] : memref<128x128xf32, #tpu.memory_space<vmem>>, vector<8x128xf32>
      tpu.vector_store %arg7[%601, %c0_315], %598 {strides = array<i32>} : memref<128x128xf32, #tpu.memory_space<vmem>>, vector<8x128xf32>,
      %c7_i32 = arith.constant 7 : i32
      %603 = arith.addi %14, %c7_i32 : i32
      %c8_i32_316 = arith.constant 8 : i32
      %604 = arith.muli %603, %c8_i32_316 : i32
      %605 = tpu.assume_multiple %604, 8 : i32
      %606 = arith.index_cast %605 : i32 to index
      %c0_317 = arith.constant 0 : index
      %607 = vector.load %arg8[%606, %c0_317] : memref<128x512xf32, #tpu.memory_space<vmem>>, vector<8x512xf32>
      %c0_318 = arith.constant 0 : index
      %c0_319 = arith.constant 0 : index
      %608 = vector.load %arg9[%c0_318, %c0_319] : memref<8x128xf32, #tpu.memory_space<vmem>>, vector<8x128xf32>
      %c0_320 = arith.constant 0 : index
      %c0_321 = arith.constant 0 : index
      %609 = vector.load %arg3[%c0_320, %c0_321] : memref<128x512xf32, #tpu.memory_space<vmem>>, vector<128x512xf32>
      %cst_322 = arith.constant dense<0.000000e+00> : vector<8x512xf32>
      %610 = tpu.matmul %608, %609, %cst_322 {dimension_numbers = #tpu.dot_dimension_numbers<[1], [0], [0], [1], [0, 0, 1, 1], [], []>} : vector<8x128xf32>, vector<128x512xf32>, vector<8x512xf32> -> vector<8x512xf32>
      %611 = arith.addf %607, %610 : vector<8x512xf32>
      %c0_323 = arith.constant 0 : index
      %c0_324 = arith.constant 0 : index
      %612 = vector.load %arg10[%c0_323, %c0_324] : memref<8x128xf32, #tpu.memory_space<vmem>>, vector<8x128xf32>
      %613 = vector.extract_strided_slice %611 {offsets = [0, 0], sizes = [8, 128], strides = [1, 1]} : vector<8x512xf32> to vector<8x128xf32>
      %cst_325 = arith.constant 5.000000e-01 : f32
      %614 = vector.broadcast %cst_325 : f32 to vector<8x128xf32>
      %615 = arith.mulf %614, %613 : vector<8x128xf32>
      %616 = math.tanh %615 : vector<8x128xf32>
      %cst_326 = arith.constant 5.000000e-01 : f32
      %617 = vector.broadcast %cst_326 : f32 to vector<8x128xf32>
      %618 = arith.mulf %617, %616 : vector<8x128xf32>
      %cst_327 = arith.constant 5.000000e-01 : f32
      %619 = vector.broadcast %cst_327 : f32 to vector<8x128xf32>
      %620 = arith.addf %618, %619 : vector<8x128xf32>
      %621 = vector.extract_strided_slice %611 {offsets = [0, 128], sizes = [8, 128], strides = [1, 1]} : vector<8x512xf32> to vector<8x128xf32>
      %cst_328 = arith.constant 5.000000e-01 : f32
      %622 = vector.broadcast %cst_328 : f32 to vector<8x128xf32>
      %623 = arith.mulf %622, %621 : vector<8x128xf32>
      %624 = math.tanh %623 : vector<8x128xf32>
      %cst_329 = arith.constant 5.000000e-01 : f32
      %625 = vector.broadcast %cst_329 : f32 to vector<8x128xf32>
      %626 = arith.mulf %625, %624 : vector<8x128xf32>
      %cst_330 = arith.constant 5.000000e-01 : f32
      %627 = vector.broadcast %cst_330 : f32 to vector<8x128xf32>
      %628 = arith.addf %626, %627 : vector<8x128xf32>
      %629 = vector.extract_strided_slice %611 {offsets = [0, 256], sizes = [8, 128], strides = [1, 1]} : vector<8x512xf32> to vector<8x128xf32>
      %630 = math.tanh %629 : vector<8x128xf32>
      %631 = vector.extract_strided_slice %611 {offsets = [0, 384], sizes = [8, 128], strides = [1, 1]} : vector<8x512xf32> to vector<8x128xf32>
      %cst_331 = arith.constant 5.000000e-01 : f32
      %632 = vector.broadcast %cst_331 : f32 to vector<8x128xf32>
      %633 = arith.mulf %632, %631 : vector<8x128xf32>
      %634 = math.tanh %633 : vector<8x128xf32>
      %cst_332 = arith.constant 5.000000e-01 : f32
      %635 = vector.broadcast %cst_332 : f32 to vector<8x128xf32>
      %636 = arith.mulf %635, %634 : vector<8x128xf32>
      %cst_333 = arith.constant 5.000000e-01 : f32
      %637 = vector.broadcast %cst_333 : f32 to vector<8x128xf32>
      %638 = arith.addf %636, %637 : vector<8x128xf32>
      %639 = arith.mulf %628, %612 : vector<8x128xf32>
      %640 = arith.mulf %620, %630 : vector<8x128xf32>
      %641 = arith.addf %639, %640 : vector<8x128xf32>
      %642 = math.tanh %641 : vector<8x128xf32>
      %643 = arith.mulf %638, %642 : vector<8x128xf32>
      %c0_334 = arith.constant 0 : index
      %c0_335 = arith.constant 0 : index
      %644 = vector.load %arg9[%c0_334, %c0_335] : memref<8x128xf32, #tpu.memory_space<vmem>>, vector<8x128xf32>
      tpu.vector_store %arg9[%c0_334, %c0_335], %643 {strides = array<i32>} : memref<8x128xf32, #tpu.memory_space<vmem>>, vector<8x128xf32>,
      %c0_336 = arith.constant 0 : index
      %c0_337 = arith.constant 0 : index
      %645 = vector.load %arg10[%c0_336, %c0_337] : memref<8x128xf32, #tpu.memory_space<vmem>>, vector<8x128xf32>
      tpu.vector_store %arg10[%c0_336, %c0_337], %641 {strides = array<i32>} : memref<8x128xf32, #tpu.memory_space<vmem>>, vector<8x128xf32>,
      %c0_338 = arith.constant 0 : index
      %c0_339 = arith.constant 0 : index
      %646 = vector.load %arg11[%c0_338, %c0_339] : memref<8x128xf32, #tpu.memory_space<vmem>>, vector<8x128xf32>
      %647 = tpu.concatenate %643, %646 in 1 : vector<8x128xf32>, vector<8x128xf32> -> vector<8x256xf32>
      %c0_340 = arith.constant 0 : index
      %c0_341 = arith.constant 0 : index
      %648 = vector.load %arg5[%c0_340, %c0_341] : memref<256x512xf32, #tpu.memory_space<vmem>>, vector<256x512xf32>
      %cst_342 = arith.constant dense<0.000000e+00> : vector<8x512xf32>
      %649 = tpu.matmul %647, %648, %cst_342 {dimension_numbers = #tpu.dot_dimension_numbers<[1], [0], [0], [1], [0, 0, 1, 1], [], []>} : vector<8x256xf32>, vector<256x512xf32>, vector<8x512xf32> -> vector<8x512xf32>
      %650 = arith.addf %649, %12 : vector<8x512xf32>
      %c0_343 = arith.constant 0 : index
      %c0_344 = arith.constant 0 : index
      %651 = vector.load %arg12[%c0_343, %c0_344] : memref<8x128xf32, #tpu.memory_space<vmem>>, vector<8x128xf32>
      %652 = vector.extract_strided_slice %650 {offsets = [0, 0], sizes = [8, 128], strides = [1, 1]} : vector<8x512xf32> to vector<8x128xf32>
      %cst_345 = arith.constant 5.000000e-01 : f32
      %653 = vector.broadcast %cst_345 : f32 to vector<8x128xf32>
      %654 = arith.mulf %653, %652 : vector<8x128xf32>
      %655 = math.tanh %654 : vector<8x128xf32>
      %cst_346 = arith.constant 5.000000e-01 : f32
      %656 = vector.broadcast %cst_346 : f32 to vector<8x128xf32>
      %657 = arith.mulf %656, %655 : vector<8x128xf32>
      %cst_347 = arith.constant 5.000000e-01 : f32
      %658 = vector.broadcast %cst_347 : f32 to vector<8x128xf32>
      %659 = arith.addf %657, %658 : vector<8x128xf32>
      %660 = vector.extract_strided_slice %650 {offsets = [0, 128], sizes = [8, 128], strides = [1, 1]} : vector<8x512xf32> to vector<8x128xf32>
      %cst_348 = arith.constant 5.000000e-01 : f32
      %661 = vector.broadcast %cst_348 : f32 to vector<8x128xf32>
      %662 = arith.mulf %661, %660 : vector<8x128xf32>
      %663 = math.tanh %662 : vector<8x128xf32>
      %cst_349 = arith.constant 5.000000e-01 : f32
      %664 = vector.broadcast %cst_349 : f32 to vector<8x128xf32>
      %665 = arith.mulf %664, %663 : vector<8x128xf32>
      %cst_350 = arith.constant 5.000000e-01 : f32
      %666 = vector.broadcast %cst_350 : f32 to vector<8x128xf32>
      %667 = arith.addf %665, %666 : vector<8x128xf32>
      %668 = vector.extract_strided_slice %650 {offsets = [0, 256], sizes = [8, 128], strides = [1, 1]} : vector<8x512xf32> to vector<8x128xf32>
      %669 = math.tanh %668 : vector<8x128xf32>
      %670 = vector.extract_strided_slice %650 {offsets = [0, 384], sizes = [8, 128], strides = [1, 1]} : vector<8x512xf32> to vector<8x128xf32>
      %cst_351 = arith.constant 5.000000e-01 : f32
      %671 = vector.broadcast %cst_351 : f32 to vector<8x128xf32>
      %672 = arith.mulf %671, %670 : vector<8x128xf32>
      %673 = math.tanh %672 : vector<8x128xf32>
      %cst_352 = arith.constant 5.000000e-01 : f32
      %674 = vector.broadcast %cst_352 : f32 to vector<8x128xf32>
      %675 = arith.mulf %674, %673 : vector<8x128xf32>
      %cst_353 = arith.constant 5.000000e-01 : f32
      %676 = vector.broadcast %cst_353 : f32 to vector<8x128xf32>
      %677 = arith.addf %675, %676 : vector<8x128xf32>
      %678 = arith.mulf %667, %651 : vector<8x128xf32>
      %679 = arith.mulf %659, %669 : vector<8x128xf32>
      %680 = arith.addf %678, %679 : vector<8x128xf32>
      %681 = math.tanh %680 : vector<8x128xf32>
      %682 = arith.mulf %677, %681 : vector<8x128xf32>
      %c0_354 = arith.constant 0 : index
      %c0_355 = arith.constant 0 : index
      %683 = vector.load %arg11[%c0_354, %c0_355] : memref<8x128xf32, #tpu.memory_space<vmem>>, vector<8x128xf32>
      tpu.vector_store %arg11[%c0_354, %c0_355], %682 {strides = array<i32>} : memref<8x128xf32, #tpu.memory_space<vmem>>, vector<8x128xf32>,
      %c0_356 = arith.constant 0 : index
      %c0_357 = arith.constant 0 : index
      %684 = vector.load %arg12[%c0_356, %c0_357] : memref<8x128xf32, #tpu.memory_space<vmem>>, vector<8x128xf32>
      tpu.vector_store %arg12[%c0_356, %c0_357], %680 {strides = array<i32>} : memref<8x128xf32, #tpu.memory_space<vmem>>, vector<8x128xf32>,
      %685 = arith.index_cast %605 : i32 to index
      %c0_358 = arith.constant 0 : index
      %686 = vector.load %arg7[%685, %c0_358] : memref<128x128xf32, #tpu.memory_space<vmem>>, vector<8x128xf32>
      tpu.vector_store %arg7[%685, %c0_358], %682 {strides = array<i32>} : memref<128x128xf32, #tpu.memory_space<vmem>>, vector<8x128xf32>,
    }
    %c2_i32_11 = arith.constant 2 : i32
    return
  }
  func.func @transform_0(%arg0: i32) -> (i32, i32) {
    %c0_i32 = arith.constant 0 : i32
    %c0_i32_0 = arith.constant 0 : i32
    return %arg0, %c0_i32 : i32, i32
  }
  func.func @transform_1(%arg0: i32) -> (i32, i32) {
    %c0_i32 = arith.constant 0 : i32
    %c0_i32_0 = arith.constant 0 : i32
    %c0_i32_1 = arith.constant 0 : i32
    return %c0_i32, %c0_i32_0 : i32, i32
  }
  func.func @transform_2(%arg0: i32) -> (i32, i32) {
    %c0_i32 = arith.constant 0 : i32
    %c0_i32_0 = arith.constant 0 : i32
    %c0_i32_1 = arith.constant 0 : i32
    return %c0_i32, %c0_i32_0 : i32, i32
  }
  func.func @transform_3(%arg0: i32) -> (i32, i32) {
    %c0_i32 = arith.constant 0 : i32
    %c0_i32_0 = arith.constant 0 : i32
    %c0_i32_1 = arith.constant 0 : i32
    return %c0_i32, %c0_i32_0 : i32, i32
  }
  func.func @transform_4(%arg0: i32) -> (i32, i32) {
    %c0_i32 = arith.constant 0 : i32
    %c0_i32_0 = arith.constant 0 : i32
    %c0_i32_1 = arith.constant 0 : i32
    return %c0_i32, %c0_i32_0 : i32, i32
  }
  func.func @transform_5(%arg0: i32) -> (i32, i32) {
    %c0_i32 = arith.constant 0 : i32
    %c0_i32_0 = arith.constant 0 : i32
    %c0_i32_1 = arith.constant 0 : i32
    return %c0_i32, %c0_i32_0 : i32, i32
  }
  func.func @transform_6(%arg0: i32) -> (i32, i32) {
    %c0_i32 = arith.constant 0 : i32
    %c0_i32_0 = arith.constant 0 : i32
    return %arg0, %c0_i32 : i32, i32
  }
}

</mosaic_0001>

<bundles_post_ra>
// kernel: text_generator_forward.3
= control target key start
LH: loop header
LB: loop body
LE: loop exit
PB: predicated region body
PF: predicated region fallthrough
CT: control target
= control target key end

     0   :  { %s257_s0 = inlined_call_operand.vmem [shape: f32[32,128], index: 0, kind: input, shape index: {}]   ;;  %s258_s1 = inlined_call_operand.vmem [shape: f32[128,128], index: 1, kind: input, shape index: {}]   ;;  %s259_s2 = inlined_call_operand.vmem [shape: f32[1,128], index: 2, kind: input, shape index: {}]   ;;  %s260_s3 = inlined_call_operand.hbm [shape: f32[32,128], index: 3, kind: output, shape index: {}]  }
   0x1   :  { %v34_v0 = vld [vmem:[%s258_s1 + $0x78] sm:$0xff]  ;;  %v33_v1 = vld [vmem:[%s258_s1 + $0x70] sm:$0xff]  ;;  %v32_v2 = vld [vmem:[%s258_s1 + $0x68] sm:$0xff] }
   0x2   :  { %91 = vmatpush.msra.mxu2 %v34_v0  ;;  %92 = vmatpush.msra.mxu3 %v34_v0  ;;  %v31_v3 = vld [vmem:[%s258_s1 + $0x60] sm:$0xff]  ;;  %v30_v4 = vld [vmem:[%s258_s1 + $0x58] sm:$0xff] }
   0x3   :  { %39 = vmatpush.msra.mxu0 %v34_v0  ;;  %90 = vmatpush.msra.mxu1 %v34_v0 }
   0x4   :  { %94 = vmatpush.msra.mxu2 %v33_v1  ;;  %95 = vmatpush.msra.mxu3 %v33_v1 }
   0x5   :  { %40 = vmatpush.msra.mxu0 %v33_v1  ;;  %93 = vmatpush.msra.mxu1 %v33_v1 }
   0x6   :  { %97 = vmatpush.msra.mxu2 %v32_v2  ;;  %98 = vmatpush.msra.mxu3 %v32_v2 }
   0x7   :  { %41 = vmatpush.msra.mxu0 %v32_v2  ;;  %96 = vmatpush.msra.mxu1 %v32_v2 }
   0x8   :  { %100 = vmatpush.msra.mxu2 %v31_v3  ;;  %101 = vmatpush.msra.mxu3 %v31_v3 }
   0x9   :  { %8 = vsyncpa [#allocation3], 0  ;;  %v29_v5 = vld [vmem:[%s258_s1 + $0x50] sm:$0xff]  ;;  %42 = vmatpush.msra.mxu0 %v31_v3  ;;  %99 = vmatpush.msra.mxu1 %v31_v3  ;;  %v28_v6 = vld [vmem:[%s258_s1 + $0x48] sm:$0xff]  ;;  %s168_s26 = smov [#allocation2]   ;;  %s170_s30 = smov 8  }
   0xa   :  { %103 = vmatpush.msra.mxu2 %v30_v4  ;;  %104 = vmatpush.msra.mxu3 %v30_v4  ;;  %v27_v7 = vld [vmem:[%s258_s1 + $0x40] sm:$0xff]  ;;  %v26_v8 = vld [vmem:[%s258_s1 + $0x38] sm:$0xff]  ;;  %v25_v9 = vld [vmem:[%s258_s1 + $0x30] sm:$0xff]  ;;  %s76_s27 = sshll.u32 %s168_s26, 4  ;;  %s77_s27 = int_to_ptr.vmem [resolvable:$true] %s76_s27 }
   0xb   :  { %43 = vmatpush.msra.mxu0 %v30_v4  ;;  %102 = vmatpush.msra.mxu1 %v30_v4  ;;  %v24_v10 = vld [vmem:[%s258_s1 + $0x28] sm:$0xff]  ;;  %v23_v11 = vld [vmem:[%s258_s1 + $0x20] sm:$0xff]  ;;  %v22_v12 = vld [vmem:[%s258_s1 + $0x18] sm:$0xff] }
   0xc   :  { %106 = vmatpush.msra.mxu2 %v29_v5  ;;  %107 = vmatpush.msra.mxu3 %v29_v5  ;;  %v21_v13 = vld [vmem:[%s258_s1 + $0x10] sm:$0xff]  ;;  %v20_v14 = vld [vmem:[%s258_s1 + $0x8] sm:$0xff]  ;;  %v19_v15 = vld [vmem:[%s258_s1] sm:$0xff] }
   0xd   :  { %44 = vmatpush.msra.mxu0 %v29_v5  ;;  %105 = vmatpush.msra.mxu1 %v29_v5  ;;  %v17_v16 = vld [vmem:[%s257_s0 + $0x10] sm:$0xff]  ;;  %v18_v17 = vld [vmem:[%s257_s0 + $0x18] sm:$0xff]  ;;  %v15_v18 = vld [vmem:[%s257_s0] sm:$0xff] }
   0xe   :  { %109 = vmatpush.msra.mxu2 %v28_v6  ;;  %110 = vmatpush.msra.mxu3 %v28_v6  ;;  %v16_v19 = vld [vmem:[%s257_s0 + $0x8] sm:$0xff]  ;;  %v141_v20 = vld [vmem:[%s259_s2] ss:$0 sm:$0xff]  ;;  %s78_s0 = sshll.u32 %s260_s3, 4  ;;  %s169_s2 = smov 128   ;;  %s79_s0 = int_to_ptr.hbm [resolvable:$true] %s78_s0 }
   0xf   :  { %45 = vmatpush.msra.mxu0 %v28_v6  ;;  %108 = vmatpush.msra.mxu1 %v28_v6 }
  0x10   :  { %112 = vmatpush.msra.mxu2 %v27_v7  ;;  %113 = vmatpush.msra.mxu3 %v27_v7 }
  0x11   :  { %46 = vmatpush.msra.mxu0 %v27_v7  ;;  %111 = vmatpush.msra.mxu1 %v27_v7 }
  0x12   :  { %115 = vmatpush.msra.mxu2 %v26_v8  ;;  %116 = vmatpush.msra.mxu3 %v26_v8 }
  0x13   :  { %47 = vmatpush.msra.mxu0 %v26_v8  ;;  %114 = vmatpush.msra.mxu1 %v26_v8 }
  0x14   :  { %118 = vmatpush.msra.mxu2 %v25_v9  ;;  %119 = vmatpush.msra.mxu3 %v25_v9 }
  0x15   :  { %48 = vmatpush.msra.mxu0 %v25_v9  ;;  %117 = vmatpush.msra.mxu1 %v25_v9 }
  0x16   :  { %121 = vmatpush.msra.mxu2 %v24_v10  ;;  %122 = vmatpush.msra.mxu3 %v24_v10 }
  0x17   :  { %49 = vmatpush.msra.mxu0 %v24_v10  ;;  %120 = vmatpush.msra.mxu1 %v24_v10 }
  0x18   :  { %124 = vmatpush.msra.mxu2 %v23_v11  ;;  %125 = vmatpush.msra.mxu3 %v23_v11 }
  0x19   :  { %50 = vmatpush.msra.mxu0 %v23_v11  ;;  %123 = vmatpush.msra.mxu1 %v23_v11 }
  0x1a   :  { %127 = vmatpush.msra.mxu2 %v22_v12  ;;  %128 = vmatpush.msra.mxu3 %v22_v12 }
  0x1b   :  { %51 = vmatpush.msra.mxu0 %v22_v12  ;;  %126 = vmatpush.msra.mxu1 %v22_v12 }
  0x1c   :  { %130 = vmatpush.msra.mxu2 %v21_v13  ;;  %131 = vmatpush.msra.mxu3 %v21_v13 }
  0x1d   :  { %52 = vmatpush.msra.mxu0 %v21_v13  ;;  %129 = vmatpush.msra.mxu1 %v21_v13 }
  0x1e   :  { %133 = vmatpush.msra.mxu2 %v20_v14  ;;  %134 = vmatpush.msra.mxu3 %v20_v14 }
  0x1f   :  { %53 = vmatpush.msra.mxu0 %v20_v14  ;;  %132 = vmatpush.msra.mxu1 %v20_v14 }
  0x20   :  { %136 = vmatpush.msra.mxu2 %v19_v15  ;;  %137 = vmatpush.msra.mxu3 %v19_v15 }
  0x21   :  { %61 = vmatmul.f32.vlgmr.msra.gmra.mxu2 %v17_v16  ;;  %64 = vmatmul.f32.vlgmr.msra.gmra.mxu3 %v18_v17 }
  0x22   :  { %54 = vmatpush.msra.mxu0 %v19_v15  ;;  %135 = vmatpush.msra.mxu1 %v19_v15 }
  0x23   :  { %55 = vmatmul.f32.vlgmr.msra.gmra.mxu0 %v15_v18  ;;  %58 = vmatmul.f32.vlgmr.msra.gmra.mxu1 %v16_v19 }
  0xa0   :  { %v56_v21 = vpop.f32.mrf.mxu0  ;;  %v59_v22 = vpop.f32.mrf.mxu1 }
  0xa1   :  { %v57_v23 = vadd.f32 %v141_v20, %v56_v21  ;;  %v60_v24 = vadd.f32 %v141_v20, %v59_v22 }
  0xa3   :  { %68 = vst [vmem:[#allocation2] sm:$0xff] %v57_v23 }
  0xa4   :  { %69 = vst [vmem:[#allocation2 + $0x8] sm:$0xff] %v60_v24  ;;  %v62_v25 = vpop.f32.mrf.mxu2  ;;  %v65_v26 = vpop.f32.mrf.mxu3 }
  0xa5   :  { %v63_v27 = vadd.f32 %v141_v20, %v62_v25  ;;  %v66_v28 = vadd.f32 %v141_v20, %v65_v26 }
  0xa7   :  { %70 = vst [vmem:[#allocation2 + $0x10] sm:$0xff] %v63_v27 }
  0xa8   :  { %71 = vst [vmem:[#allocation2 + $0x18] sm:$0xff] %v66_v28 }
  0xa9   :  { %84 = dma.vmem_to_hbm [thread:$0]  %s77_s27, 512, %s79_s0, [#allocation3], %s169_s2, %s169_s2, %s170_s30  }
  0xaa   :  { %166 = dma.done.wait [#allocation3], 512  }
  0xab   :  { %167 = vsyncadd [#allocation3], 4294966784 }
  0xac   :  { %89 = vsyncpa [#allocation3], 1 }

// kernel: text_generator_forward.2
= control target key start
LH: loop header
LB: loop body
LE: loop exit
PB: predicated region body
PF: predicated region fallthrough
CT: control target
= control target key end

     0   :  { %11 = vsyncpa [#allocation8], 0  ;;  %s9213_s0 = inlined_call_operand.vmem [shape: f32[128,256], index: 0, kind: input, shape index: {}]   ;;  %s9214_s1 = inlined_call_operand.vmem [shape: f32[256,512], index: 1, kind: input, shape index: {}]   ;;  %s9215_s2 = inlined_call_operand.hbm [shape: f32[128,512], index: 2, kind: input, shape index: {}]   ;;  %s9216_s3 = inlined_call_operand.vmem [shape: f32[1,512], index: 3, kind: input, shape index: {}]   ;;  %s9217_s4 = inlined_call_operand.hbm [shape: f32[256,512], index: 4, kind: input, shape index: {}]   ;;  %s9218_s5 = inlined_call_operand.vmem [shape: f32[1,512], index: 5, kind: input, shape index: {}]   ;;  %s9219_s6 = inlined_call_operand.vmem [shape: f32[128,128], index: 6, kind: output, shape index: {}]  }
   0x1   :  { %s21_s23 = sshll.u32 %s9215_s2, 4  ;;  %s22_s23 = int_to_ptr.hbm [resolvable:$true] %s21_s23 }
   0x2   :  { %12 = vsyncpa [#allocation10], 0  ;;  %s5149_s24 = smov [#allocation7]   ;;  %s36_s28 = sshll.u32 %s9217_s4, 4  ;;  %s37_s28 = int_to_ptr.hbm [resolvable:$true] %s36_s28 }
   0x3   :  { %s23_s25 = sshll.u32 %s5149_s24, 4  ;;  %s5150_s29 = smov 512   ;;  %s24_s25 = int_to_ptr.vmem [resolvable:$true] %s23_s25 }
   0x4   :  { %s5151_s30 = smov 32   ;;  %s5152_s7 = smov [#allocation9]  }
   0x5   :  { %29 = dma.hbm_to_vmem [thread:$0]  %s22_s23, 8192, %s24_s25, [#allocation8], %s5150_s29, %s5150_s29, %s5151_s30  }
   0x6   :  { %s38_s8 = sshll.u32 %s5152_s7, 4  ;;  %s39_s8 = int_to_ptr.vmem [resolvable:$true] %s38_s8 }
   0x7   :  { %44 = dma.hbm_to_vmem [thread:$0]  %s37_s28, 16384, %s39_s8, [#allocation10], %s5150_s29, %s5150_s29, %s5151_s30  }
   0x8   :  { %5141 = dma.done.wait [#allocation8], 8192  }
   0x9   :  { %5142 = vsyncadd [#allocation8], 4294959104 }
   0xa   :  { %5143 = dma.done.wait [#allocation10], 16384  }
   0xb   :  { %5144 = vsyncadd [#allocation10], 4294950912  ;;  %v5153_v0 = vmov 0.0   ;;  %v817_v1 = vld [vmem:[%s9218_s5] sm:$0xf]  ;;  %v156_v2 = vld [vmem:[%s9214_s1 + $0x1e8] sm:$0xff] }
   0xc   :  { %59 = vst [vmem:[#allocation3] sm:$0xff] %v5153_v0  ;;  %v152_v3 = vld [vmem:[%s9214_s1 + $0x1c8] sm:$0xff]  ;;  %v5204_v4 = vperm.slane %v817_v1, 0  ;;  %v5206_v5 = vperm.slane %v817_v1, 1  ;;  %v5208_v6 = vperm.slane %v817_v1, 2  ;;  %v5210_v7 = vperm.slane %v817_v1, 3  ;;  %363 = vmatpush.msra.mxu2 %v156_v2 }
   0xd   :  { %60 = vst [vmem:[#allocation4] sm:$0xff] %v5153_v0  ;;  %v220_v8 = vld [vmem:[%s9214_s1 + $0x3e8] sm:$0xff]  ;;  %v155_v11 = vld [vmem:[%s9214_s1 + $0x1e0] sm:$0xff] }
   0xe   :  { %61 = vst [vmem:[#allocation5] sm:$0xff] %v5153_v0  ;;  %428 = vmatpush.msra.mxu3 %v220_v8  ;;  %v148_v9 = vld [vmem:[%s9214_s1 + $0x1a8] sm:$0xff]  ;;  %364 = vmatpush.msra.mxu2 %v152_v3  ;;  %v151_v13 = vld [vmem:[%s9214_s1 + $0x1c0] sm:$0xff]  ;;  %v158_v8 = vld [vmem:[%s9214_s1 + $0x1f8] sm:$0xff] }
   0xf   :  { %62 = vst [vmem:[#allocation6] sm:$0xff] %v5153_v0  ;;  %v216_v10 = vld [vmem:[%s9214_s1 + $0x3c8] sm:$0xff]  ;;  %233 = vmatpush.msra.mxu0 %v155_v11  ;;  %v219_v14 = vld [vmem:[%s9214_s1 + $0x3e0] sm:$0xff] }
  0x10   :  { %9749 = vst [vmem:[#allocation13_spill] sm:$0xff] %v5204_v4  ;;  %v212_v12 = vld [vmem:[%s9214_s1 + $0x3a8] sm:$0xff]  ;;  %429 = vmatpush.msra.mxu3 %v216_v10  ;;  %298 = vmatpush.msra.mxu1 %v219_v14  ;;  %v147_v16 = vld [vmem:[%s9214_s1 + $0x1a0] sm:$0xff]  ;;  %v222_v10 = vld [vmem:[%s9214_s1 + $0x3f8] sm:$0xff] }
  0x11   :  { %9750 = vst [vmem:[#allocation14_spill] sm:$0xff] %v5206_v5  ;;  %v144_v15 = vld [vmem:[%s9214_s1 + $0x188] sm:$0xff]  ;;  %365 = vmatpush.msra.mxu2 %v148_v9  ;;  %234 = vmatpush.msra.mxu0 %v151_v13  ;;  %v215_v18 = vld [vmem:[%s9214_s1 + $0x3c0] sm:$0xff]  ;;  %v157_v13 = vld [vmem:[%s9214_s1 + $0x1f0] sm:$0xff] }
  0x12   :  { %9751 = vst [vmem:[#allocation15_spill] sm:$0xff] %v5208_v6  ;;  %v208_v17 = vld [vmem:[%s9214_s1 + $0x388] sm:$0xff]  ;;  %430 = vmatpush.msra.mxu3 %v212_v12  ;;  %299 = vmatpush.msra.mxu1 %v215_v18  ;;  %v143_v20 = vld [vmem:[%s9214_s1 + $0x180] sm:$0xff]  ;;  %v154_v14 = vld [vmem:[%s9214_s1 + $0x1d8] sm:$0xff] }
  0x13   :  { %9752 = vst [vmem:[#allocation16_spill] sm:$0xff] %v5210_v7  ;;  %v140_v19 = vld [vmem:[%s9214_s1 + $0x168] sm:$0xff]  ;;  %v211_v21 = vld [vmem:[%s9214_s1 + $0x3a0] sm:$0xff]  ;;  %366 = vmatpush.msra.mxu2 %v144_v15  ;;  %235 = vmatpush.msra.mxu0 %v147_v16  ;;  %v218_v16 = vld [vmem:[%s9214_s1 + $0x3d8] sm:$0xff] }
  0x14   :  { %v204_v22 = vld [vmem:[%s9214_s1 + $0x368] sm:$0xff]  ;;  %v207_v23 = vld [vmem:[%s9214_s1 + $0x380] sm:$0xff]  ;;  %431 = vmatpush.msra.mxu3 %v208_v17  ;;  %300 = vmatpush.msra.mxu1 %v211_v21  ;;  %v153_v17 = vld [vmem:[%s9214_s1 + $0x1d0] sm:$0xff] }
  0x15   :  { %v136_v24 = vld [vmem:[%s9214_s1 + $0x148] sm:$0xff]  ;;  %v139_v25 = vld [vmem:[%s9214_s1 + $0x160] sm:$0xff]  ;;  %367 = vmatpush.msra.mxu2 %v140_v19  ;;  %236 = vmatpush.msra.mxu0 %v143_v20  ;;  %v221_v18 = vld [vmem:[%s9214_s1 + $0x3f0] sm:$0xff] }
  0x16   :  { %v200_v26 = vld [vmem:[%s9214_s1 + $0x348] sm:$0xff]  ;;  %v203_v27 = vld [vmem:[%s9214_s1 + $0x360] sm:$0xff]  ;;  %432 = vmatpush.msra.mxu3 %v204_v22  ;;  %301 = vmatpush.msra.mxu1 %v207_v23  ;;  %v150_v19 = vld [vmem:[%s9214_s1 + $0x1b8] sm:$0xff] }
  0x17   :  { %v132_v28 = vld [vmem:[%s9214_s1 + $0x128] sm:$0xff]  ;;  %v135_v29 = vld [vmem:[%s9214_s1 + $0x140] sm:$0xff]  ;;  %368 = vmatpush.msra.mxu2 %v136_v24  ;;  %237 = vmatpush.msra.mxu0 %v139_v25  ;;  %v5438_v20 = vld [vmem:[%s9213_s0 + $0x10] sm:$0xff] }
  0x18   :  { %v196_v30 = vld [vmem:[%s9214_s1 + $0x328] sm:$0xff]  ;;  %v199_v31 = vld [vmem:[%s9214_s1 + $0x340] sm:$0xff]  ;;  %433 = vmatpush.msra.mxu3 %v200_v26  ;;  %302 = vmatpush.msra.mxu1 %v203_v27  ;;  %v214_v21 = vld [vmem:[%s9214_s1 + $0x3b8] sm:$0xff] }
  0x19   :  { %v128_v32 = vld [vmem:[%s9214_s1 + $0x108] sm:$0xff]  ;;  %v131_v33 = vld [vmem:[%s9214_s1 + $0x120] sm:$0xff]  ;;  %369 = vmatpush.msra.mxu2 %v132_v28  ;;  %238 = vmatpush.msra.mxu0 %v135_v29  ;;  %v5447_v22 = vld [vmem:[%s9213_s0 + $0x18] sm:$0xff] }
  0x1a   :  { %v192_v34 = vld [vmem:[%s9214_s1 + $0x308] sm:$0xff]  ;;  %v195_v35 = vld [vmem:[%s9214_s1 + $0x320] sm:$0xff]  ;;  %434 = vmatpush.msra.mxu3 %v196_v30  ;;  %303 = vmatpush.msra.mxu1 %v199_v31  ;;  %v217_v23 = vld [vmem:[%s9214_s1 + $0x3d0] sm:$0xff] }
  0x1b   :  { %v124_v36 = vld [vmem:[%s9214_s1 + $0xe8] sm:$0xff]  ;;  %v127_v37 = vld [vmem:[%s9214_s1 + $0x100] sm:$0xff]  ;;  %370 = vmatpush.msra.mxu2 %v128_v32  ;;  %239 = vmatpush.msra.mxu0 %v131_v33  ;;  %v149_v24 = vld [vmem:[%s9214_s1 + $0x1b0] sm:$0xff] }
  0x1c   :  { %v188_v38 = vld [vmem:[%s9214_s1 + $0x2e8] sm:$0xff]  ;;  %v191_v39 = vld [vmem:[%s9214_s1 + $0x300] sm:$0xff]  ;;  %435 = vmatpush.msra.mxu3 %v192_v34  ;;  %304 = vmatpush.msra.mxu1 %v195_v35  ;;  %v146_v25 = vld [vmem:[%s9214_s1 + $0x198] sm:$0xff] }
  0x1d   :  { %v120_v40 = vld [vmem:[%s9214_s1 + $0xc8] sm:$0xff]  ;;  %v123_v41 = vld [vmem:[%s9214_s1 + $0xe0] sm:$0xff]  ;;  %371 = vmatpush.msra.mxu2 %v124_v36  ;;  %240 = vmatpush.msra.mxu0 %v127_v37  ;;  %v213_v26 = vld [vmem:[%s9214_s1 + $0x3b0] sm:$0xff] }
  0x1e   :  { %v184_v42 = vld [vmem:[%s9214_s1 + $0x2c8] sm:$0xff]  ;;  %v187_v43 = vld [vmem:[%s9214_s1 + $0x2e0] sm:$0xff]  ;;  %436 = vmatpush.msra.mxu3 %v188_v38  ;;  %305 = vmatpush.msra.mxu1 %v191_v39  ;;  %v210_v27 = vld [vmem:[%s9214_s1 + $0x398] sm:$0xff] }
  0x1f   :  { %v116_v44 = vld [vmem:[%s9214_s1 + $0xa8] sm:$0xff]  ;;  %v119_v45 = vld [vmem:[%s9214_s1 + $0xc0] sm:$0xff]  ;;  %372 = vmatpush.msra.mxu2 %v120_v40  ;;  %241 = vmatpush.msra.mxu0 %v123_v41  ;;  %v145_v28 = vld [vmem:[%s9214_s1 + $0x190] sm:$0xff] }
  0x20   :  { %v180_v46 = vld [vmem:[%s9214_s1 + $0x2a8] sm:$0xff]  ;;  %v183_v47 = vld [vmem:[%s9214_s1 + $0x2c0] sm:$0xff]  ;;  %437 = vmatpush.msra.mxu3 %v184_v42  ;;  %306 = vmatpush.msra.mxu1 %v187_v43  ;;  %v209_v29 = vld [vmem:[%s9214_s1 + $0x390] sm:$0xff] }
  0x21   :  { %v112_v48 = vld [vmem:[%s9214_s1 + $0x88] sm:$0xff]  ;;  %v115_v49 = vld [vmem:[%s9214_s1 + $0xa0] sm:$0xff]  ;;  %373 = vmatpush.msra.mxu2 %v116_v44  ;;  %242 = vmatpush.msra.mxu0 %v119_v45  ;;  %v142_v30 = vld [vmem:[%s9214_s1 + $0x178] sm:$0xff] }
  0x22   :  { %v176_v50 = vld [vmem:[%s9214_s1 + $0x288] sm:$0xff]  ;;  %v179_v51 = vld [vmem:[%s9214_s1 + $0x2a0] sm:$0xff]  ;;  %438 = vmatpush.msra.mxu3 %v180_v46  ;;  %307 = vmatpush.msra.mxu1 %v183_v47  ;;  %v206_v31 = vld [vmem:[%s9214_s1 + $0x378] sm:$0xff] }
  0x23   :  { %v108_v52 = vld [vmem:[%s9214_s1 + $0x68] sm:$0xff]  ;;  %v111_v53 = vld [vmem:[%s9214_s1 + $0x80] sm:$0xff]  ;;  %374 = vmatpush.msra.mxu2 %v112_v48  ;;  %243 = vmatpush.msra.mxu0 %v115_v49  ;;  %v141_v32 = vld [vmem:[%s9214_s1 + $0x170] sm:$0xff] }
  0x24   :  { %v172_v54 = vld [vmem:[%s9214_s1 + $0x268] sm:$0xff]  ;;  %v175_v55 = vld [vmem:[%s9214_s1 + $0x280] sm:$0xff]  ;;  %439 = vmatpush.msra.mxu3 %v176_v50  ;;  %308 = vmatpush.msra.mxu1 %v179_v51  ;;  %v205_v33 = vld [vmem:[%s9214_s1 + $0x370] sm:$0xff] }
  0x25   :  { %v104_v56 = vld [vmem:[%s9214_s1 + $0x48] sm:$0xff]  ;;  %v107_v57 = vld [vmem:[%s9214_s1 + $0x60] sm:$0xff]  ;;  %375 = vmatpush.msra.mxu2 %v108_v52  ;;  %244 = vmatpush.msra.mxu0 %v111_v53  ;;  %v202_v35 = vld [vmem:[%s9214_s1 + $0x358] sm:$0xff] }
  0x26   :  { %v168_v58 = vld [vmem:[%s9214_s1 + $0x248] sm:$0xff]  ;;  %v171_v59 = vld [vmem:[%s9214_s1 + $0x260] sm:$0xff]  ;;  %440 = vmatpush.msra.mxu3 %v172_v54  ;;  %309 = vmatpush.msra.mxu1 %v175_v55  ;;  %v138_v37 = vld [vmem:[%s9214_s1 + $0x158] sm:$0xff] }
  0x27   :  { %v100_v60 = vld [vmem:[%s9214_s1 + $0x28] sm:$0xff]  ;;  %v103_v61 = vld [vmem:[%s9214_s1 + $0x40] sm:$0xff]  ;;  %376 = vmatpush.msra.mxu2 %v104_v56  ;;  %245 = vmatpush.msra.mxu0 %v107_v57  ;;  %v137_v38 = vld [vmem:[%s9214_s1 + $0x150] sm:$0xff] }
  0x28   :  { %v164_v62 = vld [vmem:[%s9214_s1 + $0x228] sm:$0xff]  ;;  %v167_v63 = vld [vmem:[%s9214_s1 + $0x240] sm:$0xff]  ;;  %441 = vmatpush.msra.mxu3 %v168_v58  ;;  %310 = vmatpush.msra.mxu1 %v171_v59  ;;  %v201_v39 = vld [vmem:[%s9214_s1 + $0x350] sm:$0xff] }
  0x29   :  { %v96_v0 = vld [vmem:[%s9214_s1 + $0x8] sm:$0xff]  ;;  %v99_v1 = vld [vmem:[%s9214_s1 + $0x20] sm:$0xff]  ;;  %377 = vmatpush.msra.mxu2 %v100_v60  ;;  %246 = vmatpush.msra.mxu0 %v103_v61  ;;  %v134_v40 = vld [vmem:[%s9214_s1 + $0x138] sm:$0xff] }
  0x2a   :  { %v5389_v2 = vld [vmem:[%s9213_s0] sm:$0xff]  ;;  %v160_v3 = vld [vmem:[%s9214_s1 + $0x208] sm:$0xff]  ;;  %442 = vmatpush.msra.mxu3 %v164_v62  ;;  %311 = vmatpush.msra.mxu1 %v167_v63  ;;  %v198_v41 = vld [vmem:[%s9214_s1 + $0x338] sm:$0xff] }
  0x2b   :  { %v5400_v9 = vld [vmem:[%s9213_s0 + $0x8] sm:$0xff]  ;;  %378 = vmatpush.msra.mxu2 %v96_v0  ;;  %247 = vmatpush.msra.mxu0 %v99_v1  ;;  %v95_v11 = vld [vmem:[%s9214_s1] sm:$0xff]  ;;  %v133_v42 = vld [vmem:[%s9214_s1 + $0x130] sm:$0xff] }
  0x2c   :  { %379 = vmatmul.f32.vlgmr.msra.gmra.mxu2 %v5389_v2  ;;  %443 = vmatpush.msra.mxu3 %v160_v3  ;;  %v163_v12 = vld [vmem:[%s9214_s1 + $0x220] sm:$0xff]  ;;  %v5497_v36 = vld [vmem:[%s9213_s0 + $0x28] sm:$0xff]  ;;  %v5523_v43 = vld [vmem:[%s9213_s0 + $0x30] sm:$0xff] }
  0x2d   :  { %623 = vmatpush.msrb.mxu2 %v158_v8  ;;  %444 = vmatmul.f32.vlgmr.msra.gmra.mxu3 %v5400_v9  ;;  %v159_v15 = vld [vmem:[%s9214_s1 + $0x200] sm:$0xff]  ;;  %v5529_v44 = vld [vmem:[%s9213_s0 + $0x38] sm:$0xff]  ;;  %v197_v45 = vld [vmem:[%s9214_s1 + $0x330] sm:$0xff] }
  0x2e   :  { %688 = vmatpush.msrb.mxu3 %v222_v10  ;;  %248 = vmatpush.msra.mxu0 %v95_v11  ;;  %v5488_v34 = vld [vmem:[%s9213_s0 + $0x20] sm:$0xff]  ;;  %v130_v46 = vld [vmem:[%s9214_s1 + $0x118] sm:$0xff]  ;;  %v129_v48 = vld [vmem:[%s9214_s1 + $0x110] sm:$0xff] }
  0x2f   :  { %312 = vmatpush.msra.mxu1 %v163_v12  ;;  %249 = vmatmul.f32.vlgmr.msra.gmra.mxu0 %v5389_v2  ;;  %v194_v47 = vld [vmem:[%s9214_s1 + $0x318] sm:$0xff]  ;;  %v5549_v49 = vld [vmem:[%s9213_s0 + $0x40] sm:$0xff]  ;;  %v5555_v50 = vld [vmem:[%s9213_s0 + $0x48] sm:$0xff] }
  0x30   :  { %493 = vmatpush.msrb.mxu0 %v157_v13  ;;  %624 = vmatpush.msrb.mxu2 %v154_v14  ;;  %v193_v51 = vld [vmem:[%s9214_s1 + $0x310] sm:$0xff]  ;;  %v126_v52 = vld [vmem:[%s9214_s1 + $0xf8] sm:$0xff]  ;;  %v5601_v61 = vld [vmem:[%s9213_s0 + $0x60] sm:$0xff] }
  0x31   :  { %313 = vmatpush.msra.mxu1 %v159_v15  ;;  %689 = vmatpush.msrb.mxu3 %v218_v16  ;;  %v190_v53 = vld [vmem:[%s9214_s1 + $0x2f8] sm:$0xff]  ;;  %v125_v54 = vld [vmem:[%s9214_s1 + $0xf0] sm:$0xff]  ;;  %v5607_v62 = vld [vmem:[%s9213_s0 + $0x68] sm:$0xff] }
  0x32   :  { %314 = vmatmul.f32.vlgmr.msra.gmra.mxu1 %v5400_v9  ;;  %494 = vmatpush.msrb.mxu0 %v153_v17  ;;  %v5575_v55 = vld [vmem:[%s9213_s0 + $0x50] sm:$0xff]  ;;  %v5581_v56 = vld [vmem:[%s9213_s0 + $0x58] sm:$0xff]  ;;  %v5653_v15 = vld [vmem:[%s9213_s0 + $0x80] sm:$0xff] }
  0x33   :  { %558 = vmatpush.msrb.mxu1 %v221_v18  ;;  %625 = vmatpush.msrb.mxu2 %v150_v19  ;;  %v189_v57 = vld [vmem:[%s9214_s1 + $0x2f0] sm:$0xff]  ;;  %v122_v58 = vld [vmem:[%s9214_s1 + $0xd8] sm:$0xff]  ;;  %v5659_v16 = vld [vmem:[%s9213_s0 + $0x88] sm:$0xff] }
  0x34   :  { %382 = vmatmul.f32.gmra.mxu2 %v5438_v20  ;;  %690 = vmatpush.msrb.mxu3 %v214_v21  ;;  %v186_v59 = vld [vmem:[%s9214_s1 + $0x2d8] sm:$0xff]  ;;  %v121_v60 = vld [vmem:[%s9214_s1 + $0xd0] sm:$0xff] }
  0x35   :  { %447 = vmatmul.f32.gmra.mxu3 %v5447_v22  ;;  %559 = vmatpush.msrb.mxu1 %v217_v23  ;;  %v185_v63 = vld [vmem:[%s9214_s1 + $0x2d0] sm:$0xff]  ;;  %v118_v0 = vld [vmem:[%s9214_s1 + $0xb8] sm:$0xff] }
  0x36   :  { %495 = vmatpush.msrb.mxu0 %v149_v24  ;;  %626 = vmatpush.msrb.mxu2 %v146_v25  ;;  %v182_v1 = vld [vmem:[%s9214_s1 + $0x2b8] sm:$0xff]  ;;  %v117_v3 = vld [vmem:[%s9214_s1 + $0xb0] sm:$0xff] }
  0x37   :  { %252 = vmatmul.f32.gmra.mxu0 %v5438_v20  ;;  %560 = vmatpush.msrb.mxu1 %v213_v26  ;;  %v5627_v8 = vld [vmem:[%s9213_s0 + $0x70] sm:$0xff]  ;;  %v5633_v10 = vld [vmem:[%s9213_s0 + $0x78] sm:$0xff] }
  0x38   :  { %691 = vmatpush.msrb.mxu3 %v210_v27  ;;  %496 = vmatpush.msrb.mxu0 %v145_v28  ;;  %v181_v11 = vld [vmem:[%s9214_s1 + $0x2b0] sm:$0xff]  ;;  %v114_v12 = vld [vmem:[%s9214_s1 + $0x98] sm:$0xff] }
  0x39   :  { %561 = vmatpush.msrb.mxu1 %v209_v29  ;;  %627 = vmatpush.msrb.mxu2 %v142_v30  ;;  %v178_v13 = vld [vmem:[%s9214_s1 + $0x298] sm:$0xff]  ;;  %v113_v14 = vld [vmem:[%s9214_s1 + $0x90] sm:$0xff]  ;;  %v5705_v29 = vld [vmem:[%s9213_s0 + $0xa0] sm:$0xff] }
  0x3a   :  { %317 = vmatmul.f32.gmra.mxu1 %v5447_v22  ;;  %692 = vmatpush.msrb.mxu3 %v206_v31  ;;  %v177_v17 = vld [vmem:[%s9214_s1 + $0x290] sm:$0xff]  ;;  %v110_v18 = vld [vmem:[%s9214_s1 + $0x78] sm:$0xff]  ;;  %v5711_v30 = vld [vmem:[%s9213_s0 + $0xa8] sm:$0xff] }
  0x3b   :  { %497 = vmatpush.msrb.mxu0 %v141_v32  ;;  %562 = vmatpush.msrb.mxu1 %v205_v33  ;;  %v174_v19 = vld [vmem:[%s9214_s1 + $0x278] sm:$0xff]  ;;  %v109_v21 = vld [vmem:[%s9214_s1 + $0x70] sm:$0xff] }
  0x3c   :  { %385 = vmatmul.f32.gmra.mxu2 %v5488_v34  ;;  %693 = vmatpush.msrb.mxu3 %v202_v35  ;;  %v5679_v23 = vld [vmem:[%s9213_s0 + $0x90] sm:$0xff]  ;;  %v5685_v24 = vld [vmem:[%s9213_s0 + $0x98] sm:$0xff] }
  0x3d   :  { %450 = vmatmul.f32.gmra.mxu3 %v5497_v36  ;;  %628 = vmatpush.msrb.mxu2 %v138_v37  ;;  %v173_v25 = vld [vmem:[%s9214_s1 + $0x270] sm:$0xff]  ;;  %v106_v26 = vld [vmem:[%s9214_s1 + $0x58] sm:$0xff] }
  0x3e   :  { %498 = vmatpush.msrb.mxu0 %v137_v38  ;;  %563 = vmatpush.msrb.mxu1 %v201_v39  ;;  %v170_v27 = vld [vmem:[%s9214_s1 + $0x258] sm:$0xff]  ;;  %v105_v28 = vld [vmem:[%s9214_s1 + $0x50] sm:$0xff] }
  0x3f   :  { %255 = vmatmul.f32.gmra.mxu0 %v5488_v34  ;;  %629 = vmatpush.msrb.mxu2 %v134_v40  ;;  %v169_v31 = vld [vmem:[%s9214_s1 + $0x250] sm:$0xff]  ;;  %v102_v32 = vld [vmem:[%s9214_s1 + $0x38] sm:$0xff] }
  0x40   :  { %694 = vmatpush.msrb.mxu3 %v198_v41  ;;  %499 = vmatpush.msrb.mxu0 %v133_v42  ;;  %v166_v33 = vld [vmem:[%s9214_s1 + $0x238] sm:$0xff]  ;;  %v101_v35 = vld [vmem:[%s9214_s1 + $0x30] sm:$0xff] }
  0x41   :  { %564 = vmatpush.msrb.mxu1 %v197_v45  ;;  %630 = vmatpush.msrb.mxu2 %v130_v46  ;;  %v5731_v37 = vld [vmem:[%s9213_s0 + $0xb0] sm:$0xff]  ;;  %v5737_v38 = vld [vmem:[%s9213_s0 + $0xb8] sm:$0xff]  ;;  %v5757_v45 = vld [vmem:[%s9213_s0 + $0xc0] sm:$0xff] }
  0x42   :  { %320 = vmatmul.f32.gmra.mxu1 %v5497_v36  ;;  %695 = vmatpush.msrb.mxu3 %v194_v47  ;;  %v165_v39 = vld [vmem:[%s9214_s1 + $0x230] sm:$0xff]  ;;  %v98_v40 = vld [vmem:[%s9214_s1 + $0x18] sm:$0xff]  ;;  %v5763_v46 = vld [vmem:[%s9213_s0 + $0xc8] sm:$0xff] }
  0x43   :  { %500 = vmatpush.msrb.mxu0 %v129_v48  ;;  %565 = vmatpush.msrb.mxu1 %v193_v51  ;;  %v162_v41 = vld [vmem:[%s9214_s1 + $0x218] sm:$0xff]  ;;  %v97_v42 = vld [vmem:[%s9214_s1 + $0x10] sm:$0xff] }
  0x44   :  { %388 = vmatmul.f32.gmra.mxu2 %v5523_v43  ;;  %696 = vmatpush.msrb.mxu3 %v190_v53  ;;  %v161_v47 = vld [vmem:[%s9214_s1 + $0x210] sm:$0xff]  ;;  %v5780_v51 = vld [vmem:[%s9213_s0 + $0xd8] sm:$0xff]  ;;  %v5794_v53 = vld [vmem:[%s9213_s0 + $0xe8] sm:$0xff] }
  0x45   :  { %453 = vmatmul.f32.gmra.mxu3 %v5529_v44  ;;  %631 = vmatpush.msrb.mxu2 %v126_v52  ;;  %v5774_v48 = vld [vmem:[%s9213_s0 + $0xd0] sm:$0xff]  ;;  %v5788_v52 = vld [vmem:[%s9213_s0 + $0xe0] sm:$0xff] }
  0x46   :  { %501 = vmatpush.msrb.mxu0 %v125_v54  ;;  %566 = vmatpush.msrb.mxu1 %v189_v57  ;;  %v5802_v54 = vld [vmem:[%s9213_s0 + $0xf0] sm:$0xff]  ;;  %v5808_v57 = vld [vmem:[%s9213_s0 + $0xf8] sm:$0xff]  ;;  %s5959_s0 = smov 0  }
  0x47   :  { %258 = vmatmul.f32.gmra.mxu0 %v5523_v43  ;;  %632 = vmatpush.msrb.mxu2 %v122_v58  ;;  %v5815_v58 = vld [vmem:[%s9216_s3] sm:$0xf] }
  0x48   :  { %697 = vmatpush.msrb.mxu3 %v186_v59  ;;  %502 = vmatpush.msrb.mxu0 %v121_v60  ;;  %v5819_v59 = vperm.slane %v5815_v58, 0 }
  0x49   :  { %567 = vmatpush.msrb.mxu1 %v185_v63  ;;  %633 = vmatpush.msrb.mxu2 %v118_v0  ;;  %v5824_v63 = vperm.slane %v5815_v58, 1 }
  0x4a   :  { %323 = vmatmul.f32.gmra.mxu1 %v5529_v44  ;;  %698 = vmatpush.msrb.mxu3 %v182_v1 }
  0x4b   :  { %503 = vmatpush.msrb.mxu0 %v117_v3  ;;  %568 = vmatpush.msrb.mxu1 %v181_v11 }
  0x4c   :  { %391 = vmatmul.f32.gmra.mxu2 %v5549_v49  ;;  %699 = vmatpush.msrb.mxu3 %v178_v13 }
  0x4d   :  { %456 = vmatmul.f32.gmra.mxu3 %v5555_v50  ;;  %634 = vmatpush.msrb.mxu2 %v114_v12 }
  0x4e   :  { %504 = vmatpush.msrb.mxu0 %v113_v14  ;;  %569 = vmatpush.msrb.mxu1 %v177_v17 }
  0x4f   :  { %261 = vmatmul.f32.gmra.mxu0 %v5549_v49  ;;  %635 = vmatpush.msrb.mxu2 %v110_v18 }
  0x50   :  { %700 = vmatpush.msrb.mxu3 %v174_v19  ;;  %505 = vmatpush.msrb.mxu0 %v109_v21 }
  0x51   :  { %570 = vmatpush.msrb.mxu1 %v173_v25  ;;  %636 = vmatpush.msrb.mxu2 %v106_v26 }
  0x52   :  { %326 = vmatmul.f32.gmra.mxu1 %v5555_v50  ;;  %701 = vmatpush.msrb.mxu3 %v170_v27 }
  0x53   :  { %506 = vmatpush.msrb.mxu0 %v105_v28  ;;  %571 = vmatpush.msrb.mxu1 %v169_v31 }
  0x54   :  { %394 = vmatmul.f32.gmra.mxu2 %v5575_v55  ;;  %702 = vmatpush.msrb.mxu3 %v166_v33 }
  0x55   :  { %459 = vmatmul.f32.gmra.mxu3 %v5581_v56  ;;  %637 = vmatpush.msrb.mxu2 %v102_v32 }
  0x56   :  { %507 = vmatpush.msrb.mxu0 %v101_v35  ;;  %572 = vmatpush.msrb.mxu1 %v165_v39 }
  0x57   :  { %264 = vmatmul.f32.gmra.mxu0 %v5575_v55  ;;  %638 = vmatpush.msrb.mxu2 %v98_v40 }
  0x58   :  { %703 = vmatpush.msrb.mxu3 %v162_v41  ;;  %508 = vmatpush.msrb.mxu0 %v97_v42 }
  0x59   :  { %573 = vmatpush.msrb.mxu1 %v161_v47 }
  0x5a   :  { %329 = vmatmul.f32.gmra.mxu1 %v5581_v56 }
  0x5c   :  { %397 = vmatmul.f32.gmra.mxu2 %v5601_v61 }
  0x5d   :  { %462 = vmatmul.f32.gmra.mxu3 %v5607_v62 }
  0x5f   :  { %267 = vmatmul.f32.gmra.mxu0 %v5601_v61 }
  0x62   :  { %332 = vmatmul.f32.gmra.mxu1 %v5607_v62 }
  0x64   :  { %400 = vmatmul.f32.gmra.mxu2 %v5627_v8 }
  0x65   :  { %465 = vmatmul.f32.gmra.mxu3 %v5633_v10 }
  0x67   :  { %270 = vmatmul.f32.gmra.mxu0 %v5627_v8 }
  0x6a   :  { %335 = vmatmul.f32.gmra.mxu1 %v5633_v10 }
  0x6c   :  { %403 = vmatmul.f32.gmra.mxu2 %v5653_v15 }
  0x6d   :  { %468 = vmatmul.f32.gmra.mxu3 %v5659_v16 }
  0x6f   :  { %273 = vmatmul.f32.gmra.mxu0 %v5653_v15 }
  0x72   :  { %338 = vmatmul.f32.gmra.mxu1 %v5659_v16 }
  0x74   :  { %406 = vmatmul.f32.gmra.mxu2 %v5679_v23 }
  0x75   :  { %471 = vmatmul.f32.gmra.mxu3 %v5685_v24 }
  0x77   :  { %276 = vmatmul.f32.gmra.mxu0 %v5679_v23 }
  0x7a   :  { %341 = vmatmul.f32.gmra.mxu1 %v5685_v24 }
  0x7c   :  { %409 = vmatmul.f32.gmra.mxu2 %v5705_v29 }
  0x7d   :  { %474 = vmatmul.f32.gmra.mxu3 %v5711_v30 }
  0x7f   :  { %279 = vmatmul.f32.gmra.mxu0 %v5705_v29 }
  0x82   :  { %344 = vmatmul.f32.gmra.mxu1 %v5711_v30 }
  0x84   :  { %412 = vmatmul.f32.gmra.mxu2 %v5731_v37 }
  0x85   :  { %477 = vmatmul.f32.gmra.mxu3 %v5737_v38 }
  0x87   :  { %282 = vmatmul.f32.gmra.mxu0 %v5731_v37 }
  0x8a   :  { %347 = vmatmul.f32.gmra.mxu1 %v5737_v38 }
  0x8c   :  { %415 = vmatmul.f32.gmra.mxu2 %v5757_v45 }
  0x8d   :  { %480 = vmatmul.f32.gmra.mxu3 %v5763_v46 }
  0x8f   :  { %285 = vmatmul.f32.gmra.mxu0 %v5757_v45 }
  0x92   :  { %350 = vmatmul.f32.gmra.mxu1 %v5763_v46 }
  0x94   :  { %418 = vmatmul.f32.gmra.mxu2 %v5774_v48 }
  0x95   :  { %483 = vmatmul.f32.gmra.mxu3 %v5780_v51 }
  0x97   :  { %288 = vmatmul.f32.gmra.mxu0 %v5774_v48 }
  0x9a   :  { %353 = vmatmul.f32.gmra.mxu1 %v5780_v51 }
  0x9c   :  { %421 = vmatmul.f32.gmra.mxu2 %v5788_v52 }
  0x9d   :  { %486 = vmatmul.f32.gmra.mxu3 %v5794_v53 }
  0x9f   :  { %291 = vmatmul.f32.gmra.mxu0 %v5788_v52 }
  0xa2   :  { %356 = vmatmul.f32.gmra.mxu1 %v5794_v53 }
  0xa4   :  { %424 = vmatmul.f32.gmra.mxu2 %v5802_v54 }
  0xa5   :  { %489 = vmatmul.f32.gmra.mxu3 %v5808_v57 }
  0xa7   :  { %294 = vmatmul.f32.gmra.mxu0 %v5802_v54 }
  0xaa   :  { %359 = vmatmul.f32.gmra.mxu1 %v5808_v57 }
  0xac   :  { %639 = vmatmul.f32.vlgmr.msrb.gmra.mxu2 %v5389_v2  ;;  %v250_v60 = vpop.f32.mrf.mxu0 }
  0xad   :  { %704 = vmatmul.f32.vlgmr.msrb.gmra.mxu3 %v5400_v9  ;;  %v251_v0 = vadd.f32 %v250_v60, %v5819_v59 }
  0xaf   :  { %v380_v1 = vpop.f32.mrf.mxu2  ;;  %v315_v3 = vpop.f32.mrf.mxu1  ;;  %509 = vmatmul.f32.vlgmr.msrb.gmra.mxu0 %v5389_v2 }
  0xb0   :  { %v381_v11 = vadd.f32 %v380_v1, %v5824_v63  ;;  %v316_v12 = vadd.f32 %v315_v3, %v251_v0  ;;  %v445_v13 = vpop.f32.mrf.mxu3 }
  0xb2   :  { %753 = vst [vmem:[#allocation2] sm:$0xff] %v316_v12  ;;  %v446_v14 = vadd.f32 %v445_v13, %v381_v11  ;;  %574 = vmatmul.f32.vlgmr.msrb.gmra.mxu1 %v5400_v9 }
  0xb4   :  { %754 = vst [vmem:[#allocation2 + $0x8] sm:$0xff] %v446_v14  ;;  %642 = vmatmul.f32.gmra.mxu2 %v5438_v20  ;;  %v253_v17 = vpop.f32.mrf.mxu0 }
  0xb5   :  { %707 = vmatmul.f32.gmra.mxu3 %v5447_v22  ;;  %v254_v18 = vadd.f32 %v253_v17, %v5819_v59 }
  0xb7   :  { %v383_v19 = vpop.f32.mrf.mxu2  ;;  %v318_v21 = vpop.f32.mrf.mxu1  ;;  %512 = vmatmul.f32.gmra.mxu0 %v5438_v20 }
  0xb8   :  { %v384_v2 = vadd.f32 %v383_v19, %v5824_v63  ;;  %v319_v25 = vadd.f32 %v318_v21, %v254_v18  ;;  %v448_v26 = vpop.f32.mrf.mxu3 }
  0xba   :  { %757 = vst [vmem:[#allocation2 + $0x20] sm:$0xff] %v319_v25  ;;  %v449_v27 = vadd.f32 %v448_v26, %v384_v2  ;;  %577 = vmatmul.f32.gmra.mxu1 %v5447_v22 }
  0xbc   :  { %758 = vst [vmem:[#allocation2 + $0x28] sm:$0xff] %v449_v27  ;;  %645 = vmatmul.f32.gmra.mxu2 %v5488_v34  ;;  %v256_v9 = vpop.f32.mrf.mxu0 }
  0xbd   :  { %710 = vmatmul.f32.gmra.mxu3 %v5497_v36  ;;  %v257_v28 = vadd.f32 %v256_v9, %v5819_v59 }
  0xbf   :  { %v386_v31 = vpop.f32.mrf.mxu2  ;;  %v321_v32 = vpop.f32.mrf.mxu1  ;;  %515 = vmatmul.f32.gmra.mxu0 %v5488_v34 }
  0xc0   :  { %v387_v20 = vadd.f32 %v386_v31, %v5824_v63  ;;  %v322_v33 = vadd.f32 %v321_v32, %v257_v28  ;;  %v451_v35 = vpop.f32.mrf.mxu3 }
  0xc2   :  { %761 = vst [vmem:[#allocation2 + $0x40] sm:$0xff] %v322_v33  ;;  %v452_v39 = vadd.f32 %v451_v35, %v387_v20  ;;  %580 = vmatmul.f32.gmra.mxu1 %v5497_v36 }
  0xc4   :  { %762 = vst [vmem:[#allocation2 + $0x48] sm:$0xff] %v452_v39  ;;  %648 = vmatmul.f32.gmra.mxu2 %v5523_v43  ;;  %v259_v22 = vpop.f32.mrf.mxu0 }
  0xc5   :  { %713 = vmatmul.f32.gmra.mxu3 %v5529_v44  ;;  %v260_v40 = vadd.f32 %v259_v22, %v5819_v59 }
  0xc7   :  { %v389_v41 = vpop.f32.mrf.mxu2  ;;  %v324_v42 = vpop.f32.mrf.mxu1  ;;  %518 = vmatmul.f32.gmra.mxu0 %v5523_v43 }
  0xc8   :  { %v390_v34 = vadd.f32 %v389_v41, %v5824_v63  ;;  %v325_v47 = vadd.f32 %v324_v42, %v260_v40  ;;  %v454_v60 = vpop.f32.mrf.mxu3 }
  0xca   :  { %765 = vst [vmem:[#allocation2 + $0x60] sm:$0xff] %v325_v47  ;;  %v455_v0 = vadd.f32 %v454_v60, %v390_v34  ;;  %583 = vmatmul.f32.gmra.mxu1 %v5529_v44 }
  0xcc   :  { %766 = vst [vmem:[#allocation2 + $0x68] sm:$0xff] %v455_v0  ;;  %651 = vmatmul.f32.gmra.mxu2 %v5549_v49  ;;  %v262_v36 = vpop.f32.mrf.mxu0 }
  0xcd   :  { %716 = vmatmul.f32.gmra.mxu3 %v5555_v50  ;;  %v263_v1 = vadd.f32 %v262_v36, %v5819_v59 }
  0xcf   :  { %v392_v3 = vpop.f32.mrf.mxu2  ;;  %v327_v11 = vpop.f32.mrf.mxu1  ;;  %521 = vmatmul.f32.gmra.mxu0 %v5549_v49 }
  0xd0   :  { %v393_v43 = vadd.f32 %v392_v3, %v5824_v63  ;;  %v328_v12 = vadd.f32 %v327_v11, %v263_v1  ;;  %v457_v13 = vpop.f32.mrf.mxu3 }
  0xd2   :  { %769 = vst [vmem:[#allocation2 + $0x80] sm:$0xff] %v328_v12  ;;  %v458_v14 = vadd.f32 %v457_v13, %v393_v43  ;;  %586 = vmatmul.f32.gmra.mxu1 %v5555_v50 }
  0xd4   :  { %770 = vst [vmem:[#allocation2 + $0x88] sm:$0xff] %v458_v14  ;;  %654 = vmatmul.f32.gmra.mxu2 %v5575_v55  ;;  %v265_v44 = vpop.f32.mrf.mxu0 }
  0xd5   :  { %719 = vmatmul.f32.gmra.mxu3 %v5581_v56  ;;  %v266_v17 = vadd.f32 %v265_v44, %v5819_v59 }
  0xd7   :  { %v395_v18 = vpop.f32.mrf.mxu2  ;;  %v330_v19 = vpop.f32.mrf.mxu1  ;;  %524 = vmatmul.f32.gmra.mxu0 %v5575_v55 }
  0xd8   :  { %v396_v49 = vadd.f32 %v395_v18, %v5824_v63  ;;  %v331_v21 = vadd.f32 %v330_v19, %v266_v17  ;;  %v460_v2 = vpop.f32.mrf.mxu3 }
  0xda   :  { %773 = vst [vmem:[#allocation2 + $0xa0] sm:$0xff] %v331_v21  ;;  %v461_v25 = vadd.f32 %v460_v2, %v396_v49  ;;  %589 = vmatmul.f32.gmra.mxu1 %v5581_v56 }
  0xdc   :  { %774 = vst [vmem:[#allocation2 + $0xa8] sm:$0xff] %v461_v25  ;;  %657 = vmatmul.f32.gmra.mxu2 %v5601_v61  ;;  %v268_v50 = vpop.f32.mrf.mxu0 }
  0xdd   :  { %722 = vmatmul.f32.gmra.mxu3 %v5607_v62  ;;  %v269_v26 = vadd.f32 %v268_v50, %v5819_v59 }
  0xdf   :  { %v398_v27 = vpop.f32.mrf.mxu2  ;;  %v333_v9 = vpop.f32.mrf.mxu1  ;;  %527 = vmatmul.f32.gmra.mxu0 %v5601_v61 }
  0xe0   :  { %v399_v55 = vadd.f32 %v398_v27, %v5824_v63  ;;  %v334_v28 = vadd.f32 %v333_v9, %v269_v26  ;;  %v463_v31 = vpop.f32.mrf.mxu3 }
  0xe2   :  { %777 = vst [vmem:[#allocation2 + $0xc0] sm:$0xff] %v334_v28  ;;  %v464_v32 = vadd.f32 %v463_v31, %v399_v55  ;;  %592 = vmatmul.f32.gmra.mxu1 %v5607_v62 }
  0xe4   :  { %778 = vst [vmem:[#allocation2 + $0xc8] sm:$0xff] %v464_v32  ;;  %660 = vmatmul.f32.gmra.mxu2 %v5627_v8  ;;  %v271_v56 = vpop.f32.mrf.mxu0 }
  0xe5   :  { %725 = vmatmul.f32.gmra.mxu3 %v5633_v10  ;;  %v272_v20 = vadd.f32 %v271_v56, %v5819_v59 }
  0xe7   :  { %v401_v33 = vpop.f32.mrf.mxu2  ;;  %v336_v35 = vpop.f32.mrf.mxu1  ;;  %530 = vmatmul.f32.gmra.mxu0 %v5627_v8 }
  0xe8   :  { %v402_v61 = vadd.f32 %v401_v33, %v5824_v63  ;;  %v337_v39 = vadd.f32 %v336_v35, %v272_v20  ;;  %v466_v22 = vpop.f32.mrf.mxu3 }
  0xea   :  { %781 = vst [vmem:[#allocation2 + $0xe0] sm:$0xff] %v337_v39  ;;  %v467_v40 = vadd.f32 %v466_v22, %v402_v61  ;;  %595 = vmatmul.f32.gmra.mxu1 %v5633_v10 }
  0xec   :  { %782 = vst [vmem:[#allocation2 + $0xe8] sm:$0xff] %v467_v40  ;;  %663 = vmatmul.f32.gmra.mxu2 %v5653_v15  ;;  %v274_v62 = vpop.f32.mrf.mxu0 }
  0xed   :  { %728 = vmatmul.f32.gmra.mxu3 %v5659_v16  ;;  %v275_v41 = vadd.f32 %v274_v62, %v5819_v59 }
  0xef   :  { %v404_v42 = vpop.f32.mrf.mxu2  ;;  %v339_v34 = vpop.f32.mrf.mxu1  ;;  %533 = vmatmul.f32.gmra.mxu0 %v5653_v15 }
  0xf0   :  { %v405_v8 = vadd.f32 %v404_v42, %v5824_v63  ;;  %v340_v47 = vadd.f32 %v339_v34, %v275_v41  ;;  %v469_v60 = vpop.f32.mrf.mxu3 }
  0xf2   :  { %785 = vst [vmem:[#allocation2 + $0x100] sm:$0xff] %v340_v47  ;;  %v470_v0 = vadd.f32 %v469_v60, %v405_v8  ;;  %598 = vmatmul.f32.gmra.mxu1 %v5659_v16 }
  0xf4   :  { %786 = vst [vmem:[#allocation2 + $0x108] sm:$0xff] %v470_v0  ;;  %666 = vmatmul.f32.gmra.mxu2 %v5679_v23  ;;  %v277_v10 = vpop.f32.mrf.mxu0 }
  0xf5   :  { %731 = vmatmul.f32.gmra.mxu3 %v5685_v24  ;;  %v278_v36 = vadd.f32 %v277_v10, %v5819_v59 }
  0xf7   :  { %v407_v1 = vpop.f32.mrf.mxu2  ;;  %v342_v3 = vpop.f32.mrf.mxu1  ;;  %536 = vmatmul.f32.gmra.mxu0 %v5679_v23 }
  0xf8   :  { %v408_v15 = vadd.f32 %v407_v1, %v5824_v63  ;;  %v343_v11 = vadd.f32 %v342_v3, %v278_v36  ;;  %v472_v43 = vpop.f32.mrf.mxu3  ;;  %v5921_v36 = vperm.slane %v5815_v58, 2  ;;  %v5925_v3 = vperm.slane %v5815_v58, 3 }
  0xfa   :  { %789 = vst [vmem:[#allocation2 + $0x120] sm:$0xff] %v343_v11  ;;  %v473_v12 = vadd.f32 %v472_v43, %v408_v15  ;;  %601 = vmatmul.f32.gmra.mxu1 %v5685_v24 }
  0xfc   :  { %790 = vst [vmem:[#allocation2 + $0x128] sm:$0xff] %v473_v12  ;;  %669 = vmatmul.f32.gmra.mxu2 %v5705_v29  ;;  %v280_v16 = vpop.f32.mrf.mxu0 }
  0xfd   :  { %734 = vmatmul.f32.gmra.mxu3 %v5711_v30  ;;  %v281_v13 = vadd.f32 %v280_v16, %v5819_v59 }
  0xff   :  { %v410_v14 = vpop.f32.mrf.mxu2  ;;  %v345_v44 = vpop.f32.mrf.mxu1  ;;  %539 = vmatmul.f32.gmra.mxu0 %v5705_v29 }
 0x100   :  { %v411_v23 = vadd.f32 %v410_v14, %v5824_v63  ;;  %v346_v17 = vadd.f32 %v345_v44, %v281_v13  ;;  %v475_v18 = vpop.f32.mrf.mxu3 }
 0x102   :  { %793 = vst [vmem:[#allocation2 + $0x140] sm:$0xff] %v346_v17  ;;  %v476_v19 = vadd.f32 %v475_v18, %v411_v23  ;;  %604 = vmatmul.f32.gmra.mxu1 %v5711_v30 }
 0x104   :  { %794 = vst [vmem:[#allocation2 + $0x148] sm:$0xff] %v476_v19  ;;  %672 = vmatmul.f32.gmra.mxu2 %v5731_v37  ;;  %v283_v24 = vpop.f32.mrf.mxu0 }
 0x105   :  { %737 = vmatmul.f32.gmra.mxu3 %v5737_v38  ;;  %v284_v49 = vadd.f32 %v283_v24, %v5819_v59 }
 0x107   :  { %v413_v21 = vpop.f32.mrf.mxu2  ;;  %v348_v2 = vpop.f32.mrf.mxu1  ;;  %542 = vmatmul.f32.gmra.mxu0 %v5731_v37 }
 0x108   :  { %v414_v29 = vadd.f32 %v413_v21, %v5824_v63  ;;  %v349_v25 = vadd.f32 %v348_v2, %v284_v49  ;;  %v478_v50 = vpop.f32.mrf.mxu3 }
 0x10a   :  { %797 = vst [vmem:[#allocation2 + $0x160] sm:$0xff] %v349_v25  ;;  %v479_v26 = vadd.f32 %v478_v50, %v414_v29  ;;  %607 = vmatmul.f32.gmra.mxu1 %v5737_v38 }
 0x10c   :  { %798 = vst [vmem:[#allocation2 + $0x168] sm:$0xff] %v479_v26  ;;  %675 = vmatmul.f32.gmra.mxu2 %v5757_v45  ;;  %v286_v30 = vpop.f32.mrf.mxu0 }
 0x10d   :  { %740 = vmatmul.f32.gmra.mxu3 %v5763_v46  ;;  %v287_v27 = vadd.f32 %v286_v30, %v5819_v59 }
 0x10f   :  { %v416_v9 = vpop.f32.mrf.mxu2  ;;  %v351_v55 = vpop.f32.mrf.mxu1  ;;  %545 = vmatmul.f32.gmra.mxu0 %v5757_v45 }
 0x110   :  { %v417_v37 = vadd.f32 %v416_v9, %v5824_v63  ;;  %v352_v28 = vadd.f32 %v351_v55, %v287_v27  ;;  %v481_v31 = vpop.f32.mrf.mxu3 }
 0x112   :  { %801 = vst [vmem:[#allocation2 + $0x180] sm:$0xff] %v352_v28  ;;  %v482_v32 = vadd.f32 %v481_v31, %v417_v37  ;;  %610 = vmatmul.f32.gmra.mxu1 %v5763_v46 }
 0x114   :  { %802 = vst [vmem:[#allocation2 + $0x188] sm:$0xff] %v482_v32  ;;  %678 = vmatmul.f32.gmra.mxu2 %v5774_v48  ;;  %v289_v38 = vpop.f32.mrf.mxu0 }
 0x115   :  { %743 = vmatmul.f32.gmra.mxu3 %v5780_v51  ;;  %v290_v56 = vadd.f32 %v289_v38, %v5819_v59 }
 0x117   :  { %v419_v20 = vpop.f32.mrf.mxu2  ;;  %v354_v33 = vpop.f32.mrf.mxu1  ;;  %548 = vmatmul.f32.gmra.mxu0 %v5774_v48 }
 0x118   :  { %v420_v45 = vadd.f32 %v419_v20, %v5824_v63  ;;  %v355_v35 = vadd.f32 %v354_v33, %v290_v56  ;;  %v484_v61 = vpop.f32.mrf.mxu3 }
 0x11a   :  { %805 = vst [vmem:[#allocation2 + $0x1a0] sm:$0xff] %v355_v35  ;;  %v485_v39 = vadd.f32 %v484_v61, %v420_v45  ;;  %613 = vmatmul.f32.gmra.mxu1 %v5780_v51 }
 0x11c   :  { %806 = vst [vmem:[#allocation2 + $0x1a8] sm:$0xff] %v485_v39  ;;  %681 = vmatmul.f32.gmra.mxu2 %v5788_v52  ;;  %v292_v46 = vpop.f32.mrf.mxu0 }
 0x11d   :  { %746 = vmatmul.f32.gmra.mxu3 %v5794_v53  ;;  %v293_v22 = vadd.f32 %v292_v46, %v5819_v59 }
 0x11f   :  { %v422_v40 = vpop.f32.mrf.mxu2  ;;  %v357_v62 = vpop.f32.mrf.mxu1  ;;  %551 = vmatmul.f32.gmra.mxu0 %v5788_v52 }
 0x120   :  { %v423_v48 = vadd.f32 %v422_v40, %v5824_v63  ;;  %v358_v41 = vadd.f32 %v357_v62, %v293_v22  ;;  %v487_v42 = vpop.f32.mrf.mxu3 }
 0x122   :  { %809 = vst [vmem:[#allocation2 + $0x1c0] sm:$0xff] %v358_v41  ;;  %v488_v34 = vadd.f32 %v487_v42, %v423_v48  ;;  %616 = vmatmul.f32.gmra.mxu1 %v5794_v53 }
 0x124   :  { %810 = vst [vmem:[#allocation2 + $0x1c8] sm:$0xff] %v488_v34  ;;  %684 = vmatmul.f32.gmra.mxu2 %v5802_v54  ;;  %v295_v51 = vpop.f32.mrf.mxu0 }
 0x125   :  { %749 = vmatmul.f32.gmra.mxu3 %v5808_v57  ;;  %v296_v8 = vadd.f32 %v295_v51, %v5819_v59 }
 0x127   :  { %v425_v47 = vpop.f32.mrf.mxu2  ;;  %v360_v60 = vpop.f32.mrf.mxu1  ;;  %554 = vmatmul.f32.gmra.mxu0 %v5802_v54 }
 0x128   :  { %v426_v52 = vadd.f32 %v425_v47, %v5824_v63  ;;  %v361_v0 = vadd.f32 %v360_v60, %v296_v8  ;;  %v490_v10 = vpop.f32.mrf.mxu3 }
 0x12a   :  { %813 = vst [vmem:[#allocation2 + $0x1e0] sm:$0xff] %v361_v0  ;;  %v491_v53 = vadd.f32 %v490_v10, %v426_v52  ;;  %619 = vmatmul.f32.gmra.mxu1 %v5808_v57 }
 0x12c   :  { %814 = vst [vmem:[#allocation2 + $0x1e8] sm:$0xff] %v491_v53  ;;  %v510_v1 = vpop.f32.mrf.mxu0 }
 0x12d   :  { %v511_v59 = vadd.f32 %v510_v1, %v5921_v36 }
 0x12f   :  { %v640_v15 = vpop.f32.mrf.mxu2  ;;  %v575_v54 = vpop.f32.mrf.mxu1 }
 0x130   :  { %v641_v63 = vadd.f32 %v640_v15, %v5925_v3  ;;  %v576_v11 = vadd.f32 %v575_v54, %v511_v59  ;;  %v705_v43 = vpop.f32.mrf.mxu3 }
 0x132   :  { %755 = vst [vmem:[#allocation2 + $0x10] sm:$0xff] %v576_v11  ;;  %v706_v12 = vadd.f32 %v705_v43, %v641_v63 }
 0x134   :  { %756 = vst [vmem:[#allocation2 + $0x18] sm:$0xff] %v706_v12  ;;  %v513_v16 = vpop.f32.mrf.mxu0 }
 0x135   :  { %v514_v13 = vadd.f32 %v513_v16, %v5921_v36 }
 0x137   :  { %v643_v57 = vpop.f32.mrf.mxu2  ;;  %v578_v14 = vpop.f32.mrf.mxu1 }
 0x138   :  { %v644_v44 = vadd.f32 %v643_v57, %v5925_v3  ;;  %v579_v58 = vadd.f32 %v578_v14, %v514_v13  ;;  %v708_v23 = vpop.f32.mrf.mxu3 }
 0x13a   :  { %759 = vst [vmem:[#allocation2 + $0x30] sm:$0xff] %v579_v58  ;;  %v709_v17 = vadd.f32 %v708_v23, %v644_v44 }
 0x13c   :  { %760 = vst [vmem:[#allocation2 + $0x38] sm:$0xff] %v709_v17  ;;  %v516_v18 = vpop.f32.mrf.mxu0 }
 0x13d   :  { %v517_v19 = vadd.f32 %v516_v18, %v5921_v36 }
 0x13f   :  { %v646_v24 = vpop.f32.mrf.mxu2  ;;  %v581_v49 = vpop.f32.mrf.mxu1 }
 0x140   :  { %v647_v21 = vadd.f32 %v646_v24, %v5925_v3  ;;  %v582_v2 = vadd.f32 %v581_v49, %v517_v19  ;;  %v711_v29 = vpop.f32.mrf.mxu3 }
 0x142   :  { %763 = vst [vmem:[#allocation2 + $0x50] sm:$0xff] %v582_v2  ;;  %v712_v25 = vadd.f32 %v711_v29, %v647_v21 }
 0x144   :  { %764 = vst [vmem:[#allocation2 + $0x58] sm:$0xff] %v712_v25  ;;  %v519_v50 = vpop.f32.mrf.mxu0 }
 0x145   :  { %v520_v26 = vadd.f32 %v519_v50, %v5921_v36 }
 0x147   :  { %v649_v30 = vpop.f32.mrf.mxu2  ;;  %v584_v27 = vpop.f32.mrf.mxu1 }
 0x148   :  { %v650_v9 = vadd.f32 %v649_v30, %v5925_v3  ;;  %v585_v55 = vadd.f32 %v584_v27, %v520_v26  ;;  %v714_v37 = vpop.f32.mrf.mxu3 }
 0x14a   :  { %767 = vst [vmem:[#allocation2 + $0x70] sm:$0xff] %v585_v55  ;;  %v715_v28 = vadd.f32 %v714_v37, %v650_v9 }
 0x14c   :  { %768 = vst [vmem:[#allocation2 + $0x78] sm:$0xff] %v715_v28  ;;  %v522_v31 = vpop.f32.mrf.mxu0 }
 0x14d   :  { %v523_v32 = vadd.f32 %v522_v31, %v5921_v36 }
 0x14f   :  { %v652_v38 = vpop.f32.mrf.mxu2  ;;  %v587_v56 = vpop.f32.mrf.mxu1 }
 0x150   :  { %v653_v20 = vadd.f32 %v652_v38, %v5925_v3  ;;  %v588_v33 = vadd.f32 %v587_v56, %v523_v32  ;;  %v717_v45 = vpop.f32.mrf.mxu3 }
 0x152   :  { %771 = vst [vmem:[#allocation2 + $0x90] sm:$0xff] %v588_v33  ;;  %v718_v35 = vadd.f32 %v717_v45, %v653_v20 }
 0x154   :  { %772 = vst [vmem:[#allocation2 + $0x98] sm:$0xff] %v718_v35  ;;  %v525_v61 = vpop.f32.mrf.mxu0 }
 0x155   :  { %v526_v39 = vadd.f32 %v525_v61, %v5921_v36 }
 0x157   :  { %v655_v46 = vpop.f32.mrf.mxu2  ;;  %v590_v22 = vpop.f32.mrf.mxu1 }
 0x158   :  { %v656_v40 = vadd.f32 %v655_v46, %v5925_v3  ;;  %v591_v62 = vadd.f32 %v590_v22, %v526_v39  ;;  %v720_v48 = vpop.f32.mrf.mxu3 }
 0x15a   :  { %775 = vst [vmem:[#allocation2 + $0xb0] sm:$0xff] %v591_v62  ;;  %v721_v41 = vadd.f32 %v720_v48, %v656_v40 }
 0x15c   :  { %776 = vst [vmem:[#allocation2 + $0xb8] sm:$0xff] %v721_v41  ;;  %v528_v42 = vpop.f32.mrf.mxu0 }
 0x15d   :  { %v529_v34 = vadd.f32 %v528_v42, %v5921_v36 }
 0x15f   :  { %v658_v51 = vpop.f32.mrf.mxu2  ;;  %v593_v8 = vpop.f32.mrf.mxu1 }
 0x160   :  { %v659_v47 = vadd.f32 %v658_v51, %v5925_v3  ;;  %v594_v60 = vadd.f32 %v593_v8, %v529_v34  ;;  %v723_v52 = vpop.f32.mrf.mxu3 }
 0x162   :  { %779 = vst [vmem:[#allocation2 + $0xd0] sm:$0xff] %v594_v60  ;;  %v724_v0 = vadd.f32 %v723_v52, %v659_v47 }
 0x164   :  { %780 = vst [vmem:[#allocation2 + $0xd8] sm:$0xff] %v724_v0  ;;  %v531_v10 = vpop.f32.mrf.mxu0 }
 0x165   :  { %v532_v53 = vadd.f32 %v531_v10, %v5921_v36 }
 0x167   :  { %v661_v1 = vpop.f32.mrf.mxu2  ;;  %v596_v59 = vpop.f32.mrf.mxu1 }
 0x168   :  { %v662_v15 = vadd.f32 %v661_v1, %v5925_v3  ;;  %v597_v54 = vadd.f32 %v596_v59, %v532_v53  ;;  %v726_v63 = vpop.f32.mrf.mxu3 }
 0x16a   :  { %783 = vst [vmem:[#allocation2 + $0xf0] sm:$0xff] %v597_v54  ;;  %v727_v11 = vadd.f32 %v726_v63, %v662_v15 }
 0x16c   :  { %784 = vst [vmem:[#allocation2 + $0xf8] sm:$0xff] %v727_v11  ;;  %v534_v43 = vpop.f32.mrf.mxu0 }
 0x16d   :  { %v535_v12 = vadd.f32 %v534_v43, %v5921_v36 }
 0x16f   :  { %v664_v16 = vpop.f32.mrf.mxu2  ;;  %v599_v13 = vpop.f32.mrf.mxu1 }
 0x170   :  { %v665_v57 = vadd.f32 %v664_v16, %v5925_v3  ;;  %v600_v14 = vadd.f32 %v599_v13, %v535_v12  ;;  %v729_v44 = vpop.f32.mrf.mxu3 }
 0x172   :  { %787 = vst [vmem:[#allocation2 + $0x110] sm:$0xff] %v600_v14  ;;  %v730_v58 = vadd.f32 %v729_v44, %v665_v57 }
 0x174   :  { %788 = vst [vmem:[#allocation2 + $0x118] sm:$0xff] %v730_v58  ;;  %v537_v23 = vpop.f32.mrf.mxu0 }
 0x175   :  { %v538_v17 = vadd.f32 %v537_v23, %v5921_v36 }
 0x177   :  { %v667_v18 = vpop.f32.mrf.mxu2  ;;  %v602_v19 = vpop.f32.mrf.mxu1 }
 0x178   :  { %v668_v24 = vadd.f32 %v667_v18, %v5925_v3  ;;  %v603_v49 = vadd.f32 %v602_v19, %v538_v17  ;;  %v732_v21 = vpop.f32.mrf.mxu3 }
 0x17a   :  { %791 = vst [vmem:[#allocation2 + $0x130] sm:$0xff] %v603_v49  ;;  %v733_v2 = vadd.f32 %v732_v21, %v668_v24 }
 0x17c   :  { %792 = vst [vmem:[#allocation2 + $0x138] sm:$0xff] %v733_v2  ;;  %v540_v29 = vpop.f32.mrf.mxu0 }
 0x17d   :  { %v541_v25 = vadd.f32 %v540_v29, %v5921_v36 }
 0x17f   :  { %v670_v50 = vpop.f32.mrf.mxu2  ;;  %v605_v26 = vpop.f32.mrf.mxu1 }
 0x180   :  { %v671_v30 = vadd.f32 %v670_v50, %v5925_v3  ;;  %v606_v27 = vadd.f32 %v605_v26, %v541_v25  ;;  %v735_v9 = vpop.f32.mrf.mxu3 }
 0x182   :  { %795 = vst [vmem:[#allocation2 + $0x150] sm:$0xff] %v606_v27  ;;  %v736_v55 = vadd.f32 %v735_v9, %v671_v30 }
 0x184   :  { %796 = vst [vmem:[#allocation2 + $0x158] sm:$0xff] %v736_v55  ;;  %v543_v37 = vpop.f32.mrf.mxu0 }
 0x185   :  { %v544_v28 = vadd.f32 %v543_v37, %v5921_v36 }
 0x187   :  { %v673_v31 = vpop.f32.mrf.mxu2  ;;  %v608_v32 = vpop.f32.mrf.mxu1 }
 0x188   :  { %v674_v38 = vadd.f32 %v673_v31, %v5925_v3  ;;  %v609_v56 = vadd.f32 %v608_v32, %v544_v28  ;;  %v738_v20 = vpop.f32.mrf.mxu3 }
 0x18a   :  { %799 = vst [vmem:[#allocation2 + $0x170] sm:$0xff] %v609_v56  ;;  %v739_v33 = vadd.f32 %v738_v20, %v674_v38 }
 0x18c   :  { %800 = vst [vmem:[#allocation2 + $0x178] sm:$0xff] %v739_v33  ;;  %v546_v45 = vpop.f32.mrf.mxu0 }
 0x18d   :  { %v547_v35 = vadd.f32 %v546_v45, %v5921_v36 }
 0x18f   :  { %v676_v61 = vpop.f32.mrf.mxu2  ;;  %v611_v39 = vpop.f32.mrf.mxu1 }
 0x190   :  { %v677_v46 = vadd.f32 %v676_v61, %v5925_v3  ;;  %v612_v22 = vadd.f32 %v611_v39, %v547_v35  ;;  %v741_v40 = vpop.f32.mrf.mxu3 }
 0x192   :  { %803 = vst [vmem:[#allocation2 + $0x190] sm:$0xff] %v612_v22  ;;  %v742_v62 = vadd.f32 %v741_v40, %v677_v46 }
 0x194   :  { %804 = vst [vmem:[#allocation2 + $0x198] sm:$0xff] %v742_v62  ;;  %v549_v48 = vpop.f32.mrf.mxu0 }
 0x195   :  { %v550_v41 = vadd.f32 %v549_v48, %v5921_v36 }
 0x197   :  { %v679_v42 = vpop.f32.mrf.mxu2  ;;  %v614_v34 = vpop.f32.mrf.mxu1 }
 0x198   :  { %v680_v51 = vadd.f32 %v679_v42, %v5925_v3  ;;  %v615_v8 = vadd.f32 %v614_v34, %v550_v41  ;;  %v744_v47 = vpop.f32.mrf.mxu3 }
 0x19a   :  { %807 = vst [vmem:[#allocation2 + $0x1b0] sm:$0xff] %v615_v8  ;;  %v745_v60 = vadd.f32 %v744_v47, %v680_v51 }
 0x19c   :  { %808 = vst [vmem:[#allocation2 + $0x1b8] sm:$0xff] %v745_v60  ;;  %v552_v52 = vpop.f32.mrf.mxu0 }
 0x19d   :  { %v553_v0 = vadd.f32 %v552_v52, %v5921_v36 }
 0x19f   :  { %v682_v10 = vpop.f32.mrf.mxu2  ;;  %v617_v53 = vpop.f32.mrf.mxu1 }
 0x1a0   :  { %v683_v1 = vadd.f32 %v682_v10, %v5925_v3  ;;  %v618_v59 = vadd.f32 %v617_v53, %v553_v0  ;;  %v747_v15 = vpop.f32.mrf.mxu3 }
 0x1a2   :  { %811 = vst [vmem:[#allocation2 + $0x1d0] sm:$0xff] %v618_v59  ;;  %v748_v54 = vadd.f32 %v747_v15, %v683_v1 }
 0x1a4   :  { %812 = vst [vmem:[#allocation2 + $0x1d8] sm:$0xff] %v748_v54  ;;  %v555_v63 = vpop.f32.mrf.mxu0 }
 0x1a5   :  { %v556_v11 = vadd.f32 %v555_v63, %v5921_v36 }
 0x1a7   :  { %v685_v43 = vpop.f32.mrf.mxu2  ;;  %v620_v12 = vpop.f32.mrf.mxu1 }
 0x1a8   :  { %v686_v16 = vadd.f32 %v685_v43, %v5925_v3  ;;  %v621_v13 = vadd.f32 %v620_v12, %v556_v11  ;;  %v750_v57 = vpop.f32.mrf.mxu3 }
 0x1aa   :  { %815 = vst [vmem:[#allocation2 + $0x1f0] sm:$0xff] %v621_v13  ;;  %v751_v14 = vadd.f32 %v750_v57, %v686_v16 }
 0x1ac   :  { %816 = vst [vmem:[#allocation2 + $0x1f8] sm:$0xff] %v751_v14 }
 0x1ad LB: > { %v5964_v44 = vld [vmem:[#allocation7 + $0x1e0] sm:$0xff]  ;;  %v5966_v58 = vld [vmem:[#allocation7 + $0x1e8] sm:$0xff]  ;;  %v5968_v36 = vld [vmem:[#allocation7 + $0x1f0] sm:$0xff]  ;;  %s6503_s3 = sshll.u32 %s5147_s0, 6  ;;  %s832_s0 = sadd.s32 1, %s5147_s0   ;;  %s5147_s0 = sphi %s5959_s0, %s832_s0  }
 0x1ae   : > { %9753 = vst [vmem:[#allocation17_spill] sm:$0xff] %v5964_v44  ;;  %909 = vmatpush.msra.mxu0 %v5964_v44  ;;  %929 = vmatpush.msra.mxu1 %v5966_v58  ;;  %v5972_v3 = vld [vmem:[#allocation7 + $0x1c0] sm:$0xff]  ;;  %v5974_v23 = vld [vmem:[#allocation7 + $0x1c8] sm:$0xff]  ;;  %v5976_v17 = vld [vmem:[#allocation7 + $0x1d0] sm:$0xff]  ;;  %s835_s8 = sshra.s32 %s6503_s3, 3  ;;  %s4882_s4 = sadd.s32 8, %s6503_s3 }
 0x1af   : > { %9754 = vst [vmem:[#allocation18_spill] sm:$0xff] %v5968_v36  ;;  %949 = vmatpush.msra.mxu2 %v5968_v36  ;;  %v5979_v18 = vld [vmem:[#allocation7 + $0x1a0] sm:$0xff]  ;;  %v5981_v19 = vld [vmem:[#allocation7 + $0x1a8] sm:$0xff]  ;;  %v5985_v24 = vld [vmem:[#allocation7 + $0x1b0] sm:$0xff]  ;;  %s4880_s2 = sshll.u32 %s835_s8, 5  ;;  %s1328_s10 = sshra.s32 %s4882_s4, 3 }
 0x1b0   : > { %9755 = vst [vmem:[#allocation19_spill] sm:$0xff] %v5972_v3  ;;  %910 = vmatpush.msra.mxu0 %v5972_v3  ;;  %930 = vmatpush.msra.mxu1 %v5974_v23  ;;  %v5987_v49 = vld [vmem:[#allocation7 + $0x1f8] sm:$0xff]  ;;  %v5991_v21 = vld [vmem:[#allocation7 + $0x180] sm:$0xff]  ;;  %v5993_v2 = vld [vmem:[#allocation7 + $0x188] sm:$0xff]  ;;  %s839_s9 = scalar_lea.vmem [#allocation2], %s4880_s2  ;;  %s4883_s11 = sshll.u32 %s1328_s10, 5 }
 0x1b1   : > { %9756 = vst [vmem:[#allocation20_spill] sm:$0xff] %v5976_v17  ;;  %950 = vmatpush.msra.mxu2 %v5976_v17  ;;  %969 = vmatpush.msra.mxu3 %v5987_v49  ;;  %v5995_v29 = vld [vmem:[#allocation7 + $0x1d8] sm:$0xff]  ;;  %v5999_v25 = vld [vmem:[#allocation7 + $0x190] sm:$0xff]  ;;  %v6005_v26 = vld [vmem:[#allocation7 + $0x160] sm:$0xff]  ;;  %s1332_s12 = scalar_lea.vmem [#allocation2], %s4883_s11  ;;  %s6749_s5 = scalar_lea.vmem %s9219_s6, %s6503_s3 }
 0x1b2   : > { %9757 = vst [vmem:[#allocation21_spill] sm:$0xff] %v5979_v18  ;;  %911 = vmatpush.msra.mxu0 %v5979_v18  ;;  %931 = vmatpush.msra.mxu1 %v5981_v19  ;;  %v6001_v50 = vld [vmem:[#allocation7 + $0x1b8] sm:$0xff]  ;;  %v6007_v30 = vld [vmem:[#allocation7 + $0x168] sm:$0xff]  ;;  %v6011_v27 = vld [vmem:[#allocation7 + $0x170] sm:$0xff]  ;;  %s4886_s15 = sadd.s32 16, %s6503_s3  ;;  %s4890_s19 = sadd.s32 24, %s6503_s3 }
 0x1b3   : > { %9758 = vst [vmem:[#allocation22_spill] sm:$0xff] %v5985_v24  ;;  %951 = vmatpush.msra.mxu2 %v5985_v24  ;;  %970 = vmatpush.msra.mxu3 %v5995_v29  ;;  %v6013_v9 = vld [vmem:[#allocation7 + $0x198] sm:$0xff]  ;;  %v6017_v55 = vld [vmem:[#allocation7 + $0x140] sm:$0xff]  ;;  %v6019_v37 = vld [vmem:[#allocation7 + $0x148] sm:$0xff]  ;;  %s7262_s16 = sshra.s32 %s4886_s15, 3  ;;  %s2314_s20 = sshra.s32 %s4890_s19, 3 }
 0x1b4   : > { %9759 = vst [vmem:[#allocation23_spill] sm:$0xff] %v5991_v21  ;;  %912 = vmatpush.msra.mxu0 %v5991_v21  ;;  %932 = vmatpush.msra.mxu1 %v5993_v2  ;;  %v6023_v28 = vld [vmem:[#allocation7 + $0x150] sm:$0xff]  ;;  %v6025_v31 = vld [vmem:[#allocation7 + $0x178] sm:$0xff]  ;;  %v6029_v32 = vld [vmem:[#allocation7 + $0x120] sm:$0xff]  ;;  %s4887_s17 = sshll.u32 %s7262_s16, 5  ;;  %s4891_s21 = sshll.u32 %s2314_s20, 5 }
 0x1b5   : > { %9760 = vst [vmem:[#allocation24_spill] sm:$0xff] %v5999_v25  ;;  %952 = vmatpush.msra.mxu2 %v5999_v25  ;;  %971 = vmatpush.msra.mxu3 %v6001_v50  ;;  %v6031_v38 = vld [vmem:[#allocation7 + $0x128] sm:$0xff]  ;;  %v6035_v56 = vld [vmem:[#allocation7 + $0x130] sm:$0xff]  ;;  %v6037_v20 = vld [vmem:[#allocation7 + $0x158] sm:$0xff]  ;;  %s7296_s18 = scalar_lea.vmem [#allocation2], %s4887_s17  ;;  %s2318_s22 = scalar_lea.vmem [#allocation2], %s4891_s21 }
 0x1b6   : > { %9761 = vst [vmem:[#allocation25_spill] sm:$0xff] %v6005_v26  ;;  %913 = vmatpush.msra.mxu0 %v6005_v26  ;;  %933 = vmatpush.msra.mxu1 %v6007_v30  ;;  %v6041_v33 = vld [vmem:[#allocation7 + $0x100] sm:$0xff]  ;;  %v6043_v45 = vld [vmem:[#allocation7 + $0x108] sm:$0xff]  ;;  %v6047_v35 = vld [vmem:[#allocation7 + $0x110] sm:$0xff]  ;;  %s4894_s1 = sadd.s32 32, %s6503_s3  ;;  %s4898_s26 = sadd.s32 40, %s6503_s3 }
 0x1b7   : > { %9762 = vst [vmem:[#allocation26_spill] sm:$0xff] %v6011_v27  ;;  %953 = vmatpush.msra.mxu2 %v6011_v27  ;;  %972 = vmatpush.msra.mxu3 %v6013_v9  ;;  %v6049_v61 = vld [vmem:[#allocation7 + $0x138] sm:$0xff]  ;;  %v6053_v39 = vld [vmem:[#allocation7 + $0xe0] sm:$0xff]  ;;  %v6055_v46 = vld [vmem:[#allocation7 + $0xe8] sm:$0xff]  ;;  %s8087_s23 = sshra.s32 %s4894_s1, 3  ;;  %s3300_s27 = sshra.s32 %s4898_s26, 3 }
 0x1b8   : > { %9763 = vst [vmem:[#allocation27_spill] sm:$0xff] %v6017_v55  ;;  %914 = vmatpush.msra.mxu0 %v6017_v55  ;;  %934 = vmatpush.msra.mxu1 %v6019_v37  ;;  %v6059_v22 = vld [vmem:[#allocation7 + $0xf0] sm:$0xff]  ;;  %v6061_v40 = vld [vmem:[#allocation7 + $0x118] sm:$0xff]  ;;  %v6065_v62 = vld [vmem:[#allocation7 + $0xc0] sm:$0xff]  ;;  %s4895_s24 = sshll.u32 %s8087_s23, 5  ;;  %s4899_s28 = sshll.u32 %s3300_s27, 5 }
 0x1b9   : > { %9764 = vst [vmem:[#allocation28_spill] sm:$0xff] %v6023_v28  ;;  %954 = vmatpush.msra.mxu2 %v6023_v28  ;;  %973 = vmatpush.msra.mxu3 %v6025_v31  ;;  %v6067_v48 = vld [vmem:[#allocation7 + $0xc8] sm:$0xff]  ;;  %v6071_v41 = vld [vmem:[#allocation7 + $0xd0] sm:$0xff]  ;;  %v6073_v42 = vld [vmem:[#allocation7 + $0xf8] sm:$0xff]  ;;  %s8121_s25 = scalar_lea.vmem [#allocation2], %s4895_s24  ;;  %s3304_s29 = scalar_lea.vmem [#allocation2], %s4899_s28 }
 0x1ba   : > { %9765 = vst [vmem:[#allocation29_spill] sm:$0xff] %v6029_v32  ;;  %915 = vmatpush.msra.mxu0 %v6029_v32  ;;  %935 = vmatpush.msra.mxu1 %v6031_v38  ;;  %v6077_v34 = vld [vmem:[#allocation7 + $0xa0] sm:$0xff]  ;;  %v6079_v51 = vld [vmem:[#allocation7 + $0xa8] sm:$0xff]  ;;  %v6083_v8 = vld [vmem:[#allocation7 + $0xb0] sm:$0xff]  ;;  %s4902_s30 = sadd.s32 48, %s6503_s3  ;;  %p829_p0 = scmp.ge.s32.totalorder %s832_s0, 2  }
 0x1bb   : > { %9766 = vst [vmem:[#allocation30_spill] sm:$0xff] %v6035_v56  ;;  %955 = vmatpush.msra.mxu2 %v6035_v56  ;;  %974 = vmatpush.msra.mxu3 %v6037_v20  ;;  %v6085_v47 = vld [vmem:[#allocation7 + $0xd8] sm:$0xff]  ;;  %v6089_v60 = vld [vmem:[#allocation7 + $0x80] sm:$0xff]  ;;  %v6091_v52 = vld [vmem:[#allocation7 + $0x88] sm:$0xff]  ;;  %s8912_s7 = sshra.s32 %s4902_s30, 3 }
 0x1bc   : > { %9767 = vst [vmem:[#allocation31_spill] sm:$0xff] %v6041_v33  ;;  %916 = vmatpush.msra.mxu0 %v6041_v33  ;;  %936 = vmatpush.msra.mxu1 %v6043_v45  ;;  %v6095_v0 = vld [vmem:[#allocation7 + $0x90] sm:$0xff]  ;;  %v6097_v10 = vld [vmem:[#allocation7 + $0xb8] sm:$0xff]  ;;  %v6101_v53 = vld [vmem:[#allocation7 + $0x60] sm:$0xff]  ;;  %s4903_s8 = sshll.u32 %s8912_s7, 5 }
 0x1bd   : > { %9768 = vst [vmem:[#allocation32_spill] sm:$0xff] %v6047_v35  ;;  %956 = vmatpush.msra.mxu2 %v6047_v35  ;;  %975 = vmatpush.msra.mxu3 %v6049_v61  ;;  %v6103_v1 = vld [vmem:[#allocation7 + $0x68] sm:$0xff]  ;;  %v6107_v59 = vld [vmem:[#allocation7 + $0x70] sm:$0xff]  ;;  %v6109_v15 = vld [vmem:[#allocation7 + $0x98] sm:$0xff]  ;;  %s8946_s2 = scalar_lea.vmem [#allocation2], %s4903_s8 }
 0x1be   : > { %9769 = vst [vmem:[#allocation33_spill] sm:$0xff] %v6053_v39  ;;  %917 = vmatpush.msra.mxu0 %v6053_v39  ;;  %937 = vmatpush.msra.mxu1 %v6055_v46  ;;  %v6113_v54 = vld [vmem:[#allocation7 + $0x40] sm:$0xff]  ;;  %v6115_v63 = vld [vmem:[#allocation7 + $0x48] sm:$0xff]  ;;  %v6119_v11 = vld [vmem:[#allocation7 + $0x50] sm:$0xff] }
 0x1bf   : > { %9770 = vst [vmem:[#allocation34_spill] sm:$0xff] %v6059_v22  ;;  %957 = vmatpush.msra.mxu2 %v6059_v22  ;;  %976 = vmatpush.msra.mxu3 %v6061_v40  ;;  %v6121_v43 = vld [vmem:[#allocation7 + $0x78] sm:$0xff]  ;;  %v6125_v12 = vld [vmem:[#allocation7 + $0x20] sm:$0xff]  ;;  %v6127_v16 = vld [vmem:[#allocation7 + $0x28] sm:$0xff] }
 0x1c0   : > { %9771 = vst [vmem:[#allocation35_spill] sm:$0xff] %v6065_v62  ;;  %918 = vmatpush.msra.mxu0 %v6065_v62  ;;  %938 = vmatpush.msra.mxu1 %v6067_v48  ;;  %v6131_v13 = vld [vmem:[#allocation7 + $0x30] sm:$0xff]  ;;  %v6133_v57 = vld [vmem:[#allocation7 + $0x58] sm:$0xff]  ;;  %v6137_v14 = vld [vmem:[#allocation7] sm:$0xff] }
 0x1c1   : > { %9772 = vst [vmem:[#allocation36_spill] sm:$0xff] %v6071_v41  ;;  %958 = vmatpush.msra.mxu2 %v6071_v41  ;;  %977 = vmatpush.msra.mxu3 %v6073_v42  ;;  %v6139_v7 = vld [vmem:[#allocation7 + $0x8] sm:$0xff]  ;;  %v6143_v6 = vld [vmem:[#allocation7 + $0x10] sm:$0xff]  ;;  %v844_v5 = vld [vmem:[#allocation3] sm:$0xff] }
 0x1c2   : > { %9773 = vst [vmem:[#allocation37_spill] sm:$0xff] %v6077_v34  ;;  %919 = vmatpush.msra.mxu0 %v6077_v34  ;;  %939 = vmatpush.msra.mxu1 %v6079_v51  ;;  %v6149_v4 = vld [vmem:[#allocation7 + $0x38] sm:$0xff]  ;;  %v6180_v34 = vld [vmem:[#allocation9 + $0x380] sm:$0xff]  ;;  %v6189_v41 = vld [vmem:[#allocation9 + $0x3a8] sm:$0xff] }
 0x1c3   : > { %9774 = vst [vmem:[#allocation38_spill] sm:$0xff] %v6083_v8  ;;  %959 = vmatpush.msra.mxu2 %v6083_v8  ;;  %978 = vmatpush.msra.mxu3 %v6085_v47  ;;  %v6178_v8 = vld [vmem:[#allocation9 + $0x3c8] sm:$0xff]  ;;  %v6191_v62 = vld [vmem:[#allocation9 + $0x360] sm:$0xff] }
 0x1c4   : > { %9775 = vst [vmem:[#allocation39_spill] sm:$0xff] %v6089_v60  ;;  %920 = vmatpush.msra.mxu0 %v6089_v60  ;;  %940 = vmatpush.msra.mxu1 %v6091_v52  ;;  %v6176_v60 = vld [vmem:[#allocation9 + $0x1a0] sm:$0xff]  ;;  %v6201_v22 = vld [vmem:[#allocation9 + $0x388] sm:$0xff] }
 0x1c5   : > { %9776 = vst [vmem:[#allocation40_spill] sm:$0xff] %v6095_v0  ;;  %960 = vmatpush.msra.mxu2 %v6095_v0  ;;  %979 = vmatpush.msra.mxu3 %v6097_v10  ;;  %v6174_v0 = vld [vmem:[#allocation9 + $0x1c8] sm:$0xff]  ;;  %v6203_v39 = vld [vmem:[#allocation9 + $0x340] sm:$0xff] }
 0x1c6   : > { %9777 = vst [vmem:[#allocation41_spill] sm:$0xff] %v6101_v53  ;;  %921 = vmatpush.msra.mxu0 %v6101_v53  ;;  %941 = vmatpush.msra.mxu1 %v6103_v1  ;;  %v6166_v53 = vld [vmem:[#allocation9 + $0x3e8] sm:$0xff]  ;;  %v6215_v33 = vld [vmem:[#allocation9 + $0x320] sm:$0xff] }
 0x1c7   : > { %9778 = vst [vmem:[#allocation42_spill] sm:$0xff] %v6107_v59  ;;  %961 = vmatpush.msra.mxu2 %v6107_v59  ;;  %980 = vmatpush.msra.mxu3 %v6109_v15  ;;  %v6160_v59 = vld [vmem:[#allocation9 + $0x3c0] sm:$0xff]  ;;  %v6213_v35 = vld [vmem:[#allocation9 + $0x368] sm:$0xff] }
 0x1c8   : > { %9779 = vst [vmem:[#allocation43_spill] sm:$0xff] %v6113_v54  ;;  %922 = vmatpush.msra.mxu0 %v6113_v54  ;;  %942 = vmatpush.msra.mxu1 %v6115_v63  ;;  %v6156_v54 = vld [vmem:[#allocation9 + $0x1e8] sm:$0xff]  ;;  %v6227_v32 = vld [vmem:[#allocation9 + $0x300] sm:$0xff] }
 0x1c9   : > { %9780 = vst [vmem:[#allocation44_spill] sm:$0xff] %v6119_v11  ;;  %962 = vmatpush.msra.mxu2 %v6119_v11  ;;  %981 = vmatpush.msra.mxu3 %v6121_v43  ;;  %v6151_v11 = vld [vmem:[#allocation9 + $0x3e0] sm:$0xff]  ;;  %v6225_v56 = vld [vmem:[#allocation9 + $0x348] sm:$0xff] }
 0x1ca   : > { %9781 = vst [vmem:[#allocation45_spill] sm:$0xff] %v6125_v12  ;;  %923 = vmatpush.msra.mxu0 %v6125_v12  ;;  %943 = vmatpush.msra.mxu1 %v6127_v16  ;;  %v6154_v12 = vld [vmem:[#allocation9 + $0x1e0] sm:$0xff]  ;;  %v6237_v28 = vld [vmem:[#allocation9 + $0x328] sm:$0xff] }
 0x1cb   : > { %9782 = vst [vmem:[#allocation46_spill] sm:$0xff] %v6131_v13  ;;  %963 = vmatpush.msra.mxu2 %v6131_v13  ;;  %982 = vmatpush.msra.mxu3 %v6133_v57  ;;  %v6158_v13 = vld [vmem:[#allocation7 + $0x18] sm:$0xff]  ;;  %v6239_v55 = vld [vmem:[#allocation9 + $0x2e0] sm:$0xff]  ;;  %v6249_v27 = vld [vmem:[#allocation9 + $0x308] sm:$0xff] }
 0x1cc   : > { %9783 = vst [vmem:[#allocation47_spill] sm:$0xff] %v6137_v14  ;;  %924 = vmatpush.msra.mxu0 %v6137_v14  ;;  %944 = vmatpush.msra.mxu1 %v6139_v7  ;;  %v6164_v14 = vld [vmem:[#allocation9 + $0x1c0] sm:$0xff]  ;;  %v6261_v25 = vld [vmem:[#allocation9 + $0x2e8] sm:$0xff] }
 0x1cd   : > { %9784 = vst [vmem:[#allocation48_spill] sm:$0xff] %v6143_v6  ;;  %964 = vmatpush.msra.mxu2 %v6143_v6  ;;  %925 = vmatmul.f32.vlgmr.msra.gmra.mxu0 %v844_v5  ;;  %v6168_v6 = vld [vmem:[#allocation9 + $0x3a0] sm:$0xff]  ;;  %v6273_v24 = vld [vmem:[#allocation9 + $0x2c8] sm:$0xff] }
 0x1ce   : > { %9785 = vst [vmem:[#allocation49_spill] sm:$0xff] %v6154_v12  ;;  %945 = vmatmul.f32.vlgmr.msra.gmra.mxu1 %v844_v5  ;;  %965 = vmatmul.f32.vlgmr.msra.gmra.mxu2 %v844_v5  ;;  %v6251_v26 = vld [vmem:[#allocation9 + $0x2c0] sm:$0xff]  ;;  %v6285_v17 = vld [vmem:[#allocation9 + $0x2a8] sm:$0xff] }
 0x1cf   : > { %9786 = vst [vmem:[#allocation50_spill] sm:$0xff] %v6156_v54  ;;  %983 = vmatpush.msra.mxu3 %v6149_v4  ;;  %1163 = vmatpush.msrb.mxu1 %v6151_v11  ;;  %v6263_v21 = vld [vmem:[#allocation9 + $0x2a0] sm:$0xff]  ;;  %v6297_v36 = vld [vmem:[#allocation9 + $0x288] sm:$0xff] }
 0x1d0   : > { %9787 = vst [vmem:[#allocation51_spill] sm:$0xff] %v6164_v14  ;;  %1143 = vmatpush.msrb.mxu0 %v6154_v12  ;;  %1183 = vmatpush.msrb.mxu2 %v6156_v54  ;;  %v6185_v54 = vld [vmem:[#allocation9 + $0x1a8] sm:$0xff]  ;;  %v6187_v12 = vld [vmem:[#allocation9 + $0x180] sm:$0xff] }
 0x1d1   : > { %984 = vmatpush.msra.mxu3 %v6158_v13  ;;  %1164 = vmatpush.msrb.mxu1 %v6160_v59  ;;  %9788 = vst [vmem:[#allocation52_spill] sm:$0xff] %v6174_v0  ;;  %v6275_v18 = vld [vmem:[#allocation9 + $0x280] sm:$0xff] }
 0x1d2   : > { %9789 = vst [vmem:[#allocation53_spill] sm:$0xff] %v6176_v60  ;;  %985 = vmatmul.f32.vlgmr.msra.gmra.mxu3 %v844_v5  ;;  %1144 = vmatpush.msrb.mxu0 %v6164_v14  ;;  %v6197_v5 = vld [vmem:[#allocation9 + $0x188] sm:$0xff]  ;;  %v6199_v14 = vld [vmem:[#allocation9 + $0x160] sm:$0xff] }
 0x1d3   : > { %1203 = vmatpush.msrb.mxu3 %v6166_v53  ;;  %1165 = vmatpush.msrb.mxu1 %v6168_v6  ;;  %9790 = vst [vmem:[#allocation54_spill] sm:$0xff] %v6185_v54  ;;  %v6287_v3 = vld [vmem:[#allocation9 + $0x260] sm:$0xff] }
 0x1d4   : > { %9791 = vst [vmem:[#allocation55_spill] sm:$0xff] %v6187_v12  ;;  %1184 = vmatpush.msrb.mxu2 %v6174_v0  ;;  %1145 = vmatpush.msrb.mxu0 %v6176_v60  ;;  %v6209_v60 = vld [vmem:[#allocation9 + $0x168] sm:$0xff]  ;;  %v6211_v0 = vld [vmem:[#allocation9 + $0x140] sm:$0xff] }
 0x1d5   : > { %1204 = vmatpush.msrb.mxu3 %v6178_v8  ;;  %1166 = vmatpush.msrb.mxu1 %v6180_v34  ;;  %9792 = vst [vmem:[#allocation56_spill] sm:$0xff] %v6197_v5  ;;  %v6299_v44 = vld [vmem:[#allocation9 + $0x240] sm:$0xff] }
 0x1d6   : > { %9793 = vst [vmem:[#allocation57_spill] sm:$0xff] %v6199_v14  ;;  %1185 = vmatpush.msrb.mxu2 %v6185_v54  ;;  %1146 = vmatpush.msrb.mxu0 %v6187_v12  ;;  %v6221_v12 = vld [vmem:[#allocation9 + $0x148] sm:$0xff]  ;;  %v6223_v54 = vld [vmem:[#allocation9 + $0x120] sm:$0xff] }
 0x1d7   : > { %1205 = vmatpush.msrb.mxu3 %v6189_v41  ;;  %1167 = vmatpush.msrb.mxu1 %v6191_v62  ;;  %9794 = vst [vmem:[#allocation58_spill] sm:$0xff] %v6209_v60 }
 0x1d8   : > { %9795 = vst [vmem:[#allocation59_spill] sm:$0xff] %v6211_v0  ;;  %1186 = vmatpush.msrb.mxu2 %v6197_v5  ;;  %1147 = vmatpush.msrb.mxu0 %v6199_v14  ;;  %v6233_v14 = vld [vmem:[#allocation9 + $0x128] sm:$0xff]  ;;  %v6235_v5 = vld [vmem:[#allocation9 + $0x100] sm:$0xff] }
 0x1d9   : > { %1206 = vmatpush.msrb.mxu3 %v6201_v22  ;;  %1168 = vmatpush.msrb.mxu1 %v6203_v39  ;;  %9796 = vst [vmem:[#allocation60_spill] sm:$0xff] %v6221_v12 }
 0x1da   : > { %9797 = vst [vmem:[#allocation61_spill] sm:$0xff] %v6223_v54  ;;  %1187 = vmatpush.msrb.mxu2 %v6209_v60  ;;  %1148 = vmatpush.msrb.mxu0 %v6211_v0  ;;  %v6245_v0 = vld [vmem:[#allocation9 + $0x108] sm:$0xff]  ;;  %v6247_v60 = vld [vmem:[#allocation9 + $0xe0] sm:$0xff] }
 0x1db   : > { %1207 = vmatpush.msrb.mxu3 %v6213_v35  ;;  %1169 = vmatpush.msrb.mxu1 %v6215_v33  ;;  %9798 = vst [vmem:[#allocation62_spill] sm:$0xff] %v6233_v14 }
 0x1dc   : > { %9799 = vst [vmem:[#allocation63_spill] sm:$0xff] %v6235_v5  ;;  %1188 = vmatpush.msrb.mxu2 %v6221_v12  ;;  %1149 = vmatpush.msrb.mxu0 %v6223_v54  ;;  %v6257_v54 = vld [vmem:[#allocation9 + $0xe8] sm:$0xff]  ;;  %v6259_v12 = vld [vmem:[#allocation9 + $0xc0] sm:$0xff] }
 0x1dd   : > { %1208 = vmatpush.msrb.mxu3 %v6225_v56  ;;  %1170 = vmatpush.msrb.mxu1 %v6227_v32  ;;  %9800 = vst [vmem:[#allocation64_spill] sm:$0xff] %v6245_v0 }
 0x1de   : > { %9801 = vst [vmem:[#allocation65_spill] sm:$0xff] %v6247_v60  ;;  %1189 = vmatpush.msrb.mxu2 %v6233_v14  ;;  %1150 = vmatpush.msrb.mxu0 %v6235_v5  ;;  %v6269_v5 = vld [vmem:[#allocation9 + $0xc8] sm:$0xff]  ;;  %v6271_v14 = vld [vmem:[#allocation9 + $0xa0] sm:$0xff] }
 0x1df   : > { %1209 = vmatpush.msrb.mxu3 %v6237_v28  ;;  %1171 = vmatpush.msrb.mxu1 %v6239_v55  ;;  %9802 = vst [vmem:[#allocation66_spill] sm:$0xff] %v6257_v54 }
 0x1e0   : > { %9803 = vst [vmem:[#allocation67_spill] sm:$0xff] %v6259_v12  ;;  %1190 = vmatpush.msrb.mxu2 %v6245_v0  ;;  %1151 = vmatpush.msrb.mxu0 %v6247_v60  ;;  %v6281_v60 = vld [vmem:[#allocation9 + $0xa8] sm:$0xff]  ;;  %v6283_v0 = vld [vmem:[#allocation9 + $0x80] sm:$0xff] }
 0x1e1   : > { %9804 = vst [vmem:[#allocation68_spill] sm:$0xff] %v6263_v21  ;;  %1210 = vmatpush.msrb.mxu3 %v6249_v27  ;;  %1172 = vmatpush.msrb.mxu1 %v6251_v26 }
 0x1e2   : > { %9805 = vst [vmem:[#allocation69_spill] sm:$0xff] %v6269_v5  ;;  %1191 = vmatpush.msrb.mxu2 %v6257_v54  ;;  %1152 = vmatpush.msrb.mxu0 %v6259_v12  ;;  %v6293_v12 = vld [vmem:[#allocation9 + $0x88] sm:$0xff]  ;;  %v6295_v54 = vld [vmem:[#allocation9 + $0x60] sm:$0xff] }
 0x1e3   : > { %9806 = vst [vmem:[#allocation70_spill] sm:$0xff] %v6271_v14  ;;  %1211 = vmatpush.msrb.mxu3 %v6261_v25  ;;  %1173 = vmatpush.msrb.mxu1 %v6263_v21  ;;  %v6311_v21 = vld [vmem:[#allocation9 + $0x220] sm:$0xff] }
 0x1e4   : > { %9807 = vst [vmem:[#allocation71_spill] sm:$0xff] %v6275_v18  ;;  %1192 = vmatpush.msrb.mxu2 %v6269_v5  ;;  %1153 = vmatpush.msrb.mxu0 %v6271_v14  ;;  %v6305_v14 = vld [vmem:[#allocation9 + $0x68] sm:$0xff]  ;;  %v6307_v5 = vld [vmem:[#allocation9 + $0x40] sm:$0xff] }
 0x1e5   : > { %9808 = vst [vmem:[#allocation72_spill] sm:$0xff] %v6281_v60  ;;  %1212 = vmatpush.msrb.mxu3 %v6273_v24  ;;  %1174 = vmatpush.msrb.mxu1 %v6275_v18  ;;  %v6309_v18 = vld [vmem:[#allocation9 + $0x268] sm:$0xff] }
 0x1e6   : > { %9809 = vst [vmem:[#allocation73_spill] sm:$0xff] %v6283_v0  ;;  %1193 = vmatpush.msrb.mxu2 %v6281_v60  ;;  %1154 = vmatpush.msrb.mxu0 %v6283_v0  ;;  %v6317_v0 = vld [vmem:[#allocation9 + $0x48] sm:$0xff]  ;;  %v6319_v60 = vld [vmem:[#allocation9 + $0x20] sm:$0xff] }
 0x1e7   : > { %9810 = vst [vmem:[#allocation74_spill] sm:$0xff] %v6285_v17  ;;  %1213 = vmatpush.msrb.mxu3 %v6285_v17  ;;  %1175 = vmatpush.msrb.mxu1 %v6287_v3  ;;  %v6323_v17 = vld [vmem:[#allocation9 + $0x200] sm:$0xff] }
 0x1e8   : > { %9811 = vst [vmem:[#allocation75_spill] sm:$0xff] %v6287_v3  ;;  %1194 = vmatpush.msrb.mxu2 %v6293_v12  ;;  %1155 = vmatpush.msrb.mxu0 %v6295_v54  ;;  %v6321_v3 = vld [vmem:[#allocation9 + $0x248] sm:$0xff] }
 0x1e9   : > { %9812 = vst [vmem:[#allocation76_spill] sm:$0xff] %v6293_v12  ;;  %1214 = vmatpush.msrb.mxu3 %v6297_v36  ;;  %1176 = vmatpush.msrb.mxu1 %v6299_v44  ;;  %v6331_v12 = vld [vmem:[#allocation9 + $0x28] sm:$0xff] }
 0x1ea   : > { %9813 = vst [vmem:[#allocation77_spill] sm:$0xff] %v6295_v54  ;;  %1195 = vmatpush.msrb.mxu2 %v6305_v14  ;;  %1156 = vmatpush.msrb.mxu0 %v6307_v5  ;;  %v6329_v54 = vld [vmem:[#allocation9 + $0x3f0] sm:$0xff] }
 0x1eb   : > { %9814 = vst [vmem:[#allocation78_spill] sm:$0xff] %v6297_v36  ;;  %1215 = vmatpush.msrb.mxu3 %v6309_v18  ;;  %1177 = vmatpush.msrb.mxu1 %v6311_v21  ;;  %v6337_v36 = vld [vmem:[#allocation9] sm:$0xff] }
 0x1ec   : > { %9815 = vst [vmem:[#allocation79_spill] sm:$0xff] %v6299_v44  ;;  %v6333_v44 = vld [vmem:[#allocation9 + $0x228] sm:$0xff]  ;;  %1196 = vmatpush.msrb.mxu2 %v6317_v0  ;;  %1157 = vmatpush.msrb.mxu0 %v6319_v60 }
 0x1ed   : > { %9816 = vst [vmem:[#allocation80_spill] sm:$0xff] %v6305_v14  ;;  %1216 = vmatpush.msrb.mxu3 %v6321_v3  ;;  %1178 = vmatpush.msrb.mxu1 %v6323_v17  ;;  %v6343_v14 = vld [vmem:[#allocation9 + $0x8] sm:$0xff] }
 0x1ee   : > { %9817 = vst [vmem:[#allocation81_spill] sm:$0xff] %v6307_v5  ;;  %v6341_v5 = vld [vmem:[#allocation9 + $0x3d0] sm:$0xff]  ;;  %1197 = vmatpush.msrb.mxu2 %v6331_v12  ;;  %1158 = vmatpush.msrb.mxu0 %v6337_v36 }
 0x1ef   : > { %9818 = vst [vmem:[#allocation82_spill] sm:$0xff] %v6309_v18  ;;  %1243 = vmatpush.msra.mxu1 %v6329_v54  ;;  %v6349_v18 = vld [vmem:[#allocation9 + $0x1f0] sm:$0xff]  ;;  %1217 = vmatpush.msrb.mxu3 %v6333_v44 }
 0x1f0   : > { %9819 = vst [vmem:[#allocation83_spill] sm:$0xff] %v6311_v21  ;;  %v6345_v21 = vld [vmem:[#allocation9 + $0x208] sm:$0xff]  ;;  %1198 = vmatpush.msrb.mxu2 %v6343_v14  ;;  %1223 = vmatpush.msra.mxu0 %v6349_v18 }
 0x1f1   : > { %9820 = vst [vmem:[#allocation84_spill] sm:$0xff] %v6317_v0  ;;  %v6354_v0 = vld [vmem:[#allocation9 + $0x3b0] sm:$0xff]  ;;  %1244 = vmatpush.msra.mxu1 %v6341_v5  ;;  %1218 = vmatpush.msrb.mxu3 %v6345_v21 }
 0x1f2   : > { %9821 = vst [vmem:[#allocation85_spill] sm:$0xff] %v6319_v60  ;;  %v6352_v60 = vld [vmem:[#allocation9 + $0x3f8] sm:$0xff] }
 0x1f3   : > { %9822 = vst [vmem:[#allocation86_spill] sm:$0xff] %v6321_v3  ;;  %1283 = vmatpush.msra.mxu3 %v6352_v60  ;;  %1245 = vmatpush.msra.mxu1 %v6354_v0  ;;  %v6410_v3 = vld [vmem:[#allocation9 + $0x258] sm:$0xff] }
 0x1f4   : > { %9823 = vst [vmem:[#allocation87_spill] sm:$0xff] %v6323_v17  ;;  %v6359_v17 = vld [vmem:[#allocation9 + $0x1f8] sm:$0xff] }
 0x1f5   : > { %9824 = vst [vmem:[#allocation88_spill] sm:$0xff] %v6329_v54  ;;  %v6362_v54 = vld [vmem:[#allocation9 + $0x3d8] sm:$0xff]  ;;  %1263 = vmatpush.msra.mxu2 %v6359_v17 }
 0x1f6   : > { %9825 = vst [vmem:[#allocation89_spill] sm:$0xff] %v6331_v12  ;;  %v6364_v12 = vld [vmem:[#allocation9 + $0x390] sm:$0xff]  ;;  %1284 = vmatpush.msra.mxu3 %v6362_v54 }
 0x1f7   : > { %9826 = vst [vmem:[#allocation90_spill] sm:$0xff] %v6333_v44  ;;  %v6369_v44 = vld [vmem:[#allocation9 + $0x3b8] sm:$0xff]  ;;  %1246 = vmatpush.msra.mxu1 %v6364_v12 }
 0x1f8   : > { %9827 = vst [vmem:[#allocation91_spill] sm:$0xff] %v6337_v36  ;;  %v6371_v36 = vld [vmem:[#allocation9 + $0x370] sm:$0xff]  ;;  %1285 = vmatpush.msra.mxu3 %v6369_v44 }
 0x1f9   : > { %9828 = vst [vmem:[#allocation92_spill] sm:$0xff] %v6341_v5  ;;  %v6378_v5 = vld [vmem:[#allocation9 + $0x350] sm:$0xff]  ;;  %1247 = vmatpush.msra.mxu1 %v6371_v36 }
 0x1fa   : > { %9829 = vst [vmem:[#allocation93_spill] sm:$0xff] %v6343_v14  ;;  %v6376_v14 = vld [vmem:[#allocation9 + $0x398] sm:$0xff] }
 0x1fb   : > { %9830 = vst [vmem:[#allocation94_spill] sm:$0xff] %v6345_v21  ;;  %1286 = vmatpush.msra.mxu3 %v6376_v14  ;;  %1248 = vmatpush.msra.mxu1 %v6378_v5  ;;  %v1098_v21 = vld [vmem:[#allocation9 + $0x298] sm:$0xff] }
 0x1fc   : > { %9831 = vst [vmem:[#allocation95_spill] sm:$0xff] %v6349_v18  ;;  %v6382_v18 = vld [vmem:[#allocation9 + $0x378] sm:$0xff] }
 0x1fd   : > { %9832 = vst [vmem:[#allocation96_spill] sm:$0xff] %v6352_v60  ;;  %1287 = vmatpush.msra.mxu3 %v6382_v18  ;;  %v1097_v60 = vld [vmem:[#allocation9 + $0x290] sm:$0xff] }
 0x1fe   : > { %9833 = vst [vmem:[#allocation97_spill] sm:$0xff] %v6354_v0  ;;  %v6384_v0 = vld [vmem:[#allocation9 + $0x330] sm:$0xff] }
 0x1ff   : > { %9834 = vst [vmem:[#allocation98_spill] sm:$0xff] %v6359_v17  ;;  %v6388_v17 = vld [vmem:[#allocation9 + $0x358] sm:$0xff]  ;;  %1249 = vmatpush.msra.mxu1 %v6384_v0 }
 0x200   : > { %9835 = vst [vmem:[#allocation99_spill] sm:$0xff] %v6362_v54  ;;  %v6390_v54 = vld [vmem:[#allocation9 + $0x310] sm:$0xff]  ;;  %1288 = vmatpush.msra.mxu3 %v6388_v17 }
 0x201   : > { %9836 = vst [vmem:[#allocation100_spill] sm:$0xff] %v6364_v12  ;;  %v6394_v12 = vld [vmem:[#allocation9 + $0x338] sm:$0xff]  ;;  %1250 = vmatpush.msra.mxu1 %v6390_v54 }
 0x202   : > { %9837 = vst [vmem:[#allocation101_spill] sm:$0xff] %v6369_v44  ;;  %v6396_v44 = vld [vmem:[#allocation9 + $0x2f0] sm:$0xff]  ;;  %1289 = vmatpush.msra.mxu3 %v6394_v12 }
 0x203   : > { %9838 = vst [vmem:[#allocation102_spill] sm:$0xff] %v6371_v36  ;;  %v6400_v36 = vld [vmem:[#allocation9 + $0x318] sm:$0xff]  ;;  %1251 = vmatpush.msra.mxu1 %v6396_v44 }
 0x204   : > { %9839 = vst [vmem:[#allocation103_spill] sm:$0xff] %v6376_v14  ;;  %v1105_v14 = vld [vmem:[#allocation9 + $0x2d0] sm:$0xff]  ;;  %1290 = vmatpush.msra.mxu3 %v6400_v36 }
 0x205   : > { %9840 = vst [vmem:[#allocation104_spill] sm:$0xff] %v6378_v5  ;;  %v6404_v5 = vld [vmem:[#allocation9 + $0x2f8] sm:$0xff]  ;;  %1252 = vmatpush.msra.mxu1 %v1105_v14  ;;  %v6414_v14 = vld [vmem:[#allocation9 + $0x230] sm:$0xff] }
 0x206   : > { %9841 = vst [vmem:[#allocation105_spill] sm:$0xff] %v6382_v18  ;;  %v1101_v18 = vld [vmem:[#allocation9 + $0x2b0] sm:$0xff]  ;;  %1291 = vmatpush.msra.mxu3 %v6404_v5 }
 0x207   : > { %9842 = vst [vmem:[#allocation106_spill] sm:$0xff] %v6384_v0  ;;  %v1106_v0 = vld [vmem:[#allocation9 + $0x2d8] sm:$0xff]  ;;  %1253 = vmatpush.msra.mxu1 %v1101_v18 }
 0x208   : > { %9843 = vst [vmem:[#allocation107_spill] sm:$0xff] %v6388_v17  ;;  %v1102_v17 = vld [vmem:[#allocation9 + $0x2b8] sm:$0xff]  ;;  %1292 = vmatpush.msra.mxu3 %v1106_v0  ;;  %v6430_v0 = vld [vmem:[#allocation9 + $0x1d0] sm:$0xff] }
 0x209   : > { %9844 = vst [vmem:[#allocation108_spill] sm:$0xff] %v6390_v54  ;;  %v1093_v54 = vld [vmem:[#allocation9 + $0x270] sm:$0xff]  ;;  %1254 = vmatpush.msra.mxu1 %v1097_v60  ;;  %v6416_v18 = vld [vmem:[#allocation9 + $0x238] sm:$0xff]  ;;  %1224 = vmatpush.msra.mxu0 %v6430_v0 }
 0x20a   : > { %9845 = vst [vmem:[#allocation109_spill] sm:$0xff] %v6394_v12  ;;  %1293 = vmatpush.msra.mxu3 %v1102_v17  ;;  %v1094_v12 = vld [vmem:[#allocation9 + $0x278] sm:$0xff]  ;;  %v6420_v17 = vld [vmem:[#allocation9 + $0x210] sm:$0xff] }
 0x20b   : > { %9846 = vst [vmem:[#allocation110_spill] sm:$0xff] %v6396_v44  ;;  %1255 = vmatpush.msra.mxu1 %v1093_v54  ;;  %v6408_v44 = vld [vmem:[#allocation9 + $0x250] sm:$0xff]  ;;  %v6432_v54 = vld [vmem:[#allocation9 + $0x1d8] sm:$0xff] }
 0x20c   : > { %1294 = vmatpush.msra.mxu3 %v1098_v21  ;;  %9847 = vst [vmem:[#allocation111_spill] sm:$0xff] %v6410_v3  ;;  %v6422_v21 = vld [vmem:[#allocation9 + $0x218] sm:$0xff]  ;;  %v6426_v60 = vld [vmem:[#allocation5] sm:$0xff]  ;;  %1264 = vmatpush.msra.mxu2 %v6432_v54 }
 0x20d   : > { %1256 = vmatpush.msra.mxu1 %v6408_v44  ;;  %9848 = vst [vmem:[#allocation112_spill] sm:$0xff] %v6414_v14  ;;  %1219 = vmatmul.f32.vlgmr.msrb.gmra.mxu3 %v6426_v60 }
 0x20e   : > { %1295 = vmatpush.msra.mxu3 %v1094_v12  ;;  %9849 = vst [vmem:[#allocation113_spill] sm:$0xff] %v6416_v18  ;;  %1179 = vmatmul.f32.vlgmr.msrb.gmra.mxu1 %v6426_v60  ;;  %v6438_v12 = vld [vmem:[#allocation9 + $0x1b0] sm:$0xff] }
 0x20f   : > { %1257 = vmatpush.msra.mxu1 %v6414_v14  ;;  %9850 = vst [vmem:[#allocation114_spill] sm:$0xff] %v6420_v17  ;;  %1225 = vmatpush.msra.mxu0 %v6438_v12 }
 0x210   : > { %1296 = vmatpush.msra.mxu3 %v6410_v3  ;;  %9851 = vst [vmem:[#allocation115_spill] sm:$0xff] %v6422_v21 }
 0x211   : > { %1258 = vmatpush.msra.mxu1 %v6420_v17  ;;  %v6446_v17 = vld [vmem:[#allocation9 + $0x190] sm:$0xff] }
 0x212   : > { %1297 = vmatpush.msra.mxu3 %v6416_v18  ;;  %1226 = vmatpush.msra.mxu0 %v6446_v17  ;;  %v6548_v18 = vld [vmem:[#allocation9 + $0x18] sm:$0xff] }
 0x213   : > { %1422 = vmatpush.msrb.mxu1 %v5966_v58  ;;  %v6448_v58 = vld [vmem:[#allocation9 + $0x198] sm:$0xff] }
 0x214   : > { %1298 = vmatpush.msra.mxu3 %v6422_v21  ;;  %v6440_v21 = vld [vmem:[#allocation9 + $0x1b8] sm:$0xff] }
 0x215   : > { %1423 = vmatpush.msrb.mxu1 %v5974_v23  ;;  %1265 = vmatpush.msra.mxu2 %v6440_v21  ;;  %v6456_v23 = vld [vmem:[#allocation9 + $0x178] sm:$0xff] }
 0x216   : > { %1462 = vmatpush.msrb.mxu3 %v5987_v49  ;;  %v6454_v49 = vld [vmem:[#allocation9 + $0x170] sm:$0xff]  ;;  %1259 = vmatmul.f32.vlgmr.msra.gmra.mxu1 %v6426_v60 }
 0x217   : > { %1424 = vmatpush.msrb.mxu1 %v5981_v19  ;;  %1266 = vmatpush.msra.mxu2 %v6448_v58  ;;  %v6464_v19 = vld [vmem:[#allocation9 + $0x158] sm:$0xff] }
 0x218   : > { %1463 = vmatpush.msrb.mxu3 %v5995_v29  ;;  %1227 = vmatpush.msra.mxu0 %v6454_v49  ;;  %v6462_v29 = vld [vmem:[#allocation9 + $0x150] sm:$0xff] }
 0x219   : > { %1425 = vmatpush.msrb.mxu1 %v5993_v2  ;;  %1267 = vmatpush.msra.mxu2 %v6456_v23  ;;  %v6472_v2 = vld [vmem:[#allocation9 + $0x138] sm:$0xff] }
 0x21a   : > { %1464 = vmatpush.msrb.mxu3 %v6001_v50  ;;  %1228 = vmatpush.msra.mxu0 %v6462_v29  ;;  %v6470_v50 = vld [vmem:[#allocation9 + $0x130] sm:$0xff] }
 0x21b   : > { %1426 = vmatpush.msrb.mxu1 %v6007_v30  ;;  %1268 = vmatpush.msra.mxu2 %v6464_v19  ;;  %v6480_v30 = vld [vmem:[#allocation9 + $0x118] sm:$0xff] }
 0x21c   : > { %1465 = vmatpush.msrb.mxu3 %v6013_v9  ;;  %1229 = vmatpush.msra.mxu0 %v6470_v50  ;;  %v6478_v9 = vld [vmem:[#allocation9 + $0x110] sm:$0xff] }
 0x21d   : > { %1427 = vmatpush.msrb.mxu1 %v6019_v37  ;;  %1269 = vmatpush.msra.mxu2 %v6472_v2  ;;  %v6486_v37 = vld [vmem:[#allocation9 + $0xf0] sm:$0xff] }
 0x21e   : > { %1466 = vmatpush.msrb.mxu3 %v6025_v31  ;;  %1230 = vmatpush.msra.mxu0 %v6478_v9  ;;  %v6488_v31 = vld [vmem:[#allocation9 + $0xf8] sm:$0xff] }
 0x21f   : > { %1428 = vmatpush.msrb.mxu1 %v6031_v38  ;;  %1270 = vmatpush.msra.mxu2 %v6480_v30  ;;  %v6494_v38 = vld [vmem:[#allocation9 + $0xd0] sm:$0xff] }
 0x220   : > { %1467 = vmatpush.msrb.mxu3 %v6037_v20  ;;  %1231 = vmatpush.msra.mxu0 %v6486_v37  ;;  %v6496_v20 = vld [vmem:[#allocation9 + $0xd8] sm:$0xff] }
 0x221   : > { %1429 = vmatpush.msrb.mxu1 %v6043_v45  ;;  %1271 = vmatpush.msra.mxu2 %v6488_v31  ;;  %v6505_v45 = vld [vmem:[#allocation9 + $0xb0] sm:$0xff] }
 0x222   : > { %1468 = vmatpush.msrb.mxu3 %v6049_v61  ;;  %1232 = vmatpush.msra.mxu0 %v6494_v38  ;;  %v6507_v61 = vld [vmem:[#allocation9 + $0xb8] sm:$0xff] }
 0x223   : > { %1430 = vmatpush.msrb.mxu1 %v6055_v46  ;;  %1272 = vmatpush.msra.mxu2 %v6496_v20  ;;  %v6513_v46 = vld [vmem:[#allocation9 + $0x90] sm:$0xff] }
 0x224   : > { %1469 = vmatpush.msrb.mxu3 %v6061_v40  ;;  %1233 = vmatpush.msra.mxu0 %v6505_v45  ;;  %v6515_v40 = vld [vmem:[#allocation9 + $0x98] sm:$0xff] }
 0x225   : > { %1431 = vmatpush.msrb.mxu1 %v6067_v48  ;;  %1273 = vmatpush.msra.mxu2 %v6507_v61  ;;  %v6522_v48 = vld [vmem:[#allocation9 + $0x70] sm:$0xff] }
 0x226   : > { %1470 = vmatpush.msrb.mxu3 %v6073_v42  ;;  %1234 = vmatpush.msra.mxu0 %v6513_v46  ;;  %v6524_v42 = vld [vmem:[#allocation9 + $0x78] sm:$0xff] }
 0x227   : > { %1432 = vmatpush.msrb.mxu1 %v6079_v51  ;;  %1274 = vmatpush.msra.mxu2 %v6515_v40  ;;  %v6530_v51 = vld [vmem:[#allocation9 + $0x50] sm:$0xff] }
 0x228   : > { %1471 = vmatpush.msrb.mxu3 %v6085_v47  ;;  %1235 = vmatpush.msra.mxu0 %v6522_v48  ;;  %v6532_v47 = vld [vmem:[#allocation9 + $0x58] sm:$0xff] }
 0x229   : > { %1433 = vmatpush.msrb.mxu1 %v6091_v52  ;;  %1275 = vmatpush.msra.mxu2 %v6524_v42  ;;  %v6538_v52 = vld [vmem:[#allocation9 + $0x30] sm:$0xff] }
 0x22a   : > { %1472 = vmatpush.msrb.mxu3 %v6097_v10  ;;  %1236 = vmatpush.msra.mxu0 %v6530_v51  ;;  %v6540_v10 = vld [vmem:[#allocation9 + $0x38] sm:$0xff] }
 0x22b   : > { %1299 = vmatmul.f32.vlgmr.msra.gmra.mxu3 %v6426_v60  ;;  %1276 = vmatpush.msra.mxu2 %v6532_v47 }
 0x22c   : > { %1473 = vmatpush.msrb.mxu3 %v6109_v15  ;;  %1434 = vmatpush.msrb.mxu1 %v6103_v1  ;;  %v6546_v15 = vld [vmem:[#allocation9 + $0x10] sm:$0xff]  ;;  %v840_v1 = vld [vmem:[%s839_s9] sm:$0xff] }
 0x22d   : > { %1237 = vmatpush.msra.mxu0 %v6538_v52  ;;  %1277 = vmatpush.msra.mxu2 %v6540_v10 }
 0x22e   : > { %1474 = vmatpush.msrb.mxu3 %v6121_v43  ;;  %1435 = vmatpush.msrb.mxu1 %v6115_v63  ;;  %v841_v43 = vld [vmem:[%s839_s9 + $0x8] sm:$0xff] }
 0x22f   : > { %1238 = vmatpush.msra.mxu0 %v6546_v15  ;;  %1278 = vmatpush.msra.mxu2 %v6548_v18 }
 0x230   : > { %1475 = vmatpush.msrb.mxu3 %v6133_v57  ;;  %1436 = vmatpush.msrb.mxu1 %v6127_v16 }
 0x232   : > { %1476 = vmatpush.msrb.mxu3 %v6149_v4  ;;  %1437 = vmatpush.msrb.mxu1 %v6139_v7  ;;  %v842_v4 = vld [vmem:[%s839_s9 + $0x10] sm:$0xff] }
 0x234   : > { %1477 = vmatpush.msrb.mxu3 %v6158_v13  ;;  %1656 = vmatpush.msra.mxu1 %v6151_v11  ;;  %v843_v11 = vld [vmem:[%s839_s9 + $0x18] sm:$0xff]  ;;  %s4906_s9 = sadd.s32 56, %s6503_s3 }
 0x235   : > { %s4286_s4 = sshra.s32 %s4906_s9, 3 }
 0x236   : > { %1696 = vmatpush.msra.mxu3 %v6166_v53  ;;  %1657 = vmatpush.msra.mxu1 %v6160_v59  ;;  %s4907_s3 = sshll.u32 %s4286_s4, 5 }
 0x237   : > { %s4290_s10 = scalar_lea.vmem [#allocation2], %s4907_s3 }
 0x238   : > { %1697 = vmatpush.msra.mxu3 %v6178_v8  ;;  %1658 = vmatpush.msra.mxu1 %v6168_v6 }
 0x23a   : > { %1698 = vmatpush.msra.mxu3 %v6189_v41  ;;  %1659 = vmatpush.msra.mxu1 %v6180_v34  ;;  %v993_v34 = vld [vmem:[#allocation4] sm:$0xff] }
 0x23c   : > { %1699 = vmatpush.msra.mxu3 %v6201_v22  ;;  %1660 = vmatpush.msra.mxu1 %v6191_v62 }
 0x23e   : > { %1700 = vmatpush.msra.mxu3 %v6213_v35  ;;  %1661 = vmatpush.msra.mxu1 %v6203_v39 }
 0x240   : > { %1701 = vmatpush.msra.mxu3 %v6225_v56  ;;  %1662 = vmatpush.msra.mxu1 %v6215_v33 }
 0x242   : > { %1702 = vmatpush.msra.mxu3 %v6237_v28  ;;  %1663 = vmatpush.msra.mxu1 %v6227_v32  ;;  %v9852_v28 = vld [vmem:[#allocation68_spill] sm:$0xff]  ;;  %v9853_v32 = vld [vmem:[#allocation74_spill] sm:$0xff] }
 0x244   : > { %1703 = vmatpush.msra.mxu3 %v6249_v27  ;;  %1664 = vmatpush.msra.mxu1 %v6239_v55 }
 0x246   : > { %1704 = vmatpush.msra.mxu3 %v6261_v25  ;;  %1665 = vmatpush.msra.mxu1 %v6251_v26  ;;  %v9856_v25 = vld [vmem:[#allocation75_spill] sm:$0xff] }
 0x248   : > { %1705 = vmatpush.msra.mxu3 %v6273_v24  ;;  %1666 = vmatpush.msra.mxu1 %v9852_v28  ;;  %v9859_v24 = vld [vmem:[#allocation86_spill] sm:$0xff]  ;;  %v9877_v28 = vld [vmem:[#allocation99_spill] sm:$0xff] }
 0x24a   : > { %v926_v60 = vpop.f32.mrf.mxu0  ;;  %1706 = vmatpush.msra.mxu3 %v9853_v32  ;;  %v9878_v32 = vld [vmem:[#allocation27_spill] sm:$0xff] }
 0x24b   : > { %v989_v14 = vadd.f32 %v926_v60, %v840_v1  ;;  %v946_v63 = vpop.f32.mrf.mxu1  ;;  %v9855_v60 = vld [vmem:[#allocation78_spill] sm:$0xff] }
 0x24c   : > { %v990_v57 = vadd.f32 %v946_v63, %v841_v43  ;;  %v9854_v43 = vld [vmem:[#allocation71_spill] sm:$0xff]  ;;  %1707 = vmatpush.msra.mxu3 %v9855_v60  ;;  %v9857_v63 = vld [vmem:[#allocation82_spill] sm:$0xff]  ;;  %v9882_v60 = vld [vmem:[#allocation29_spill] sm:$0xff] }
 0x24d   : > { %v994_v3 = vmul.f32 0.5, %v989_v14  ;;  %1667 = vmatpush.msra.mxu1 %v9854_v43  ;;  %v9881_v43 = vld [vmem:[#allocation101_spill] sm:$0xff] }
 0x24e   : > { %v998_v16 = vmul.f32 0.5, %v990_v57  ;;  %1708 = vmatpush.msra.mxu3 %v9857_v63  ;;  %v9858_v57 = vld [vmem:[#allocation79_spill] sm:$0xff] }
 0x24f   : > { %4929 = vtanh.f32 %v994_v3  ;;  %1668 = vmatpush.msra.mxu1 %v9856_v25  ;;  %v9884_v25 = vld [vmem:[#allocation100_spill] sm:$0xff]  ;;  %v9885_v63 = vld [vmem:[#allocation103_spill] sm:$0xff] }
 0x250   : > { %4931 = vtanh.f32 %v998_v16  ;;  %1709 = vmatpush.msra.mxu3 %v9859_v24  ;;  %v9888_v24 = vld [vmem:[#allocation102_spill] sm:$0xff] }
 0x251   : > { %v966_v7 = vpop.f32.mrf.mxu2  ;;  %1669 = vmatpush.msra.mxu1 %v9858_v57  ;;  %v9887_v57 = vld [vmem:[#allocation32_spill] sm:$0xff] }
 0x252   : > { %v991_v53 = vadd.f32 %v966_v7, %v842_v4  ;;  %v9860_v4 = vld [vmem:[#allocation83_spill] sm:$0xff]  ;;  %v9861_v7 = vld [vmem:[#allocation90_spill] sm:$0xff] }
 0x253   : > { %1670 = vmatpush.msra.mxu1 %v9860_v4  ;;  %1710 = vmatpush.msra.mxu3 %v9861_v7  ;;  %v9889_v4 = vld [vmem:[#allocation105_spill] sm:$0xff] }
 0x254   : > { %4933 = vtanh.f32 %v991_v53  ;;  %v9862_v53 = vld [vmem:[#allocation17_spill] sm:$0xff] }
 0x255   : > { %v4930_v8 = vpop.eup %4929  ;;  %v986_v3 = vpop.f32.mrf.mxu3  ;;  %v9890_v7 = vld [vmem:[#allocation33_spill] sm:$0xff] }
 0x256   : > { %v4932_v6 = vpop.eup %4931  ;;  %v996_v41 = vmul.f32 0.5, %v4930_v8  ;;  %v992_v59 = vadd.f32 %v986_v3, %v843_v11  ;;  %v9863_v11 = vld [vmem:[#allocation18_spill] sm:$0xff]  ;;  %v9864_v8 = vld [vmem:[#allocation19_spill] sm:$0xff]  ;;  %v9865_v3 = vld [vmem:[#allocation20_spill] sm:$0xff] }
 0x257   : > { %v1000_v13 = vmul.f32 0.5, %v4932_v6  ;;  %v9866_v6 = vld [vmem:[#allocation87_spill] sm:$0xff] }
 0x258   : > { %v997_v22 = vadd.f32 0.5, %v996_v41  ;;  %v1003_v62 = vmul.f32 0.5, %v992_v59  ;;  %1671 = vmatpush.msra.mxu1 %v9866_v6  ;;  %v9867_v41 = vld [vmem:[#allocation94_spill] sm:$0xff]  ;;  %v9868_v59 = vld [vmem:[#allocation21_spill] sm:$0xff]  ;;  %v9895_v6 = vld [vmem:[#allocation36_spill] sm:$0xff] }
 0x259   : > { %v1001_v14 = vadd.f32 0.5, %v1000_v13  ;;  %1711 = vmatpush.msra.mxu3 %v9867_v41  ;;  %v9869_v13 = vld [vmem:[#allocation22_spill] sm:$0xff] }
 0x25a   : > { %v4934_v35 = vpop.eup %4933  ;;  %4935 = vtanh.f32 %v1003_v62  ;;  %v9872_v62 = vld [vmem:[#allocation23_spill] sm:$0xff]  ;;  %v9896_v41 = vld [vmem:[#allocation106_spill] sm:$0xff] }
 0x25b   : > { %v1007_v39 = vmul.f32 %v1001_v14, %v993_v34  ;;  %v1008_v56 = vmul.f32 %v4934_v35, %v997_v22  ;;  %v9870_v22 = vld [vmem:[#allocation88_spill] sm:$0xff]  ;;  %v9874_v35 = vld [vmem:[#allocation25_spill] sm:$0xff] }
 0x25c   : > { %v9871_v34 = vld [vmem:[#allocation96_spill] sm:$0xff] }
 0x25d   : > { %v6576_v1 = vadd.f32 %v1008_v56, %v1007_v39  ;;  %v9873_v14 = vld [vmem:[#allocation24_spill] sm:$0xff]  ;;  %v9875_v39 = vld [vmem:[#allocation26_spill] sm:$0xff] }
 0x25e   : > { %v9876_v56 = vld [vmem:[#allocation92_spill] sm:$0xff] }
 0x25f   : > { %4937 = vtanh.f32 %v6576_v1 }
 0x260   : > { %v4936_v27 = vpop.eup %4935 }
 0x261   : > { %v1005_v33 = vmul.f32 0.5, %v4936_v27  ;;  %v9879_v27 = vld [vmem:[#allocation28_spill] sm:$0xff] }
 0x263   : > { %v1006_v55 = vadd.f32 0.5, %v1005_v33  ;;  %v9880_v33 = vld [vmem:[#allocation97_spill] sm:$0xff] }
 0x265   : > { %v4938_v26 = vpop.eup %4937 }
 0x266   : > { %v1011_v16 = vmul.f32 %v4938_v26, %v1006_v55  ;;  %v9883_v55 = vld [vmem:[#allocation30_spill] sm:$0xff]  ;;  %v9886_v26 = vld [vmem:[#allocation31_spill] sm:$0xff] }
 0x268   : > { %1159 = vmatmul.f32.vlgmr.msrb.gmra.mxu0 %v1011_v16  ;;  %1199 = vmatmul.f32.vlgmr.msrb.gmra.mxu2 %v1011_v16 }
 0x269   : > { %1402 = vmatpush.msrb.mxu0 %v9862_v53  ;;  %1442 = vmatpush.msrb.mxu2 %v9863_v11  ;;  %v9891_v53 = vld [vmem:[#allocation34_spill] sm:$0xff]  ;;  %v9892_v11 = vld [vmem:[#allocation104_spill] sm:$0xff] }
 0x26a   : > { %1438 = vmatmul.f32.vlgmr.msrb.gmra.mxu1 %v1011_v16  ;;  %1478 = vmatmul.f32.vlgmr.msrb.gmra.mxu3 %v1011_v16 }
 0x26b   : > { %1403 = vmatpush.msrb.mxu0 %v9864_v8  ;;  %1443 = vmatpush.msrb.mxu2 %v9865_v3  ;;  %v9893_v8 = vld [vmem:[#allocation107_spill] sm:$0xff] }
 0x26c   : > { %1736 = vmatpush.msrb.mxu1 %v9870_v22  ;;  %1776 = vmatpush.msrb.mxu3 %v9871_v34  ;;  %v9894_v3 = vld [vmem:[#allocation35_spill] sm:$0xff]  ;;  %v9899_v22 = vld [vmem:[#allocation38_spill] sm:$0xff]  ;;  %v9900_v34 = vld [vmem:[#allocation108_spill] sm:$0xff] }
 0x26d   : > { %1404 = vmatpush.msrb.mxu0 %v9868_v59  ;;  %1444 = vmatpush.msrb.mxu2 %v9869_v13  ;;  %v9897_v59 = vld [vmem:[#allocation109_spill] sm:$0xff] }
 0x26e   : > { %1737 = vmatpush.msrb.mxu1 %v9876_v56  ;;  %1777 = vmatpush.msrb.mxu3 %v9877_v28  ;;  %v9898_v13 = vld [vmem:[#allocation37_spill] sm:$0xff]  ;;  %v9905_v56 = vld [vmem:[#allocation42_spill] sm:$0xff]  ;;  %v9906_v28 = vld [vmem:[#allocation43_spill] sm:$0xff] }
 0x26f   : > { %1405 = vmatpush.msrb.mxu0 %v9872_v62  ;;  %1445 = vmatpush.msrb.mxu2 %v9873_v14  ;;  %v9901_v62 = vld [vmem:[#allocation39_spill] sm:$0xff]  ;;  %v9902_v14 = vld [vmem:[#allocation40_spill] sm:$0xff] }
 0x270   : > { %1239 = vmatmul.f32.vlgmr.msra.gmra.mxu0 %v1011_v16  ;;  %1279 = vmatmul.f32.vlgmr.msra.gmra.mxu2 %v1011_v16 }
 0x271   : > { %1406 = vmatpush.msrb.mxu0 %v9874_v35  ;;  %1446 = vmatpush.msrb.mxu2 %v9875_v39  ;;  %v9903_v35 = vld [vmem:[#allocation110_spill] sm:$0xff]  ;;  %v9904_v39 = vld [vmem:[#allocation41_spill] sm:$0xff] }
 0x272   : > { %1738 = vmatpush.msrb.mxu1 %v9880_v33  ;;  %1778 = vmatpush.msrb.mxu3 %v9881_v43  ;;  %v9909_v33 = vld [vmem:[#allocation46_spill] sm:$0xff]  ;;  %v9911_v43 = vld [vmem:[#allocation48_spill] sm:$0xff] }
 0x273   : > { %1407 = vmatpush.msrb.mxu0 %v9878_v32  ;;  %1447 = vmatpush.msrb.mxu2 %v9879_v27  ;;  %v9907_v32 = vld [vmem:[#allocation44_spill] sm:$0xff]  ;;  %v9908_v27 = vld [vmem:[#allocation45_spill] sm:$0xff] }
 0x274   : > { %1739 = vmatpush.msrb.mxu1 %v9884_v25  ;;  %1779 = vmatpush.msrb.mxu3 %v9885_v63  ;;  %v9915_v25 = vld [vmem:[#allocation52_spill] sm:$0xff]  ;;  %v9916_v63 = vld [vmem:[#allocation53_spill] sm:$0xff] }
 0x275   : > { %1408 = vmatpush.msrb.mxu0 %v9882_v60  ;;  %1448 = vmatpush.msrb.mxu2 %v9883_v55  ;;  %v9912_v60 = vld [vmem:[#allocation49_spill] sm:$0xff]  ;;  %v9914_v55 = vld [vmem:[#allocation51_spill] sm:$0xff] }
 0x276   : > { %1740 = vmatpush.msrb.mxu1 %v9888_v24  ;;  %1780 = vmatpush.msrb.mxu3 %v9889_v4  ;;  %v9919_v24 = vld [vmem:[#allocation56_spill] sm:$0xff]  ;;  %v9920_v4 = vld [vmem:[#allocation57_spill] sm:$0xff] }
 0x277   : > { %1409 = vmatpush.msrb.mxu0 %v9886_v26  ;;  %1449 = vmatpush.msrb.mxu2 %v9887_v57  ;;  %v9917_v26 = vld [vmem:[#allocation54_spill] sm:$0xff]  ;;  %v9918_v57 = vld [vmem:[#allocation55_spill] sm:$0xff] }
 0x278   : > { %1741 = vmatpush.msrb.mxu1 %v9892_v11  ;;  %1781 = vmatpush.msrb.mxu3 %v9893_v8  ;;  %v9924_v11 = vld [vmem:[#allocation61_spill] sm:$0xff]  ;;  %v9925_v8 = vld [vmem:[#allocation62_spill] sm:$0xff] }
 0x279   : > { %1410 = vmatpush.msrb.mxu0 %v9890_v7  ;;  %1450 = vmatpush.msrb.mxu2 %v9891_v53  ;;  %v9921_v7 = vld [vmem:[#allocation58_spill] sm:$0xff]  ;;  %v9923_v53 = vld [vmem:[#allocation60_spill] sm:$0xff] }
 0x27a   : > { %1742 = vmatpush.msrb.mxu1 %v9896_v41  ;;  %1782 = vmatpush.msrb.mxu3 %v9897_v59  ;;  %v9928_v41 = vld [vmem:[#allocation65_spill] sm:$0xff]  ;;  %v9929_v59 = vld [vmem:[#allocation66_spill] sm:$0xff] }
 0x27b   : > { %1411 = vmatpush.msrb.mxu0 %v9894_v3  ;;  %1451 = vmatpush.msrb.mxu2 %v9895_v6  ;;  %v9926_v3 = vld [vmem:[#allocation63_spill] sm:$0xff]  ;;  %v9927_v6 = vld [vmem:[#allocation64_spill] sm:$0xff] }
 0x27c   : > { %1743 = vmatpush.msrb.mxu1 %v9900_v34  ;;  %1783 = vmatpush.msrb.mxu3 %v6400_v36  ;;  %v9910_v36 = vld [vmem:[#allocation47_spill] sm:$0xff]  ;;  %v9932_v34 = vld [vmem:[#allocation70_spill] sm:$0xff] }
 0x27d   : > { %1412 = vmatpush.msrb.mxu0 %v9898_v13  ;;  %1452 = vmatpush.msrb.mxu2 %v9899_v22  ;;  %v9930_v13 = vld [vmem:[#allocation67_spill] sm:$0xff]  ;;  %v9931_v22 = vld [vmem:[#allocation69_spill] sm:$0xff] }
 0x27e   : > { %1744 = vmatpush.msrb.mxu1 %v9903_v35  ;;  %1784 = vmatpush.msrb.mxu3 %v6404_v5  ;;  %v9913_v5 = vld [vmem:[#allocation50_spill] sm:$0xff]  ;;  %v9935_v35 = vld [vmem:[#allocation76_spill] sm:$0xff] }
 0x27f   : > { %1413 = vmatpush.msrb.mxu0 %v9901_v62  ;;  %1453 = vmatpush.msrb.mxu2 %v9902_v14  ;;  %v9933_v62 = vld [vmem:[#allocation72_spill] sm:$0xff]  ;;  %v9934_v14 = vld [vmem:[#allocation73_spill] sm:$0xff] }
 0x281   : > { %1414 = vmatpush.msrb.mxu0 %v9904_v39  ;;  %1454 = vmatpush.msrb.mxu2 %v9905_v56  ;;  %v9936_v39 = vld [vmem:[#allocation77_spill] sm:$0xff]  ;;  %v9937_v56 = vld [vmem:[#allocation80_spill] sm:$0xff] }
 0x283   : > { %1415 = vmatpush.msrb.mxu0 %v9906_v28  ;;  %1455 = vmatpush.msrb.mxu2 %v9907_v32  ;;  %v9938_v28 = vld [vmem:[#allocation81_spill] sm:$0xff]  ;;  %v9939_v32 = vld [vmem:[#allocation84_spill] sm:$0xff] }
 0x285   : > { %1416 = vmatpush.msrb.mxu0 %v9908_v27  ;;  %1456 = vmatpush.msrb.mxu2 %v9909_v33  ;;  %v9940_v27 = vld [vmem:[#allocation85_spill] sm:$0xff] }
 0x286   : > { %v9941_v33 = vld [vmem:[#allocation89_spill] sm:$0xff] }
 0x287   : > { %1417 = vmatpush.msrb.mxu0 %v9910_v36  ;;  %1457 = vmatpush.msrb.mxu2 %v9911_v43  ;;  %v9942_v36 = vld [vmem:[#allocation91_spill] sm:$0xff]  ;;  %v9943_v43 = vld [vmem:[#allocation93_spill] sm:$0xff] }
 0x288   : > { %1418 = vmatmul.f32.vlgmr.msrb.gmra.mxu0 %v1011_v16  ;;  %1458 = vmatmul.f32.vlgmr.msrb.gmra.mxu2 %v1011_v16  ;;  %v9922_v16 = vld [vmem:[#allocation59_spill] sm:$0xff] }
 0x289   : > { %1636 = vmatpush.msra.mxu0 %v9912_v60  ;;  %1676 = vmatpush.msra.mxu2 %v9913_v5  ;;  %v9944_v60 = vld [vmem:[#allocation95_spill] sm:$0xff]  ;;  %v9945_v5 = vld [vmem:[#allocation98_spill] sm:$0xff] }
 0x28b   : > { %1637 = vmatpush.msra.mxu0 %v9914_v55  ;;  %1677 = vmatpush.msra.mxu2 %v9915_v25  ;;  %v9954_v25 = vld [vmem:[#allocation16_spill] sm:$0xff] }
 0x28d   : > { %1638 = vmatpush.msra.mxu0 %v9916_v63  ;;  %1678 = vmatpush.msra.mxu2 %v9917_v26 }
 0x28f   : > { %1639 = vmatpush.msra.mxu0 %v9918_v57  ;;  %1679 = vmatpush.msra.mxu2 %v9919_v24 }
 0x291   : > { %1640 = vmatpush.msra.mxu0 %v9920_v4  ;;  %1680 = vmatpush.msra.mxu2 %v9921_v7 }
 0x293   : > { %1641 = vmatpush.msra.mxu0 %v9922_v16  ;;  %1681 = vmatpush.msra.mxu2 %v9923_v53  ;;  %v1334_v53 = vld [vmem:[%s1332_s12 + $0x8] sm:$0xff] }
 0x295   : > { %1642 = vmatpush.msra.mxu0 %v9924_v11  ;;  %1682 = vmatpush.msra.mxu2 %v9925_v8 }
 0x297   : > { %1643 = vmatpush.msra.mxu0 %v9926_v3  ;;  %1683 = vmatpush.msra.mxu2 %v9927_v6  ;;  %v1303_v3 = vld [vmem:[#allocation6] sm:$0xff] }
 0x299   : > { %1644 = vmatpush.msra.mxu0 %v9928_v41  ;;  %1684 = vmatpush.msra.mxu2 %v9929_v59 }
 0x29b   : > { %1645 = vmatpush.msra.mxu0 %v9930_v13  ;;  %1685 = vmatpush.msra.mxu2 %v9931_v22 }
 0x29d   : > { %1646 = vmatpush.msra.mxu0 %v9932_v34  ;;  %1686 = vmatpush.msra.mxu2 %v9933_v62 }
 0x29f   : > { %1647 = vmatpush.msra.mxu0 %v9934_v14  ;;  %1687 = vmatpush.msra.mxu2 %v9935_v35 }
 0x2a1   : > { %1648 = vmatpush.msra.mxu0 %v9936_v39  ;;  %1688 = vmatpush.msra.mxu2 %v9937_v56  ;;  %v1333_v39 = vld [vmem:[%s1332_s12] sm:$0xff] }
 0x2a3   : > { %1649 = vmatpush.msra.mxu0 %v9938_v28  ;;  %1689 = vmatpush.msra.mxu2 %v9939_v32  ;;  %v1336_v32 = vld [vmem:[%s1332_s12 + $0x18] sm:$0xff] }
 0x2a5   : > { %1650 = vmatpush.msra.mxu0 %v9940_v27  ;;  %1690 = vmatpush.msra.mxu2 %v9941_v33 }
 0x2a7   : > { %1651 = vmatpush.msra.mxu0 %v9942_v36  ;;  %1691 = vmatpush.msra.mxu2 %v9943_v43 }
 0x2a9   : > { %1716 = vmatpush.msrb.mxu0 %v9944_v60  ;;  %1756 = vmatpush.msrb.mxu2 %v9945_v5  ;;  %v6751_v5 = vld [vmem:[#allocation7 + $0x1e8] sm:$0xff] }
 0x2ab   : > { %1717 = vmatpush.msrb.mxu0 %v6430_v0  ;;  %1757 = vmatpush.msrb.mxu2 %v6432_v54  ;;  %v6713_v0 = vld [vmem:[#allocation9 + $0x2b0] sm:$0xff]  ;;  %v6715_v54 = vld [vmem:[#allocation9 + $0x2b8] sm:$0xff] }
 0x2ad   : > { %1718 = vmatpush.msrb.mxu0 %v6438_v12  ;;  %1758 = vmatpush.msrb.mxu2 %v6440_v21  ;;  %v6709_v21 = vld [vmem:[#allocation9 + $0x2d8] sm:$0xff]  ;;  %v6719_v12 = vld [vmem:[#allocation9 + $0x290] sm:$0xff] }
 0x2ae   : > { %1785 = vmatpush.msrb.mxu3 %v6709_v21 }
 0x2af   : > { %1719 = vmatpush.msrb.mxu0 %v6446_v17  ;;  %1759 = vmatpush.msrb.mxu2 %v6448_v58  ;;  %v6707_v17 = vld [vmem:[#allocation9 + $0x2d0] sm:$0xff]  ;;  %v6721_v58 = vld [vmem:[#allocation9 + $0x298] sm:$0xff] }
 0x2b0   : > { %1745 = vmatpush.msrb.mxu1 %v6707_v17  ;;  %1786 = vmatpush.msrb.mxu3 %v6715_v54 }
 0x2b1   : > { %1720 = vmatpush.msrb.mxu0 %v6454_v49  ;;  %1760 = vmatpush.msrb.mxu2 %v6456_v23  ;;  %v9946_v23 = vld [vmem:[#allocation13_spill] sm:$0xff] }
 0x2b2   : > { %1746 = vmatpush.msrb.mxu1 %v6713_v0  ;;  %1787 = vmatpush.msrb.mxu3 %v6721_v58 }
 0x2b3   : > { %1721 = vmatpush.msrb.mxu0 %v6462_v29  ;;  %1761 = vmatpush.msrb.mxu2 %v6464_v19  ;;  %v6726_v19 = vld [vmem:[#allocation9 + $0x270] sm:$0xff] }
 0x2b4   : > { %1747 = vmatpush.msrb.mxu1 %v6719_v12 }
 0x2b5   : > { %1722 = vmatpush.msrb.mxu0 %v6470_v50  ;;  %1762 = vmatpush.msrb.mxu2 %v6472_v2  ;;  %v6728_v50 = vld [vmem:[#allocation9 + $0x278] sm:$0xff] }
 0x2b6   : > { %1748 = vmatpush.msrb.mxu1 %v6726_v19  ;;  %1788 = vmatpush.msrb.mxu3 %v6728_v50 }
 0x2b7   : > { %1723 = vmatpush.msrb.mxu0 %v6478_v9  ;;  %1763 = vmatpush.msrb.mxu2 %v6480_v30  ;;  %v9947_v9 = vld [vmem:[#allocation111_spill] sm:$0xff] }
 0x2b8   : > { %1749 = vmatpush.msrb.mxu1 %v6408_v44  ;;  %1789 = vmatpush.msrb.mxu3 %v9947_v9  ;;  %v9953_v44 = vld [vmem:[#allocation15_spill] sm:$0xff]  ;;  %v6756_v9 = vld [vmem:[#allocation7 + $0x1c8] sm:$0xff] }
 0x2b9   : > { %1724 = vmatpush.msrb.mxu0 %v6486_v37  ;;  %1764 = vmatpush.msrb.mxu2 %v6488_v31  ;;  %v1220_v37 = vpop.f32.mrf.mxu3 }
 0x2bb   : > { %1725 = vmatpush.msrb.mxu0 %v6494_v38  ;;  %1765 = vmatpush.msrb.mxu2 %v6496_v20  ;;  %v9948_v38 = vld [vmem:[#allocation112_spill] sm:$0xff]  ;;  %v9949_v20 = vld [vmem:[#allocation113_spill] sm:$0xff] }
 0x2bc   : > { %1750 = vmatpush.msrb.mxu1 %v9948_v38  ;;  %1790 = vmatpush.msrb.mxu3 %v9949_v20  ;;  %v6762_v38 = vld [vmem:[#allocation7 + $0x1a8] sm:$0xff]  ;;  %v6764_v20 = vld [vmem:[#allocation7 + $0x1b8] sm:$0xff] }
 0x2bd   : > { %1726 = vmatpush.msrb.mxu0 %v6505_v45  ;;  %1766 = vmatpush.msrb.mxu2 %v6507_v61  ;;  %v9950_v45 = vld [vmem:[#allocation14_spill] sm:$0xff] }
 0x2bf   : > { %1727 = vmatpush.msrb.mxu0 %v6513_v46  ;;  %1767 = vmatpush.msrb.mxu2 %v6515_v40  ;;  %v9951_v40 = vld [vmem:[#allocation114_spill] sm:$0xff] }
 0x2c0   : > { %1751 = vmatpush.msrb.mxu1 %v9951_v40  ;;  %v6768_v40 = vld [vmem:[#allocation7 + $0x188] sm:$0xff] }
 0x2c1   : > { %1728 = vmatpush.msrb.mxu0 %v6522_v48  ;;  %1768 = vmatpush.msrb.mxu2 %v6524_v42  ;;  %v9952_v48 = vld [vmem:[#allocation115_spill] sm:$0xff]  ;;  %v1300_v26 = vpop.f32.mrf.mxu3 }
 0x2c2   : > { %1791 = vmatpush.msrb.mxu3 %v9952_v48  ;;  %v6770_v48 = vld [vmem:[#allocation7 + $0x198] sm:$0xff] }
 0x2c3   : > { %1729 = vmatpush.msrb.mxu0 %v6530_v51  ;;  %1769 = vmatpush.msrb.mxu2 %v6532_v47 }
 0x2c5   : > { %1730 = vmatpush.msrb.mxu0 %v6538_v52  ;;  %1770 = vmatpush.msrb.mxu2 %v6540_v10 }
 0x2c7   : > { %1731 = vmatpush.msrb.mxu0 %v6546_v15  ;;  %1771 = vmatpush.msrb.mxu2 %v6548_v18  ;;  %v1180_v18 = vpop.f32.mrf.mxu1 }
 0x2cf   : > { %v1260_v47 = vpop.f32.mrf.mxu1 }
 0x2e5   : > { %v1160_v49 = vpop.f32.mrf.mxu0 }
 0x2e6   : > { %v1161_v29 = vadd.f32 %v1160_v49, %v9946_v23 }
 0x2e7   : > { %v1439_v11 = vpop.f32.mrf.mxu1 }
 0x2e8   : > { %v1181_v2 = vadd.f32 %v1180_v18, %v1161_v29  ;;  %v1483_v59 = vadd.f32 %v1439_v11, %v1334_v53  ;;  %v6753_v18 = vld [vmem:[#allocation7 + $0x1f8] sm:$0xff]  ;;  %v1335_v29 = vld [vmem:[%s1332_s12 + $0x10] sm:$0xff] }
 0x2e9   : > { %v6795_v53 = vld [vmem:[#allocation7 + $0x118] sm:$0xff] }
 0x2ea   : > { %v1304_v30 = vmul.f32 0.5, %v1181_v2  ;;  %v1491_v14 = vmul.f32 0.5, %v1483_v59  ;;  %v6810_v59 = vld [vmem:[#allocation7 + $0xd8] sm:$0xff] }
 0x2eb   : > { %v1200_v31 = vpop.f32.mrf.mxu2 }
 0x2ec   : > { %v1201_v61 = vadd.f32 %v1200_v31, %v9950_v45  ;;  %4939 = vtanh.f32 %v1304_v30  ;;  %v6758_v30 = vld [vmem:[#allocation7 + $0x1d8] sm:$0xff] }
 0x2ed   : > { %v1240_v46 = vpop.f32.mrf.mxu0  ;;  %v1479_v27 = vpop.f32.mrf.mxu3 }
 0x2ee   : > { %v1221_v42 = vadd.f32 %v1220_v37, %v1201_v61  ;;  %v1241_v51 = vadd.f32 %v1240_v46, %v9953_v44  ;;  %v1485_v49 = vadd.f32 %v1479_v27, %v1336_v32  ;;  %v6830_v32 = vld [vmem:[#allocation7 + $0x1f0] sm:$0xff]  ;;  %v6834_v27 = vld [vmem:[#allocation7 + $0x68] sm:$0xff] }
 0x2f0   : > { %v1308_v52 = vmul.f32 0.5, %v1221_v42  ;;  %v1261_v10 = vadd.f32 %v1260_v47, %v1241_v51  ;;  %v1496_v46 = vmul.f32 0.5, %v1485_v49  ;;  %v6774_v51 = vld [vmem:[#allocation7 + $0x168] sm:$0xff]  ;;  %v6776_v47 = vld [vmem:[#allocation7 + $0x178] sm:$0xff] }
 0x2f1   : > { %v6848_v49 = vld [vmem:[#allocation7 + $0x58] sm:$0xff] }
 0x2f2   : > { %4941 = vtanh.f32 %v1308_v52  ;;  %v4940_v55 = vpop.eup %4939 }
 0x2f3   : > { %v1280_v15 = vpop.f32.mrf.mxu2  ;;  %4943 = vtanh.f32 %v1261_v10  ;;  %v1306_v24 = vmul.f32 0.5, %v4940_v55  ;;  %v6782_v55 = vld [vmem:[#allocation7 + $0x158] sm:$0xff] }
 0x2f4   : > { %v1281_v63 = vadd.f32 %v1280_v15, %v9954_v25  ;;  %v6780_v15 = vld [vmem:[#allocation7 + $0x148] sm:$0xff] }
 0x2f5   : > { %v1307_v6 = vadd.f32 0.5, %v1306_v24  ;;  %v6788_v24 = vld [vmem:[#allocation7 + $0x138] sm:$0xff] }
 0x2f6   : > { %v1301_v57 = vadd.f32 %v1300_v26, %v1281_v63 }
 0x2f8   : > { %v4942_v4 = vpop.eup %4941  ;;  %v1313_v7 = vmul.f32 0.5, %v1301_v57  ;;  %v6786_v57 = vld [vmem:[#allocation7 + $0x128] sm:$0xff] }
 0x2f9   : > { %v1310_v16 = vmul.f32 0.5, %v4942_v4  ;;  %v4944_v8 = vpop.eup %4943 }
 0x2fa   : > { %4945 = vtanh.f32 %v1313_v7  ;;  %v1318_v22 = vmul.f32 %v4944_v8, %v1307_v6  ;;  %v6803_v6 = vld [vmem:[#allocation7 + $0xf8] sm:$0xff] }
 0x2fb   : > { %v1311_v41 = vadd.f32 0.5, %v1310_v16  ;;  %v6793_v16 = vld [vmem:[#allocation7 + $0x108] sm:$0xff] }
 0x2fd   : > { %v1317_v13 = vmul.f32 %v1311_v41, %v1303_v3  ;;  %v6801_v3 = vld [vmem:[#allocation7 + $0xe8] sm:$0xff] }
 0x2fe   : > { %v6808_v41 = vld [vmem:[#allocation7 + $0xc8] sm:$0xff] }
 0x2ff   : > { %v6742_v34 = vadd.f32 %v1318_v22, %v1317_v13  ;;  %v6814_v13 = vld [vmem:[#allocation7 + $0xa8] sm:$0xff]  ;;  %v6816_v22 = vld [vmem:[#allocation7 + $0xb8] sm:$0xff] }
 0x300   : > { %v4946_v62 = vpop.eup %4945 }
 0x301   : > { %4947 = vtanh.f32 %v6742_v34  ;;  %v1315_v35 = vmul.f32 0.5, %v4946_v62 }
 0x302   : > { %4949 = vtanh.f32 %v1491_v14  ;;  %v6820_v14 = vld [vmem:[#allocation7 + $0x88] sm:$0xff] }
 0x303   : > { %v1316_v28 = vadd.f32 0.5, %v1315_v35  ;;  %v6822_v35 = vld [vmem:[#allocation7 + $0x98] sm:$0xff] }
 0x305   : > { %v1419_v56 = vpop.f32.mrf.mxu0 }
 0x306   : > { %v1482_v33 = vadd.f32 %v1419_v56, %v1333_v39 }
 0x307   : > { %v4948_v36 = vpop.eup %4947 }
 0x308   : > { %v1321_v43 = vmul.f32 %v4948_v36, %v1316_v28  ;;  %v1487_v60 = vmul.f32 0.5, %v1482_v33  ;;  %v4950_v2 = vpop.eup %4949  ;;  %v6828_v28 = vld [vmem:[#allocation7 + $0x1e0] sm:$0xff]  ;;  %v6836_v33 = vld [vmem:[#allocation7 + $0x78] sm:$0xff] }
 0x309   : > { %v1493_v61 = vmul.f32 0.5, %v4950_v2  ;;  %v6840_v36 = vld [vmem:[#allocation7 + $0x1c0] sm:$0xff]  ;;  %v6852_v2 = vld [vmem:[#allocation7 + $0x1b0] sm:$0xff] }
 0x30a   : > { %1325 = vst [vmem:[%s6749_s5] sm:$0xff] %v1321_v43  ;;  %4951 = vtanh.f32 %v1487_v60  ;;  %1672 = vmatmul.f32.vlgmr.msra.gmra.mxu1 %v1321_v43  ;;  %1712 = vmatmul.f32.vlgmr.msra.gmra.mxu3 %v1321_v43  ;;  %v6846_v60 = vld [vmem:[#allocation7 + $0x48] sm:$0xff] }
 0x30b   : > { %v1459_v37 = vpop.f32.mrf.mxu2  ;;  %1915 = vmatpush.msra.mxu1 %v6751_v5  ;;  %1955 = vmatpush.msra.mxu3 %v6753_v18  ;;  %v1494_v52 = vadd.f32 0.5, %v1493_v61  ;;  %v6862_v61 = vld [vmem:[#allocation7 + $0x180] sm:$0xff] }
 0x30c   : > { %v1484_v31 = vadd.f32 %v1459_v37, %v1335_v29  ;;  %v6850_v29 = vld [vmem:[#allocation7 + $0x1a0] sm:$0xff]  ;;  %v6858_v37 = vld [vmem:[#allocation7 + $0x28] sm:$0xff] }
 0x30d   : > { %1916 = vmatpush.msra.mxu1 %v6756_v9  ;;  %1956 = vmatpush.msra.mxu3 %v6758_v30  ;;  %v1500_v4 = vmul.f32 %v1494_v52, %v6576_v1  ;;  %v6872_v52 = vld [vmem:[#allocation7 + $0x170] sm:$0xff] }
 0x30e   : > { %4953 = vtanh.f32 %v1484_v31  ;;  %v6860_v31 = vld [vmem:[#allocation7 + $0x38] sm:$0xff] }
 0x30f   : > { %1917 = vmatpush.msra.mxu1 %v6762_v38  ;;  %1957 = vmatpush.msra.mxu3 %v6764_v20  ;;  %4955 = vtanh.f32 %v1496_v46  ;;  %v6864_v46 = vld [vmem:[#allocation7 + $0x190] sm:$0xff] }
 0x310   : > { %v4952_v42 = vpop.eup %4951 }
 0x311   : > { %v1489_v10 = vmul.f32 0.5, %v4952_v42  ;;  %1918 = vmatpush.msra.mxu1 %v6768_v40  ;;  %1958 = vmatpush.msra.mxu3 %v6770_v48  ;;  %v6870_v42 = vld [vmem:[#allocation7 + $0x160] sm:$0xff] }
 0x312   : > { %1752 = vmatmul.f32.vlgmr.msrb.gmra.mxu1 %v1321_v43  ;;  %1792 = vmatmul.f32.vlgmr.msrb.gmra.mxu3 %v1321_v43  ;;  %v6842_v43 = vld [vmem:[#allocation7 + $0x1d0] sm:$0xff]  ;;  %9955 = vst [vmem:[#allocation68_spill] sm:$0xff] %v6870_v42 }
 0x313   : > { %v1490_v63 = vadd.f32 0.5, %v1489_v10  ;;  %1919 = vmatpush.msra.mxu1 %v6774_v51  ;;  %1959 = vmatpush.msra.mxu3 %v6776_v47  ;;  %v6878_v10 = vld [vmem:[#allocation7 + $0x8] sm:$0xff] }
 0x314   : > { %v4954_v26 = vpop.eup %4953  ;;  %9956 = vst [vmem:[#allocation74_spill] sm:$0xff] %v6878_v10 }
 0x315   : > { %v1501_v7 = vmul.f32 %v4954_v26, %v1490_v63  ;;  %1920 = vmatpush.msra.mxu1 %v6780_v15  ;;  %1960 = vmatpush.msra.mxu3 %v6782_v55  ;;  %v4956_v11 = vpop.eup %4955  ;;  %v6880_v63 = vld [vmem:[#allocation7 + $0x18] sm:$0xff]  ;;  %v6884_v26 = vld [vmem:[#allocation7 + $0x140] sm:$0xff] }
 0x316   : > { %v1498_v1 = vmul.f32 0.5, %v4956_v11  ;;  %9957 = vst [vmem:[#allocation71_spill] sm:$0xff] %v6880_v63  ;;  %v6892_v11 = vld [vmem:[#allocation7 + $0x130] sm:$0xff] }
 0x317   : > { %v6797_v8 = vadd.f32 %v1501_v7, %v1500_v4  ;;  %1921 = vmatpush.msra.mxu1 %v6786_v57  ;;  %1961 = vmatpush.msra.mxu3 %v6788_v24  ;;  %9958 = vst [vmem:[#allocation78_spill] sm:$0xff] %v6884_v26  ;;  %v6886_v4 = vld [vmem:[#allocation7 + $0x150] sm:$0xff]  ;;  %v6890_v7 = vld [vmem:[#allocation7 + $0x120] sm:$0xff] }
 0x318   : > { %v1499_v62 = vadd.f32 0.5, %v1498_v1  ;;  %9959 = vst [vmem:[#allocation75_spill] sm:$0xff] %v6886_v4  ;;  %v6898_v1 = vld [vmem:[#allocation9 + $0x3e0] sm:$0xff] }
 0x319   : > { %4957 = vtanh.f32 %v6797_v8  ;;  %1922 = vmatpush.msra.mxu1 %v6793_v16  ;;  %1962 = vmatpush.msra.mxu3 %v6795_v53  ;;  %9960 = vst [vmem:[#allocation82_spill] sm:$0xff] %v6890_v7 }
 0x31a   : > { %9961 = vst [vmem:[#allocation79_spill] sm:$0xff] %v6892_v11 }
 0x31b   : > { %1923 = vmatpush.msra.mxu1 %v6801_v3  ;;  %1963 = vmatpush.msra.mxu3 %v6803_v6 }
 0x31d   : > { %1924 = vmatpush.msra.mxu1 %v6808_v41  ;;  %1964 = vmatpush.msra.mxu3 %v6810_v59 }
 0x31f   : > { %v4958_v39 = vpop.eup %4957  ;;  %1925 = vmatpush.msra.mxu1 %v6814_v13  ;;  %1965 = vmatpush.msra.mxu3 %v6816_v22 }
 0x320   : > { %v6826_v56 = vmul.f32 %v4958_v39, %v1499_v62  ;;  %v6900_v62 = vld [vmem:[#allocation9 + $0x3e8] sm:$0xff]  ;;  %v6902_v39 = vld [vmem:[#allocation7 + $0x100] sm:$0xff] }
 0x321   : > { %1926 = vmatpush.msra.mxu1 %v6820_v14  ;;  %1966 = vmatpush.msra.mxu3 %v6822_v35  ;;  %9962 = vst [vmem:[#allocation86_spill] sm:$0xff] %v6900_v62 }
 0x322   : > { %1652 = vmatmul.f32.vlgmr.msra.gmra.mxu0 %v6826_v56  ;;  %1692 = vmatmul.f32.vlgmr.msra.gmra.mxu2 %v6826_v56  ;;  %9963 = vst [vmem:[#allocation83_spill] sm:$0xff] %v6902_v39 }
 0x323   : > { %1895 = vmatpush.msra.mxu0 %v6828_v28  ;;  %1935 = vmatpush.msra.mxu2 %v6830_v32 }
 0x324   : > { %1927 = vmatpush.msra.mxu1 %v6834_v27  ;;  %1967 = vmatpush.msra.mxu3 %v6836_v33 }
 0x325   : > { %1896 = vmatpush.msra.mxu0 %v6840_v36  ;;  %1936 = vmatpush.msra.mxu2 %v6842_v43 }
 0x326   : > { %1928 = vmatpush.msra.mxu1 %v6846_v60  ;;  %1968 = vmatpush.msra.mxu3 %v6848_v49 }
 0x327   : > { %1897 = vmatpush.msra.mxu0 %v6850_v29  ;;  %1937 = vmatpush.msra.mxu2 %v6852_v2 }
 0x328   : > { %1929 = vmatpush.msra.mxu1 %v6858_v37  ;;  %1969 = vmatpush.msra.mxu3 %v6860_v31 }
 0x329   : > { %1898 = vmatpush.msra.mxu0 %v6862_v61  ;;  %1938 = vmatpush.msra.mxu2 %v6864_v46 }
 0x32a   : > { %1732 = vmatmul.f32.vlgmr.msrb.gmra.mxu0 %v6826_v56  ;;  %1772 = vmatmul.f32.vlgmr.msrb.gmra.mxu2 %v6826_v56 }
 0x32b   : > { %1899 = vmatpush.msra.mxu0 %v6870_v42  ;;  %1939 = vmatpush.msra.mxu2 %v6872_v52  ;;  %v6904_v42 = vld [vmem:[#allocation7 + $0x110] sm:$0xff] }
 0x32c   : > { %1930 = vmatpush.msra.mxu1 %v6878_v10  ;;  %1970 = vmatpush.msra.mxu3 %v6880_v63  ;;  %9964 = vst [vmem:[#allocation90_spill] sm:$0xff] %v6904_v42  ;;  %v6910_v63 = vld [vmem:[#allocation7 + $0xe0] sm:$0xff]  ;;  %v6920_v10 = vld [vmem:[#allocation7 + $0xd0] sm:$0xff] }
 0x32d   : > { %1900 = vmatpush.msra.mxu0 %v6884_v26  ;;  %1940 = vmatpush.msra.mxu2 %v6886_v4  ;;  %9965 = vst [vmem:[#allocation17_spill] sm:$0xff] %v6910_v63  ;;  %v6912_v26 = vld [vmem:[#allocation7 + $0xf0] sm:$0xff]  ;;  %v6918_v4 = vld [vmem:[#allocation7 + $0xc0] sm:$0xff] }
 0x32e   : > { %1931 = vmatmul.f32.vlgmr.msra.gmra.mxu1 %v6826_v56  ;;  %1971 = vmatmul.f32.vlgmr.msra.gmra.mxu3 %v6826_v56  ;;  %9966 = vst [vmem:[#allocation18_spill] sm:$0xff] %v6912_v26 }
 0x32f   : > { %1901 = vmatpush.msra.mxu0 %v6890_v7  ;;  %1941 = vmatpush.msra.mxu2 %v6892_v11  ;;  %9967 = vst [vmem:[#allocation19_spill] sm:$0xff] %v6918_v4  ;;  %v6924_v11 = vld [vmem:[#allocation7 + $0xa0] sm:$0xff]  ;;  %v6926_v7 = vld [vmem:[#allocation7 + $0xb0] sm:$0xff] }
 0x330   : > { %2149 = vmatpush.msrb.mxu1 %v6898_v1  ;;  %2189 = vmatpush.msrb.mxu3 %v6900_v62  ;;  %9968 = vst [vmem:[#allocation20_spill] sm:$0xff] %v6920_v10  ;;  %v6930_v62 = vld [vmem:[#allocation7 + $0x80] sm:$0xff] }
 0x331   : > { %1902 = vmatpush.msra.mxu0 %v6902_v39  ;;  %1942 = vmatpush.msra.mxu2 %v6904_v42  ;;  %9969 = vst [vmem:[#allocation87_spill] sm:$0xff] %v6924_v11  ;;  %v6932_v39 = vld [vmem:[#allocation7 + $0x90] sm:$0xff]  ;;  %v6936_v42 = vld [vmem:[#allocation7 + $0x60] sm:$0xff] }
 0x332   : > { %9970 = vst [vmem:[#allocation94_spill] sm:$0xff] %v6926_v7 }
 0x333   : > { %1903 = vmatpush.msra.mxu0 %v6910_v63  ;;  %1943 = vmatpush.msra.mxu2 %v6912_v26  ;;  %9971 = vst [vmem:[#allocation21_spill] sm:$0xff] %v6930_v62  ;;  %v6938_v63 = vld [vmem:[#allocation7 + $0x70] sm:$0xff]  ;;  %v6942_v26 = vld [vmem:[#allocation7 + $0x40] sm:$0xff] }
 0x334   : > { %9972 = vst [vmem:[#allocation22_spill] sm:$0xff] %v6932_v39 }
 0x335   : > { %1904 = vmatpush.msra.mxu0 %v6918_v4  ;;  %1944 = vmatpush.msra.mxu2 %v6920_v10  ;;  %9973 = vst [vmem:[#allocation88_spill] sm:$0xff] %v6936_v42  ;;  %v6944_v4 = vld [vmem:[#allocation7 + $0x50] sm:$0xff]  ;;  %v6948_v10 = vld [vmem:[#allocation7 + $0x20] sm:$0xff] }
 0x336   : > { %9974 = vst [vmem:[#allocation96_spill] sm:$0xff] %v6938_v63 }
 0x337   : > { %1905 = vmatpush.msra.mxu0 %v6924_v11  ;;  %1945 = vmatpush.msra.mxu2 %v6926_v7  ;;  %9975 = vst [vmem:[#allocation23_spill] sm:$0xff] %v6942_v26  ;;  %v6950_v11 = vld [vmem:[#allocation7 + $0x30] sm:$0xff]  ;;  %v6954_v7 = vld [vmem:[#allocation7] sm:$0xff] }
 0x338   : > { %9976 = vst [vmem:[#allocation24_spill] sm:$0xff] %v6944_v4 }
 0x339   : > { %1906 = vmatpush.msra.mxu0 %v6930_v62  ;;  %1946 = vmatpush.msra.mxu2 %v6932_v39  ;;  %9977 = vst [vmem:[#allocation25_spill] sm:$0xff] %v6948_v10  ;;  %v6956_v62 = vld [vmem:[#allocation7 + $0x10] sm:$0xff]  ;;  %v6990_v39 = vld [vmem:[#allocation9 + $0x348] sm:$0xff] }
 0x33a   : > { %9978 = vst [vmem:[#allocation26_spill] sm:$0xff] %v6950_v11 }
 0x33b   : > { %1907 = vmatpush.msra.mxu0 %v6936_v42  ;;  %1947 = vmatpush.msra.mxu2 %v6938_v63  ;;  %9979 = vst [vmem:[#allocation92_spill] sm:$0xff] %v6954_v7  ;;  %v6964_v63 = vld [vmem:[#allocation9 + $0x3c0] sm:$0xff] }
 0x33c   : > { %9980 = vst [vmem:[#allocation99_spill] sm:$0xff] %v6956_v62  ;;  %2150 = vmatpush.msrb.mxu1 %v6964_v63  ;;  %v6988_v42 = vld [vmem:[#allocation9 + $0x340] sm:$0xff] }
 0x33d   : > { %1908 = vmatpush.msra.mxu0 %v6942_v26  ;;  %1948 = vmatpush.msra.mxu2 %v6944_v4  ;;  %v6966_v26 = vld [vmem:[#allocation9 + $0x3c8] sm:$0xff]  ;;  %v6968_v4 = vld [vmem:[#allocation9 + $0x3a0] sm:$0xff]  ;;  %9988 = vst [vmem:[#allocation103_spill] sm:$0xff] %v6988_v42 }
 0x33e   : > { %9981 = vst [vmem:[#allocation27_spill] sm:$0xff] %v6966_v26  ;;  %2190 = vmatpush.msrb.mxu3 %v6966_v26  ;;  %2151 = vmatpush.msrb.mxu1 %v6968_v4  ;;  %v6992_v26 = vld [vmem:[#allocation9 + $0x320] sm:$0xff] }
 0x33f   : > { %1909 = vmatpush.msra.mxu0 %v6948_v10  ;;  %1949 = vmatpush.msra.mxu2 %v6950_v11  ;;  %9982 = vst [vmem:[#allocation28_spill] sm:$0xff] %v6968_v4  ;;  %v6972_v10 = vld [vmem:[#allocation9 + $0x3a8] sm:$0xff]  ;;  %v6974_v11 = vld [vmem:[#allocation9 + $0x380] sm:$0xff] }
 0x340   : > { %9983 = vst [vmem:[#allocation97_spill] sm:$0xff] %v6972_v10  ;;  %2191 = vmatpush.msrb.mxu3 %v6972_v10  ;;  %2152 = vmatpush.msrb.mxu1 %v6974_v11  ;;  %v7000_v10 = vld [vmem:[#allocation9 + $0x308] sm:$0xff]  ;;  %v7002_v4 = vld [vmem:[#allocation9 + $0x1e0] sm:$0xff] }
 0x341   : > { %1910 = vmatpush.msra.mxu0 %v6954_v7  ;;  %1950 = vmatpush.msra.mxu2 %v6956_v62  ;;  %9984 = vst [vmem:[#allocation101_spill] sm:$0xff] %v6974_v11  ;;  %v6976_v7 = vld [vmem:[#allocation9 + $0x388] sm:$0xff] }
 0x342   : > { %1911 = vmatmul.f32.vlgmr.msra.gmra.mxu0 %v6826_v56  ;;  %1951 = vmatmul.f32.vlgmr.msra.gmra.mxu2 %v6826_v56  ;;  %9985 = vst [vmem:[#allocation29_spill] sm:$0xff] %v6976_v7  ;;  %v6982_v56 = vld [vmem:[#allocation9 + $0x360] sm:$0xff]  ;;  %v6984_v62 = vld [vmem:[#allocation9 + $0x368] sm:$0xff] }
 0x343   : > { %2192 = vmatpush.msrb.mxu3 %v6976_v7  ;;  %9986 = vst [vmem:[#allocation30_spill] sm:$0xff] %v6982_v56  ;;  %2153 = vmatpush.msrb.mxu1 %v6982_v56  ;;  %v6996_v11 = vld [vmem:[#allocation9 + $0x328] sm:$0xff]  ;;  %v6998_v7 = vld [vmem:[#allocation9 + $0x300] sm:$0xff] }
 0x344   : > { %9987 = vst [vmem:[#allocation100_spill] sm:$0xff] %v6984_v62  ;;  %v7004_v56 = vld [vmem:[#allocation9 + $0x1e8] sm:$0xff]  ;;  %2129 = vmatpush.msrb.mxu0 %v7002_v4 }
 0x345   : > { %2193 = vmatpush.msrb.mxu3 %v6984_v62  ;;  %9989 = vst [vmem:[#allocation31_spill] sm:$0xff] %v6990_v39  ;;  %2154 = vmatpush.msrb.mxu1 %v6988_v42  ;;  %v7014_v42 = vld [vmem:[#allocation9 + $0x2e8] sm:$0xff]  ;;  %v7018_v62 = vld [vmem:[#allocation9 + $0x2c0] sm:$0xff] }
 0x346   : > { %9990 = vst [vmem:[#allocation32_spill] sm:$0xff] %v6992_v26  ;;  %2169 = vmatpush.msrb.mxu2 %v7004_v56 }
 0x347   : > { %2194 = vmatpush.msrb.mxu3 %v6990_v39  ;;  %9991 = vst [vmem:[#allocation102_spill] sm:$0xff] %v6996_v11  ;;  %2155 = vmatpush.msrb.mxu1 %v6992_v26  ;;  %v7012_v39 = vld [vmem:[#allocation9 + $0x2e0] sm:$0xff]  ;;  %v7020_v26 = vld [vmem:[#allocation9 + $0x2c8] sm:$0xff] }
 0x348   : > { %9992 = vst [vmem:[#allocation105_spill] sm:$0xff] %v6998_v7 }
 0x349   : > { %9993 = vst [vmem:[#allocation33_spill] sm:$0xff] %v7000_v10  ;;  %2195 = vmatpush.msrb.mxu3 %v6996_v11  ;;  %2156 = vmatpush.msrb.mxu1 %v6998_v7  ;;  %v7042_v7 = vld [vmem:[#allocation9 + $0x1c8] sm:$0xff]  ;;  %v7082_v11 = vld [vmem:[#allocation9 + $0x3f0] sm:$0xff] }
 0x34a   : > { %9994 = vst [vmem:[#allocation34_spill] sm:$0xff] %v7002_v4  ;;  %v7026_v4 = vld [vmem:[#allocation9 + $0x2a8] sm:$0xff]  ;;  %2170 = vmatpush.msrb.mxu2 %v7042_v7 }
 0x34b   : > { %9995 = vst [vmem:[#allocation104_spill] sm:$0xff] %v7004_v56  ;;  %2196 = vmatpush.msrb.mxu3 %v7000_v10  ;;  %2157 = vmatpush.msrb.mxu1 %v7012_v39  ;;  %v7024_v56 = vld [vmem:[#allocation9 + $0x2a0] sm:$0xff] }
 0x34c   : > { %9996 = vst [vmem:[#allocation107_spill] sm:$0xff] %v7012_v39  ;;  %v7030_v10 = vld [vmem:[#allocation9 + $0x280] sm:$0xff]  ;;  %v7032_v39 = vld [vmem:[#allocation9 + $0x288] sm:$0xff] }
 0x34d   : > { %9997 = vst [vmem:[#allocation35_spill] sm:$0xff] %v7014_v42  ;;  %2197 = vmatpush.msrb.mxu3 %v7014_v42  ;;  %2158 = vmatpush.msrb.mxu1 %v7018_v62  ;;  %v7036_v42 = vld [vmem:[#allocation9 + $0x260] sm:$0xff] }
 0x34e   : > { %9998 = vst [vmem:[#allocation36_spill] sm:$0xff] %v7018_v62  ;;  %v7038_v62 = vld [vmem:[#allocation9 + $0x268] sm:$0xff] }
 0x34f   : > { %9999 = vst [vmem:[#allocation106_spill] sm:$0xff] %v7020_v26  ;;  %2198 = vmatpush.msrb.mxu3 %v7020_v26  ;;  %2159 = vmatpush.msrb.mxu1 %v7024_v56  ;;  %v7040_v26 = vld [vmem:[#allocation9 + $0x1c0] sm:$0xff] }
 0x350   : > { %10000 = vst [vmem:[#allocation109_spill] sm:$0xff] %v7024_v56  ;;  %2130 = vmatpush.msrb.mxu0 %v7040_v26  ;;  %v7054_v56 = vld [vmem:[#allocation9 + $0x1a8] sm:$0xff] }
 0x351   : > { %10001 = vst [vmem:[#allocation37_spill] sm:$0xff] %v7026_v4  ;;  %2199 = vmatpush.msrb.mxu3 %v7026_v4  ;;  %2160 = vmatpush.msrb.mxu1 %v7030_v10  ;;  %v7048_v4 = vld [vmem:[#allocation9 + $0x240] sm:$0xff] }
 0x352   : > { %10002 = vst [vmem:[#allocation38_spill] sm:$0xff] %v7030_v10  ;;  %v7050_v10 = vld [vmem:[#allocation9 + $0x248] sm:$0xff]  ;;  %2171 = vmatpush.msrb.mxu2 %v7054_v56 }
 0x353   : > { %10003 = vst [vmem:[#allocation108_spill] sm:$0xff] %v7032_v39  ;;  %2200 = vmatpush.msrb.mxu3 %v7032_v39  ;;  %2161 = vmatpush.msrb.mxu1 %v7036_v42  ;;  %v7052_v39 = vld [vmem:[#allocation9 + $0x1a0] sm:$0xff] }
 0x354   : > { %10004 = vst [vmem:[#allocation39_spill] sm:$0xff] %v7036_v42  ;;  %2131 = vmatpush.msrb.mxu0 %v7052_v39  ;;  %v7062_v42 = vld [vmem:[#allocation9 + $0x228] sm:$0xff] }
 0x355   : > { %10005 = vst [vmem:[#allocation40_spill] sm:$0xff] %v7038_v62  ;;  %2201 = vmatpush.msrb.mxu3 %v7038_v62  ;;  %2162 = vmatpush.msrb.mxu1 %v7048_v4  ;;  %v7060_v62 = vld [vmem:[#allocation9 + $0x220] sm:$0xff] }
 0x356   : > { %10006 = vst [vmem:[#allocation110_spill] sm:$0xff] %v7040_v26  ;;  %v7066_v26 = vld [vmem:[#allocation9 + $0x188] sm:$0xff] }
 0x357   : > { %10007 = vst [vmem:[#allocation41_spill] sm:$0xff] %v7042_v7  ;;  %2202 = vmatpush.msrb.mxu3 %v7050_v10  ;;  %v7064_v7 = vld [vmem:[#allocation9 + $0x180] sm:$0xff]  ;;  %2163 = vmatpush.msrb.mxu1 %v7060_v62 }
 0x358   : > { %10008 = vst [vmem:[#allocation42_spill] sm:$0xff] %v7048_v4  ;;  %2132 = vmatpush.msrb.mxu0 %v7064_v7  ;;  %2172 = vmatpush.msrb.mxu2 %v7066_v26  ;;  %v7074_v4 = vld [vmem:[#allocation9 + $0x208] sm:$0xff] }
 0x359   : > { %10009 = vst [vmem:[#allocation43_spill] sm:$0xff] %v7050_v10  ;;  %2203 = vmatpush.msrb.mxu3 %v7062_v42  ;;  %v7072_v10 = vld [vmem:[#allocation9 + $0x200] sm:$0xff] }
 0x35a   : > { %10010 = vst [vmem:[#allocation44_spill] sm:$0xff] %v7052_v39  ;;  %v7078_v39 = vld [vmem:[#allocation9 + $0x168] sm:$0xff]  ;;  %2164 = vmatpush.msrb.mxu1 %v7072_v10 }
 0x35b   : > { %10011 = vst [vmem:[#allocation45_spill] sm:$0xff] %v7054_v56  ;;  %v7076_v56 = vld [vmem:[#allocation9 + $0x160] sm:$0xff]  ;;  %2204 = vmatpush.msrb.mxu3 %v7074_v4  ;;  %2173 = vmatpush.msrb.mxu2 %v7078_v39 }
 0x35c   : > { %10012 = vst [vmem:[#allocation46_spill] sm:$0xff] %v7060_v62  ;;  %2133 = vmatpush.msrb.mxu0 %v7076_v56  ;;  %v7088_v62 = vld [vmem:[#allocation9 + $0x140] sm:$0xff]  ;;  %2229 = vmatpush.msra.mxu1 %v7082_v11 }
 0x35d   : > { %10013 = vst [vmem:[#allocation47_spill] sm:$0xff] %v7062_v42  ;;  %v7086_v42 = vld [vmem:[#allocation9 + $0x3f8] sm:$0xff] }
 0x35e   : > { %10014 = vst [vmem:[#allocation48_spill] sm:$0xff] %v7064_v7  ;;  %2269 = vmatpush.msra.mxu3 %v7086_v42  ;;  %v7094_v7 = vld [vmem:[#allocation9 + $0x3d0] sm:$0xff]  ;;  %2134 = vmatpush.msrb.mxu0 %v7088_v62 }
 0x35f   : > { %10015 = vst [vmem:[#allocation49_spill] sm:$0xff] %v7066_v26  ;;  %v7090_v26 = vld [vmem:[#allocation9 + $0x148] sm:$0xff]  ;;  %2230 = vmatpush.msra.mxu1 %v7094_v7 }
 0x360   : > { %10016 = vst [vmem:[#allocation50_spill] sm:$0xff] %v7072_v10  ;;  %2174 = vmatpush.msrb.mxu2 %v7090_v26  ;;  %v7100_v10 = vld [vmem:[#allocation9 + $0x120] sm:$0xff] }
 0x361   : > { %10017 = vst [vmem:[#allocation51_spill] sm:$0xff] %v7074_v4  ;;  %v7098_v4 = vld [vmem:[#allocation9 + $0x3d8] sm:$0xff]  ;;  %2135 = vmatpush.msrb.mxu0 %v7100_v10 }
 0x362   : > { %10018 = vst [vmem:[#allocation52_spill] sm:$0xff] %v7076_v56  ;;  %2270 = vmatpush.msra.mxu3 %v7098_v4  ;;  %v7106_v56 = vld [vmem:[#allocation9 + $0x3b0] sm:$0xff] }
 0x363   : > { %10019 = vst [vmem:[#allocation53_spill] sm:$0xff] %v7078_v39  ;;  %v7102_v39 = vld [vmem:[#allocation9 + $0x128] sm:$0xff]  ;;  %2231 = vmatpush.msra.mxu1 %v7106_v56 }
 0x364   : > { %10020 = vst [vmem:[#allocation54_spill] sm:$0xff] %v7082_v11  ;;  %2175 = vmatpush.msrb.mxu2 %v7102_v39  ;;  %v7112_v11 = vld [vmem:[#allocation9 + $0x100] sm:$0xff] }
 0x365   : > { %10021 = vst [vmem:[#allocation55_spill] sm:$0xff] %v7086_v42  ;;  %v7110_v42 = vld [vmem:[#allocation9 + $0x3b8] sm:$0xff]  ;;  %2136 = vmatpush.msrb.mxu0 %v7112_v11 }
 0x366   : > { %10022 = vst [vmem:[#allocation56_spill] sm:$0xff] %v7088_v62  ;;  %2271 = vmatpush.msra.mxu3 %v7110_v42  ;;  %v7118_v62 = vld [vmem:[#allocation9 + $0x390] sm:$0xff] }
 0x367   : > { %10023 = vst [vmem:[#allocation57_spill] sm:$0xff] %v7090_v26  ;;  %v7114_v26 = vld [vmem:[#allocation9 + $0x108] sm:$0xff]  ;;  %2232 = vmatpush.msra.mxu1 %v7118_v62 }
 0x368   : > { %10024 = vst [vmem:[#allocation58_spill] sm:$0xff] %v7094_v7  ;;  %2176 = vmatpush.msrb.mxu2 %v7114_v26  ;;  %v7124_v7 = vld [vmem:[#allocation9 + $0xe0] sm:$0xff] }
 0x369   : > { %10025 = vst [vmem:[#allocation59_spill] sm:$0xff] %v7098_v4  ;;  %v7122_v4 = vld [vmem:[#allocation9 + $0x398] sm:$0xff]  ;;  %2137 = vmatpush.msrb.mxu0 %v7124_v7 }
 0x36a   : > { %10026 = vst [vmem:[#allocation60_spill] sm:$0xff] %v7100_v10  ;;  %2272 = vmatpush.msra.mxu3 %v7122_v4  ;;  %v7130_v10 = vld [vmem:[#allocation9 + $0x370] sm:$0xff] }
 0x36b   : > { %10027 = vst [vmem:[#allocation61_spill] sm:$0xff] %v7102_v39  ;;  %v7126_v39 = vld [vmem:[#allocation9 + $0xe8] sm:$0xff]  ;;  %2233 = vmatpush.msra.mxu1 %v7130_v10 }
 0x36c   : > { %10028 = vst [vmem:[#allocation62_spill] sm:$0xff] %v7106_v56  ;;  %2177 = vmatpush.msrb.mxu2 %v7126_v39  ;;  %v7136_v56 = vld [vmem:[#allocation9 + $0xc0] sm:$0xff] }
 0x36d   : > { %10029 = vst [vmem:[#allocation63_spill] sm:$0xff] %v7110_v42  ;;  %v7134_v42 = vld [vmem:[#allocation9 + $0x378] sm:$0xff]  ;;  %2138 = vmatpush.msrb.mxu0 %v7136_v56 }
 0x36e   : > { %10030 = vst [vmem:[#allocation64_spill] sm:$0xff] %v7112_v11  ;;  %2273 = vmatpush.msra.mxu3 %v7134_v42  ;;  %v7142_v11 = vld [vmem:[#allocation9 + $0x350] sm:$0xff] }
 0x36f   : > { %10031 = vst [vmem:[#allocation65_spill] sm:$0xff] %v7114_v26  ;;  %v7138_v26 = vld [vmem:[#allocation9 + $0xc8] sm:$0xff]  ;;  %2234 = vmatpush.msra.mxu1 %v7142_v11 }
 0x370   : > { %10032 = vst [vmem:[#allocation66_spill] sm:$0xff] %v7118_v62  ;;  %2178 = vmatpush.msrb.mxu2 %v7138_v26  ;;  %v7148_v62 = vld [vmem:[#allocation9 + $0xa0] sm:$0xff] }
 0x371   : > { %10033 = vst [vmem:[#allocation67_spill] sm:$0xff] %v7122_v4  ;;  %v7146_v4 = vld [vmem:[#allocation9 + $0x358] sm:$0xff]  ;;  %2139 = vmatpush.msrb.mxu0 %v7148_v62 }
 0x372   : > { %10034 = vst [vmem:[#allocation69_spill] sm:$0xff] %v7124_v7  ;;  %2274 = vmatpush.msra.mxu3 %v7146_v4  ;;  %v7154_v7 = vld [vmem:[#allocation9 + $0x330] sm:$0xff] }
 0x373   : > { %10035 = vst [vmem:[#allocation70_spill] sm:$0xff] %v7126_v39  ;;  %v7150_v39 = vld [vmem:[#allocation9 + $0xa8] sm:$0xff]  ;;  %2235 = vmatpush.msra.mxu1 %v7154_v7 }
 0x374   : > { %10036 = vst [vmem:[#allocation72_spill] sm:$0xff] %v7130_v10  ;;  %2179 = vmatpush.msrb.mxu2 %v7150_v39  ;;  %v7160_v10 = vld [vmem:[#allocation9 + $0x80] sm:$0xff] }
 0x375   : > { %10037 = vst [vmem:[#allocation73_spill] sm:$0xff] %v7134_v42  ;;  %v7158_v42 = vld [vmem:[#allocation9 + $0x338] sm:$0xff]  ;;  %2140 = vmatpush.msrb.mxu0 %v7160_v10 }
 0x376   : > { %10038 = vst [vmem:[#allocation76_spill] sm:$0xff] %v7136_v56  ;;  %2275 = vmatpush.msra.mxu3 %v7158_v42  ;;  %v7166_v56 = vld [vmem:[#allocation9 + $0x310] sm:$0xff] }
 0x377   : > { %10039 = vst [vmem:[#allocation77_spill] sm:$0xff] %v7138_v26  ;;  %v7162_v26 = vld [vmem:[#allocation9 + $0x88] sm:$0xff]  ;;  %2236 = vmatpush.msra.mxu1 %v7166_v56 }
 0x378   : > { %10040 = vst [vmem:[#allocation80_spill] sm:$0xff] %v7142_v11  ;;  %2180 = vmatpush.msrb.mxu2 %v7162_v26  ;;  %v7172_v11 = vld [vmem:[#allocation9 + $0x60] sm:$0xff] }
 0x379   : > { %10041 = vst [vmem:[#allocation81_spill] sm:$0xff] %v7146_v4  ;;  %v7170_v4 = vld [vmem:[#allocation9 + $0x318] sm:$0xff]  ;;  %2141 = vmatpush.msrb.mxu0 %v7172_v11 }
 0x37a   : > { %10042 = vst [vmem:[#allocation84_spill] sm:$0xff] %v7148_v62  ;;  %2276 = vmatpush.msra.mxu3 %v7170_v4  ;;  %v7178_v62 = vld [vmem:[#allocation9 + $0x2f0] sm:$0xff] }
 0x37b   : > { %10043 = vst [vmem:[#allocation85_spill] sm:$0xff] %v7150_v39  ;;  %v7174_v39 = vld [vmem:[#allocation9 + $0x68] sm:$0xff]  ;;  %2237 = vmatpush.msra.mxu1 %v7178_v62 }
 0x37c   : > { %10044 = vst [vmem:[#allocation89_spill] sm:$0xff] %v7154_v7  ;;  %2181 = vmatpush.msrb.mxu2 %v7174_v39  ;;  %v7184_v7 = vld [vmem:[#allocation9 + $0x40] sm:$0xff] }
 0x37d   : > { %10045 = vst [vmem:[#allocation91_spill] sm:$0xff] %v7158_v42  ;;  %v7182_v42 = vld [vmem:[#allocation9 + $0x2f8] sm:$0xff]  ;;  %2142 = vmatpush.msrb.mxu0 %v7184_v7  ;;  %2238 = vmatpush.msra.mxu1 %v6707_v17  ;;  %v7208_v17 = vld [vmem:[#allocation9 + $0x1f0] sm:$0xff] }
 0x37e   : > { %10046 = vst [vmem:[#allocation93_spill] sm:$0xff] %v7162_v26  ;;  %v7186_v26 = vld [vmem:[#allocation9 + $0x48] sm:$0xff]  ;;  %2277 = vmatpush.msra.mxu3 %v7182_v42 }
 0x37f   : > { %10047 = vst [vmem:[#allocation95_spill] sm:$0xff] %v7166_v56  ;;  %2182 = vmatpush.msrb.mxu2 %v7186_v26  ;;  %v7194_v56 = vld [vmem:[#allocation9 + $0x28] sm:$0xff]  ;;  %2239 = vmatpush.msra.mxu1 %v6713_v0  ;;  %v7217_v0 = vld [vmem:[#allocation9 + $0x1d8] sm:$0xff] }
 0x380   : > { %10048 = vst [vmem:[#allocation98_spill] sm:$0xff] %v7170_v4  ;;  %v7192_v4 = vld [vmem:[#allocation9 + $0x20] sm:$0xff]  ;;  %2278 = vmatpush.msra.mxu3 %v6709_v21  ;;  %v7210_v21 = vld [vmem:[#allocation9 + $0x1f8] sm:$0xff] }
 0x381   : > { %10049 = vst [vmem:[#allocation111_spill] sm:$0xff] %v7174_v39  ;;  %2143 = vmatpush.msrb.mxu0 %v7192_v4  ;;  %2183 = vmatpush.msrb.mxu2 %v7194_v56  ;;  %v7200_v39 = vld [vmem:[#allocation9] sm:$0xff] }
 0x382   : > { %10050 = vst [vmem:[#allocation112_spill] sm:$0xff] %v7178_v62  ;;  %v7202_v62 = vld [vmem:[#allocation9 + $0x8] sm:$0xff]  ;;  %2279 = vmatpush.msra.mxu3 %v6715_v54  ;;  %2240 = vmatpush.msra.mxu1 %v6719_v12 }
 0x383   : > { %10051 = vst [vmem:[#allocation113_spill] sm:$0xff] %v7182_v42  ;;  %2144 = vmatpush.msrb.mxu0 %v7200_v39  ;;  %2184 = vmatpush.msrb.mxu2 %v7202_v62 }
 0x384   : > { %10052 = vst [vmem:[#allocation114_spill] sm:$0xff] %v7186_v26  ;;  %2280 = vmatpush.msra.mxu3 %v6721_v58  ;;  %2241 = vmatpush.msra.mxu1 %v6726_v19  ;;  %v7235_v58 = vld [vmem:[#allocation9 + $0x230] sm:$0xff] }
 0x385   : > { %10053 = vst [vmem:[#allocation115_spill] sm:$0xff] %v7192_v4  ;;  %2209 = vmatpush.msra.mxu0 %v7208_v17  ;;  %2249 = vmatpush.msra.mxu2 %v7210_v21  ;;  %v7215_v4 = vld [vmem:[#allocation9 + $0x1d0] sm:$0xff] }
 0x386   : > { %10054 = vst [vmem:[#allocation116_spill] sm:$0xff] %v7194_v56  ;;  %2281 = vmatpush.msra.mxu3 %v6728_v50  ;;  %v7249_v50 = vld [vmem:[#allocation9 + $0x210] sm:$0xff] }
 0x387   : > { %10055 = vst [vmem:[#allocation117_spill] sm:$0xff] %v7200_v39  ;;  %v1673_v42 = vpop.f32.mrf.mxu1  ;;  %2210 = vmatpush.msra.mxu0 %v7215_v4  ;;  %2250 = vmatpush.msra.mxu2 %v7217_v0  ;;  %v7255_v39 = vld [vmem:[#allocation9 + $0x178] sm:$0xff] }
 0x388   : > { %10056 = vst [vmem:[#allocation118_spill] sm:$0xff] %v7202_v62  ;;  %v7223_v62 = vld [vmem:[#allocation9 + $0x250] sm:$0xff] }
 0x389   : > { %10057 = vst [vmem:[#allocation119_spill] sm:$0xff] %v7208_v17  ;;  %v7241_v17 = vld [vmem:[#allocation9 + $0x198] sm:$0xff]  ;;  %2242 = vmatpush.msra.mxu1 %v7223_v62 }
 0x38a   : > { %10058 = vst [vmem:[#allocation120_spill] sm:$0xff] %v7210_v21  ;;  %v7229_v21 = vld [vmem:[#allocation9 + $0x1b8] sm:$0xff] }
 0x38b   : > { %10059 = vst [vmem:[#allocation121_spill] sm:$0xff] %v7215_v4  ;;  %2251 = vmatpush.msra.mxu2 %v7229_v21  ;;  %v7239_v4 = vld [vmem:[#allocation9 + $0x190] sm:$0xff]  ;;  %2243 = vmatpush.msra.mxu1 %v7235_v58 }
 0x38c   : > { %10060 = vst [vmem:[#allocation122_spill] sm:$0xff] %v7217_v0 }
 0x38d   : > { %10061 = vst [vmem:[#allocation123_spill] sm:$0xff] %v7223_v62  ;;  %2252 = vmatpush.msra.mxu2 %v7241_v17  ;;  %v7264_v62 = vld [vmem:[#allocation9 + $0x150] sm:$0xff]  ;;  %2244 = vmatpush.msra.mxu1 %v7249_v50 }
 0x38e   : > { %10064 = vst [vmem:[#allocation126_spill] sm:$0xff] %v7229_v21 }
 0x38f   : > { %10065 = vst [vmem:[#allocation127_spill] sm:$0xff] %v7235_v58  ;;  %2253 = vmatpush.msra.mxu2 %v7255_v39 }
 0x390   : > { %10067 = vst [vmem:[#allocation129_spill] sm:$0xff] %v7241_v17  ;;  %v7266_v17 = vld [vmem:[#allocation9 + $0x158] sm:$0xff] }
 0x391   : > { %10068 = vst [vmem:[#allocation130_spill] sm:$0xff] %v7249_v50  ;;  %2254 = vmatpush.msra.mxu2 %v7266_v17  ;;  %v7279_v50 = vld [vmem:[#allocation9 + $0x110] sm:$0xff] }
 0x392   : > { %10071 = vst [vmem:[#allocation133_spill] sm:$0xff] %v7255_v39 }
 0x393   : > { %10072 = vst [vmem:[#allocation134_spill] sm:$0xff] %v7264_v62 }
 0x394   : > { %10073 = vst [vmem:[#allocation135_spill] sm:$0xff] %v7266_v17 }
 0x395   : > { %10076 = vst [vmem:[#allocation138_spill] sm:$0xff] %v7279_v50 }
 0x39f   : > { %v1653_v26 = vpop.f32.mrf.mxu0 }
 0x3a0   : > { %v1654_v56 = vadd.f32 %v1653_v26, %v9946_v23  ;;  %v7225_v26 = vld [vmem:[#allocation9 + $0x258] sm:$0xff]  ;;  %v7227_v23 = vld [vmem:[#allocation9 + $0x1b0] sm:$0xff] }
 0x3a1   : > { %10062 = vst [vmem:[#allocation124_spill] sm:$0xff] %v7225_v26  ;;  %2211 = vmatpush.msra.mxu0 %v7227_v23  ;;  %2282 = vmatpush.msra.mxu3 %v7225_v26  ;;  %v1753_v26 = vpop.f32.mrf.mxu1 }
 0x3a2   : > { %v1674_v54 = vadd.f32 %v1673_v42, %v1654_v56  ;;  %10063 = vst [vmem:[#allocation125_spill] sm:$0xff] %v7227_v23  ;;  %v7237_v42 = vld [vmem:[#allocation9 + $0x238] sm:$0xff]  ;;  %v1713_v56 = vpop.f32.mrf.mxu3  ;;  %v7253_v23 = vld [vmem:[#allocation9 + $0x170] sm:$0xff] }
 0x3a3   : > { %10066 = vst [vmem:[#allocation128_spill] sm:$0xff] %v7237_v42  ;;  %2212 = vmatpush.msra.mxu0 %v7239_v4  ;;  %2283 = vmatpush.msra.mxu3 %v7237_v42  ;;  %v7288_v42 = vld [vmem:[#allocation9 + $0xf8] sm:$0xff] }
 0x3a4   : > { %v1797_v12 = vmul.f32 0.5, %v1674_v54  ;;  %v7251_v54 = vld [vmem:[#allocation9 + $0x218] sm:$0xff]  ;;  %10070 = vst [vmem:[#allocation132_spill] sm:$0xff] %v7253_v23 }
 0x3a5   : > { %v1693_v0 = vpop.f32.mrf.mxu2  ;;  %10069 = vst [vmem:[#allocation131_spill] sm:$0xff] %v7251_v54  ;;  %2213 = vmatpush.msra.mxu0 %v7253_v23  ;;  %2284 = vmatpush.msra.mxu3 %v7251_v54  ;;  %v7281_v54 = vld [vmem:[#allocation9 + $0x118] sm:$0xff]  ;;  %v7318_v23 = vld [vmem:[#allocation9 + $0x50] sm:$0xff] }
 0x3a6   : > { %v1694_v19 = vadd.f32 %v1693_v0, %v9950_v45  ;;  %4959 = vtanh.f32 %v1797_v12  ;;  %10077 = vst [vmem:[#allocation139_spill] sm:$0xff] %v7281_v54 }
 0x3a7   : > { %v1733_v21 = vpop.f32.mrf.mxu0  ;;  %2214 = vmatpush.msra.mxu0 %v7264_v62  ;;  %10079 = vst [vmem:[#allocation141_spill] sm:$0xff] %v7288_v42  ;;  %v7311_v62 = vld [vmem:[#allocation9 + $0x70] sm:$0xff] }
 0x3a8   : > { %v1714_v0 = vadd.f32 %v1713_v56, %v1694_v19  ;;  %v1734_v45 = vadd.f32 %v1733_v21, %v9953_v44  ;;  %v7272_v21 = vld [vmem:[#allocation9 + $0x130] sm:$0xff]  ;;  %v7274_v19 = vld [vmem:[#allocation9 + $0x138] sm:$0xff]  ;;  %10085 = vst [vmem:[#allocation147_spill] sm:$0xff] %v7311_v62 }
 0x3a9   : > { %10074 = vst [vmem:[#allocation136_spill] sm:$0xff] %v7272_v21  ;;  %2215 = vmatpush.msra.mxu0 %v7272_v21  ;;  %2255 = vmatpush.msra.mxu2 %v7274_v19  ;;  %v7292_v21 = vld [vmem:[#allocation9 + $0xd0] sm:$0xff] }
 0x3aa   : > { %v1801_v12 = vmul.f32 0.5, %v1714_v0  ;;  %v1754_v56 = vadd.f32 %v1753_v26, %v1734_v45  ;;  %10075 = vst [vmem:[#allocation137_spill] sm:$0xff] %v7274_v19  ;;  %v1793_v0 = vpop.f32.mrf.mxu3 }
 0x3ab   : > { %2216 = vmatpush.msra.mxu0 %v7279_v50  ;;  %2256 = vmatpush.msra.mxu2 %v7281_v54  ;;  %10080 = vst [vmem:[#allocation142_spill] sm:$0xff] %v7292_v21  ;;  %v1827_v54 = vld [vmem:[%s7296_s18 + $0x8] sm:$0xff] }
 0x3ac   : > { %4961 = vtanh.f32 %v1801_v12  ;;  %v4960_v45 = vpop.eup %4959  ;;  %v7286_v12 = vld [vmem:[#allocation9 + $0xf0] sm:$0xff]  ;;  %10087 = vst [vmem:[#allocation149_spill] sm:$0xff] %v7318_v23 }
 0x3ad   : > { %v1773_v44 = vpop.f32.mrf.mxu2  ;;  %4963 = vtanh.f32 %v1754_v56  ;;  %10078 = vst [vmem:[#allocation140_spill] sm:$0xff] %v7286_v12  ;;  %2217 = vmatpush.msra.mxu0 %v7286_v12  ;;  %2257 = vmatpush.msra.mxu2 %v7288_v42  ;;  %v1799_v19 = vmul.f32 0.5, %v4960_v45  ;;  %v7294_v56 = vld [vmem:[#allocation9 + $0xd8] sm:$0xff]  ;;  %v7301_v12 = vld [vmem:[#allocation9 + $0xb0] sm:$0xff] }
 0x3ae   : > { %v1774_v26 = vadd.f32 %v1773_v44, %v9954_v25  ;;  %10081 = vst [vmem:[#allocation143_spill] sm:$0xff] %v7294_v56  ;;  %v7303_v42 = vld [vmem:[#allocation9 + $0xb8] sm:$0xff]  ;;  %v7305_v45 = vld [vmem:[#allocation9 + $0x90] sm:$0xff] }
 0x3af   : > { %2218 = vmatpush.msra.mxu0 %v7292_v21  ;;  %2258 = vmatpush.msra.mxu2 %v7294_v56  ;;  %10082 = vst [vmem:[#allocation144_spill] sm:$0xff] %v7301_v12  ;;  %v1800_v17 = vadd.f32 0.5, %v1799_v19 }
 0x3b0   : > { %v1794_v58 = vadd.f32 %v1793_v0, %v1774_v26  ;;  %v1932_v0 = vpop.f32.mrf.mxu1  ;;  %10083 = vst [vmem:[#allocation145_spill] sm:$0xff] %v7305_v45 }
 0x3b1   : > { %2219 = vmatpush.msra.mxu0 %v7301_v12  ;;  %2259 = vmatpush.msra.mxu2 %v7303_v42  ;;  %v1976_v56 = vadd.f32 %v1932_v0, %v1827_v54  ;;  %v7320_v12 = vld [vmem:[#allocation9 + $0x58] sm:$0xff] }
 0x3b2   : > { %v4962_v44 = vpop.eup %4961  ;;  %v1806_v25 = vmul.f32 0.5, %v1794_v58  ;;  %v7309_v58 = vld [vmem:[#allocation9 + $0x98] sm:$0xff]  ;;  %10088 = vst [vmem:[#allocation150_spill] sm:$0xff] %v7320_v12 }
 0x3b3   : > { %v1803_v26 = vmul.f32 0.5, %v4962_v44  ;;  %v4964_v50 = vpop.eup %4963  ;;  %10084 = vst [vmem:[#allocation146_spill] sm:$0xff] %v7309_v58  ;;  %v7313_v44 = vld [vmem:[#allocation9 + $0x78] sm:$0xff]  ;;  %2220 = vmatpush.msra.mxu0 %v7305_v45  ;;  %2260 = vmatpush.msra.mxu2 %v7309_v58  ;;  %v1984_v58 = vmul.f32 0.5, %v1976_v56  ;;  %v1828_v45 = vld [vmem:[%s7296_s18 + $0x10] sm:$0xff] }
 0x3b4   : > { %4965 = vtanh.f32 %v1806_v25  ;;  %10086 = vst [vmem:[#allocation148_spill] sm:$0xff] %v7313_v44  ;;  %v1811_v25 = vmul.f32 %v4964_v50, %v1800_v17  ;;  %v7328_v54 = vld [vmem:[#allocation9 + $0x38] sm:$0xff] }
 0x3b5   : > { %v1804_v21 = vadd.f32 0.5, %v1803_v26  ;;  %2221 = vmatpush.msra.mxu0 %v7311_v62  ;;  %2261 = vmatpush.msra.mxu2 %v7313_v44  ;;  %v7326_v26 = vld [vmem:[#allocation9 + $0x30] sm:$0xff]  ;;  %v7335_v17 = vld [vmem:[#allocation9 + $0x18] sm:$0xff] }
 0x3b6   : > { %10090 = vst [vmem:[#allocation152_spill] sm:$0xff] %v7326_v26 }
 0x3b7   : > { %v1810_v39 = vmul.f32 %v1804_v21, %v6742_v34  ;;  %2222 = vmatpush.msra.mxu0 %v7318_v23  ;;  %2262 = vmatpush.msra.mxu2 %v7320_v12  ;;  %v7333_v34 = vld [vmem:[#allocation9 + $0x10] sm:$0xff]  ;;  %10092 = vst [vmem:[#allocation154_spill] sm:$0xff] %v7335_v17 }
 0x3b8   : > { %10091 = vst [vmem:[#allocation153_spill] sm:$0xff] %v7333_v34 }
 0x3b9   : > { %v7324_v19 = vadd.f32 %v1811_v25, %v1810_v39  ;;  %2223 = vmatpush.msra.mxu0 %v7326_v26  ;;  %2263 = vmatpush.msra.mxu2 %v7328_v54  ;;  %v1826_v39 = vld [vmem:[%s7296_s18] sm:$0xff]  ;;  %v1829_v25 = vld [vmem:[%s7296_s18 + $0x18] sm:$0xff] }
 0x3ba   : > { %v4966_v0 = vpop.eup %4965 }
 0x3bb   : > { %10089 = vst [vmem:[#allocation151_spill] sm:$0xff] %v7324_v19  ;;  %4967 = vtanh.f32 %v7324_v19  ;;  %v1808_v50 = vmul.f32 0.5, %v4966_v0  ;;  %2224 = vmatpush.msra.mxu0 %v7333_v34  ;;  %2264 = vmatpush.msra.mxu2 %v7335_v17  ;;  %v1972_v19 = vpop.f32.mrf.mxu3 }
 0x3bc   : > { %4969 = vtanh.f32 %v1984_v58  ;;  %v1978_v62 = vadd.f32 %v1972_v19, %v1829_v25  ;;  %v10134_v25 = vld [vmem:[#allocation34_spill] sm:$0xff] }
 0x3bd   : > { %v1809_v56 = vadd.f32 0.5, %v1808_v50 }
 0x3be   : > { %v1989_v34 = vmul.f32 0.5, %v1978_v62  ;;  %v10125_v62 = vld [vmem:[#allocation24_spill] sm:$0xff] }
 0x3bf   : > { %v1912_v21 = vpop.f32.mrf.mxu0 }
 0x3c0   : > { %v1975_v12 = vadd.f32 %v1912_v21, %v1826_v39  ;;  %v10131_v39 = vld [vmem:[#allocation35_spill] sm:$0xff]  ;;  %v10132_v21 = vld [vmem:[#allocation92_spill] sm:$0xff] }
 0x3c1   : > { %v4968_v23 = vpop.eup %4967 }
 0x3c2   : > { %v1814_v44 = vmul.f32 %v4968_v23, %v1809_v56  ;;  %v1980_v0 = vmul.f32 0.5, %v1975_v12  ;;  %v4970_v26 = vpop.eup %4969  ;;  %v10133_v56 = vld [vmem:[#allocation99_spill] sm:$0xff] }
 0x3c3   : > { %v1986_v50 = vmul.f32 0.5, %v4970_v26  ;;  %v10128_v26 = vld [vmem:[#allocation25_spill] sm:$0xff] }
 0x3c4   : > { %4843 = vst [vmem:[%s6749_s5 + $0x8] sm:$0xff] %v1814_v44  ;;  %4971 = vtanh.f32 %v1980_v0  ;;  %2165 = vmatmul.f32.vlgmr.msrb.gmra.mxu1 %v1814_v44  ;;  %2205 = vmatmul.f32.vlgmr.msrb.gmra.mxu3 %v1814_v44  ;;  %v10135_v0 = vld [vmem:[#allocation104_spill] sm:$0xff] }
 0x3c5   : > { %v1952_v58 = vpop.f32.mrf.mxu2  ;;  %2408 = vmatpush.msrb.mxu1 %v6751_v5  ;;  %2448 = vmatpush.msrb.mxu3 %v6753_v18  ;;  %v1987_v12 = vadd.f32 0.5, %v1986_v50  ;;  %v10137_v50 = vld [vmem:[#allocation106_spill] sm:$0xff] }
 0x3c6   : > { %v1977_v17 = vadd.f32 %v1952_v58, %v1828_v45  ;;  %v10126_v45 = vld [vmem:[#allocation105_spill] sm:$0xff]  ;;  %v10136_v58 = vld [vmem:[#allocation36_spill] sm:$0xff] }
 0x3c7   : > { %2409 = vmatpush.msrb.mxu1 %v6756_v9  ;;  %2449 = vmatpush.msrb.mxu3 %v6758_v30  ;;  %v1993_v9 = vmul.f32 %v1987_v12, %v6797_v8  ;;  %v10099_v8 = vld [vmem:[#allocation79_spill] sm:$0xff]  ;;  %v10139_v12 = vld [vmem:[#allocation41_spill] sm:$0xff] }
 0x3c8   : > { %4973 = vtanh.f32 %v1977_v17  ;;  %v10130_v17 = vld [vmem:[#allocation107_spill] sm:$0xff] }
 0x3c9   : > { %2410 = vmatpush.msrb.mxu1 %v6762_v38  ;;  %2450 = vmatpush.msrb.mxu3 %v6764_v20  ;;  %4975 = vtanh.f32 %v1989_v34  ;;  %v10129_v34 = vld [vmem:[#allocation26_spill] sm:$0xff] }
 0x3ca   : > { %v4972_v23 = vpop.eup %4971 }
 0x3cb   : > { %v1982_v19 = vmul.f32 0.5, %v4972_v23  ;;  %2411 = vmatpush.msrb.mxu1 %v6768_v40  ;;  %2451 = vmatpush.msrb.mxu3 %v6770_v48  ;;  %v10138_v23 = vld [vmem:[#allocation110_spill] sm:$0xff] }
 0x3cc   : > { %2245 = vmatmul.f32.vlgmr.msra.gmra.mxu1 %v1814_v44  ;;  %2285 = vmatmul.f32.vlgmr.msra.gmra.mxu3 %v1814_v44  ;;  %v10127_v44 = vld [vmem:[#allocation33_spill] sm:$0xff] }
 0x3cd   : > { %v1983_v5 = vadd.f32 0.5, %v1982_v19  ;;  %2412 = vmatpush.msrb.mxu1 %v6774_v51  ;;  %2452 = vmatpush.msrb.mxu3 %v6776_v47  ;;  %v10140_v19 = vld [vmem:[#allocation109_spill] sm:$0xff] }
 0x3ce   : > { %v4974_v18 = vpop.eup %4973 }
 0x3cf   : > { %v1994_v30 = vmul.f32 %v4974_v18, %v1983_v5  ;;  %2413 = vmatpush.msrb.mxu1 %v6780_v15  ;;  %2453 = vmatpush.msrb.mxu3 %v6782_v55  ;;  %v4976_v38 = vpop.eup %4975  ;;  %v10093_v15 = vld [vmem:[#allocation68_spill] sm:$0xff]  ;;  %v10094_v55 = vld [vmem:[#allocation74_spill] sm:$0xff]  ;;  %v10141_v5 = vld [vmem:[#allocation37_spill] sm:$0xff] }
 0x3d0   : > { %v1991_v40 = vmul.f32 0.5, %v4976_v38  ;;  %v10142_v18 = vld [vmem:[#allocation44_spill] sm:$0xff] }
 0x3d1   : > { %v7358_v20 = vadd.f32 %v1994_v30, %v1993_v9  ;;  %2414 = vmatpush.msrb.mxu1 %v6786_v57  ;;  %2454 = vmatpush.msrb.mxu3 %v6788_v24  ;;  %v10095_v57 = vld [vmem:[#allocation71_spill] sm:$0xff]  ;;  %v10096_v24 = vld [vmem:[#allocation78_spill] sm:$0xff]  ;;  %v10143_v9 = vld [vmem:[#allocation45_spill] sm:$0xff] }
 0x3d2   : > { %v1992_v48 = vadd.f32 0.5, %v1991_v40  ;;  %v10144_v30 = vld [vmem:[#allocation38_spill] sm:$0xff]  ;;  %v10145_v38 = vld [vmem:[#allocation108_spill] sm:$0xff] }
 0x3d3   : > { %4977 = vtanh.f32 %v7358_v20  ;;  %2415 = vmatpush.msrb.mxu1 %v6793_v16  ;;  %2455 = vmatpush.msrb.mxu3 %v6795_v53  ;;  %v10097_v16 = vld [vmem:[#allocation75_spill] sm:$0xff]  ;;  %v10098_v53 = vld [vmem:[#allocation82_spill] sm:$0xff]  ;;  %v10146_v40 = vld [vmem:[#allocation48_spill] sm:$0xff] }
 0x3d5   : > { %2416 = vmatpush.msrb.mxu1 %v6801_v3  ;;  %2456 = vmatpush.msrb.mxu3 %v6803_v6  ;;  %v10100_v3 = vld [vmem:[#allocation86_spill] sm:$0xff]  ;;  %v10101_v6 = vld [vmem:[#allocation83_spill] sm:$0xff] }
 0x3d7   : > { %2417 = vmatpush.msrb.mxu1 %v6808_v41  ;;  %2457 = vmatpush.msrb.mxu3 %v6810_v59  ;;  %v10102_v41 = vld [vmem:[#allocation90_spill] sm:$0xff]  ;;  %v10103_v59 = vld [vmem:[#allocation27_spill] sm:$0xff] }
 0x3d9   : > { %v4978_v51 = vpop.eup %4977  ;;  %2418 = vmatpush.msrb.mxu1 %v6814_v13  ;;  %2458 = vmatpush.msrb.mxu3 %v6816_v22  ;;  %v10104_v13 = vld [vmem:[#allocation17_spill] sm:$0xff]  ;;  %v10105_v22 = vld [vmem:[#allocation18_spill] sm:$0xff] }
 0x3da   : > { %v7371_v47 = vmul.f32 %v4978_v51, %v1992_v48  ;;  %v10147_v48 = vld [vmem:[#allocation49_spill] sm:$0xff]  ;;  %v10148_v51 = vld [vmem:[#allocation39_spill] sm:$0xff] }
 0x3db   : > { %2419 = vmatpush.msrb.mxu1 %v6820_v14  ;;  %2459 = vmatpush.msrb.mxu3 %v6822_v35  ;;  %v10106_v14 = vld [vmem:[#allocation28_spill] sm:$0xff]  ;;  %v10107_v35 = vld [vmem:[#allocation97_spill] sm:$0xff] }
 0x3dc   : > { %2145 = vmatmul.f32.vlgmr.msrb.gmra.mxu0 %v7371_v47  ;;  %2185 = vmatmul.f32.vlgmr.msrb.gmra.mxu2 %v7371_v47 }
 0x3dd   : > { %2388 = vmatpush.msrb.mxu0 %v6828_v28  ;;  %2428 = vmatpush.msrb.mxu2 %v6830_v32  ;;  %v10108_v28 = vld [vmem:[#allocation19_spill] sm:$0xff]  ;;  %v10109_v32 = vld [vmem:[#allocation20_spill] sm:$0xff] }
 0x3de   : > { %2420 = vmatpush.msrb.mxu1 %v6834_v27  ;;  %2460 = vmatpush.msrb.mxu3 %v6836_v33  ;;  %v10110_v27 = vld [vmem:[#allocation101_spill] sm:$0xff] }
 0x3df   : > { %2389 = vmatpush.msrb.mxu0 %v6840_v36  ;;  %2429 = vmatpush.msrb.mxu2 %v6842_v43  ;;  %v10111_v33 = vld [vmem:[#allocation29_spill] sm:$0xff]  ;;  %v10112_v36 = vld [vmem:[#allocation87_spill] sm:$0xff]  ;;  %v10113_v43 = vld [vmem:[#allocation94_spill] sm:$0xff] }
 0x3e0   : > { %2421 = vmatpush.msrb.mxu1 %v6846_v60  ;;  %2461 = vmatpush.msrb.mxu3 %v6848_v49  ;;  %v10114_v60 = vld [vmem:[#allocation30_spill] sm:$0xff]  ;;  %v10115_v49 = vld [vmem:[#allocation100_spill] sm:$0xff] }
 0x3e1   : > { %2390 = vmatpush.msrb.mxu0 %v6850_v29  ;;  %2430 = vmatpush.msrb.mxu2 %v6852_v2  ;;  %v10116_v29 = vld [vmem:[#allocation21_spill] sm:$0xff]  ;;  %v10117_v2 = vld [vmem:[#allocation22_spill] sm:$0xff] }
 0x3e2   : > { %2422 = vmatpush.msrb.mxu1 %v6858_v37  ;;  %2462 = vmatpush.msrb.mxu3 %v6860_v31  ;;  %v10118_v37 = vld [vmem:[#allocation103_spill] sm:$0xff] }
 0x3e3   : > { %2391 = vmatpush.msrb.mxu0 %v6862_v61  ;;  %2431 = vmatpush.msrb.mxu2 %v6864_v46  ;;  %v10119_v31 = vld [vmem:[#allocation31_spill] sm:$0xff]  ;;  %v10120_v61 = vld [vmem:[#allocation88_spill] sm:$0xff] }
 0x3e4   : > { %2225 = vmatmul.f32.vlgmr.msra.gmra.mxu0 %v7371_v47  ;;  %2265 = vmatmul.f32.vlgmr.msra.gmra.mxu2 %v7371_v47  ;;  %v10121_v46 = vld [vmem:[#allocation96_spill] sm:$0xff] }
 0x3e5   : > { %2392 = vmatpush.msrb.mxu0 %v10093_v15  ;;  %2432 = vmatpush.msrb.mxu2 %v6872_v52  ;;  %v10122_v52 = vld [vmem:[#allocation32_spill] sm:$0xff] }
 0x3e6   : > { %2423 = vmatpush.msrb.mxu1 %v10094_v55  ;;  %2463 = vmatpush.msrb.mxu3 %v10095_v57  ;;  %v10150_v15 = vld [vmem:[#allocation52_spill] sm:$0xff]  ;;  %v10151_v55 = vld [vmem:[#allocation53_spill] sm:$0xff]  ;;  %v10152_v57 = vld [vmem:[#allocation42_spill] sm:$0xff] }
 0x3e7   : > { %2393 = vmatpush.msrb.mxu0 %v10096_v24  ;;  %2433 = vmatpush.msrb.mxu2 %v10097_v16  ;;  %v10153_v24 = vld [vmem:[#allocation43_spill] sm:$0xff]  ;;  %v10154_v16 = vld [vmem:[#allocation56_spill] sm:$0xff] }
 0x3e8   : > { %2424 = vmatmul.f32.vlgmr.msrb.gmra.mxu1 %v7371_v47  ;;  %2464 = vmatmul.f32.vlgmr.msrb.gmra.mxu3 %v7371_v47 }
 0x3e9   : > { %2394 = vmatpush.msrb.mxu0 %v10098_v53  ;;  %2434 = vmatpush.msrb.mxu2 %v10099_v8  ;;  %v10155_v53 = vld [vmem:[#allocation57_spill] sm:$0xff]  ;;  %v10156_v8 = vld [vmem:[#allocation46_spill] sm:$0xff] }
 0x3ea   : > { %2642 = vmatpush.msra.mxu1 %v6898_v1  ;;  %2682 = vmatpush.msra.mxu3 %v10100_v3  ;;  %v10124_v1 = vld [vmem:[#allocation23_spill] sm:$0xff] }
 0x3eb   : > { %2395 = vmatpush.msrb.mxu0 %v10101_v6  ;;  %2435 = vmatpush.msrb.mxu2 %v10102_v41  ;;  %v10157_v3 = vld [vmem:[#allocation47_spill] sm:$0xff]  ;;  %v10158_v6 = vld [vmem:[#allocation60_spill] sm:$0xff]  ;;  %v10159_v41 = vld [vmem:[#allocation61_spill] sm:$0xff] }
 0x3ec   : > { %2643 = vmatpush.msra.mxu1 %v6964_v63  ;;  %2683 = vmatpush.msra.mxu3 %v10103_v59  ;;  %v10123_v63 = vld [vmem:[#allocation102_spill] sm:$0xff] }
 0x3ed   : > { %2396 = vmatpush.msrb.mxu0 %v10104_v13  ;;  %2436 = vmatpush.msrb.mxu2 %v10105_v22  ;;  %v10160_v59 = vld [vmem:[#allocation50_spill] sm:$0xff]  ;;  %v10161_v13 = vld [vmem:[#allocation51_spill] sm:$0xff]  ;;  %v10162_v22 = vld [vmem:[#allocation64_spill] sm:$0xff] }
 0x3ee   : > { %2644 = vmatpush.msra.mxu1 %v10106_v14  ;;  %2684 = vmatpush.msra.mxu3 %v10107_v35  ;;  %v10163_v14 = vld [vmem:[#allocation65_spill] sm:$0xff]  ;;  %v10164_v35 = vld [vmem:[#allocation54_spill] sm:$0xff] }
 0x3ef   : > { %2397 = vmatpush.msrb.mxu0 %v10108_v28  ;;  %2437 = vmatpush.msrb.mxu2 %v10109_v32  ;;  %v10165_v28 = vld [vmem:[#allocation55_spill] sm:$0xff]  ;;  %v10166_v32 = vld [vmem:[#allocation69_spill] sm:$0xff] }
 0x3f0   : > { %2645 = vmatpush.msra.mxu1 %v10110_v27  ;;  %2685 = vmatpush.msra.mxu3 %v10111_v33  ;;  %v10167_v27 = vld [vmem:[#allocation70_spill] sm:$0xff] }
 0x3f1   : > { %2398 = vmatpush.msrb.mxu0 %v10112_v36  ;;  %2438 = vmatpush.msrb.mxu2 %v10113_v43  ;;  %v10168_v33 = vld [vmem:[#allocation58_spill] sm:$0xff]  ;;  %v10169_v36 = vld [vmem:[#allocation59_spill] sm:$0xff]  ;;  %v10170_v43 = vld [vmem:[#allocation76_spill] sm:$0xff] }
 0x3f2   : > { %2646 = vmatpush.msra.mxu1 %v10114_v60  ;;  %2686 = vmatpush.msra.mxu3 %v10115_v49  ;;  %v10171_v60 = vld [vmem:[#allocation77_spill] sm:$0xff]  ;;  %v10172_v49 = vld [vmem:[#allocation62_spill] sm:$0xff] }
 0x3f3   : > { %2399 = vmatpush.msrb.mxu0 %v10116_v29  ;;  %2439 = vmatpush.msrb.mxu2 %v10117_v2  ;;  %v10173_v29 = vld [vmem:[#allocation63_spill] sm:$0xff]  ;;  %v10174_v2 = vld [vmem:[#allocation84_spill] sm:$0xff] }
 0x3f4   : > { %2647 = vmatpush.msra.mxu1 %v10118_v37  ;;  %2687 = vmatpush.msra.mxu3 %v10119_v31  ;;  %v10175_v37 = vld [vmem:[#allocation85_spill] sm:$0xff]  ;;  %v10176_v31 = vld [vmem:[#allocation66_spill] sm:$0xff] }
 0x3f5   : > { %2400 = vmatpush.msrb.mxu0 %v10120_v61  ;;  %2440 = vmatpush.msrb.mxu2 %v10121_v46  ;;  %v10177_v61 = vld [vmem:[#allocation67_spill] sm:$0xff]  ;;  %v10178_v46 = vld [vmem:[#allocation93_spill] sm:$0xff] }
 0x3f6   : > { %2648 = vmatpush.msra.mxu1 %v10122_v52  ;;  %2688 = vmatpush.msra.mxu3 %v10123_v63  ;;  %v10179_v52 = vld [vmem:[#allocation72_spill] sm:$0xff]  ;;  %v10180_v63 = vld [vmem:[#allocation73_spill] sm:$0xff] }
 0x3f7   : > { %2401 = vmatpush.msrb.mxu0 %v10124_v1  ;;  %2441 = vmatpush.msrb.mxu2 %v10125_v62  ;;  %v10181_v1 = vld [vmem:[#allocation111_spill] sm:$0xff]  ;;  %v10182_v62 = vld [vmem:[#allocation80_spill] sm:$0xff] }
 0x3f8   : > { %2649 = vmatpush.msra.mxu1 %v10126_v45  ;;  %2689 = vmatpush.msra.mxu3 %v10127_v44  ;;  %v10183_v45 = vld [vmem:[#allocation81_spill] sm:$0xff]  ;;  %v10184_v44 = vld [vmem:[#allocation114_spill] sm:$0xff] }
 0x3f9   : > { %2402 = vmatpush.msrb.mxu0 %v10128_v26  ;;  %2442 = vmatpush.msrb.mxu2 %v10129_v34  ;;  %v10185_v26 = vld [vmem:[#allocation89_spill] sm:$0xff]  ;;  %v10187_v34 = vld [vmem:[#allocation115_spill] sm:$0xff] }
 0x3fa   : > { %2650 = vmatpush.msra.mxu1 %v10130_v17  ;;  %2690 = vmatpush.msra.mxu3 %v10131_v39  ;;  %v10188_v17 = vld [vmem:[#allocation116_spill] sm:$0xff]  ;;  %v10189_v39 = vld [vmem:[#allocation95_spill] sm:$0xff] }
 0x3fb   : > { %2403 = vmatpush.msrb.mxu0 %v10132_v21  ;;  %2443 = vmatpush.msrb.mxu2 %v10133_v56  ;;  %v10191_v21 = vld [vmem:[#allocation117_spill] sm:$0xff]  ;;  %v10192_v56 = vld [vmem:[#allocation118_spill] sm:$0xff] }
 0x3fc   : > { %2404 = vmatmul.f32.vlgmr.msrb.gmra.mxu0 %v7371_v47  ;;  %2444 = vmatmul.f32.vlgmr.msrb.gmra.mxu2 %v7371_v47  ;;  %v10149_v47 = vld [vmem:[#allocation40_spill] sm:$0xff] }
 0x3fd   : > { %2622 = vmatpush.msra.mxu0 %v10134_v25  ;;  %2662 = vmatpush.msra.mxu2 %v10135_v0  ;;  %v10193_v25 = vld [vmem:[#allocation119_spill] sm:$0xff]  ;;  %v10195_v0 = vld [vmem:[#allocation112_spill] sm:$0xff] }
 0x3fe   : > { %2651 = vmatpush.msra.mxu1 %v10136_v58  ;;  %2691 = vmatpush.msra.mxu3 %v10137_v50  ;;  %v10196_v58 = vld [vmem:[#allocation113_spill] sm:$0xff] }
 0x3ff   : > { %2623 = vmatpush.msra.mxu0 %v10138_v23  ;;  %2663 = vmatpush.msra.mxu2 %v10139_v12  ;;  %v10197_v50 = vld [vmem:[#allocation121_spill] sm:$0xff]  ;;  %v10198_v23 = vld [vmem:[#allocation122_spill] sm:$0xff] }
 0x400   : > { %2652 = vmatpush.msra.mxu1 %v10140_v19  ;;  %2692 = vmatpush.msra.mxu3 %v10141_v5  ;;  %v10199_v12 = vld [vmem:[#allocation125_spill] sm:$0xff]  ;;  %v10200_v19 = vld [vmem:[#allocation126_spill] sm:$0xff] }
 0x401   : > { %2624 = vmatpush.msra.mxu0 %v10142_v18  ;;  %2664 = vmatpush.msra.mxu2 %v10143_v9  ;;  %v10201_v5 = vld [vmem:[#allocation129_spill] sm:$0xff]  ;;  %v10202_v18 = vld [vmem:[#allocation132_spill] sm:$0xff] }
 0x402   : > { %2653 = vmatpush.msra.mxu1 %v10144_v30  ;;  %2693 = vmatpush.msra.mxu3 %v10145_v38  ;;  %v10203_v9 = vld [vmem:[#allocation133_spill] sm:$0xff]  ;;  %v10204_v30 = vld [vmem:[#allocation134_spill] sm:$0xff]  ;;  %v10205_v38 = vld [vmem:[#allocation135_spill] sm:$0xff] }
 0x403   : > { %2625 = vmatpush.msra.mxu0 %v10146_v40  ;;  %2665 = vmatpush.msra.mxu2 %v10147_v48  ;;  %v10206_v40 = vld [vmem:[#allocation136_spill] sm:$0xff]  ;;  %v10207_v48 = vld [vmem:[#allocation137_spill] sm:$0xff] }
 0x404   : > { %2654 = vmatpush.msra.mxu1 %v10148_v51  ;;  %2694 = vmatpush.msra.mxu3 %v10149_v47  ;;  %v10208_v51 = vld [vmem:[#allocation138_spill] sm:$0xff]  ;;  %v10209_v47 = vld [vmem:[#allocation139_spill] sm:$0xff] }
 0x405   : > { %2626 = vmatpush.msra.mxu0 %v10150_v15  ;;  %2666 = vmatpush.msra.mxu2 %v10151_v55  ;;  %v10210_v15 = vld [vmem:[#allocation140_spill] sm:$0xff]  ;;  %v10212_v55 = vld [vmem:[#allocation142_spill] sm:$0xff] }
 0x406   : > { %2655 = vmatpush.msra.mxu1 %v10152_v57  ;;  %2695 = vmatpush.msra.mxu3 %v10153_v24  ;;  %v10213_v57 = vld [vmem:[#allocation143_spill] sm:$0xff]  ;;  %v10214_v24 = vld [vmem:[#allocation144_spill] sm:$0xff] }
 0x407   : > { %2627 = vmatpush.msra.mxu0 %v10154_v16  ;;  %2667 = vmatpush.msra.mxu2 %v10155_v53  ;;  %v10215_v16 = vld [vmem:[#allocation145_spill] sm:$0xff]  ;;  %v10216_v53 = vld [vmem:[#allocation146_spill] sm:$0xff] }
 0x408   : > { %2656 = vmatpush.msra.mxu1 %v10156_v8  ;;  %2696 = vmatpush.msra.mxu3 %v10157_v3  ;;  %v10217_v8 = vld [vmem:[#allocation147_spill] sm:$0xff]  ;;  %v10218_v3 = vld [vmem:[#allocation148_spill] sm:$0xff] }
 0x409   : > { %2628 = vmatpush.msra.mxu0 %v10158_v6  ;;  %2668 = vmatpush.msra.mxu2 %v10159_v41  ;;  %v10219_v6 = vld [vmem:[#allocation149_spill] sm:$0xff]  ;;  %v10220_v41 = vld [vmem:[#allocation150_spill] sm:$0xff] }
 0x40a   : > { %2657 = vmatpush.msra.mxu1 %v10160_v59  ;;  %2697 = vmatpush.msra.mxu3 %v10161_v13  ;;  %v10221_v59 = vld [vmem:[#allocation152_spill] sm:$0xff]  ;;  %v10222_v13 = vld [vmem:[#allocation153_spill] sm:$0xff] }
 0x40b   : > { %2629 = vmatpush.msra.mxu0 %v10162_v22  ;;  %2669 = vmatpush.msra.mxu2 %v10163_v14  ;;  %v10223_v22 = vld [vmem:[#allocation154_spill] sm:$0xff]  ;;  %v7539_v14 = vld [vmem:[#allocation9 + $0x2d8] sm:$0xff] }
 0x40c   : > { %2722 = vmatpush.msrb.mxu1 %v10164_v35  ;;  %2762 = vmatpush.msrb.mxu3 %v10165_v28  ;;  %v7543_v35 = vld [vmem:[#allocation9 + $0x2b0] sm:$0xff]  ;;  %v7545_v28 = vld [vmem:[#allocation9 + $0x2b8] sm:$0xff] }
 0x40d   : > { %2630 = vmatpush.msra.mxu0 %v10166_v32  ;;  %2670 = vmatpush.msra.mxu2 %v10167_v27  ;;  %v7551_v32 = vld [vmem:[#allocation9 + $0x298] sm:$0xff] }
 0x40e   : > { %2723 = vmatpush.msrb.mxu1 %v10168_v33  ;;  %2763 = vmatpush.msrb.mxu3 %v10169_v36  ;;  %v10224_v36 = vld [vmem:[#allocation13_spill] sm:$0xff] }
 0x40f   : > { %2631 = vmatpush.msra.mxu0 %v10170_v43  ;;  %2671 = vmatpush.msra.mxu2 %v10171_v60  ;;  %v7556_v60 = vld [vmem:[#allocation9 + $0x270] sm:$0xff] }
 0x410   : > { %2724 = vmatpush.msrb.mxu1 %v10172_v49  ;;  %2764 = vmatpush.msrb.mxu3 %v10173_v29  ;;  %v7558_v49 = vld [vmem:[#allocation9 + $0x278] sm:$0xff] }
 0x411   : > { %2632 = vmatpush.msra.mxu0 %v10174_v2  ;;  %2672 = vmatpush.msra.mxu2 %v10175_v37  ;;  %v10225_v2 = vld [vmem:[#allocation123_spill] sm:$0xff]  ;;  %v10226_v37 = vld [vmem:[#allocation124_spill] sm:$0xff] }
 0x412   : > { %2725 = vmatpush.msrb.mxu1 %v10176_v31  ;;  %2765 = vmatpush.msrb.mxu3 %v10177_v61 }
 0x413   : > { %2633 = vmatpush.msra.mxu0 %v7160_v10  ;;  %2673 = vmatpush.msra.mxu2 %v10178_v46  ;;  %v10186_v10 = vld [vmem:[#allocation91_spill] sm:$0xff] }
 0x414   : > { %2726 = vmatpush.msrb.mxu1 %v10179_v52  ;;  %2766 = vmatpush.msrb.mxu3 %v10180_v63  ;;  %v10227_v52 = vld [vmem:[#allocation127_spill] sm:$0xff]  ;;  %v10228_v63 = vld [vmem:[#allocation128_spill] sm:$0xff] }
 0x415   : > { %2634 = vmatpush.msra.mxu0 %v7172_v11  ;;  %2674 = vmatpush.msra.mxu2 %v10181_v1  ;;  %v10190_v11 = vld [vmem:[#allocation98_spill] sm:$0xff] }
 0x416   : > { %2727 = vmatpush.msrb.mxu1 %v10182_v62  ;;  %2767 = vmatpush.msrb.mxu3 %v10183_v45  ;;  %v10229_v1 = vld [vmem:[#allocation14_spill] sm:$0xff] }
 0x417   : > { %2635 = vmatpush.msra.mxu0 %v7184_v7  ;;  %2675 = vmatpush.msra.mxu2 %v10184_v44  ;;  %v10194_v7 = vld [vmem:[#allocation120_spill] sm:$0xff]  ;;  %v10230_v44 = vld [vmem:[#allocation130_spill] sm:$0xff] }
 0x418   : > { %2728 = vmatpush.msrb.mxu1 %v10185_v26  ;;  %2768 = vmatpush.msrb.mxu3 %v10186_v10  ;;  %v10231_v26 = vld [vmem:[#allocation131_spill] sm:$0xff] }
 0x419   : > { %2636 = vmatpush.msra.mxu0 %v10187_v34  ;;  %2676 = vmatpush.msra.mxu2 %v10188_v17  ;;  %v10232_v34 = vld [vmem:[#allocation15_spill] sm:$0xff] }
 0x41a   : > { %2729 = vmatpush.msrb.mxu1 %v10189_v39  ;;  %2769 = vmatpush.msrb.mxu3 %v10190_v11 }
 0x41b   : > { %2637 = vmatpush.msra.mxu0 %v10191_v21  ;;  %2677 = vmatpush.msra.mxu2 %v10192_v56 }
 0x41c   : > { %2730 = vmatpush.msrb.mxu1 %v10195_v0  ;;  %2770 = vmatpush.msrb.mxu3 %v10196_v58 }
 0x41d   : > { %2702 = vmatpush.msrb.mxu0 %v10193_v25  ;;  %2742 = vmatpush.msrb.mxu2 %v10194_v7  ;;  %v10233_v7 = vld [vmem:[#allocation16_spill] sm:$0xff] }
 0x41e   : > { %2771 = vmatpush.msrb.mxu3 %v7539_v14 }
 0x41f   : > { %2703 = vmatpush.msrb.mxu0 %v10197_v50  ;;  %2743 = vmatpush.msrb.mxu2 %v10198_v23 }
 0x420   : > { %2772 = vmatpush.msrb.mxu3 %v7545_v28 }
 0x421   : > { %2704 = vmatpush.msrb.mxu0 %v10199_v12  ;;  %2744 = vmatpush.msrb.mxu2 %v10200_v19 }
 0x422   : > { %2773 = vmatpush.msrb.mxu3 %v7551_v32 }
 0x423   : > { %2705 = vmatpush.msrb.mxu0 %v7239_v4  ;;  %2745 = vmatpush.msrb.mxu2 %v10201_v5  ;;  %v10211_v4 = vld [vmem:[#allocation141_spill] sm:$0xff] }
 0x424   : > { %2774 = vmatpush.msrb.mxu3 %v7558_v49 }
 0x425   : > { %2706 = vmatpush.msrb.mxu0 %v10202_v18  ;;  %2746 = vmatpush.msrb.mxu2 %v10203_v9  ;;  %v2320_v18 = vld [vmem:[%s2318_s22 + $0x8] sm:$0xff] }
 0x426   : > { %2775 = vmatpush.msrb.mxu3 %v10226_v37  ;;  %v7581_v37 = vld [vmem:[#allocation7 + $0x1c8] sm:$0xff] }
 0x427   : > { %2707 = vmatpush.msrb.mxu0 %v10204_v30  ;;  %2747 = vmatpush.msrb.mxu2 %v10205_v38 }
 0x428   : > { %2776 = vmatpush.msrb.mxu3 %v10228_v63  ;;  %v7589_v63 = vld [vmem:[#allocation7 + $0x1b8] sm:$0xff] }
 0x429   : > { %2708 = vmatpush.msrb.mxu0 %v10206_v40  ;;  %2748 = vmatpush.msrb.mxu2 %v10207_v48 }
 0x42a   : > { %2777 = vmatpush.msrb.mxu3 %v10231_v26  ;;  %v7595_v26 = vld [vmem:[#allocation7 + $0x198] sm:$0xff] }
 0x42b   : > { %2709 = vmatpush.msrb.mxu0 %v10208_v51  ;;  %2749 = vmatpush.msrb.mxu2 %v10209_v47  ;;  %v10234_v51 = vld [vmem:[#allocation151_spill] sm:$0xff] }
 0x42d   : > { %2710 = vmatpush.msrb.mxu0 %v10210_v15  ;;  %2750 = vmatpush.msrb.mxu2 %v10211_v4 }
 0x42f   : > { %2711 = vmatpush.msrb.mxu0 %v10212_v55  ;;  %2751 = vmatpush.msrb.mxu2 %v10213_v57 }
 0x431   : > { %2712 = vmatpush.msrb.mxu0 %v10214_v24  ;;  %2752 = vmatpush.msrb.mxu2 %v7303_v42  ;;  %v7537_v42 = vld [vmem:[#allocation9 + $0x2d0] sm:$0xff] }
 0x432   : > { %2731 = vmatpush.msrb.mxu1 %v7537_v42 }
 0x433   : > { %2713 = vmatpush.msrb.mxu0 %v10215_v16  ;;  %2753 = vmatpush.msrb.mxu2 %v10216_v53  ;;  %v2319_v16 = vld [vmem:[%s2318_s22] sm:$0xff] }
 0x434   : > { %2732 = vmatpush.msrb.mxu1 %v7543_v35 }
 0x435   : > { %2714 = vmatpush.msrb.mxu0 %v10217_v8  ;;  %2754 = vmatpush.msrb.mxu2 %v10218_v3  ;;  %v2322_v3 = vld [vmem:[%s2318_s22 + $0x18] sm:$0xff] }
 0x437   : > { %2715 = vmatpush.msrb.mxu0 %v10219_v6  ;;  %2755 = vmatpush.msrb.mxu2 %v10220_v41 }
 0x439   : > { %2716 = vmatpush.msrb.mxu0 %v10221_v59  ;;  %2756 = vmatpush.msrb.mxu2 %v7328_v54  ;;  %v7549_v54 = vld [vmem:[#allocation9 + $0x290] sm:$0xff] }
 0x43a   : > { %2733 = vmatpush.msrb.mxu1 %v7549_v54 }
 0x43b   : > { %2717 = vmatpush.msrb.mxu0 %v10222_v13  ;;  %2757 = vmatpush.msrb.mxu2 %v10223_v22 }
 0x43c   : > { %2734 = vmatpush.msrb.mxu1 %v7556_v60 }
 0x43e   : > { %2735 = vmatpush.msrb.mxu1 %v10225_v2 }
 0x440   : > { %2736 = vmatpush.msrb.mxu1 %v10227_v52  ;;  %v7587_v52 = vld [vmem:[#allocation7 + $0x1a8] sm:$0xff] }
 0x441   : > { %v2166_v27 = vpop.f32.mrf.mxu1 }
 0x442   : > { %2737 = vmatpush.msrb.mxu1 %v10230_v44  ;;  %v7593_v44 = vld [vmem:[#allocation7 + $0x188] sm:$0xff] }
 0x447   : > { %v2206_v61 = vpop.f32.mrf.mxu3 }
 0x449   : > { %v2246_v39 = vpop.f32.mrf.mxu1 }
 0x44f   : > { %v2286_v58 = vpop.f32.mrf.mxu3 }
 0x459   : > { %v2146_v33 = vpop.f32.mrf.mxu0 }
 0x45a   : > { %v2147_v43 = vadd.f32 %v2146_v33, %v10224_v36  ;;  %v7578_v33 = vld [vmem:[#allocation7 + $0x1f8] sm:$0xff] }
 0x45c   : > { %v2167_v29 = vadd.f32 %v2166_v27, %v2147_v43  ;;  %v7576_v27 = vld [vmem:[#allocation7 + $0x1e8] sm:$0xff] }
 0x45e   : > { %v2290_v31 = vmul.f32 0.5, %v2167_v29  ;;  %v2321_v29 = vld [vmem:[%s2318_s22 + $0x10] sm:$0xff] }
 0x45f   : > { %v2186_v46 = vpop.f32.mrf.mxu2 }
 0x460   : > { %v2187_v62 = vadd.f32 %v2186_v46, %v10229_v1  ;;  %4979 = vtanh.f32 %v2290_v31  ;;  %v7583_v31 = vld [vmem:[#allocation7 + $0x1d8] sm:$0xff] }
 0x461   : > { %v2226_v45 = vpop.f32.mrf.mxu0 }
 0x462   : > { %v2207_v10 = vadd.f32 %v2206_v61, %v2187_v62  ;;  %v2227_v17 = vadd.f32 %v2226_v45, %v10232_v34 }
 0x464   : > { %v2294_v11 = vmul.f32 0.5, %v2207_v10  ;;  %v2247_v21 = vadd.f32 %v2246_v39, %v2227_v17  ;;  %v7599_v17 = vld [vmem:[#allocation7 + $0x168] sm:$0xff]  ;;  %v7601_v39 = vld [vmem:[#allocation7 + $0x178] sm:$0xff] }
 0x465   : > { %v2425_v9 = vpop.f32.mrf.mxu1 }
 0x466   : > { %4981 = vtanh.f32 %v2294_v11  ;;  %v4980_v25 = vpop.eup %4979  ;;  %v2469_v48 = vadd.f32 %v2425_v9, %v2320_v18  ;;  %v7620_v18 = vld [vmem:[#allocation7 + $0x118] sm:$0xff] }
 0x467   : > { %v2266_v56 = vpop.f32.mrf.mxu2  ;;  %4983 = vtanh.f32 %v2247_v21  ;;  %v2292_v23 = vmul.f32 0.5, %v4980_v25  ;;  %v7607_v25 = vld [vmem:[#allocation7 + $0x158] sm:$0xff] }
 0x468   : > { %v2267_v0 = vadd.f32 %v2266_v56, %v10233_v7  ;;  %v2477_v57 = vmul.f32 0.5, %v2469_v48  ;;  %v7605_v56 = vld [vmem:[#allocation7 + $0x148] sm:$0xff] }
 0x469   : > { %v2293_v38 = vadd.f32 0.5, %v2292_v23  ;;  %v7613_v23 = vld [vmem:[#allocation7 + $0x138] sm:$0xff]  ;;  %v7633_v48 = vld [vmem:[#allocation7 + $0xc8] sm:$0xff] }
 0x46a   : > { %v2287_v50 = vadd.f32 %v2286_v58, %v2267_v0 }
 0x46b   : > { %v2465_v6 = vpop.f32.mrf.mxu3 }
 0x46c   : > { %v4982_v12 = vpop.eup %4981  ;;  %v2299_v19 = vmul.f32 0.5, %v2287_v50  ;;  %v2471_v43 = vadd.f32 %v2465_v6, %v2322_v3  ;;  %v7611_v50 = vld [vmem:[#allocation7 + $0x128] sm:$0xff]  ;;  %v7655_v3 = vld [vmem:[#allocation7 + $0x1f0] sm:$0xff] }
 0x46d   : > { %v2296_v5 = vmul.f32 0.5, %v4982_v12  ;;  %v4984_v30 = vpop.eup %4983  ;;  %v7659_v6 = vld [vmem:[#allocation7 + $0x68] sm:$0xff] }
 0x46e   : > { %4985 = vtanh.f32 %v2299_v19  ;;  %v2304_v15 = vmul.f32 %v4984_v30, %v2293_v38  ;;  %v2482_v45 = vmul.f32 0.5, %v2471_v43  ;;  %v7626_v38 = vld [vmem:[#allocation7 + $0xe8] sm:$0xff]  ;;  %v7673_v43 = vld [vmem:[#allocation7 + $0x58] sm:$0xff] }
 0x46f   : > { %v2297_v40 = vadd.f32 0.5, %v2296_v5  ;;  %v7618_v5 = vld [vmem:[#allocation7 + $0x108] sm:$0xff] }
 0x471   : > { %v2303_v47 = vmul.f32 %v2297_v40, %v10234_v51  ;;  %v7628_v40 = vld [vmem:[#allocation7 + $0xf8] sm:$0xff] }
 0x472   : > { %v7635_v51 = vld [vmem:[#allocation7 + $0xd8] sm:$0xff] }
 0x473   : > { %v7573_v4 = vadd.f32 %v2304_v15, %v2303_v47  ;;  %v7639_v47 = vld [vmem:[#allocation7 + $0xa8] sm:$0xff]  ;;  %v7641_v15 = vld [vmem:[#allocation7 + $0xb8] sm:$0xff] }
 0x474   : > { %v4986_v55 = vpop.eup %4985 }
 0x475   : > { %4987 = vtanh.f32 %v7573_v4  ;;  %v2301_v24 = vmul.f32 0.5, %v4986_v55 }
 0x476   : > { %4989 = vtanh.f32 %v2477_v57  ;;  %v7645_v57 = vld [vmem:[#allocation7 + $0x88] sm:$0xff] }
 0x477   : > { %v2302_v8 = vadd.f32 0.5, %v2301_v24  ;;  %v7647_v24 = vld [vmem:[#allocation7 + $0x98] sm:$0xff] }
 0x479   : > { %v2405_v53 = vpop.f32.mrf.mxu0 }
 0x47a   : > { %v2468_v41 = vadd.f32 %v2405_v53, %v2319_v16 }
 0x47b   : > { %v4988_v59 = vpop.eup %4987 }
 0x47c   : > { %v2307_v13 = vmul.f32 %v4988_v59, %v2302_v8  ;;  %v2473_v22 = vmul.f32 0.5, %v2468_v41  ;;  %v4990_v2 = vpop.eup %4989  ;;  %v7653_v8 = vld [vmem:[#allocation7 + $0x1e0] sm:$0xff]  ;;  %v7661_v41 = vld [vmem:[#allocation7 + $0x78] sm:$0xff] }
 0x47d   : > { %v2479_v62 = vmul.f32 0.5, %v4990_v2  ;;  %v7665_v59 = vld [vmem:[#allocation7 + $0x1c0] sm:$0xff]  ;;  %v7677_v2 = vld [vmem:[#allocation7 + $0x1b0] sm:$0xff] }
 0x47e   : > { %4849 = vst [vmem:[%s6749_s5 + $0x10] sm:$0xff] %v2307_v13  ;;  %4991 = vtanh.f32 %v2473_v22  ;;  %2658 = vmatmul.f32.vlgmr.msra.gmra.mxu1 %v2307_v13  ;;  %2698 = vmatmul.f32.vlgmr.msra.gmra.mxu3 %v2307_v13  ;;  %v7671_v22 = vld [vmem:[#allocation7 + $0x48] sm:$0xff] }
 0x47f   : > { %v2445_v61 = vpop.f32.mrf.mxu2  ;;  %2901 = vmatpush.msra.mxu1 %v7576_v27  ;;  %2941 = vmatpush.msra.mxu3 %v7578_v33  ;;  %v2480_v11 = vadd.f32 0.5, %v2479_v62  ;;  %v7687_v62 = vld [vmem:[#allocation7 + $0x180] sm:$0xff] }
 0x480   : > { %v2470_v46 = vadd.f32 %v2445_v61, %v2321_v29  ;;  %v7675_v29 = vld [vmem:[#allocation7 + $0x1a0] sm:$0xff]  ;;  %v7683_v61 = vld [vmem:[#allocation7 + $0x28] sm:$0xff] }
 0x481   : > { %2902 = vmatpush.msra.mxu1 %v7581_v37  ;;  %2942 = vmatpush.msra.mxu3 %v7583_v31  ;;  %v2486_v12 = vmul.f32 %v2480_v11, %v7358_v20  ;;  %v7697_v11 = vld [vmem:[#allocation7 + $0x170] sm:$0xff] }
 0x482   : > { %4993 = vtanh.f32 %v2470_v46  ;;  %v7685_v46 = vld [vmem:[#allocation7 + $0x38] sm:$0xff] }
 0x483   : > { %2903 = vmatpush.msra.mxu1 %v7587_v52  ;;  %2943 = vmatpush.msra.mxu3 %v7589_v63  ;;  %4995 = vtanh.f32 %v2482_v45  ;;  %v7689_v45 = vld [vmem:[#allocation7 + $0x190] sm:$0xff] }
 0x484   : > { %v4992_v10 = vpop.eup %4991 }
 0x485   : > { %v2475_v21 = vmul.f32 0.5, %v4992_v10  ;;  %2904 = vmatpush.msra.mxu1 %v7593_v44  ;;  %2944 = vmatpush.msra.mxu3 %v7595_v26  ;;  %v7695_v10 = vld [vmem:[#allocation7 + $0x160] sm:$0xff] }
 0x486   : > { %2738 = vmatmul.f32.vlgmr.msrb.gmra.mxu1 %v2307_v13  ;;  %2778 = vmatmul.f32.vlgmr.msrb.gmra.mxu3 %v2307_v13  ;;  %v7667_v13 = vld [vmem:[#allocation7 + $0x1d0] sm:$0xff]  ;;  %10235 = vst [vmem:[#allocation68_spill] sm:$0xff] %v7695_v10 }
 0x487   : > { %v2476_v0 = vadd.f32 0.5, %v2475_v21  ;;  %2905 = vmatpush.msra.mxu1 %v7599_v17  ;;  %2945 = vmatpush.msra.mxu3 %v7601_v39  ;;  %v7703_v21 = vld [vmem:[#allocation7 + $0x8] sm:$0xff] }
 0x488   : > { %v4994_v58 = vpop.eup %4993  ;;  %10236 = vst [vmem:[#allocation74_spill] sm:$0xff] %v7703_v21 }
 0x489   : > { %v2487_v19 = vmul.f32 %v4994_v58, %v2476_v0  ;;  %2906 = vmatpush.msra.mxu1 %v7605_v56  ;;  %2946 = vmatpush.msra.mxu3 %v7607_v25  ;;  %v4996_v9 = vpop.eup %4995  ;;  %v7705_v0 = vld [vmem:[#allocation7 + $0x18] sm:$0xff]  ;;  %v7709_v58 = vld [vmem:[#allocation7 + $0x140] sm:$0xff] }
 0x48a   : > { %v2484_v20 = vmul.f32 0.5, %v4996_v9  ;;  %10237 = vst [vmem:[#allocation71_spill] sm:$0xff] %v7705_v0  ;;  %v7717_v9 = vld [vmem:[#allocation7 + $0x130] sm:$0xff] }
 0x48b   : > { %v7622_v30 = vadd.f32 %v2487_v19, %v2486_v12  ;;  %2907 = vmatpush.msra.mxu1 %v7611_v50  ;;  %2947 = vmatpush.msra.mxu3 %v7613_v23  ;;  %10238 = vst [vmem:[#allocation78_spill] sm:$0xff] %v7709_v58  ;;  %v7711_v12 = vld [vmem:[#allocation7 + $0x150] sm:$0xff]  ;;  %v7715_v19 = vld [vmem:[#allocation7 + $0x120] sm:$0xff] }
 0x48c   : > { %v2485_v55 = vadd.f32 0.5, %v2484_v20  ;;  %10239 = vst [vmem:[#allocation75_spill] sm:$0xff] %v7711_v12  ;;  %v7723_v20 = vld [vmem:[#allocation9 + $0x3e0] sm:$0xff] }
 0x48d   : > { %4997 = vtanh.f32 %v7622_v30  ;;  %2908 = vmatpush.msra.mxu1 %v7618_v5  ;;  %2948 = vmatpush.msra.mxu3 %v7620_v18  ;;  %10240 = vst [vmem:[#allocation82_spill] sm:$0xff] %v7715_v19 }
 0x48e   : > { %10241 = vst [vmem:[#allocation79_spill] sm:$0xff] %v7717_v9 }
 0x48f   : > { %2909 = vmatpush.msra.mxu1 %v7626_v38  ;;  %2949 = vmatpush.msra.mxu3 %v7628_v40 }
 0x491   : > { %2910 = vmatpush.msra.mxu1 %v7633_v48  ;;  %2950 = vmatpush.msra.mxu3 %v7635_v51 }
 0x493   : > { %v4998_v16 = vpop.eup %4997  ;;  %2911 = vmatpush.msra.mxu1 %v7639_v47  ;;  %2951 = vmatpush.msra.mxu3 %v7641_v15 }
 0x494   : > { %v7651_v53 = vmul.f32 %v4998_v16, %v2485_v55  ;;  %v7725_v55 = vld [vmem:[#allocation9 + $0x3e8] sm:$0xff]  ;;  %v7727_v16 = vld [vmem:[#allocation7 + $0x100] sm:$0xff] }
 0x495   : > { %2912 = vmatpush.msra.mxu1 %v7645_v57  ;;  %2952 = vmatpush.msra.mxu3 %v7647_v24  ;;  %10242 = vst [vmem:[#allocation86_spill] sm:$0xff] %v7725_v55 }
 0x496   : > { %2638 = vmatmul.f32.vlgmr.msra.gmra.mxu0 %v7651_v53  ;;  %2678 = vmatmul.f32.vlgmr.msra.gmra.mxu2 %v7651_v53  ;;  %10243 = vst [vmem:[#allocation83_spill] sm:$0xff] %v7727_v16 }
 0x497   : > { %2881 = vmatpush.msra.mxu0 %v7653_v8  ;;  %2921 = vmatpush.msra.mxu2 %v7655_v3 }
 0x498   : > { %2913 = vmatpush.msra.mxu1 %v7659_v6  ;;  %2953 = vmatpush.msra.mxu3 %v7661_v41 }
 0x499   : > { %2882 = vmatpush.msra.mxu0 %v7665_v59  ;;  %2922 = vmatpush.msra.mxu2 %v7667_v13 }
 0x49a   : > { %2914 = vmatpush.msra.mxu1 %v7671_v22  ;;  %2954 = vmatpush.msra.mxu3 %v7673_v43 }
 0x49b   : > { %2883 = vmatpush.msra.mxu0 %v7675_v29  ;;  %2923 = vmatpush.msra.mxu2 %v7677_v2 }
 0x49c   : > { %2915 = vmatpush.msra.mxu1 %v7683_v61  ;;  %2955 = vmatpush.msra.mxu3 %v7685_v46 }
 0x49d   : > { %2884 = vmatpush.msra.mxu0 %v7687_v62  ;;  %2924 = vmatpush.msra.mxu2 %v7689_v45 }
 0x49e   : > { %2718 = vmatmul.f32.vlgmr.msrb.gmra.mxu0 %v7651_v53  ;;  %2758 = vmatmul.f32.vlgmr.msrb.gmra.mxu2 %v7651_v53 }
 0x49f   : > { %2885 = vmatpush.msra.mxu0 %v7695_v10  ;;  %2925 = vmatpush.msra.mxu2 %v7697_v11  ;;  %v7729_v10 = vld [vmem:[#allocation7 + $0x110] sm:$0xff] }
 0x4a0   : > { %2916 = vmatpush.msra.mxu1 %v7703_v21  ;;  %2956 = vmatpush.msra.mxu3 %v7705_v0  ;;  %10244 = vst [vmem:[#allocation90_spill] sm:$0xff] %v7729_v10  ;;  %v7735_v0 = vld [vmem:[#allocation7 + $0xe0] sm:$0xff]  ;;  %v7745_v21 = vld [vmem:[#allocation7 + $0xd0] sm:$0xff] }
 0x4a1   : > { %2886 = vmatpush.msra.mxu0 %v7709_v58  ;;  %2926 = vmatpush.msra.mxu2 %v7711_v12  ;;  %10245 = vst [vmem:[#allocation27_spill] sm:$0xff] %v7735_v0  ;;  %v7737_v58 = vld [vmem:[#allocation7 + $0xf0] sm:$0xff]  ;;  %v7743_v12 = vld [vmem:[#allocation7 + $0xc0] sm:$0xff] }
 0x4a2   : > { %2917 = vmatmul.f32.vlgmr.msra.gmra.mxu1 %v7651_v53  ;;  %2957 = vmatmul.f32.vlgmr.msra.gmra.mxu3 %v7651_v53  ;;  %10246 = vst [vmem:[#allocation17_spill] sm:$0xff] %v7737_v58 }
 0x4a3   : > { %2887 = vmatpush.msra.mxu0 %v7715_v19  ;;  %2927 = vmatpush.msra.mxu2 %v7717_v9  ;;  %10247 = vst [vmem:[#allocation18_spill] sm:$0xff] %v7743_v12  ;;  %v7749_v9 = vld [vmem:[#allocation7 + $0xa0] sm:$0xff]  ;;  %v7751_v19 = vld [vmem:[#allocation7 + $0xb0] sm:$0xff] }
 0x4a4   : > { %3135 = vmatpush.msrb.mxu1 %v7723_v20  ;;  %3175 = vmatpush.msrb.mxu3 %v7725_v55  ;;  %10248 = vst [vmem:[#allocation28_spill] sm:$0xff] %v7745_v21  ;;  %v7755_v55 = vld [vmem:[#allocation7 + $0x80] sm:$0xff] }
 0x4a5   : > { %2888 = vmatpush.msra.mxu0 %v7727_v16  ;;  %2928 = vmatpush.msra.mxu2 %v7729_v10  ;;  %10249 = vst [vmem:[#allocation97_spill] sm:$0xff] %v7749_v9  ;;  %v7757_v16 = vld [vmem:[#allocation7 + $0x90] sm:$0xff]  ;;  %v7761_v10 = vld [vmem:[#allocation7 + $0x60] sm:$0xff] }
 0x4a6   : > { %10250 = vst [vmem:[#allocation19_spill] sm:$0xff] %v7751_v19 }
 0x4a7   : > { %2889 = vmatpush.msra.mxu0 %v7735_v0  ;;  %2929 = vmatpush.msra.mxu2 %v7737_v58  ;;  %10251 = vst [vmem:[#allocation20_spill] sm:$0xff] %v7755_v55  ;;  %v7763_v0 = vld [vmem:[#allocation7 + $0x70] sm:$0xff]  ;;  %v7767_v58 = vld [vmem:[#allocation7 + $0x40] sm:$0xff] }
 0x4a8   : > { %10252 = vst [vmem:[#allocation101_spill] sm:$0xff] %v7757_v16 }
 0x4a9   : > { %2890 = vmatpush.msra.mxu0 %v7743_v12  ;;  %2930 = vmatpush.msra.mxu2 %v7745_v21  ;;  %10253 = vst [vmem:[#allocation29_spill] sm:$0xff] %v7761_v10  ;;  %v7769_v12 = vld [vmem:[#allocation7 + $0x50] sm:$0xff]  ;;  %v7773_v21 = vld [vmem:[#allocation7 + $0x20] sm:$0xff] }
 0x4aa   : > { %10254 = vst [vmem:[#allocation87_spill] sm:$0xff] %v7763_v0 }
 0x4ab   : > { %2891 = vmatpush.msra.mxu0 %v7749_v9  ;;  %2931 = vmatpush.msra.mxu2 %v7751_v19  ;;  %10255 = vst [vmem:[#allocation94_spill] sm:$0xff] %v7767_v58  ;;  %v7775_v9 = vld [vmem:[#allocation7 + $0x30] sm:$0xff]  ;;  %v7779_v19 = vld [vmem:[#allocation7] sm:$0xff] }
 0x4ac   : > { %10256 = vst [vmem:[#allocation30_spill] sm:$0xff] %v7769_v12 }
 0x4ad   : > { %2892 = vmatpush.msra.mxu0 %v7755_v55  ;;  %2932 = vmatpush.msra.mxu2 %v7757_v16  ;;  %10257 = vst [vmem:[#allocation100_spill] sm:$0xff] %v7773_v21  ;;  %v7781_v55 = vld [vmem:[#allocation7 + $0x10] sm:$0xff]  ;;  %v7815_v16 = vld [vmem:[#allocation9 + $0x348] sm:$0xff] }
 0x4ae   : > { %10258 = vst [vmem:[#allocation21_spill] sm:$0xff] %v7775_v9 }
 0x4af   : > { %2893 = vmatpush.msra.mxu0 %v7761_v10  ;;  %2933 = vmatpush.msra.mxu2 %v7763_v0  ;;  %10259 = vst [vmem:[#allocation22_spill] sm:$0xff] %v7779_v19  ;;  %v7789_v0 = vld [vmem:[#allocation9 + $0x3c0] sm:$0xff] }
 0x4b0   : > { %10260 = vst [vmem:[#allocation103_spill] sm:$0xff] %v7781_v55  ;;  %3136 = vmatpush.msrb.mxu1 %v7789_v0  ;;  %v7813_v10 = vld [vmem:[#allocation9 + $0x340] sm:$0xff] }
 0x4b1   : > { %2894 = vmatpush.msra.mxu0 %v7767_v58  ;;  %2934 = vmatpush.msra.mxu2 %v7769_v12  ;;  %v7791_v58 = vld [vmem:[#allocation9 + $0x3c8] sm:$0xff]  ;;  %v7793_v12 = vld [vmem:[#allocation9 + $0x3a0] sm:$0xff]  ;;  %10268 = vst [vmem:[#allocation105_spill] sm:$0xff] %v7813_v10 }
 0x4b2   : > { %10261 = vst [vmem:[#allocation31_spill] sm:$0xff] %v7791_v58  ;;  %3176 = vmatpush.msrb.mxu3 %v7791_v58  ;;  %3137 = vmatpush.msrb.mxu1 %v7793_v12  ;;  %v7817_v58 = vld [vmem:[#allocation9 + $0x320] sm:$0xff] }
 0x4b3   : > { %2895 = vmatpush.msra.mxu0 %v7773_v21  ;;  %2935 = vmatpush.msra.mxu2 %v7775_v9  ;;  %10262 = vst [vmem:[#allocation88_spill] sm:$0xff] %v7793_v12  ;;  %v7797_v21 = vld [vmem:[#allocation9 + $0x3a8] sm:$0xff]  ;;  %v7799_v9 = vld [vmem:[#allocation9 + $0x380] sm:$0xff] }
 0x4b4   : > { %10263 = vst [vmem:[#allocation96_spill] sm:$0xff] %v7797_v21  ;;  %3177 = vmatpush.msrb.mxu3 %v7797_v21  ;;  %3138 = vmatpush.msrb.mxu1 %v7799_v9  ;;  %v7825_v21 = vld [vmem:[#allocation9 + $0x308] sm:$0xff]  ;;  %v7827_v12 = vld [vmem:[#allocation9 + $0x1e0] sm:$0xff] }
 0x4b5   : > { %2896 = vmatpush.msra.mxu0 %v7779_v19  ;;  %2936 = vmatpush.msra.mxu2 %v7781_v55  ;;  %10264 = vst [vmem:[#allocation32_spill] sm:$0xff] %v7799_v9  ;;  %v7801_v19 = vld [vmem:[#allocation9 + $0x388] sm:$0xff] }
 0x4b6   : > { %2897 = vmatmul.f32.vlgmr.msra.gmra.mxu0 %v7651_v53  ;;  %2937 = vmatmul.f32.vlgmr.msra.gmra.mxu2 %v7651_v53  ;;  %10265 = vst [vmem:[#allocation102_spill] sm:$0xff] %v7801_v19  ;;  %v7807_v53 = vld [vmem:[#allocation9 + $0x360] sm:$0xff]  ;;  %v7809_v55 = vld [vmem:[#allocation9 + $0x368] sm:$0xff] }
 0x4b7   : > { %3178 = vmatpush.msrb.mxu3 %v7801_v19  ;;  %10266 = vst [vmem:[#allocation23_spill] sm:$0xff] %v7807_v53  ;;  %3139 = vmatpush.msrb.mxu1 %v7807_v53  ;;  %v7821_v9 = vld [vmem:[#allocation9 + $0x328] sm:$0xff]  ;;  %v7823_v19 = vld [vmem:[#allocation9 + $0x300] sm:$0xff] }
 0x4b8   : > { %10267 = vst [vmem:[#allocation24_spill] sm:$0xff] %v7809_v55  ;;  %v7829_v53 = vld [vmem:[#allocation9 + $0x1e8] sm:$0xff]  ;;  %3115 = vmatpush.msrb.mxu0 %v7827_v12 }
 0x4b9   : > { %3179 = vmatpush.msrb.mxu3 %v7809_v55  ;;  %10269 = vst [vmem:[#allocation33_spill] sm:$0xff] %v7815_v16  ;;  %3140 = vmatpush.msrb.mxu1 %v7813_v10  ;;  %v7839_v10 = vld [vmem:[#allocation9 + $0x2e8] sm:$0xff]  ;;  %v7843_v55 = vld [vmem:[#allocation9 + $0x2c0] sm:$0xff] }
 0x4ba   : > { %10270 = vst [vmem:[#allocation25_spill] sm:$0xff] %v7817_v58  ;;  %3155 = vmatpush.msrb.mxu2 %v7829_v53 }
 0x4bb   : > { %3180 = vmatpush.msrb.mxu3 %v7815_v16  ;;  %10271 = vst [vmem:[#allocation26_spill] sm:$0xff] %v7821_v9  ;;  %3141 = vmatpush.msrb.mxu1 %v7817_v58  ;;  %v7837_v16 = vld [vmem:[#allocation9 + $0x2e0] sm:$0xff]  ;;  %v7845_v58 = vld [vmem:[#allocation9 + $0x2c8] sm:$0xff] }
 0x4bc   : > { %10272 = vst [vmem:[#allocation107_spill] sm:$0xff] %v7823_v19 }
 0x4bd   : > { %10273 = vst [vmem:[#allocation35_spill] sm:$0xff] %v7825_v21  ;;  %3181 = vmatpush.msrb.mxu3 %v7821_v9  ;;  %3142 = vmatpush.msrb.mxu1 %v7823_v19  ;;  %v7867_v19 = vld [vmem:[#allocation9 + $0x1c8] sm:$0xff]  ;;  %v7907_v9 = vld [vmem:[#allocation9 + $0x3f0] sm:$0xff] }
 0x4be   : > { %10274 = vst [vmem:[#allocation92_spill] sm:$0xff] %v7827_v12  ;;  %v7851_v12 = vld [vmem:[#allocation9 + $0x2a8] sm:$0xff]  ;;  %3156 = vmatpush.msrb.mxu2 %v7867_v19 }
 0x4bf   : > { %10275 = vst [vmem:[#allocation99_spill] sm:$0xff] %v7829_v53  ;;  %3182 = vmatpush.msrb.mxu3 %v7825_v21  ;;  %3143 = vmatpush.msrb.mxu1 %v7837_v16  ;;  %v7849_v53 = vld [vmem:[#allocation9 + $0x2a0] sm:$0xff] }
 0x4c0   : > { %10276 = vst [vmem:[#allocation34_spill] sm:$0xff] %v7837_v16  ;;  %v7855_v21 = vld [vmem:[#allocation9 + $0x280] sm:$0xff]  ;;  %v7857_v16 = vld [vmem:[#allocation9 + $0x288] sm:$0xff] }
 0x4c1   : > { %10277 = vst [vmem:[#allocation104_spill] sm:$0xff] %v7839_v10  ;;  %3183 = vmatpush.msrb.mxu3 %v7839_v10  ;;  %3144 = vmatpush.msrb.mxu1 %v7843_v55  ;;  %v7861_v10 = vld [vmem:[#allocation9 + $0x260] sm:$0xff] }
 0x4c2   : > { %10278 = vst [vmem:[#allocation36_spill] sm:$0xff] %v7843_v55  ;;  %v7863_v55 = vld [vmem:[#allocation9 + $0x268] sm:$0xff] }
 0x4c3   : > { %10279 = vst [vmem:[#allocation106_spill] sm:$0xff] %v7845_v58  ;;  %3184 = vmatpush.msrb.mxu3 %v7845_v58  ;;  %3145 = vmatpush.msrb.mxu1 %v7849_v53  ;;  %v7865_v58 = vld [vmem:[#allocation9 + $0x1c0] sm:$0xff] }
 0x4c4   : > { %10280 = vst [vmem:[#allocation110_spill] sm:$0xff] %v7849_v53  ;;  %3116 = vmatpush.msrb.mxu0 %v7865_v58  ;;  %v7879_v53 = vld [vmem:[#allocation9 + $0x1a8] sm:$0xff] }
 0x4c5   : > { %10281 = vst [vmem:[#allocation41_spill] sm:$0xff] %v7851_v12  ;;  %3185 = vmatpush.msrb.mxu3 %v7851_v12  ;;  %3146 = vmatpush.msrb.mxu1 %v7855_v21  ;;  %v7873_v12 = vld [vmem:[#allocation9 + $0x240] sm:$0xff] }
 0x4c6   : > { %10282 = vst [vmem:[#allocation109_spill] sm:$0xff] %v7855_v21  ;;  %v7875_v21 = vld [vmem:[#allocation9 + $0x248] sm:$0xff]  ;;  %3157 = vmatpush.msrb.mxu2 %v7879_v53 }
 0x4c7   : > { %10283 = vst [vmem:[#allocation37_spill] sm:$0xff] %v7857_v16  ;;  %3186 = vmatpush.msrb.mxu3 %v7857_v16  ;;  %3147 = vmatpush.msrb.mxu1 %v7861_v10  ;;  %v7877_v16 = vld [vmem:[#allocation9 + $0x1a0] sm:$0xff] }
 0x4c8   : > { %10284 = vst [vmem:[#allocation44_spill] sm:$0xff] %v7861_v10  ;;  %3117 = vmatpush.msrb.mxu0 %v7877_v16  ;;  %v7887_v10 = vld [vmem:[#allocation9 + $0x228] sm:$0xff] }
 0x4c9   : > { %10285 = vst [vmem:[#allocation45_spill] sm:$0xff] %v7863_v55  ;;  %3187 = vmatpush.msrb.mxu3 %v7863_v55  ;;  %3148 = vmatpush.msrb.mxu1 %v7873_v12  ;;  %v7885_v55 = vld [vmem:[#allocation9 + $0x220] sm:$0xff] }
 0x4ca   : > { %10286 = vst [vmem:[#allocation38_spill] sm:$0xff] %v7865_v58  ;;  %v7891_v58 = vld [vmem:[#allocation9 + $0x188] sm:$0xff] }
 0x4cb   : > { %10287 = vst [vmem:[#allocation108_spill] sm:$0xff] %v7867_v19  ;;  %3188 = vmatpush.msrb.mxu3 %v7875_v21  ;;  %v7889_v19 = vld [vmem:[#allocation9 + $0x180] sm:$0xff]  ;;  %3149 = vmatpush.msrb.mxu1 %v7885_v55 }
 0x4cc   : > { %10288 = vst [vmem:[#allocation48_spill] sm:$0xff] %v7873_v12  ;;  %3118 = vmatpush.msrb.mxu0 %v7889_v19  ;;  %3158 = vmatpush.msrb.mxu2 %v7891_v58  ;;  %v7899_v12 = vld [vmem:[#allocation9 + $0x208] sm:$0xff] }
 0x4cd   : > { %10289 = vst [vmem:[#allocation49_spill] sm:$0xff] %v7875_v21  ;;  %3189 = vmatpush.msrb.mxu3 %v7887_v10  ;;  %v7897_v21 = vld [vmem:[#allocation9 + $0x200] sm:$0xff] }
 0x4ce   : > { %10290 = vst [vmem:[#allocation39_spill] sm:$0xff] %v7877_v16  ;;  %v7903_v16 = vld [vmem:[#allocation9 + $0x168] sm:$0xff]  ;;  %3150 = vmatpush.msrb.mxu1 %v7897_v21 }
 0x4cf   : > { %10291 = vst [vmem:[#allocation40_spill] sm:$0xff] %v7879_v53  ;;  %v7901_v53 = vld [vmem:[#allocation9 + $0x160] sm:$0xff]  ;;  %3190 = vmatpush.msrb.mxu3 %v7899_v12  ;;  %3159 = vmatpush.msrb.mxu2 %v7903_v16 }
 0x4d0   : > { %10292 = vst [vmem:[#allocation52_spill] sm:$0xff] %v7885_v55  ;;  %3119 = vmatpush.msrb.mxu0 %v7901_v53  ;;  %v7913_v55 = vld [vmem:[#allocation9 + $0x140] sm:$0xff]  ;;  %3215 = vmatpush.msra.mxu1 %v7907_v9 }
 0x4d1   : > { %10293 = vst [vmem:[#allocation53_spill] sm:$0xff] %v7887_v10  ;;  %v7911_v10 = vld [vmem:[#allocation9 + $0x3f8] sm:$0xff] }
 0x4d2   : > { %10294 = vst [vmem:[#allocation42_spill] sm:$0xff] %v7889_v19  ;;  %3255 = vmatpush.msra.mxu3 %v7911_v10  ;;  %v7919_v19 = vld [vmem:[#allocation9 + $0x3d0] sm:$0xff]  ;;  %3120 = vmatpush.msrb.mxu0 %v7913_v55 }
 0x4d3   : > { %10295 = vst [vmem:[#allocation43_spill] sm:$0xff] %v7891_v58  ;;  %v7915_v58 = vld [vmem:[#allocation9 + $0x148] sm:$0xff]  ;;  %3216 = vmatpush.msra.mxu1 %v7919_v19 }
 0x4d4   : > { %10296 = vst [vmem:[#allocation56_spill] sm:$0xff] %v7897_v21  ;;  %3160 = vmatpush.msrb.mxu2 %v7915_v58  ;;  %v7925_v21 = vld [vmem:[#allocation9 + $0x120] sm:$0xff] }
 0x4d5   : > { %10297 = vst [vmem:[#allocation57_spill] sm:$0xff] %v7899_v12  ;;  %v7923_v12 = vld [vmem:[#allocation9 + $0x3d8] sm:$0xff]  ;;  %3121 = vmatpush.msrb.mxu0 %v7925_v21 }
 0x4d6   : > { %10298 = vst [vmem:[#allocation46_spill] sm:$0xff] %v7901_v53  ;;  %3256 = vmatpush.msra.mxu3 %v7923_v12  ;;  %v7931_v53 = vld [vmem:[#allocation9 + $0x3b0] sm:$0xff] }
 0x4d7   : > { %10299 = vst [vmem:[#allocation47_spill] sm:$0xff] %v7903_v16  ;;  %v7927_v16 = vld [vmem:[#allocation9 + $0x128] sm:$0xff]  ;;  %3217 = vmatpush.msra.mxu1 %v7931_v53 }
 0x4d8   : > { %10300 = vst [vmem:[#allocation60_spill] sm:$0xff] %v7907_v9  ;;  %3161 = vmatpush.msrb.mxu2 %v7927_v16  ;;  %v7937_v9 = vld [vmem:[#allocation9 + $0x100] sm:$0xff] }
 0x4d9   : > { %10301 = vst [vmem:[#allocation61_spill] sm:$0xff] %v7911_v10  ;;  %v7935_v10 = vld [vmem:[#allocation9 + $0x3b8] sm:$0xff]  ;;  %3122 = vmatpush.msrb.mxu0 %v7937_v9 }
 0x4da   : > { %10302 = vst [vmem:[#allocation50_spill] sm:$0xff] %v7913_v55  ;;  %3257 = vmatpush.msra.mxu3 %v7935_v10  ;;  %v7943_v55 = vld [vmem:[#allocation9 + $0x390] sm:$0xff] }
 0x4db   : > { %10303 = vst [vmem:[#allocation51_spill] sm:$0xff] %v7915_v58  ;;  %v7939_v58 = vld [vmem:[#allocation9 + $0x108] sm:$0xff]  ;;  %3218 = vmatpush.msra.mxu1 %v7943_v55 }
 0x4dc   : > { %10304 = vst [vmem:[#allocation64_spill] sm:$0xff] %v7919_v19  ;;  %3162 = vmatpush.msrb.mxu2 %v7939_v58  ;;  %v7949_v19 = vld [vmem:[#allocation9 + $0xe0] sm:$0xff] }
 0x4dd   : > { %10305 = vst [vmem:[#allocation65_spill] sm:$0xff] %v7923_v12  ;;  %v7947_v12 = vld [vmem:[#allocation9 + $0x398] sm:$0xff]  ;;  %3123 = vmatpush.msrb.mxu0 %v7949_v19 }
 0x4de   : > { %10306 = vst [vmem:[#allocation54_spill] sm:$0xff] %v7925_v21  ;;  %3258 = vmatpush.msra.mxu3 %v7947_v12  ;;  %v7955_v21 = vld [vmem:[#allocation9 + $0x370] sm:$0xff] }
 0x4df   : > { %10307 = vst [vmem:[#allocation55_spill] sm:$0xff] %v7927_v16  ;;  %v7951_v16 = vld [vmem:[#allocation9 + $0xe8] sm:$0xff]  ;;  %3219 = vmatpush.msra.mxu1 %v7955_v21 }
 0x4e0   : > { %10308 = vst [vmem:[#allocation69_spill] sm:$0xff] %v7931_v53  ;;  %3163 = vmatpush.msrb.mxu2 %v7951_v16  ;;  %v7961_v53 = vld [vmem:[#allocation9 + $0xc0] sm:$0xff] }
 0x4e1   : > { %10309 = vst [vmem:[#allocation70_spill] sm:$0xff] %v7935_v10  ;;  %v7959_v10 = vld [vmem:[#allocation9 + $0x378] sm:$0xff]  ;;  %3124 = vmatpush.msrb.mxu0 %v7961_v53 }
 0x4e2   : > { %10310 = vst [vmem:[#allocation58_spill] sm:$0xff] %v7937_v9  ;;  %3259 = vmatpush.msra.mxu3 %v7959_v10  ;;  %v7967_v9 = vld [vmem:[#allocation9 + $0x350] sm:$0xff] }
 0x4e3   : > { %10311 = vst [vmem:[#allocation59_spill] sm:$0xff] %v7939_v58  ;;  %v7963_v58 = vld [vmem:[#allocation9 + $0xc8] sm:$0xff]  ;;  %3220 = vmatpush.msra.mxu1 %v7967_v9 }
 0x4e4   : > { %10312 = vst [vmem:[#allocation76_spill] sm:$0xff] %v7943_v55  ;;  %3164 = vmatpush.msrb.mxu2 %v7963_v58  ;;  %v7973_v55 = vld [vmem:[#allocation9 + $0xa0] sm:$0xff] }
 0x4e5   : > { %10313 = vst [vmem:[#allocation77_spill] sm:$0xff] %v7947_v12  ;;  %v7971_v12 = vld [vmem:[#allocation9 + $0x358] sm:$0xff]  ;;  %3125 = vmatpush.msrb.mxu0 %v7973_v55 }
 0x4e6   : > { %10314 = vst [vmem:[#allocation62_spill] sm:$0xff] %v7949_v19  ;;  %3260 = vmatpush.msra.mxu3 %v7971_v12  ;;  %v7979_v19 = vld [vmem:[#allocation9 + $0x330] sm:$0xff] }
 0x4e7   : > { %10315 = vst [vmem:[#allocation63_spill] sm:$0xff] %v7951_v16  ;;  %v7975_v16 = vld [vmem:[#allocation9 + $0xa8] sm:$0xff]  ;;  %3221 = vmatpush.msra.mxu1 %v7979_v19 }
 0x4e8   : > { %10316 = vst [vmem:[#allocation84_spill] sm:$0xff] %v7955_v21  ;;  %3165 = vmatpush.msrb.mxu2 %v7975_v16  ;;  %v7985_v21 = vld [vmem:[#allocation9 + $0x80] sm:$0xff] }
 0x4e9   : > { %10317 = vst [vmem:[#allocation85_spill] sm:$0xff] %v7959_v10  ;;  %v7983_v10 = vld [vmem:[#allocation9 + $0x338] sm:$0xff]  ;;  %3126 = vmatpush.msrb.mxu0 %v7985_v21 }
 0x4ea   : > { %10318 = vst [vmem:[#allocation66_spill] sm:$0xff] %v7961_v53  ;;  %3261 = vmatpush.msra.mxu3 %v7983_v10  ;;  %v7991_v53 = vld [vmem:[#allocation9 + $0x310] sm:$0xff] }
 0x4eb   : > { %10319 = vst [vmem:[#allocation67_spill] sm:$0xff] %v7963_v58  ;;  %v7987_v58 = vld [vmem:[#allocation9 + $0x88] sm:$0xff]  ;;  %3222 = vmatpush.msra.mxu1 %v7991_v53 }
 0x4ec   : > { %10320 = vst [vmem:[#allocation93_spill] sm:$0xff] %v7967_v9  ;;  %3166 = vmatpush.msrb.mxu2 %v7987_v58  ;;  %v7997_v9 = vld [vmem:[#allocation9 + $0x60] sm:$0xff] }
 0x4ed   : > { %10321 = vst [vmem:[#allocation72_spill] sm:$0xff] %v7971_v12  ;;  %v7995_v12 = vld [vmem:[#allocation9 + $0x318] sm:$0xff]  ;;  %3127 = vmatpush.msrb.mxu0 %v7997_v9 }
 0x4ee   : > { %10322 = vst [vmem:[#allocation73_spill] sm:$0xff] %v7973_v55  ;;  %3262 = vmatpush.msra.mxu3 %v7995_v12  ;;  %v8003_v55 = vld [vmem:[#allocation9 + $0x2f0] sm:$0xff] }
 0x4ef   : > { %10323 = vst [vmem:[#allocation111_spill] sm:$0xff] %v7975_v16  ;;  %v7999_v16 = vld [vmem:[#allocation9 + $0x68] sm:$0xff]  ;;  %3223 = vmatpush.msra.mxu1 %v8003_v55 }
 0x4f0   : > { %10324 = vst [vmem:[#allocation80_spill] sm:$0xff] %v7979_v19  ;;  %3167 = vmatpush.msrb.mxu2 %v7999_v16  ;;  %v8009_v19 = vld [vmem:[#allocation9 + $0x40] sm:$0xff] }
 0x4f1   : > { %10325 = vst [vmem:[#allocation81_spill] sm:$0xff] %v7983_v10  ;;  %v8007_v10 = vld [vmem:[#allocation9 + $0x2f8] sm:$0xff]  ;;  %3128 = vmatpush.msrb.mxu0 %v8009_v19  ;;  %3224 = vmatpush.msra.mxu1 %v7537_v42  ;;  %v8033_v42 = vld [vmem:[#allocation9 + $0x1f0] sm:$0xff] }
 0x4f2   : > { %10326 = vst [vmem:[#allocation114_spill] sm:$0xff] %v7987_v58  ;;  %v8011_v58 = vld [vmem:[#allocation9 + $0x48] sm:$0xff]  ;;  %3263 = vmatpush.msra.mxu3 %v8007_v10 }
 0x4f3   : > { %10327 = vst [vmem:[#allocation89_spill] sm:$0xff] %v7991_v53  ;;  %3168 = vmatpush.msrb.mxu2 %v8011_v58  ;;  %v8019_v53 = vld [vmem:[#allocation9 + $0x28] sm:$0xff]  ;;  %3225 = vmatpush.msra.mxu1 %v7543_v35  ;;  %v8042_v35 = vld [vmem:[#allocation9 + $0x1d8] sm:$0xff] }
 0x4f4   : > { %10328 = vst [vmem:[#allocation91_spill] sm:$0xff] %v7995_v12  ;;  %v8017_v12 = vld [vmem:[#allocation9 + $0x20] sm:$0xff]  ;;  %3264 = vmatpush.msra.mxu3 %v7539_v14  ;;  %v8035_v14 = vld [vmem:[#allocation9 + $0x1f8] sm:$0xff] }
 0x4f5   : > { %10329 = vst [vmem:[#allocation115_spill] sm:$0xff] %v7999_v16  ;;  %3129 = vmatpush.msrb.mxu0 %v8017_v12  ;;  %3169 = vmatpush.msrb.mxu2 %v8019_v53  ;;  %v8025_v16 = vld [vmem:[#allocation9] sm:$0xff] }
 0x4f6   : > { %10330 = vst [vmem:[#allocation116_spill] sm:$0xff] %v8003_v55  ;;  %v8027_v55 = vld [vmem:[#allocation9 + $0x8] sm:$0xff]  ;;  %3265 = vmatpush.msra.mxu3 %v7545_v28  ;;  %3226 = vmatpush.msra.mxu1 %v7549_v54 }
 0x4f7   : > { %10331 = vst [vmem:[#allocation95_spill] sm:$0xff] %v8007_v10  ;;  %3130 = vmatpush.msrb.mxu0 %v8025_v16  ;;  %3170 = vmatpush.msrb.mxu2 %v8027_v55 }
 0x4f8   : > { %10332 = vst [vmem:[#allocation98_spill] sm:$0xff] %v8011_v58  ;;  %3266 = vmatpush.msra.mxu3 %v7551_v32  ;;  %3227 = vmatpush.msra.mxu1 %v7556_v60  ;;  %v8060_v32 = vld [vmem:[#allocation9 + $0x230] sm:$0xff] }
 0x4f9   : > { %10333 = vst [vmem:[#allocation117_spill] sm:$0xff] %v8017_v12  ;;  %3195 = vmatpush.msra.mxu0 %v8033_v42  ;;  %3235 = vmatpush.msra.mxu2 %v8035_v14  ;;  %v8040_v12 = vld [vmem:[#allocation9 + $0x1d0] sm:$0xff] }
 0x4fa   : > { %10334 = vst [vmem:[#allocation118_spill] sm:$0xff] %v8019_v53  ;;  %3267 = vmatpush.msra.mxu3 %v7558_v49  ;;  %v8074_v49 = vld [vmem:[#allocation9 + $0x210] sm:$0xff] }
 0x4fb   : > { %10335 = vst [vmem:[#allocation119_spill] sm:$0xff] %v8025_v16  ;;  %v2659_v10 = vpop.f32.mrf.mxu1  ;;  %3196 = vmatpush.msra.mxu0 %v8040_v12  ;;  %3236 = vmatpush.msra.mxu2 %v8042_v35  ;;  %v8080_v16 = vld [vmem:[#allocation9 + $0x178] sm:$0xff] }
 0x4fc   : > { %10336 = vst [vmem:[#allocation120_spill] sm:$0xff] %v8027_v55  ;;  %v8048_v55 = vld [vmem:[#allocation9 + $0x250] sm:$0xff] }
 0x4fd   : > { %10337 = vst [vmem:[#allocation112_spill] sm:$0xff] %v8033_v42  ;;  %v8066_v42 = vld [vmem:[#allocation9 + $0x198] sm:$0xff]  ;;  %3228 = vmatpush.msra.mxu1 %v8048_v55 }
 0x4fe   : > { %10338 = vst [vmem:[#allocation113_spill] sm:$0xff] %v8035_v14  ;;  %v8054_v14 = vld [vmem:[#allocation9 + $0x1b8] sm:$0xff] }
 0x4ff   : > { %10339 = vst [vmem:[#allocation121_spill] sm:$0xff] %v8040_v12  ;;  %3237 = vmatpush.msra.mxu2 %v8054_v14  ;;  %v8064_v12 = vld [vmem:[#allocation9 + $0x190] sm:$0xff]  ;;  %3229 = vmatpush.msra.mxu1 %v8060_v32 }
 0x500   : > { %10340 = vst [vmem:[#allocation122_spill] sm:$0xff] %v8042_v35 }
 0x501   : > { %10341 = vst [vmem:[#allocation125_spill] sm:$0xff] %v8048_v55  ;;  %3238 = vmatpush.msra.mxu2 %v8066_v42  ;;  %v8089_v55 = vld [vmem:[#allocation9 + $0x150] sm:$0xff]  ;;  %3230 = vmatpush.msra.mxu1 %v8074_v49 }
 0x502   : > { %10344 = vst [vmem:[#allocation132_spill] sm:$0xff] %v8054_v14 }
 0x503   : > { %10345 = vst [vmem:[#allocation133_spill] sm:$0xff] %v8060_v32  ;;  %3239 = vmatpush.msra.mxu2 %v8080_v16 }
 0x504   : > { %10347 = vst [vmem:[#allocation135_spill] sm:$0xff] %v8066_v42  ;;  %v8091_v42 = vld [vmem:[#allocation9 + $0x158] sm:$0xff] }
 0x505   : > { %10348 = vst [vmem:[#allocation136_spill] sm:$0xff] %v8074_v49  ;;  %3240 = vmatpush.msra.mxu2 %v8091_v42  ;;  %v8104_v49 = vld [vmem:[#allocation9 + $0x110] sm:$0xff] }
 0x506   : > { %10351 = vst [vmem:[#allocation139_spill] sm:$0xff] %v8080_v16 }
 0x507   : > { %10352 = vst [vmem:[#allocation140_spill] sm:$0xff] %v8089_v55 }
 0x508   : > { %10353 = vst [vmem:[#allocation141_spill] sm:$0xff] %v8091_v42 }
 0x509   : > { %10356 = vst [vmem:[#allocation144_spill] sm:$0xff] %v8104_v49 }
 0x513   : > { %v2639_v58 = vpop.f32.mrf.mxu0 }
 0x514   : > { %v2640_v53 = vadd.f32 %v2639_v58, %v10224_v36  ;;  %v8050_v58 = vld [vmem:[#allocation9 + $0x258] sm:$0xff]  ;;  %v8052_v36 = vld [vmem:[#allocation9 + $0x1b0] sm:$0xff] }
 0x515   : > { %10342 = vst [vmem:[#allocation126_spill] sm:$0xff] %v8050_v58  ;;  %3197 = vmatpush.msra.mxu0 %v8052_v36  ;;  %3268 = vmatpush.msra.mxu3 %v8050_v58  ;;  %v2739_v58 = vpop.f32.mrf.mxu1 }
 0x516   : > { %v2660_v28 = vadd.f32 %v2659_v10, %v2640_v53  ;;  %10343 = vst [vmem:[#allocation129_spill] sm:$0xff] %v8052_v36  ;;  %v8062_v10 = vld [vmem:[#allocation9 + $0x238] sm:$0xff]  ;;  %v2699_v53 = vpop.f32.mrf.mxu3  ;;  %v8078_v36 = vld [vmem:[#allocation9 + $0x170] sm:$0xff] }
 0x517   : > { %10346 = vst [vmem:[#allocation134_spill] sm:$0xff] %v8062_v10  ;;  %3198 = vmatpush.msra.mxu0 %v8064_v12  ;;  %3269 = vmatpush.msra.mxu3 %v8062_v10  ;;  %v8113_v10 = vld [vmem:[#allocation9 + $0xf8] sm:$0xff] }
 0x518   : > { %v2783_v54 = vmul.f32 0.5, %v2660_v28  ;;  %v8076_v28 = vld [vmem:[#allocation9 + $0x218] sm:$0xff]  ;;  %10350 = vst [vmem:[#allocation138_spill] sm:$0xff] %v8078_v36 }
 0x519   : > { %v2679_v35 = vpop.f32.mrf.mxu2  ;;  %10349 = vst [vmem:[#allocation137_spill] sm:$0xff] %v8076_v28  ;;  %3199 = vmatpush.msra.mxu0 %v8078_v36  ;;  %3270 = vmatpush.msra.mxu3 %v8076_v28  ;;  %v8106_v28 = vld [vmem:[#allocation9 + $0x118] sm:$0xff]  ;;  %v8143_v36 = vld [vmem:[#allocation9 + $0x50] sm:$0xff] }
 0x51a   : > { %v2680_v60 = vadd.f32 %v2679_v35, %v10229_v1  ;;  %4999 = vtanh.f32 %v2783_v54  ;;  %10357 = vst [vmem:[#allocation145_spill] sm:$0xff] %v8106_v28 }
 0x51b   : > { %v2719_v14 = vpop.f32.mrf.mxu0  ;;  %3200 = vmatpush.msra.mxu0 %v8089_v55  ;;  %10359 = vst [vmem:[#allocation147_spill] sm:$0xff] %v8113_v10  ;;  %v8136_v55 = vld [vmem:[#allocation9 + $0x70] sm:$0xff] }
 0x51c   : > { %v2700_v35 = vadd.f32 %v2699_v53, %v2680_v60  ;;  %v2720_v1 = vadd.f32 %v2719_v14, %v10232_v34  ;;  %v8097_v14 = vld [vmem:[#allocation9 + $0x130] sm:$0xff]  ;;  %v8099_v60 = vld [vmem:[#allocation9 + $0x138] sm:$0xff]  ;;  %10365 = vst [vmem:[#allocation154_spill] sm:$0xff] %v8136_v55 }
 0x51d   : > { %10354 = vst [vmem:[#allocation142_spill] sm:$0xff] %v8097_v14  ;;  %3201 = vmatpush.msra.mxu0 %v8097_v14  ;;  %3241 = vmatpush.msra.mxu2 %v8099_v60  ;;  %v8117_v14 = vld [vmem:[#allocation9 + $0xd0] sm:$0xff] }
 0x51e   : > { %v2787_v54 = vmul.f32 0.5, %v2700_v35  ;;  %v2740_v53 = vadd.f32 %v2739_v58, %v2720_v1  ;;  %10355 = vst [vmem:[#allocation143_spill] sm:$0xff] %v8099_v60  ;;  %v2779_v35 = vpop.f32.mrf.mxu3 }
 0x51f   : > { %3202 = vmatpush.msra.mxu0 %v8104_v49  ;;  %3242 = vmatpush.msra.mxu2 %v8106_v28  ;;  %10360 = vst [vmem:[#allocation148_spill] sm:$0xff] %v8117_v14  ;;  %v2813_v28 = vld [vmem:[%s8121_s25 + $0x8] sm:$0xff] }
 0x520   : > { %5001 = vtanh.f32 %v2787_v54  ;;  %v5000_v1 = vpop.eup %4999  ;;  %v8111_v54 = vld [vmem:[#allocation9 + $0xf0] sm:$0xff]  ;;  %10367 = vst [vmem:[#allocation124_spill] sm:$0xff] %v8143_v36 }
 0x521   : > { %v2759_v34 = vpop.f32.mrf.mxu2  ;;  %5003 = vtanh.f32 %v2740_v53  ;;  %10358 = vst [vmem:[#allocation146_spill] sm:$0xff] %v8111_v54  ;;  %3203 = vmatpush.msra.mxu0 %v8111_v54  ;;  %3243 = vmatpush.msra.mxu2 %v8113_v10  ;;  %v2785_v60 = vmul.f32 0.5, %v5000_v1  ;;  %v8119_v53 = vld [vmem:[#allocation9 + $0xd8] sm:$0xff]  ;;  %v8126_v54 = vld [vmem:[#allocation9 + $0xb0] sm:$0xff] }
 0x522   : > { %v2760_v58 = vadd.f32 %v2759_v34, %v10233_v7  ;;  %10361 = vst [vmem:[#allocation149_spill] sm:$0xff] %v8119_v53  ;;  %v8128_v10 = vld [vmem:[#allocation9 + $0xb8] sm:$0xff]  ;;  %v8130_v1 = vld [vmem:[#allocation9 + $0x90] sm:$0xff] }
 0x523   : > { %3204 = vmatpush.msra.mxu0 %v8117_v14  ;;  %3244 = vmatpush.msra.mxu2 %v8119_v53  ;;  %10362 = vst [vmem:[#allocation150_spill] sm:$0xff] %v8126_v54  ;;  %v2786_v42 = vadd.f32 0.5, %v2785_v60 }
 0x524   : > { %v2780_v32 = vadd.f32 %v2779_v35, %v2760_v58  ;;  %v2918_v35 = vpop.f32.mrf.mxu1  ;;  %10363 = vst [vmem:[#allocation152_spill] sm:$0xff] %v8130_v1 }
 0x525   : > { %3205 = vmatpush.msra.mxu0 %v8126_v54  ;;  %3245 = vmatpush.msra.mxu2 %v8128_v10  ;;  %v2962_v53 = vadd.f32 %v2918_v35, %v2813_v28  ;;  %v8145_v54 = vld [vmem:[#allocation9 + $0x58] sm:$0xff] }
 0x526   : > { %v5002_v34 = vpop.eup %5001  ;;  %v2792_v7 = vmul.f32 0.5, %v2780_v32  ;;  %v8134_v32 = vld [vmem:[#allocation9 + $0x98] sm:$0xff]  ;;  %10368 = vst [vmem:[#allocation127_spill] sm:$0xff] %v8145_v54 }
 0x527   : > { %v2789_v58 = vmul.f32 0.5, %v5002_v34  ;;  %v5004_v49 = vpop.eup %5003  ;;  %10364 = vst [vmem:[#allocation153_spill] sm:$0xff] %v8134_v32  ;;  %v8138_v34 = vld [vmem:[#allocation9 + $0x78] sm:$0xff]  ;;  %3206 = vmatpush.msra.mxu0 %v8130_v1  ;;  %3246 = vmatpush.msra.mxu2 %v8134_v32  ;;  %v2970_v32 = vmul.f32 0.5, %v2962_v53  ;;  %v2814_v1 = vld [vmem:[%s8121_s25 + $0x10] sm:$0xff] }
 0x528   : > { %5005 = vtanh.f32 %v2792_v7  ;;  %10366 = vst [vmem:[#allocation123_spill] sm:$0xff] %v8138_v34  ;;  %v2797_v7 = vmul.f32 %v5004_v49, %v2786_v42  ;;  %v8153_v28 = vld [vmem:[#allocation9 + $0x38] sm:$0xff] }
 0x529   : > { %v2790_v14 = vadd.f32 0.5, %v2789_v58  ;;  %3207 = vmatpush.msra.mxu0 %v8136_v55  ;;  %3247 = vmatpush.msra.mxu2 %v8138_v34  ;;  %v8151_v58 = vld [vmem:[#allocation9 + $0x30] sm:$0xff]  ;;  %v8160_v42 = vld [vmem:[#allocation9 + $0x18] sm:$0xff] }
 0x52a   : > { %10370 = vst [vmem:[#allocation130_spill] sm:$0xff] %v8151_v58 }
 0x52b   : > { %v2796_v16 = vmul.f32 %v2790_v14, %v7573_v4  ;;  %3208 = vmatpush.msra.mxu0 %v8143_v36  ;;  %3248 = vmatpush.msra.mxu2 %v8145_v54  ;;  %v8158_v4 = vld [vmem:[#allocation9 + $0x10] sm:$0xff]  ;;  %10372 = vst [vmem:[#allocation151_spill] sm:$0xff] %v8160_v42 }
 0x52c   : > { %10371 = vst [vmem:[#allocation131_spill] sm:$0xff] %v8158_v4 }
 0x52d   : > { %v8149_v60 = vadd.f32 %v2797_v7, %v2796_v16  ;;  %3209 = vmatpush.msra.mxu0 %v8151_v58  ;;  %3249 = vmatpush.msra.mxu2 %v8153_v28  ;;  %v2812_v16 = vld [vmem:[%s8121_s25] sm:$0xff]  ;;  %v2815_v7 = vld [vmem:[%s8121_s25 + $0x18] sm:$0xff] }
 0x52e   : > { %v5006_v35 = vpop.eup %5005 }
 0x52f   : > { %10369 = vst [vmem:[#allocation128_spill] sm:$0xff] %v8149_v60  ;;  %5007 = vtanh.f32 %v8149_v60  ;;  %v2794_v49 = vmul.f32 0.5, %v5006_v35  ;;  %3210 = vmatpush.msra.mxu0 %v8158_v4  ;;  %3250 = vmatpush.msra.mxu2 %v8160_v42  ;;  %v2958_v60 = vpop.f32.mrf.mxu3 }
 0x530   : > { %5009 = vtanh.f32 %v2970_v32  ;;  %v2964_v55 = vadd.f32 %v2958_v60, %v2815_v7  ;;  %v10414_v7 = vld [vmem:[#allocation92_spill] sm:$0xff] }
 0x531   : > { %v2795_v53 = vadd.f32 0.5, %v2794_v49 }
 0x532   : > { %v2975_v4 = vmul.f32 0.5, %v2964_v55  ;;  %v10405_v55 = vld [vmem:[#allocation30_spill] sm:$0xff] }
 0x533   : > { %v2898_v14 = vpop.f32.mrf.mxu0 }
 0x534   : > { %v2961_v54 = vadd.f32 %v2898_v14, %v2812_v16  ;;  %v10411_v16 = vld [vmem:[#allocation104_spill] sm:$0xff]  ;;  %v10412_v14 = vld [vmem:[#allocation22_spill] sm:$0xff] }
 0x535   : > { %v5008_v36 = vpop.eup %5007 }
 0x536   : > { %v2800_v34 = vmul.f32 %v5008_v36, %v2795_v53  ;;  %v2966_v35 = vmul.f32 0.5, %v2961_v54  ;;  %v5010_v58 = vpop.eup %5009  ;;  %v10413_v53 = vld [vmem:[#allocation103_spill] sm:$0xff] }
 0x537   : > { %v2972_v49 = vmul.f32 0.5, %v5010_v58  ;;  %v10408_v58 = vld [vmem:[#allocation100_spill] sm:$0xff] }
 0x538   : > { %4855 = vst [vmem:[%s6749_s5 + $0x18] sm:$0xff] %v2800_v34  ;;  %5011 = vtanh.f32 %v2966_v35  ;;  %3151 = vmatmul.f32.vlgmr.msrb.gmra.mxu1 %v2800_v34  ;;  %3191 = vmatmul.f32.vlgmr.msrb.gmra.mxu3 %v2800_v34  ;;  %v10415_v35 = vld [vmem:[#allocation99_spill] sm:$0xff] }
 0x539   : > { %v2938_v32 = vpop.f32.mrf.mxu2  ;;  %3394 = vmatpush.msrb.mxu1 %v7576_v27  ;;  %3434 = vmatpush.msrb.mxu3 %v7578_v33  ;;  %v2973_v54 = vadd.f32 0.5, %v2972_v49  ;;  %v10417_v49 = vld [vmem:[#allocation106_spill] sm:$0xff] }
 0x53a   : > { %v2963_v42 = vadd.f32 %v2938_v32, %v2814_v1  ;;  %v10406_v1 = vld [vmem:[#allocation107_spill] sm:$0xff]  ;;  %v10416_v32 = vld [vmem:[#allocation36_spill] sm:$0xff] }
 0x53b   : > { %3395 = vmatpush.msrb.mxu1 %v7581_v37  ;;  %3435 = vmatpush.msrb.mxu3 %v7583_v31  ;;  %v2979_v37 = vmul.f32 %v2973_v54, %v7622_v30  ;;  %v10379_v30 = vld [vmem:[#allocation79_spill] sm:$0xff]  ;;  %v10419_v54 = vld [vmem:[#allocation108_spill] sm:$0xff] }
 0x53c   : > { %5013 = vtanh.f32 %v2963_v42  ;;  %v10410_v42 = vld [vmem:[#allocation34_spill] sm:$0xff] }
 0x53d   : > { %3396 = vmatpush.msrb.mxu1 %v7587_v52  ;;  %3436 = vmatpush.msrb.mxu3 %v7589_v63  ;;  %5015 = vtanh.f32 %v2975_v4  ;;  %v10409_v4 = vld [vmem:[#allocation21_spill] sm:$0xff] }
 0x53e   : > { %v5012_v36 = vpop.eup %5011 }
 0x53f   : > { %v2968_v60 = vmul.f32 0.5, %v5012_v36  ;;  %3397 = vmatpush.msrb.mxu1 %v7593_v44  ;;  %3437 = vmatpush.msrb.mxu3 %v7595_v26  ;;  %v10418_v36 = vld [vmem:[#allocation38_spill] sm:$0xff] }
 0x540   : > { %3231 = vmatmul.f32.vlgmr.msra.gmra.mxu1 %v2800_v34  ;;  %3271 = vmatmul.f32.vlgmr.msra.gmra.mxu3 %v2800_v34  ;;  %v10407_v34 = vld [vmem:[#allocation35_spill] sm:$0xff] }
 0x541   : > { %v2969_v27 = vadd.f32 0.5, %v2968_v60  ;;  %3398 = vmatpush.msrb.mxu1 %v7599_v17  ;;  %3438 = vmatpush.msrb.mxu3 %v7601_v39  ;;  %v10420_v60 = vld [vmem:[#allocation110_spill] sm:$0xff] }
 0x542   : > { %v5014_v33 = vpop.eup %5013 }
 0x543   : > { %v2980_v31 = vmul.f32 %v5014_v33, %v2969_v27  ;;  %3399 = vmatpush.msrb.mxu1 %v7605_v56  ;;  %3439 = vmatpush.msrb.mxu3 %v7607_v25  ;;  %v5016_v52 = vpop.eup %5015  ;;  %v10373_v56 = vld [vmem:[#allocation68_spill] sm:$0xff]  ;;  %v10374_v25 = vld [vmem:[#allocation74_spill] sm:$0xff]  ;;  %v10421_v27 = vld [vmem:[#allocation41_spill] sm:$0xff] }
 0x544   : > { %v2977_v44 = vmul.f32 0.5, %v5016_v52  ;;  %v10422_v33 = vld [vmem:[#allocation39_spill] sm:$0xff]  ;;  %v10425_v52 = vld [vmem:[#allocation37_spill] sm:$0xff] }
 0x545   : > { %v8183_v63 = vadd.f32 %v2980_v31, %v2979_v37  ;;  %3400 = vmatpush.msrb.mxu1 %v7611_v50  ;;  %3440 = vmatpush.msrb.mxu3 %v7613_v23  ;;  %v10375_v50 = vld [vmem:[#allocation71_spill] sm:$0xff]  ;;  %v10376_v23 = vld [vmem:[#allocation78_spill] sm:$0xff]  ;;  %v10423_v37 = vld [vmem:[#allocation40_spill] sm:$0xff] }
 0x546   : > { %v2978_v26 = vadd.f32 0.5, %v2977_v44  ;;  %v10424_v31 = vld [vmem:[#allocation109_spill] sm:$0xff]  ;;  %v10426_v44 = vld [vmem:[#allocation42_spill] sm:$0xff] }
 0x547   : > { %5017 = vtanh.f32 %v8183_v63  ;;  %3401 = vmatpush.msrb.mxu1 %v7618_v5  ;;  %3441 = vmatpush.msrb.mxu3 %v7620_v18  ;;  %v10377_v5 = vld [vmem:[#allocation75_spill] sm:$0xff]  ;;  %v10378_v18 = vld [vmem:[#allocation82_spill] sm:$0xff] }
 0x549   : > { %3402 = vmatpush.msrb.mxu1 %v7626_v38  ;;  %3442 = vmatpush.msrb.mxu3 %v7628_v40  ;;  %v10380_v38 = vld [vmem:[#allocation86_spill] sm:$0xff]  ;;  %v10381_v40 = vld [vmem:[#allocation83_spill] sm:$0xff] }
 0x54b   : > { %3403 = vmatpush.msrb.mxu1 %v7633_v48  ;;  %3443 = vmatpush.msrb.mxu3 %v7635_v51  ;;  %v10382_v48 = vld [vmem:[#allocation90_spill] sm:$0xff]  ;;  %v10383_v51 = vld [vmem:[#allocation31_spill] sm:$0xff] }
 0x54d   : > { %v5018_v17 = vpop.eup %5017  ;;  %3404 = vmatpush.msrb.mxu1 %v7639_v47  ;;  %3444 = vmatpush.msrb.mxu3 %v7641_v15  ;;  %v10384_v47 = vld [vmem:[#allocation27_spill] sm:$0xff]  ;;  %v10385_v15 = vld [vmem:[#allocation17_spill] sm:$0xff] }
 0x54e   : > { %v8196_v39 = vmul.f32 %v5018_v17, %v2978_v26  ;;  %v10427_v26 = vld [vmem:[#allocation43_spill] sm:$0xff]  ;;  %v10428_v17 = vld [vmem:[#allocation44_spill] sm:$0xff] }
 0x54f   : > { %3405 = vmatpush.msrb.mxu1 %v7645_v57  ;;  %3445 = vmatpush.msrb.mxu3 %v7647_v24  ;;  %v10386_v57 = vld [vmem:[#allocation88_spill] sm:$0xff] }
 0x550   : > { %3131 = vmatmul.f32.vlgmr.msrb.gmra.mxu0 %v8196_v39  ;;  %3171 = vmatmul.f32.vlgmr.msrb.gmra.mxu2 %v8196_v39  ;;  %v10387_v24 = vld [vmem:[#allocation96_spill] sm:$0xff] }
 0x551   : > { %3374 = vmatpush.msrb.mxu0 %v7653_v8  ;;  %3414 = vmatpush.msrb.mxu2 %v7655_v3  ;;  %v10388_v8 = vld [vmem:[#allocation18_spill] sm:$0xff]  ;;  %v10389_v3 = vld [vmem:[#allocation28_spill] sm:$0xff] }
 0x552   : > { %3406 = vmatpush.msrb.mxu1 %v7659_v6  ;;  %3446 = vmatpush.msrb.mxu3 %v7661_v41  ;;  %v10390_v6 = vld [vmem:[#allocation32_spill] sm:$0xff]  ;;  %v10391_v41 = vld [vmem:[#allocation102_spill] sm:$0xff] }
 0x553   : > { %3375 = vmatpush.msrb.mxu0 %v7665_v59  ;;  %3415 = vmatpush.msrb.mxu2 %v7667_v13  ;;  %v10392_v59 = vld [vmem:[#allocation97_spill] sm:$0xff]  ;;  %v10393_v13 = vld [vmem:[#allocation19_spill] sm:$0xff] }
 0x554   : > { %3407 = vmatpush.msrb.mxu1 %v7671_v22  ;;  %3447 = vmatpush.msrb.mxu3 %v7673_v43  ;;  %v10394_v22 = vld [vmem:[#allocation23_spill] sm:$0xff]  ;;  %v10395_v43 = vld [vmem:[#allocation24_spill] sm:$0xff] }
 0x555   : > { %3376 = vmatpush.msrb.mxu0 %v7675_v29  ;;  %3416 = vmatpush.msrb.mxu2 %v7677_v2  ;;  %v10396_v29 = vld [vmem:[#allocation20_spill] sm:$0xff]  ;;  %v10397_v2 = vld [vmem:[#allocation101_spill] sm:$0xff] }
 0x556   : > { %3408 = vmatpush.msrb.mxu1 %v7683_v61  ;;  %3448 = vmatpush.msrb.mxu3 %v7685_v46  ;;  %v10398_v61 = vld [vmem:[#allocation105_spill] sm:$0xff] }
 0x557   : > { %3377 = vmatpush.msrb.mxu0 %v7687_v62  ;;  %3417 = vmatpush.msrb.mxu2 %v7689_v45  ;;  %v10399_v46 = vld [vmem:[#allocation33_spill] sm:$0xff]  ;;  %v10401_v45 = vld [vmem:[#allocation87_spill] sm:$0xff] }
 0x558   : > { %3211 = vmatmul.f32.vlgmr.msra.gmra.mxu0 %v8196_v39  ;;  %3251 = vmatmul.f32.vlgmr.msra.gmra.mxu2 %v8196_v39  ;;  %v10400_v62 = vld [vmem:[#allocation29_spill] sm:$0xff] }
 0x559   : > { %3378 = vmatpush.msrb.mxu0 %v10373_v56  ;;  %3418 = vmatpush.msrb.mxu2 %v7697_v11  ;;  %v10402_v11 = vld [vmem:[#allocation25_spill] sm:$0xff]  ;;  %v10430_v56 = vld [vmem:[#allocation46_spill] sm:$0xff] }
 0x55a   : > { %3409 = vmatpush.msrb.mxu1 %v10374_v25  ;;  %3449 = vmatpush.msrb.mxu3 %v10375_v50  ;;  %v10431_v25 = vld [vmem:[#allocation47_spill] sm:$0xff]  ;;  %v10432_v50 = vld [vmem:[#allocation48_spill] sm:$0xff] }
 0x55b   : > { %3379 = vmatpush.msrb.mxu0 %v10376_v23  ;;  %3419 = vmatpush.msrb.mxu2 %v10377_v5  ;;  %v10433_v23 = vld [vmem:[#allocation49_spill] sm:$0xff]  ;;  %v10434_v5 = vld [vmem:[#allocation50_spill] sm:$0xff] }
 0x55c   : > { %3410 = vmatmul.f32.vlgmr.msrb.gmra.mxu1 %v8196_v39  ;;  %3450 = vmatmul.f32.vlgmr.msrb.gmra.mxu3 %v8196_v39 }
 0x55d   : > { %3380 = vmatpush.msrb.mxu0 %v10378_v18  ;;  %3420 = vmatpush.msrb.mxu2 %v10379_v30  ;;  %v10435_v18 = vld [vmem:[#allocation51_spill] sm:$0xff]  ;;  %v10436_v30 = vld [vmem:[#allocation52_spill] sm:$0xff] }
 0x55e   : > { %3628 = vmatpush.msra.mxu1 %v7723_v20  ;;  %3668 = vmatpush.msra.mxu3 %v10380_v38  ;;  %v10404_v20 = vld [vmem:[#allocation94_spill] sm:$0xff]  ;;  %v10437_v38 = vld [vmem:[#allocation53_spill] sm:$0xff] }
 0x55f   : > { %3381 = vmatpush.msrb.mxu0 %v10381_v40  ;;  %3421 = vmatpush.msrb.mxu2 %v10382_v48  ;;  %v10438_v40 = vld [vmem:[#allocation54_spill] sm:$0xff]  ;;  %v10439_v48 = vld [vmem:[#allocation55_spill] sm:$0xff] }
 0x560   : > { %3629 = vmatpush.msra.mxu1 %v7789_v0  ;;  %3669 = vmatpush.msra.mxu3 %v10383_v51  ;;  %v10403_v0 = vld [vmem:[#allocation26_spill] sm:$0xff]  ;;  %v10440_v51 = vld [vmem:[#allocation56_spill] sm:$0xff] }
 0x561   : > { %3382 = vmatpush.msrb.mxu0 %v10384_v47  ;;  %3422 = vmatpush.msrb.mxu2 %v10385_v15  ;;  %v10441_v47 = vld [vmem:[#allocation57_spill] sm:$0xff]  ;;  %v10442_v15 = vld [vmem:[#allocation58_spill] sm:$0xff] }
 0x562   : > { %3630 = vmatpush.msra.mxu1 %v10386_v57  ;;  %3670 = vmatpush.msra.mxu3 %v10387_v24  ;;  %v10443_v57 = vld [vmem:[#allocation59_spill] sm:$0xff]  ;;  %v10444_v24 = vld [vmem:[#allocation60_spill] sm:$0xff] }
 0x563   : > { %3383 = vmatpush.msrb.mxu0 %v10388_v8  ;;  %3423 = vmatpush.msrb.mxu2 %v10389_v3  ;;  %v10445_v8 = vld [vmem:[#allocation61_spill] sm:$0xff]  ;;  %v10446_v3 = vld [vmem:[#allocation62_spill] sm:$0xff] }
 0x564   : > { %3631 = vmatpush.msra.mxu1 %v10390_v6  ;;  %3671 = vmatpush.msra.mxu3 %v10391_v41  ;;  %v10447_v6 = vld [vmem:[#allocation63_spill] sm:$0xff]  ;;  %v10448_v41 = vld [vmem:[#allocation64_spill] sm:$0xff] }
 0x565   : > { %3384 = vmatpush.msrb.mxu0 %v10392_v59  ;;  %3424 = vmatpush.msrb.mxu2 %v10393_v13  ;;  %v10449_v59 = vld [vmem:[#allocation65_spill] sm:$0xff]  ;;  %v10450_v13 = vld [vmem:[#allocation66_spill] sm:$0xff] }
 0x566   : > { %3632 = vmatpush.msra.mxu1 %v10394_v22  ;;  %3672 = vmatpush.msra.mxu3 %v10395_v43  ;;  %v10451_v22 = vld [vmem:[#allocation67_spill] sm:$0xff]  ;;  %v10452_v43 = vld [vmem:[#allocation69_spill] sm:$0xff] }
 0x567   : > { %3385 = vmatpush.msrb.mxu0 %v10396_v29  ;;  %3425 = vmatpush.msrb.mxu2 %v10397_v2  ;;  %v10453_v29 = vld [vmem:[#allocation70_spill] sm:$0xff]  ;;  %v10454_v2 = vld [vmem:[#allocation73_spill] sm:$0xff] }
 0x568   : > { %3633 = vmatpush.msra.mxu1 %v10398_v61  ;;  %3673 = vmatpush.msra.mxu3 %v10399_v46  ;;  %v10455_v61 = vld [vmem:[#allocation111_spill] sm:$0xff]  ;;  %v10456_v46 = vld [vmem:[#allocation76_spill] sm:$0xff] }
 0x569   : > { %3386 = vmatpush.msrb.mxu0 %v10400_v62  ;;  %3426 = vmatpush.msrb.mxu2 %v10401_v45  ;;  %v10457_v62 = vld [vmem:[#allocation77_spill] sm:$0xff]  ;;  %v10458_v45 = vld [vmem:[#allocation114_spill] sm:$0xff] }
 0x56a   : > { %3634 = vmatpush.msra.mxu1 %v10402_v11  ;;  %3674 = vmatpush.msra.mxu3 %v10403_v0  ;;  %v10459_v11 = vld [vmem:[#allocation84_spill] sm:$0xff]  ;;  %v10460_v0 = vld [vmem:[#allocation85_spill] sm:$0xff] }
 0x56b   : > { %3387 = vmatpush.msrb.mxu0 %v10404_v20  ;;  %3427 = vmatpush.msrb.mxu2 %v10405_v55  ;;  %v10461_v20 = vld [vmem:[#allocation115_spill] sm:$0xff]  ;;  %v10462_v55 = vld [vmem:[#allocation93_spill] sm:$0xff] }
 0x56c   : > { %3635 = vmatpush.msra.mxu1 %v10406_v1  ;;  %3675 = vmatpush.msra.mxu3 %v10407_v34  ;;  %v10463_v1 = vld [vmem:[#allocation72_spill] sm:$0xff]  ;;  %v10464_v34 = vld [vmem:[#allocation98_spill] sm:$0xff] }
 0x56d   : > { %3388 = vmatpush.msrb.mxu0 %v10408_v58  ;;  %3428 = vmatpush.msrb.mxu2 %v10409_v4  ;;  %v10465_v58 = vld [vmem:[#allocation80_spill] sm:$0xff]  ;;  %v10467_v4 = vld [vmem:[#allocation117_spill] sm:$0xff] }
 0x56e   : > { %3636 = vmatpush.msra.mxu1 %v10410_v42  ;;  %3676 = vmatpush.msra.mxu3 %v10411_v16  ;;  %v10468_v42 = vld [vmem:[#allocation118_spill] sm:$0xff]  ;;  %v10469_v16 = vld [vmem:[#allocation89_spill] sm:$0xff] }
 0x56f   : > { %3389 = vmatpush.msrb.mxu0 %v10412_v14  ;;  %3429 = vmatpush.msrb.mxu2 %v10413_v53  ;;  %v10471_v14 = vld [vmem:[#allocation119_spill] sm:$0xff]  ;;  %v10472_v53 = vld [vmem:[#allocation120_spill] sm:$0xff] }
 0x570   : > { %3390 = vmatmul.f32.vlgmr.msrb.gmra.mxu0 %v8196_v39  ;;  %3430 = vmatmul.f32.vlgmr.msrb.gmra.mxu2 %v8196_v39  ;;  %v10429_v39 = vld [vmem:[#allocation45_spill] sm:$0xff] }
 0x571   : > { %3608 = vmatpush.msra.mxu0 %v10414_v7  ;;  %3648 = vmatpush.msra.mxu2 %v10415_v35  ;;  %v10473_v7 = vld [vmem:[#allocation112_spill] sm:$0xff] }
 0x572   : > { %3637 = vmatpush.msra.mxu1 %v10416_v32  ;;  %3677 = vmatpush.msra.mxu3 %v10417_v49  ;;  %v10475_v35 = vld [vmem:[#allocation116_spill] sm:$0xff]  ;;  %v10476_v32 = vld [vmem:[#allocation95_spill] sm:$0xff]  ;;  %v10477_v49 = vld [vmem:[#allocation121_spill] sm:$0xff] }
 0x573   : > { %3609 = vmatpush.msra.mxu0 %v10418_v36  ;;  %3649 = vmatpush.msra.mxu2 %v10419_v54  ;;  %v10478_v36 = vld [vmem:[#allocation122_spill] sm:$0xff]  ;;  %v10479_v54 = vld [vmem:[#allocation129_spill] sm:$0xff] }
 0x574   : > { %3638 = vmatpush.msra.mxu1 %v10420_v60  ;;  %3678 = vmatpush.msra.mxu3 %v10421_v27  ;;  %v10480_v60 = vld [vmem:[#allocation132_spill] sm:$0xff]  ;;  %v10481_v27 = vld [vmem:[#allocation135_spill] sm:$0xff] }
 0x575   : > { %3610 = vmatpush.msra.mxu0 %v10422_v33  ;;  %3650 = vmatpush.msra.mxu2 %v10423_v37  ;;  %v10482_v33 = vld [vmem:[#allocation138_spill] sm:$0xff]  ;;  %v10483_v37 = vld [vmem:[#allocation139_spill] sm:$0xff] }
 0x576   : > { %3639 = vmatpush.msra.mxu1 %v10424_v31  ;;  %3679 = vmatpush.msra.mxu3 %v10425_v52  ;;  %v10484_v31 = vld [vmem:[#allocation140_spill] sm:$0xff]  ;;  %v10485_v52 = vld [vmem:[#allocation141_spill] sm:$0xff] }
 0x577   : > { %3611 = vmatpush.msra.mxu0 %v10426_v44  ;;  %3651 = vmatpush.msra.mxu2 %v10427_v26  ;;  %v10486_v44 = vld [vmem:[#allocation142_spill] sm:$0xff]  ;;  %v10487_v26 = vld [vmem:[#allocation143_spill] sm:$0xff] }
 0x578   : > { %3640 = vmatpush.msra.mxu1 %v10428_v17  ;;  %3680 = vmatpush.msra.mxu3 %v10429_v39  ;;  %v10488_v17 = vld [vmem:[#allocation144_spill] sm:$0xff]  ;;  %v10489_v39 = vld [vmem:[#allocation145_spill] sm:$0xff] }
 0x579   : > { %3612 = vmatpush.msra.mxu0 %v10430_v56  ;;  %3652 = vmatpush.msra.mxu2 %v10431_v25  ;;  %v10490_v56 = vld [vmem:[#allocation146_spill] sm:$0xff]  ;;  %v10492_v25 = vld [vmem:[#allocation148_spill] sm:$0xff] }
 0x57a   : > { %3641 = vmatpush.msra.mxu1 %v10432_v50  ;;  %3681 = vmatpush.msra.mxu3 %v10433_v23  ;;  %v10493_v50 = vld [vmem:[#allocation149_spill] sm:$0xff]  ;;  %v10494_v23 = vld [vmem:[#allocation150_spill] sm:$0xff] }
 0x57b   : > { %3613 = vmatpush.msra.mxu0 %v10434_v5  ;;  %3653 = vmatpush.msra.mxu2 %v10435_v18  ;;  %v10495_v5 = vld [vmem:[#allocation152_spill] sm:$0xff]  ;;  %v10496_v18 = vld [vmem:[#allocation153_spill] sm:$0xff] }
 0x57c   : > { %3642 = vmatpush.msra.mxu1 %v10436_v30  ;;  %3682 = vmatpush.msra.mxu3 %v10437_v38  ;;  %v10497_v30 = vld [vmem:[#allocation154_spill] sm:$0xff]  ;;  %v10498_v38 = vld [vmem:[#allocation123_spill] sm:$0xff] }
 0x57d   : > { %3614 = vmatpush.msra.mxu0 %v10438_v40  ;;  %3654 = vmatpush.msra.mxu2 %v10439_v48  ;;  %v10499_v40 = vld [vmem:[#allocation124_spill] sm:$0xff]  ;;  %v10500_v48 = vld [vmem:[#allocation127_spill] sm:$0xff] }
 0x57e   : > { %3643 = vmatpush.msra.mxu1 %v10440_v51  ;;  %3683 = vmatpush.msra.mxu3 %v10441_v47  ;;  %v10501_v51 = vld [vmem:[#allocation130_spill] sm:$0xff]  ;;  %v10502_v47 = vld [vmem:[#allocation131_spill] sm:$0xff] }
 0x57f   : > { %3615 = vmatpush.msra.mxu0 %v10442_v15  ;;  %3655 = vmatpush.msra.mxu2 %v10443_v57  ;;  %v10503_v15 = vld [vmem:[#allocation151_spill] sm:$0xff]  ;;  %v8364_v57 = vld [vmem:[#allocation9 + $0x2d8] sm:$0xff] }
 0x580   : > { %3708 = vmatpush.msrb.mxu1 %v10444_v24  ;;  %3748 = vmatpush.msrb.mxu3 %v10445_v8  ;;  %v8368_v24 = vld [vmem:[#allocation9 + $0x2b0] sm:$0xff]  ;;  %v8370_v8 = vld [vmem:[#allocation9 + $0x2b8] sm:$0xff] }
 0x581   : > { %3616 = vmatpush.msra.mxu0 %v10446_v3  ;;  %3656 = vmatpush.msra.mxu2 %v10447_v6  ;;  %v8376_v3 = vld [vmem:[#allocation9 + $0x298] sm:$0xff] }
 0x582   : > { %3709 = vmatpush.msrb.mxu1 %v10448_v41  ;;  %3749 = vmatpush.msrb.mxu3 %v10449_v59  ;;  %v10504_v59 = vld [vmem:[#allocation13_spill] sm:$0xff] }
 0x583   : > { %3617 = vmatpush.msra.mxu0 %v10450_v13  ;;  %3657 = vmatpush.msra.mxu2 %v10451_v22  ;;  %v8381_v22 = vld [vmem:[#allocation9 + $0x270] sm:$0xff] }
 0x584   : > { %3710 = vmatpush.msrb.mxu1 %v10452_v43  ;;  %3750 = vmatpush.msrb.mxu3 %v10453_v29  ;;  %v8383_v43 = vld [vmem:[#allocation9 + $0x278] sm:$0xff] }
 0x585   : > { %3618 = vmatpush.msra.mxu0 %v10454_v2  ;;  %3658 = vmatpush.msra.mxu2 %v10455_v61  ;;  %v10505_v2 = vld [vmem:[#allocation125_spill] sm:$0xff]  ;;  %v10506_v61 = vld [vmem:[#allocation126_spill] sm:$0xff] }
 0x586   : > { %3711 = vmatpush.msrb.mxu1 %v10456_v46  ;;  %3751 = vmatpush.msrb.mxu3 %v10457_v62 }
 0x587   : > { %3619 = vmatpush.msra.mxu0 %v7985_v21  ;;  %3659 = vmatpush.msra.mxu2 %v10458_v45  ;;  %v10466_v21 = vld [vmem:[#allocation81_spill] sm:$0xff] }
 0x588   : > { %3712 = vmatpush.msrb.mxu1 %v10459_v11  ;;  %3752 = vmatpush.msrb.mxu3 %v10460_v0  ;;  %v10507_v11 = vld [vmem:[#allocation133_spill] sm:$0xff]  ;;  %v10508_v0 = vld [vmem:[#allocation134_spill] sm:$0xff] }
 0x589   : > { %3620 = vmatpush.msra.mxu0 %v7997_v9  ;;  %3660 = vmatpush.msra.mxu2 %v10461_v20  ;;  %v10470_v9 = vld [vmem:[#allocation91_spill] sm:$0xff]  ;;  %v10509_v20 = vld [vmem:[#allocation14_spill] sm:$0xff] }
 0x58a   : > { %3713 = vmatpush.msrb.mxu1 %v10462_v55  ;;  %3753 = vmatpush.msrb.mxu3 %v10463_v1 }
 0x58b   : > { %3621 = vmatpush.msra.mxu0 %v8009_v19  ;;  %3661 = vmatpush.msra.mxu2 %v10464_v34  ;;  %v10474_v19 = vld [vmem:[#allocation113_spill] sm:$0xff]  ;;  %v10510_v34 = vld [vmem:[#allocation136_spill] sm:$0xff] }
 0x58c   : > { %3714 = vmatpush.msrb.mxu1 %v10465_v58  ;;  %3754 = vmatpush.msrb.mxu3 %v10466_v21  ;;  %v10511_v58 = vld [vmem:[#allocation137_spill] sm:$0xff] }
 0x58d   : > { %3622 = vmatpush.msra.mxu0 %v10467_v4  ;;  %3662 = vmatpush.msra.mxu2 %v10468_v42  ;;  %v10512_v4 = vld [vmem:[#allocation15_spill] sm:$0xff] }
 0x58e   : > { %3715 = vmatpush.msrb.mxu1 %v10469_v16  ;;  %3755 = vmatpush.msrb.mxu3 %v10470_v9 }
 0x58f   : > { %3623 = vmatpush.msra.mxu0 %v10471_v14  ;;  %3663 = vmatpush.msra.mxu2 %v10472_v53 }
 0x590   : > { %3716 = vmatpush.msrb.mxu1 %v10475_v35  ;;  %3756 = vmatpush.msrb.mxu3 %v10476_v32 }
 0x591   : > { %3688 = vmatpush.msrb.mxu0 %v10473_v7  ;;  %3728 = vmatpush.msrb.mxu2 %v10474_v19  ;;  %v10513_v19 = vld [vmem:[#allocation16_spill] sm:$0xff] }
 0x592   : > { %3757 = vmatpush.msrb.mxu3 %v8364_v57 }
 0x593   : > { %3689 = vmatpush.msrb.mxu0 %v10477_v49  ;;  %3729 = vmatpush.msrb.mxu2 %v10478_v36 }
 0x594   : > { %3758 = vmatpush.msrb.mxu3 %v8370_v8 }
 0x595   : > { %3690 = vmatpush.msrb.mxu0 %v10479_v54  ;;  %3730 = vmatpush.msrb.mxu2 %v10480_v60 }
 0x596   : > { %3759 = vmatpush.msrb.mxu3 %v8376_v3 }
 0x597   : > { %3691 = vmatpush.msrb.mxu0 %v8064_v12  ;;  %3731 = vmatpush.msrb.mxu2 %v10481_v27  ;;  %v10491_v12 = vld [vmem:[#allocation147_spill] sm:$0xff] }
 0x598   : > { %3760 = vmatpush.msrb.mxu3 %v8383_v43 }
 0x599   : > { %3692 = vmatpush.msrb.mxu0 %v10482_v33  ;;  %3732 = vmatpush.msrb.mxu2 %v10483_v37  ;;  %v3306_v33 = vld [vmem:[%s3304_s29 + $0x8] sm:$0xff] }
 0x59a   : > { %3761 = vmatpush.msrb.mxu3 %v10506_v61  ;;  %v8406_v61 = vld [vmem:[#allocation7 + $0x1c8] sm:$0xff] }
 0x59b   : > { %3693 = vmatpush.msrb.mxu0 %v10484_v31  ;;  %3733 = vmatpush.msrb.mxu2 %v10485_v52 }
 0x59c   : > { %3762 = vmatpush.msrb.mxu3 %v10508_v0  ;;  %v8414_v0 = vld [vmem:[#allocation7 + $0x1b8] sm:$0xff] }
 0x59d   : > { %3694 = vmatpush.msrb.mxu0 %v10486_v44  ;;  %3734 = vmatpush.msrb.mxu2 %v10487_v26 }
 0x59e   : > { %3763 = vmatpush.msrb.mxu3 %v10511_v58  ;;  %v8420_v58 = vld [vmem:[#allocation7 + $0x198] sm:$0xff] }
 0x59f   : > { %3695 = vmatpush.msrb.mxu0 %v10488_v17  ;;  %3735 = vmatpush.msrb.mxu2 %v10489_v39  ;;  %v10514_v17 = vld [vmem:[#allocation128_spill] sm:$0xff] }
 0x5a1   : > { %3696 = vmatpush.msrb.mxu0 %v10490_v56  ;;  %3736 = vmatpush.msrb.mxu2 %v10491_v12 }
 0x5a3   : > { %3697 = vmatpush.msrb.mxu0 %v10492_v25  ;;  %3737 = vmatpush.msrb.mxu2 %v10493_v50 }
 0x5a5   : > { %3698 = vmatpush.msrb.mxu0 %v10494_v23  ;;  %3738 = vmatpush.msrb.mxu2 %v8128_v10  ;;  %v8362_v10 = vld [vmem:[#allocation9 + $0x2d0] sm:$0xff] }
 0x5a6   : > { %3717 = vmatpush.msrb.mxu1 %v8362_v10 }
 0x5a7   : > { %3699 = vmatpush.msrb.mxu0 %v10495_v5  ;;  %3739 = vmatpush.msrb.mxu2 %v10496_v18  ;;  %v3305_v5 = vld [vmem:[%s3304_s29] sm:$0xff] }
 0x5a8   : > { %3718 = vmatpush.msrb.mxu1 %v8368_v24 }
 0x5a9   : > { %3700 = vmatpush.msrb.mxu0 %v10497_v30  ;;  %3740 = vmatpush.msrb.mxu2 %v10498_v38  ;;  %v3308_v38 = vld [vmem:[%s3304_s29 + $0x18] sm:$0xff] }
 0x5ab   : > { %3701 = vmatpush.msrb.mxu0 %v10499_v40  ;;  %3741 = vmatpush.msrb.mxu2 %v10500_v48 }
 0x5ad   : > { %3702 = vmatpush.msrb.mxu0 %v10501_v51  ;;  %3742 = vmatpush.msrb.mxu2 %v8153_v28  ;;  %v8374_v28 = vld [vmem:[#allocation9 + $0x290] sm:$0xff] }
 0x5ae   : > { %3719 = vmatpush.msrb.mxu1 %v8374_v28 }
 0x5af   : > { %3703 = vmatpush.msrb.mxu0 %v10502_v47  ;;  %3743 = vmatpush.msrb.mxu2 %v10503_v15 }
 0x5b0   : > { %3720 = vmatpush.msrb.mxu1 %v8381_v22 }
 0x5b2   : > { %3721 = vmatpush.msrb.mxu1 %v10505_v2 }
 0x5b4   : > { %3722 = vmatpush.msrb.mxu1 %v10507_v11  ;;  %v8412_v11 = vld [vmem:[#allocation7 + $0x1a8] sm:$0xff] }
 0x5b5   : > { %v3152_v6 = vpop.f32.mrf.mxu1 }
 0x5b6   : > { %3723 = vmatpush.msrb.mxu1 %v10510_v34  ;;  %v8418_v34 = vld [vmem:[#allocation7 + $0x188] sm:$0xff] }
 0x5bb   : > { %v3192_v62 = vpop.f32.mrf.mxu3 }
 0x5bd   : > { %v3232_v16 = vpop.f32.mrf.mxu1 }
 0x5c3   : > { %v3272_v32 = vpop.f32.mrf.mxu3 }
 0x5cd   : > { %v3132_v41 = vpop.f32.mrf.mxu0 }
 0x5ce   : > { %v3133_v13 = vadd.f32 %v3132_v41, %v10504_v59  ;;  %v8403_v41 = vld [vmem:[#allocation7 + $0x1f8] sm:$0xff] }
 0x5d0   : > { %v3153_v29 = vadd.f32 %v3152_v6, %v3133_v13  ;;  %v8401_v6 = vld [vmem:[#allocation7 + $0x1e8] sm:$0xff] }
 0x5d2   : > { %v3276_v46 = vmul.f32 0.5, %v3153_v29  ;;  %v3307_v29 = vld [vmem:[%s3304_s29 + $0x10] sm:$0xff] }
 0x5d3   : > { %v3172_v45 = vpop.f32.mrf.mxu2 }
 0x5d4   : > { %v3173_v55 = vadd.f32 %v3172_v45, %v10509_v20  ;;  %5019 = vtanh.f32 %v3276_v46  ;;  %v8408_v46 = vld [vmem:[#allocation7 + $0x1d8] sm:$0xff] }
 0x5d5   : > { %v3212_v1 = vpop.f32.mrf.mxu0 }
 0x5d6   : > { %v3193_v21 = vadd.f32 %v3192_v62, %v3173_v55  ;;  %v3213_v42 = vadd.f32 %v3212_v1, %v10512_v4 }
 0x5d8   : > { %v3280_v9 = vmul.f32 0.5, %v3193_v21  ;;  %v3233_v14 = vadd.f32 %v3232_v16, %v3213_v42  ;;  %v8424_v42 = vld [vmem:[#allocation7 + $0x168] sm:$0xff]  ;;  %v8426_v16 = vld [vmem:[#allocation7 + $0x178] sm:$0xff] }
 0x5d9   : > { %v3411_v37 = vpop.f32.mrf.mxu1 }
 0x5da   : > { %5021 = vtanh.f32 %v3280_v9  ;;  %v5020_v7 = vpop.eup %5019  ;;  %v3455_v26 = vadd.f32 %v3411_v37, %v3306_v33  ;;  %v8445_v33 = vld [vmem:[#allocation7 + $0x118] sm:$0xff] }
 0x5db   : > { %v3252_v53 = vpop.f32.mrf.mxu2  ;;  %5023 = vtanh.f32 %v3233_v14  ;;  %v3278_v36 = vmul.f32 0.5, %v5020_v7  ;;  %v8432_v7 = vld [vmem:[#allocation7 + $0x158] sm:$0xff] }
 0x5dc   : > { %v3253_v35 = vadd.f32 %v3252_v53, %v10513_v19  ;;  %v3463_v50 = vmul.f32 0.5, %v3455_v26  ;;  %v8430_v53 = vld [vmem:[#allocation7 + $0x148] sm:$0xff] }
 0x5dd   : > { %v3279_v52 = vadd.f32 0.5, %v3278_v36  ;;  %v8438_v36 = vld [vmem:[#allocation7 + $0x138] sm:$0xff]  ;;  %v8458_v26 = vld [vmem:[#allocation7 + $0xc8] sm:$0xff] }
 0x5de   : > { %v3273_v49 = vadd.f32 %v3272_v32, %v3253_v35 }
 0x5df   : > { %v3451_v40 = vpop.f32.mrf.mxu3 }
 0x5e0   : > { %v5022_v54 = vpop.eup %5021  ;;  %v3285_v60 = vmul.f32 0.5, %v3273_v49  ;;  %v3457_v13 = vadd.f32 %v3451_v40, %v3308_v38  ;;  %v8436_v49 = vld [vmem:[#allocation7 + $0x128] sm:$0xff]  ;;  %v8480_v38 = vld [vmem:[#allocation7 + $0x1f0] sm:$0xff] }
 0x5e1   : > { %v3282_v27 = vmul.f32 0.5, %v5022_v54  ;;  %v5024_v31 = vpop.eup %5023  ;;  %v8484_v40 = vld [vmem:[#allocation7 + $0x68] sm:$0xff] }
 0x5e2   : > { %5025 = vtanh.f32 %v3285_v60  ;;  %v3290_v56 = vmul.f32 %v5024_v31, %v3279_v52  ;;  %v3468_v1 = vmul.f32 0.5, %v3457_v13  ;;  %v8451_v52 = vld [vmem:[#allocation7 + $0xe8] sm:$0xff]  ;;  %v8498_v13 = vld [vmem:[#allocation7 + $0x58] sm:$0xff] }
 0x5e3   : > { %v3283_v44 = vadd.f32 0.5, %v3282_v27  ;;  %v8443_v27 = vld [vmem:[#allocation7 + $0x108] sm:$0xff] }
 0x5e5   : > { %v3289_v39 = vmul.f32 %v3283_v44, %v10514_v17  ;;  %v8453_v44 = vld [vmem:[#allocation7 + $0xf8] sm:$0xff] }
 0x5e6   : > { %v8460_v17 = vld [vmem:[#allocation7 + $0xd8] sm:$0xff] }
 0x5e7   : > { %v8398_v12 = vadd.f32 %v3290_v56, %v3289_v39  ;;  %v8464_v39 = vld [vmem:[#allocation7 + $0xa8] sm:$0xff]  ;;  %v8466_v56 = vld [vmem:[#allocation7 + $0xb8] sm:$0xff] }
 0x5e8   : > { %v5026_v25 = vpop.eup %5025 }
 0x5e9   : > { %5027 = vtanh.f32 %v8398_v12  ;;  %v3287_v23 = vmul.f32 0.5, %v5026_v25 }
 0x5ea   : > { %5029 = vtanh.f32 %v3463_v50  ;;  %v8470_v50 = vld [vmem:[#allocation7 + $0x88] sm:$0xff] }
 0x5eb   : > { %v3288_v30 = vadd.f32 0.5, %v3287_v23  ;;  %v8472_v23 = vld [vmem:[#allocation7 + $0x98] sm:$0xff] }
 0x5ed   : > { %v3391_v18 = vpop.f32.mrf.mxu0 }
 0x5ee   : > { %v3454_v48 = vadd.f32 %v3391_v18, %v3305_v5 }
 0x5ef   : > { %v5028_v51 = vpop.eup %5027 }
 0x5f0   : > { %v3293_v47 = vmul.f32 %v5028_v51, %v3288_v30  ;;  %v3459_v15 = vmul.f32 0.5, %v3454_v48  ;;  %v5030_v2 = vpop.eup %5029  ;;  %v8478_v30 = vld [vmem:[#allocation7 + $0x1e0] sm:$0xff]  ;;  %v8486_v48 = vld [vmem:[#allocation7 + $0x78] sm:$0xff] }
 0x5f1   : > { %v3465_v55 = vmul.f32 0.5, %v5030_v2  ;;  %v8490_v51 = vld [vmem:[#allocation7 + $0x1c0] sm:$0xff]  ;;  %v8502_v2 = vld [vmem:[#allocation7 + $0x1b0] sm:$0xff] }
 0x5f2   : > { %4861 = vst [vmem:[%s6749_s5 + $0x20] sm:$0xff] %v3293_v47  ;;  %5031 = vtanh.f32 %v3459_v15  ;;  %3644 = vmatmul.f32.vlgmr.msra.gmra.mxu1 %v3293_v47  ;;  %3684 = vmatmul.f32.vlgmr.msra.gmra.mxu3 %v3293_v47  ;;  %v8496_v15 = vld [vmem:[#allocation7 + $0x48] sm:$0xff] }
 0x5f3   : > { %v3431_v62 = vpop.f32.mrf.mxu2  ;;  %3887 = vmatpush.msra.mxu1 %v8401_v6  ;;  %3927 = vmatpush.msra.mxu3 %v8403_v41  ;;  %v3466_v9 = vadd.f32 0.5, %v3465_v55  ;;  %v8512_v55 = vld [vmem:[#allocation7 + $0x180] sm:$0xff] }
 0x5f4   : > { %v3456_v45 = vadd.f32 %v3431_v62, %v3307_v29  ;;  %v8500_v29 = vld [vmem:[#allocation7 + $0x1a0] sm:$0xff]  ;;  %v8508_v62 = vld [vmem:[#allocation7 + $0x28] sm:$0xff] }
 0x5f5   : > { %3888 = vmatpush.msra.mxu1 %v8406_v61  ;;  %3928 = vmatpush.msra.mxu3 %v8408_v46  ;;  %v3472_v54 = vmul.f32 %v3466_v9, %v8183_v63  ;;  %v8522_v9 = vld [vmem:[#allocation7 + $0x170] sm:$0xff] }
 0x5f6   : > { %5033 = vtanh.f32 %v3456_v45  ;;  %v8510_v45 = vld [vmem:[#allocation7 + $0x38] sm:$0xff] }
 0x5f7   : > { %3889 = vmatpush.msra.mxu1 %v8412_v11  ;;  %3929 = vmatpush.msra.mxu3 %v8414_v0  ;;  %5035 = vtanh.f32 %v3468_v1  ;;  %v8514_v1 = vld [vmem:[#allocation7 + $0x190] sm:$0xff] }
 0x5f8   : > { %v5032_v21 = vpop.eup %5031 }
 0x5f9   : > { %v3461_v14 = vmul.f32 0.5, %v5032_v21  ;;  %3890 = vmatpush.msra.mxu1 %v8418_v34  ;;  %3930 = vmatpush.msra.mxu3 %v8420_v58  ;;  %v8520_v21 = vld [vmem:[#allocation7 + $0x160] sm:$0xff] }
 0x5fa   : > { %3724 = vmatmul.f32.vlgmr.msrb.gmra.mxu1 %v3293_v47  ;;  %3764 = vmatmul.f32.vlgmr.msrb.gmra.mxu3 %v3293_v47  ;;  %v8492_v47 = vld [vmem:[#allocation7 + $0x1d0] sm:$0xff]  ;;  %10515 = vst [vmem:[#allocation68_spill] sm:$0xff] %v8520_v21 }
 0x5fb   : > { %v3462_v35 = vadd.f32 0.5, %v3461_v14  ;;  %3891 = vmatpush.msra.mxu1 %v8424_v42  ;;  %3931 = vmatpush.msra.mxu3 %v8426_v16  ;;  %v8528_v14 = vld [vmem:[#allocation7 + $0x8] sm:$0xff] }
 0x5fc   : > { %v5034_v32 = vpop.eup %5033  ;;  %10516 = vst [vmem:[#allocation74_spill] sm:$0xff] %v8528_v14 }
 0x5fd   : > { %v3473_v60 = vmul.f32 %v5034_v32, %v3462_v35  ;;  %3892 = vmatpush.msra.mxu1 %v8430_v53  ;;  %3932 = vmatpush.msra.mxu3 %v8432_v7  ;;  %v5036_v37 = vpop.eup %5035  ;;  %v8530_v35 = vld [vmem:[#allocation7 + $0x18] sm:$0xff]  ;;  %v8534_v32 = vld [vmem:[#allocation7 + $0x140] sm:$0xff] }
 0x5fe   : > { %v3470_v63 = vmul.f32 0.5, %v5036_v37  ;;  %10517 = vst [vmem:[#allocation71_spill] sm:$0xff] %v8530_v35  ;;  %v8542_v37 = vld [vmem:[#allocation7 + $0x130] sm:$0xff] }
 0x5ff   : > { %v8447_v31 = vadd.f32 %v3473_v60, %v3472_v54  ;;  %3893 = vmatpush.msra.mxu1 %v8436_v49  ;;  %3933 = vmatpush.msra.mxu3 %v8438_v36  ;;  %10518 = vst [vmem:[#allocation78_spill] sm:$0xff] %v8534_v32  ;;  %v8536_v54 = vld [vmem:[#allocation7 + $0x150] sm:$0xff]  ;;  %v8540_v60 = vld [vmem:[#allocation7 + $0x120] sm:$0xff] }
 0x600   : > { %v3471_v25 = vadd.f32 0.5, %v3470_v63  ;;  %10519 = vst [vmem:[#allocation75_spill] sm:$0xff] %v8536_v54  ;;  %v8548_v63 = vld [vmem:[#allocation9 + $0x3e0] sm:$0xff] }
 0x601   : > { %5037 = vtanh.f32 %v8447_v31  ;;  %3894 = vmatpush.msra.mxu1 %v8443_v27  ;;  %3934 = vmatpush.msra.mxu3 %v8445_v33  ;;  %10520 = vst [vmem:[#allocation82_spill] sm:$0xff] %v8540_v60 }
 0x602   : > { %10521 = vst [vmem:[#allocation79_spill] sm:$0xff] %v8542_v37 }
 0x603   : > { %3895 = vmatpush.msra.mxu1 %v8451_v52  ;;  %3935 = vmatpush.msra.mxu3 %v8453_v44 }
 0x605   : > { %3896 = vmatpush.msra.mxu1 %v8458_v26  ;;  %3936 = vmatpush.msra.mxu3 %v8460_v17 }
 0x607   : > { %v5038_v5 = vpop.eup %5037  ;;  %3897 = vmatpush.msra.mxu1 %v8464_v39  ;;  %3937 = vmatpush.msra.mxu3 %v8466_v56 }
 0x608   : > { %v8476_v18 = vmul.f32 %v5038_v5, %v3471_v25  ;;  %v8550_v25 = vld [vmem:[#allocation9 + $0x3e8] sm:$0xff]  ;;  %v8552_v5 = vld [vmem:[#allocation7 + $0x100] sm:$0xff] }
 0x609   : > { %3898 = vmatpush.msra.mxu1 %v8470_v50  ;;  %3938 = vmatpush.msra.mxu3 %v8472_v23  ;;  %10522 = vst [vmem:[#allocation86_spill] sm:$0xff] %v8550_v25 }
 0x60a   : > { %3624 = vmatmul.f32.vlgmr.msra.gmra.mxu0 %v8476_v18  ;;  %3664 = vmatmul.f32.vlgmr.msra.gmra.mxu2 %v8476_v18  ;;  %10523 = vst [vmem:[#allocation83_spill] sm:$0xff] %v8552_v5 }
 0x60b   : > { %3867 = vmatpush.msra.mxu0 %v8478_v30  ;;  %3907 = vmatpush.msra.mxu2 %v8480_v38 }
 0x60c   : > { %3899 = vmatpush.msra.mxu1 %v8484_v40  ;;  %3939 = vmatpush.msra.mxu3 %v8486_v48 }
 0x60d   : > { %3868 = vmatpush.msra.mxu0 %v8490_v51  ;;  %3908 = vmatpush.msra.mxu2 %v8492_v47 }
 0x60e   : > { %3900 = vmatpush.msra.mxu1 %v8496_v15  ;;  %3940 = vmatpush.msra.mxu3 %v8498_v13 }
 0x60f   : > { %3869 = vmatpush.msra.mxu0 %v8500_v29  ;;  %3909 = vmatpush.msra.mxu2 %v8502_v2 }
 0x610   : > { %3901 = vmatpush.msra.mxu1 %v8508_v62  ;;  %3941 = vmatpush.msra.mxu3 %v8510_v45 }
 0x611   : > { %3870 = vmatpush.msra.mxu0 %v8512_v55  ;;  %3910 = vmatpush.msra.mxu2 %v8514_v1 }
 0x612   : > { %3704 = vmatmul.f32.vlgmr.msrb.gmra.mxu0 %v8476_v18  ;;  %3744 = vmatmul.f32.vlgmr.msrb.gmra.mxu2 %v8476_v18 }
 0x613   : > { %3871 = vmatpush.msra.mxu0 %v8520_v21  ;;  %3911 = vmatpush.msra.mxu2 %v8522_v9  ;;  %v8554_v21 = vld [vmem:[#allocation7 + $0x110] sm:$0xff] }
 0x614   : > { %3902 = vmatpush.msra.mxu1 %v8528_v14  ;;  %3942 = vmatpush.msra.mxu3 %v8530_v35  ;;  %10524 = vst [vmem:[#allocation90_spill] sm:$0xff] %v8554_v21  ;;  %v8560_v35 = vld [vmem:[#allocation7 + $0xe0] sm:$0xff]  ;;  %v8570_v14 = vld [vmem:[#allocation7 + $0xd0] sm:$0xff] }
 0x615   : > { %3872 = vmatpush.msra.mxu0 %v8534_v32  ;;  %3912 = vmatpush.msra.mxu2 %v8536_v54  ;;  %10525 = vst [vmem:[#allocation31_spill] sm:$0xff] %v8560_v35  ;;  %v8562_v32 = vld [vmem:[#allocation7 + $0xf0] sm:$0xff]  ;;  %v8568_v54 = vld [vmem:[#allocation7 + $0xc0] sm:$0xff] }
 0x616   : > { %3903 = vmatmul.f32.vlgmr.msra.gmra.mxu1 %v8476_v18  ;;  %3943 = vmatmul.f32.vlgmr.msra.gmra.mxu3 %v8476_v18  ;;  %10526 = vst [vmem:[#allocation27_spill] sm:$0xff] %v8562_v32 }
 0x617   : > { %3873 = vmatpush.msra.mxu0 %v8540_v60  ;;  %3913 = vmatpush.msra.mxu2 %v8542_v37  ;;  %10527 = vst [vmem:[#allocation17_spill] sm:$0xff] %v8568_v54  ;;  %v8574_v37 = vld [vmem:[#allocation7 + $0xa0] sm:$0xff]  ;;  %v8576_v60 = vld [vmem:[#allocation7 + $0xb0] sm:$0xff] }
 0x618   : > { %4121 = vmatpush.msrb.mxu1 %v8548_v63  ;;  %4161 = vmatpush.msrb.mxu3 %v8550_v25  ;;  %10528 = vst [vmem:[#allocation88_spill] sm:$0xff] %v8570_v14  ;;  %v8580_v25 = vld [vmem:[#allocation7 + $0x80] sm:$0xff] }
 0x619   : > { %3874 = vmatpush.msra.mxu0 %v8552_v5  ;;  %3914 = vmatpush.msra.mxu2 %v8554_v21  ;;  %10529 = vst [vmem:[#allocation96_spill] sm:$0xff] %v8574_v37  ;;  %v8582_v5 = vld [vmem:[#allocation7 + $0x90] sm:$0xff]  ;;  %v8586_v21 = vld [vmem:[#allocation7 + $0x60] sm:$0xff] }
 0x61a   : > { %10530 = vst [vmem:[#allocation18_spill] sm:$0xff] %v8576_v60 }
 0x61b   : > { %3875 = vmatpush.msra.mxu0 %v8560_v35  ;;  %3915 = vmatpush.msra.mxu2 %v8562_v32  ;;  %10531 = vst [vmem:[#allocation28_spill] sm:$0xff] %v8580_v25  ;;  %v8588_v35 = vld [vmem:[#allocation7 + $0x70] sm:$0xff]  ;;  %v8592_v32 = vld [vmem:[#allocation7 + $0x40] sm:$0xff] }
 0x61c   : > { %10532 = vst [vmem:[#allocation32_spill] sm:$0xff] %v8582_v5 }
 0x61d   : > { %3876 = vmatpush.msra.mxu0 %v8568_v54  ;;  %3916 = vmatpush.msra.mxu2 %v8570_v14  ;;  %10533 = vst [vmem:[#allocation102_spill] sm:$0xff] %v8586_v21  ;;  %v8594_v54 = vld [vmem:[#allocation7 + $0x50] sm:$0xff]  ;;  %v8598_v14 = vld [vmem:[#allocation7 + $0x20] sm:$0xff] }
 0x61e   : > { %10534 = vst [vmem:[#allocation97_spill] sm:$0xff] %v8588_v35 }
 0x61f   : > { %3877 = vmatpush.msra.mxu0 %v8574_v37  ;;  %3917 = vmatpush.msra.mxu2 %v8576_v60  ;;  %10535 = vst [vmem:[#allocation19_spill] sm:$0xff] %v8592_v32  ;;  %v8600_v37 = vld [vmem:[#allocation7 + $0x30] sm:$0xff]  ;;  %v8604_v60 = vld [vmem:[#allocation7] sm:$0xff] }
 0x620   : > { %10536 = vst [vmem:[#allocation23_spill] sm:$0xff] %v8594_v54 }
 0x621   : > { %3878 = vmatpush.msra.mxu0 %v8580_v25  ;;  %3918 = vmatpush.msra.mxu2 %v8582_v5  ;;  %10537 = vst [vmem:[#allocation24_spill] sm:$0xff] %v8598_v14  ;;  %v8606_v25 = vld [vmem:[#allocation7 + $0x10] sm:$0xff]  ;;  %v8640_v5 = vld [vmem:[#allocation9 + $0x348] sm:$0xff] }
 0x622   : > { %10538 = vst [vmem:[#allocation20_spill] sm:$0xff] %v8600_v37 }
 0x623   : > { %3879 = vmatpush.msra.mxu0 %v8586_v21  ;;  %3919 = vmatpush.msra.mxu2 %v8588_v35  ;;  %10539 = vst [vmem:[#allocation101_spill] sm:$0xff] %v8604_v60  ;;  %v8614_v35 = vld [vmem:[#allocation9 + $0x3c0] sm:$0xff] }
 0x624   : > { %10540 = vst [vmem:[#allocation105_spill] sm:$0xff] %v8606_v25  ;;  %4122 = vmatpush.msrb.mxu1 %v8614_v35  ;;  %v8638_v21 = vld [vmem:[#allocation9 + $0x340] sm:$0xff] }
 0x625   : > { %3880 = vmatpush.msra.mxu0 %v8592_v32  ;;  %3920 = vmatpush.msra.mxu2 %v8594_v54  ;;  %v8616_v32 = vld [vmem:[#allocation9 + $0x3c8] sm:$0xff]  ;;  %v8618_v54 = vld [vmem:[#allocation9 + $0x3a0] sm:$0xff]  ;;  %10548 = vst [vmem:[#allocation107_spill] sm:$0xff] %v8638_v21 }
 0x626   : > { %10541 = vst [vmem:[#allocation33_spill] sm:$0xff] %v8616_v32  ;;  %4162 = vmatpush.msrb.mxu3 %v8616_v32  ;;  %4123 = vmatpush.msrb.mxu1 %v8618_v54  ;;  %v8642_v32 = vld [vmem:[#allocation9 + $0x320] sm:$0xff] }
 0x627   : > { %3881 = vmatpush.msra.mxu0 %v8598_v14  ;;  %3921 = vmatpush.msra.mxu2 %v8600_v37  ;;  %10542 = vst [vmem:[#allocation29_spill] sm:$0xff] %v8618_v54  ;;  %v8622_v14 = vld [vmem:[#allocation9 + $0x3a8] sm:$0xff]  ;;  %v8624_v37 = vld [vmem:[#allocation9 + $0x380] sm:$0xff] }
 0x628   : > { %10543 = vst [vmem:[#allocation87_spill] sm:$0xff] %v8622_v14  ;;  %4163 = vmatpush.msrb.mxu3 %v8622_v14  ;;  %4124 = vmatpush.msrb.mxu1 %v8624_v37  ;;  %v8650_v14 = vld [vmem:[#allocation9 + $0x308] sm:$0xff]  ;;  %v8652_v54 = vld [vmem:[#allocation9 + $0x1e0] sm:$0xff] }
 0x629   : > { %3882 = vmatpush.msra.mxu0 %v8604_v60  ;;  %3922 = vmatpush.msra.mxu2 %v8606_v25  ;;  %10544 = vst [vmem:[#allocation25_spill] sm:$0xff] %v8624_v37  ;;  %v8626_v60 = vld [vmem:[#allocation9 + $0x388] sm:$0xff] }
 0x62a   : > { %3883 = vmatmul.f32.vlgmr.msra.gmra.mxu0 %v8476_v18  ;;  %3923 = vmatmul.f32.vlgmr.msra.gmra.mxu2 %v8476_v18  ;;  %10545 = vst [vmem:[#allocation26_spill] sm:$0xff] %v8626_v60  ;;  %v8632_v18 = vld [vmem:[#allocation9 + $0x360] sm:$0xff]  ;;  %v8634_v25 = vld [vmem:[#allocation9 + $0x368] sm:$0xff] }
 0x62b   : > { %4164 = vmatpush.msrb.mxu3 %v8626_v60  ;;  %10546 = vst [vmem:[#allocation94_spill] sm:$0xff] %v8632_v18  ;;  %4125 = vmatpush.msrb.mxu1 %v8632_v18  ;;  %v8646_v37 = vld [vmem:[#allocation9 + $0x328] sm:$0xff]  ;;  %v8648_v60 = vld [vmem:[#allocation9 + $0x300] sm:$0xff] }
 0x62c   : > { %10547 = vst [vmem:[#allocation30_spill] sm:$0xff] %v8634_v25  ;;  %v8654_v18 = vld [vmem:[#allocation9 + $0x1e8] sm:$0xff]  ;;  %4101 = vmatpush.msrb.mxu0 %v8652_v54 }
 0x62d   : > { %4165 = vmatpush.msrb.mxu3 %v8634_v25  ;;  %10549 = vst [vmem:[#allocation35_spill] sm:$0xff] %v8640_v5  ;;  %4126 = vmatpush.msrb.mxu1 %v8638_v21  ;;  %v8664_v21 = vld [vmem:[#allocation9 + $0x2e8] sm:$0xff]  ;;  %v8668_v25 = vld [vmem:[#allocation9 + $0x2c0] sm:$0xff] }
 0x62e   : > { %10550 = vst [vmem:[#allocation100_spill] sm:$0xff] %v8642_v32  ;;  %4141 = vmatpush.msrb.mxu2 %v8654_v18 }
 0x62f   : > { %4166 = vmatpush.msrb.mxu3 %v8640_v5  ;;  %10551 = vst [vmem:[#allocation21_spill] sm:$0xff] %v8646_v37  ;;  %4127 = vmatpush.msrb.mxu1 %v8642_v32  ;;  %v8662_v5 = vld [vmem:[#allocation9 + $0x2e0] sm:$0xff]  ;;  %v8670_v32 = vld [vmem:[#allocation9 + $0x2c8] sm:$0xff] }
 0x630   : > { %10552 = vst [vmem:[#allocation34_spill] sm:$0xff] %v8648_v60 }
 0x631   : > { %10553 = vst [vmem:[#allocation104_spill] sm:$0xff] %v8650_v14  ;;  %4167 = vmatpush.msrb.mxu3 %v8646_v37  ;;  %4128 = vmatpush.msrb.mxu1 %v8648_v60  ;;  %v8692_v60 = vld [vmem:[#allocation9 + $0x1c8] sm:$0xff]  ;;  %v8732_v37 = vld [vmem:[#allocation9 + $0x3f0] sm:$0xff] }
 0x632   : > { %10554 = vst [vmem:[#allocation22_spill] sm:$0xff] %v8652_v54  ;;  %v8676_v54 = vld [vmem:[#allocation9 + $0x2a8] sm:$0xff]  ;;  %4142 = vmatpush.msrb.mxu2 %v8692_v60 }
 0x633   : > { %10555 = vst [vmem:[#allocation103_spill] sm:$0xff] %v8654_v18  ;;  %4168 = vmatpush.msrb.mxu3 %v8650_v14  ;;  %4129 = vmatpush.msrb.mxu1 %v8662_v5  ;;  %v8674_v18 = vld [vmem:[#allocation9 + $0x2a0] sm:$0xff] }
 0x634   : > { %10556 = vst [vmem:[#allocation92_spill] sm:$0xff] %v8662_v5  ;;  %v8680_v14 = vld [vmem:[#allocation9 + $0x280] sm:$0xff]  ;;  %v8682_v5 = vld [vmem:[#allocation9 + $0x288] sm:$0xff] }
 0x635   : > { %10557 = vst [vmem:[#allocation99_spill] sm:$0xff] %v8664_v21  ;;  %4169 = vmatpush.msrb.mxu3 %v8664_v21  ;;  %4130 = vmatpush.msrb.mxu1 %v8668_v25  ;;  %v8686_v21 = vld [vmem:[#allocation9 + $0x260] sm:$0xff] }
 0x636   : > { %10558 = vst [vmem:[#allocation36_spill] sm:$0xff] %v8668_v25  ;;  %v8688_v25 = vld [vmem:[#allocation9 + $0x268] sm:$0xff] }
 0x637   : > { %10559 = vst [vmem:[#allocation106_spill] sm:$0xff] %v8670_v32  ;;  %4170 = vmatpush.msrb.mxu3 %v8670_v32  ;;  %4131 = vmatpush.msrb.mxu1 %v8674_v18  ;;  %v8690_v32 = vld [vmem:[#allocation9 + $0x1c0] sm:$0xff] }
 0x638   : > { %10560 = vst [vmem:[#allocation38_spill] sm:$0xff] %v8674_v18  ;;  %4102 = vmatpush.msrb.mxu0 %v8690_v32  ;;  %v8704_v18 = vld [vmem:[#allocation9 + $0x1a8] sm:$0xff] }
 0x639   : > { %10561 = vst [vmem:[#allocation108_spill] sm:$0xff] %v8676_v54  ;;  %4171 = vmatpush.msrb.mxu3 %v8676_v54  ;;  %4132 = vmatpush.msrb.mxu1 %v8680_v14  ;;  %v8698_v54 = vld [vmem:[#allocation9 + $0x240] sm:$0xff] }
 0x63a   : > { %10562 = vst [vmem:[#allocation110_spill] sm:$0xff] %v8680_v14  ;;  %v8700_v14 = vld [vmem:[#allocation9 + $0x248] sm:$0xff]  ;;  %4143 = vmatpush.msrb.mxu2 %v8704_v18 }
 0x63b   : > { %10563 = vst [vmem:[#allocation41_spill] sm:$0xff] %v8682_v5  ;;  %4172 = vmatpush.msrb.mxu3 %v8682_v5  ;;  %4133 = vmatpush.msrb.mxu1 %v8686_v21  ;;  %v8702_v5 = vld [vmem:[#allocation9 + $0x1a0] sm:$0xff] }
 0x63c   : > { %10564 = vst [vmem:[#allocation39_spill] sm:$0xff] %v8686_v21  ;;  %4103 = vmatpush.msrb.mxu0 %v8702_v5  ;;  %v8712_v21 = vld [vmem:[#allocation9 + $0x228] sm:$0xff] }
 0x63d   : > { %10565 = vst [vmem:[#allocation40_spill] sm:$0xff] %v8688_v25  ;;  %4173 = vmatpush.msrb.mxu3 %v8688_v25  ;;  %4134 = vmatpush.msrb.mxu1 %v8698_v54  ;;  %v8710_v25 = vld [vmem:[#allocation9 + $0x220] sm:$0xff] }
 0x63e   : > { %10566 = vst [vmem:[#allocation109_spill] sm:$0xff] %v8690_v32  ;;  %v8716_v32 = vld [vmem:[#allocation9 + $0x188] sm:$0xff] }
 0x63f   : > { %10567 = vst [vmem:[#allocation37_spill] sm:$0xff] %v8692_v60  ;;  %4174 = vmatpush.msrb.mxu3 %v8700_v14  ;;  %v8714_v60 = vld [vmem:[#allocation9 + $0x180] sm:$0xff]  ;;  %4135 = vmatpush.msrb.mxu1 %v8710_v25 }
 0x640   : > { %10568 = vst [vmem:[#allocation42_spill] sm:$0xff] %v8698_v54  ;;  %4104 = vmatpush.msrb.mxu0 %v8714_v60  ;;  %4144 = vmatpush.msrb.mxu2 %v8716_v32  ;;  %v8724_v54 = vld [vmem:[#allocation9 + $0x208] sm:$0xff] }
 0x641   : > { %10569 = vst [vmem:[#allocation43_spill] sm:$0xff] %v8700_v14  ;;  %4175 = vmatpush.msrb.mxu3 %v8712_v21  ;;  %v8722_v14 = vld [vmem:[#allocation9 + $0x200] sm:$0xff] }
 0x642   : > { %10570 = vst [vmem:[#allocation44_spill] sm:$0xff] %v8702_v5  ;;  %v8728_v5 = vld [vmem:[#allocation9 + $0x168] sm:$0xff]  ;;  %4136 = vmatpush.msrb.mxu1 %v8722_v14 }
 0x643   : > { %10571 = vst [vmem:[#allocation45_spill] sm:$0xff] %v8704_v18  ;;  %v8726_v18 = vld [vmem:[#allocation9 + $0x160] sm:$0xff]  ;;  %4176 = vmatpush.msrb.mxu3 %v8724_v54  ;;  %4145 = vmatpush.msrb.mxu2 %v8728_v5 }
 0x644   : > { %10572 = vst [vmem:[#allocation46_spill] sm:$0xff] %v8710_v25  ;;  %4105 = vmatpush.msrb.mxu0 %v8726_v18  ;;  %v8738_v25 = vld [vmem:[#allocation9 + $0x140] sm:$0xff]  ;;  %4201 = vmatpush.msra.mxu1 %v8732_v37 }
 0x645   : > { %10573 = vst [vmem:[#allocation47_spill] sm:$0xff] %v8712_v21  ;;  %v8736_v21 = vld [vmem:[#allocation9 + $0x3f8] sm:$0xff] }
 0x646   : > { %10574 = vst [vmem:[#allocation48_spill] sm:$0xff] %v8714_v60  ;;  %4241 = vmatpush.msra.mxu3 %v8736_v21  ;;  %v8744_v60 = vld [vmem:[#allocation9 + $0x3d0] sm:$0xff]  ;;  %4106 = vmatpush.msrb.mxu0 %v8738_v25 }
 0x647   : > { %10575 = vst [vmem:[#allocation49_spill] sm:$0xff] %v8716_v32  ;;  %v8740_v32 = vld [vmem:[#allocation9 + $0x148] sm:$0xff]  ;;  %4202 = vmatpush.msra.mxu1 %v8744_v60 }
 0x648   : > { %10576 = vst [vmem:[#allocation50_spill] sm:$0xff] %v8722_v14  ;;  %4146 = vmatpush.msrb.mxu2 %v8740_v32  ;;  %v8750_v14 = vld [vmem:[#allocation9 + $0x120] sm:$0xff] }
 0x649   : > { %10577 = vst [vmem:[#allocation51_spill] sm:$0xff] %v8724_v54  ;;  %v8748_v54 = vld [vmem:[#allocation9 + $0x3d8] sm:$0xff]  ;;  %4107 = vmatpush.msrb.mxu0 %v8750_v14 }
 0x64a   : > { %10578 = vst [vmem:[#allocation52_spill] sm:$0xff] %v8726_v18  ;;  %4242 = vmatpush.msra.mxu3 %v8748_v54  ;;  %v8756_v18 = vld [vmem:[#allocation9 + $0x3b0] sm:$0xff] }
 0x64b   : > { %10579 = vst [vmem:[#allocation53_spill] sm:$0xff] %v8728_v5  ;;  %v8752_v5 = vld [vmem:[#allocation9 + $0x128] sm:$0xff]  ;;  %4203 = vmatpush.msra.mxu1 %v8756_v18 }
 0x64c   : > { %10580 = vst [vmem:[#allocation54_spill] sm:$0xff] %v8732_v37  ;;  %4147 = vmatpush.msrb.mxu2 %v8752_v5  ;;  %v8762_v37 = vld [vmem:[#allocation9 + $0x100] sm:$0xff] }
 0x64d   : > { %10581 = vst [vmem:[#allocation55_spill] sm:$0xff] %v8736_v21  ;;  %v8760_v21 = vld [vmem:[#allocation9 + $0x3b8] sm:$0xff]  ;;  %4108 = vmatpush.msrb.mxu0 %v8762_v37 }
 0x64e   : > { %10582 = vst [vmem:[#allocation56_spill] sm:$0xff] %v8738_v25  ;;  %4243 = vmatpush.msra.mxu3 %v8760_v21  ;;  %v8768_v25 = vld [vmem:[#allocation9 + $0x390] sm:$0xff] }
 0x64f   : > { %10583 = vst [vmem:[#allocation57_spill] sm:$0xff] %v8740_v32  ;;  %v8764_v32 = vld [vmem:[#allocation9 + $0x108] sm:$0xff]  ;;  %4204 = vmatpush.msra.mxu1 %v8768_v25 }
 0x650   : > { %10584 = vst [vmem:[#allocation58_spill] sm:$0xff] %v8744_v60  ;;  %4148 = vmatpush.msrb.mxu2 %v8764_v32  ;;  %v8774_v60 = vld [vmem:[#allocation9 + $0xe0] sm:$0xff] }
 0x651   : > { %10585 = vst [vmem:[#allocation59_spill] sm:$0xff] %v8748_v54  ;;  %v8772_v54 = vld [vmem:[#allocation9 + $0x398] sm:$0xff]  ;;  %4109 = vmatpush.msrb.mxu0 %v8774_v60 }
 0x652   : > { %10586 = vst [vmem:[#allocation60_spill] sm:$0xff] %v8750_v14  ;;  %4244 = vmatpush.msra.mxu3 %v8772_v54  ;;  %v8780_v14 = vld [vmem:[#allocation9 + $0x370] sm:$0xff] }
 0x653   : > { %10587 = vst [vmem:[#allocation61_spill] sm:$0xff] %v8752_v5  ;;  %v8776_v5 = vld [vmem:[#allocation9 + $0xe8] sm:$0xff]  ;;  %4205 = vmatpush.msra.mxu1 %v8780_v14 }
 0x654   : > { %10588 = vst [vmem:[#allocation62_spill] sm:$0xff] %v8756_v18  ;;  %4149 = vmatpush.msrb.mxu2 %v8776_v5  ;;  %v8786_v18 = vld [vmem:[#allocation9 + $0xc0] sm:$0xff] }
 0x655   : > { %10589 = vst [vmem:[#allocation63_spill] sm:$0xff] %v8760_v21  ;;  %v8784_v21 = vld [vmem:[#allocation9 + $0x378] sm:$0xff]  ;;  %4110 = vmatpush.msrb.mxu0 %v8786_v18 }
 0x656   : > { %10590 = vst [vmem:[#allocation64_spill] sm:$0xff] %v8762_v37  ;;  %4245 = vmatpush.msra.mxu3 %v8784_v21  ;;  %v8792_v37 = vld [vmem:[#allocation9 + $0x350] sm:$0xff] }
 0x657   : > { %10591 = vst [vmem:[#allocation65_spill] sm:$0xff] %v8764_v32  ;;  %v8788_v32 = vld [vmem:[#allocation9 + $0xc8] sm:$0xff]  ;;  %4206 = vmatpush.msra.mxu1 %v8792_v37 }
 0x658   : > { %10592 = vst [vmem:[#allocation66_spill] sm:$0xff] %v8768_v25  ;;  %4150 = vmatpush.msrb.mxu2 %v8788_v32  ;;  %v8798_v25 = vld [vmem:[#allocation9 + $0xa0] sm:$0xff] }
 0x659   : > { %10593 = vst [vmem:[#allocation67_spill] sm:$0xff] %v8772_v54  ;;  %v8796_v54 = vld [vmem:[#allocation9 + $0x358] sm:$0xff]  ;;  %4111 = vmatpush.msrb.mxu0 %v8798_v25 }
 0x65a   : > { %10594 = vst [vmem:[#allocation69_spill] sm:$0xff] %v8774_v60  ;;  %4246 = vmatpush.msra.mxu3 %v8796_v54  ;;  %v8804_v60 = vld [vmem:[#allocation9 + $0x330] sm:$0xff] }
 0x65b   : > { %10595 = vst [vmem:[#allocation70_spill] sm:$0xff] %v8776_v5  ;;  %v8800_v5 = vld [vmem:[#allocation9 + $0xa8] sm:$0xff]  ;;  %4207 = vmatpush.msra.mxu1 %v8804_v60 }
 0x65c   : > { %10596 = vst [vmem:[#allocation73_spill] sm:$0xff] %v8780_v14  ;;  %4151 = vmatpush.msrb.mxu2 %v8800_v5  ;;  %v8810_v14 = vld [vmem:[#allocation9 + $0x80] sm:$0xff] }
 0x65d   : > { %10597 = vst [vmem:[#allocation111_spill] sm:$0xff] %v8784_v21  ;;  %v8808_v21 = vld [vmem:[#allocation9 + $0x338] sm:$0xff]  ;;  %4112 = vmatpush.msrb.mxu0 %v8810_v14 }
 0x65e   : > { %10598 = vst [vmem:[#allocation76_spill] sm:$0xff] %v8786_v18  ;;  %4247 = vmatpush.msra.mxu3 %v8808_v21  ;;  %v8816_v18 = vld [vmem:[#allocation9 + $0x310] sm:$0xff] }
 0x65f   : > { %10599 = vst [vmem:[#allocation77_spill] sm:$0xff] %v8788_v32  ;;  %v8812_v32 = vld [vmem:[#allocation9 + $0x88] sm:$0xff]  ;;  %4208 = vmatpush.msra.mxu1 %v8816_v18 }
 0x660   : > { %10600 = vst [vmem:[#allocation114_spill] sm:$0xff] %v8792_v37  ;;  %4152 = vmatpush.msrb.mxu2 %v8812_v32  ;;  %v8822_v37 = vld [vmem:[#allocation9 + $0x60] sm:$0xff] }
 0x661   : > { %10601 = vst [vmem:[#allocation84_spill] sm:$0xff] %v8796_v54  ;;  %v8820_v54 = vld [vmem:[#allocation9 + $0x318] sm:$0xff]  ;;  %4113 = vmatpush.msrb.mxu0 %v8822_v37 }
 0x662   : > { %10602 = vst [vmem:[#allocation85_spill] sm:$0xff] %v8798_v25  ;;  %4248 = vmatpush.msra.mxu3 %v8820_v54  ;;  %v8828_v25 = vld [vmem:[#allocation9 + $0x2f0] sm:$0xff] }
 0x663   : > { %10603 = vst [vmem:[#allocation115_spill] sm:$0xff] %v8800_v5  ;;  %v8824_v5 = vld [vmem:[#allocation9 + $0x68] sm:$0xff]  ;;  %4209 = vmatpush.msra.mxu1 %v8828_v25 }
 0x664   : > { %10604 = vst [vmem:[#allocation93_spill] sm:$0xff] %v8804_v60  ;;  %4153 = vmatpush.msrb.mxu2 %v8824_v5  ;;  %v8834_v60 = vld [vmem:[#allocation9 + $0x40] sm:$0xff] }
 0x665   : > { %10605 = vst [vmem:[#allocation72_spill] sm:$0xff] %v8808_v21  ;;  %v8832_v21 = vld [vmem:[#allocation9 + $0x2f8] sm:$0xff]  ;;  %4114 = vmatpush.msrb.mxu0 %v8834_v60  ;;  %4210 = vmatpush.msra.mxu1 %v8362_v10  ;;  %v8858_v10 = vld [vmem:[#allocation9 + $0x1f0] sm:$0xff] }
 0x666   : > { %10606 = vst [vmem:[#allocation98_spill] sm:$0xff] %v8812_v32  ;;  %v8836_v32 = vld [vmem:[#allocation9 + $0x48] sm:$0xff]  ;;  %4249 = vmatpush.msra.mxu3 %v8832_v21 }
 0x667   : > { %10607 = vst [vmem:[#allocation80_spill] sm:$0xff] %v8816_v18  ;;  %4154 = vmatpush.msrb.mxu2 %v8836_v32  ;;  %v8844_v18 = vld [vmem:[#allocation9 + $0x28] sm:$0xff]  ;;  %4211 = vmatpush.msra.mxu1 %v8368_v24  ;;  %v8867_v24 = vld [vmem:[#allocation9 + $0x1d8] sm:$0xff] }
 0x668   : > { %10608 = vst [vmem:[#allocation81_spill] sm:$0xff] %v8820_v54  ;;  %v8842_v54 = vld [vmem:[#allocation9 + $0x20] sm:$0xff]  ;;  %4250 = vmatpush.msra.mxu3 %v8364_v57  ;;  %v8860_v57 = vld [vmem:[#allocation9 + $0x1f8] sm:$0xff] }
 0x669   : > { %10609 = vst [vmem:[#allocation117_spill] sm:$0xff] %v8824_v5  ;;  %4115 = vmatpush.msrb.mxu0 %v8842_v54  ;;  %4155 = vmatpush.msrb.mxu2 %v8844_v18  ;;  %v8850_v5 = vld [vmem:[#allocation9] sm:$0xff] }
 0x66a   : > { %10610 = vst [vmem:[#allocation118_spill] sm:$0xff] %v8828_v25  ;;  %v8852_v25 = vld [vmem:[#allocation9 + $0x8] sm:$0xff]  ;;  %4251 = vmatpush.msra.mxu3 %v8370_v8  ;;  %4212 = vmatpush.msra.mxu1 %v8374_v28 }
 0x66b   : > { %10611 = vst [vmem:[#allocation89_spill] sm:$0xff] %v8832_v21  ;;  %4116 = vmatpush.msrb.mxu0 %v8850_v5  ;;  %4156 = vmatpush.msrb.mxu2 %v8852_v25 }
 0x66c   : > { %10612 = vst [vmem:[#allocation91_spill] sm:$0xff] %v8836_v32  ;;  %4252 = vmatpush.msra.mxu3 %v8376_v3  ;;  %4213 = vmatpush.msra.mxu1 %v8381_v22  ;;  %v8885_v3 = vld [vmem:[#allocation9 + $0x230] sm:$0xff] }
 0x66d   : > { %10613 = vst [vmem:[#allocation119_spill] sm:$0xff] %v8842_v54  ;;  %4181 = vmatpush.msra.mxu0 %v8858_v10  ;;  %4221 = vmatpush.msra.mxu2 %v8860_v57  ;;  %v8865_v54 = vld [vmem:[#allocation9 + $0x1d0] sm:$0xff] }
 0x66e   : > { %10614 = vst [vmem:[#allocation120_spill] sm:$0xff] %v8844_v18  ;;  %4253 = vmatpush.msra.mxu3 %v8383_v43  ;;  %v8899_v43 = vld [vmem:[#allocation9 + $0x210] sm:$0xff] }
 0x66f   : > { %10615 = vst [vmem:[#allocation112_spill] sm:$0xff] %v8850_v5  ;;  %v3645_v21 = vpop.f32.mrf.mxu1  ;;  %4182 = vmatpush.msra.mxu0 %v8865_v54  ;;  %4222 = vmatpush.msra.mxu2 %v8867_v24  ;;  %v8905_v5 = vld [vmem:[#allocation9 + $0x178] sm:$0xff] }
 0x670   : > { %10616 = vst [vmem:[#allocation113_spill] sm:$0xff] %v8852_v25  ;;  %v8873_v25 = vld [vmem:[#allocation9 + $0x250] sm:$0xff] }
 0x671   : > { %10617 = vst [vmem:[#allocation116_spill] sm:$0xff] %v8858_v10  ;;  %v8891_v10 = vld [vmem:[#allocation9 + $0x198] sm:$0xff]  ;;  %4214 = vmatpush.msra.mxu1 %v8873_v25 }
 0x672   : > { %10618 = vst [vmem:[#allocation95_spill] sm:$0xff] %v8860_v57  ;;  %v8879_v57 = vld [vmem:[#allocation9 + $0x1b8] sm:$0xff] }
 0x673   : > { %10619 = vst [vmem:[#allocation121_spill] sm:$0xff] %v8865_v54  ;;  %4223 = vmatpush.msra.mxu2 %v8879_v57  ;;  %v8889_v54 = vld [vmem:[#allocation9 + $0x190] sm:$0xff]  ;;  %4215 = vmatpush.msra.mxu1 %v8885_v3 }
 0x674   : > { %10620 = vst [vmem:[#allocation122_spill] sm:$0xff] %v8867_v24 }
 0x675   : > { %10621 = vst [vmem:[#allocation129_spill] sm:$0xff] %v8873_v25  ;;  %4224 = vmatpush.msra.mxu2 %v8891_v10  ;;  %4216 = vmatpush.msra.mxu1 %v8899_v43 }
 0x676   : > { %10624 = vst [vmem:[#allocation138_spill] sm:$0xff] %v8879_v57 }
 0x677   : > { %10625 = vst [vmem:[#allocation139_spill] sm:$0xff] %v8885_v3  ;;  %4225 = vmatpush.msra.mxu2 %v8905_v5  ;;  %v3725_v25 = vpop.f32.mrf.mxu1  ;;  %v8938_v3 = vld [vmem:[#allocation9 + $0xf8] sm:$0xff] }
 0x678   : > { %10627 = vst [vmem:[#allocation141_spill] sm:$0xff] %v8891_v10  ;;  %v8916_v10 = vld [vmem:[#allocation9 + $0x158] sm:$0xff] }
 0x679   : > { %10628 = vst [vmem:[#allocation142_spill] sm:$0xff] %v8899_v43  ;;  %4226 = vmatpush.msra.mxu2 %v8916_v10  ;;  %v8929_v43 = vld [vmem:[#allocation9 + $0x110] sm:$0xff] }
 0x67a   : > { %10631 = vst [vmem:[#allocation145_spill] sm:$0xff] %v8905_v5 }
 0x67b   : > { %10633 = vst [vmem:[#allocation147_spill] sm:$0xff] %v8916_v10 }
 0x67c   : > { %10636 = vst [vmem:[#allocation150_spill] sm:$0xff] %v8929_v43 }
 0x67d   : > { %10639 = vst [vmem:[#allocation154_spill] sm:$0xff] %v8938_v3 }
 0x687   : > { %v3625_v32 = vpop.f32.mrf.mxu0 }
 0x688   : > { %v3626_v18 = vadd.f32 %v3625_v32, %v10504_v59  ;;  %v8875_v32 = vld [vmem:[#allocation9 + $0x258] sm:$0xff]  ;;  %v8877_v59 = vld [vmem:[#allocation9 + $0x1b0] sm:$0xff] }
 0x689   : > { %10622 = vst [vmem:[#allocation132_spill] sm:$0xff] %v8875_v32  ;;  %4183 = vmatpush.msra.mxu0 %v8877_v59  ;;  %4254 = vmatpush.msra.mxu3 %v8875_v32 }
 0x68a   : > { %v3646_v8 = vadd.f32 %v3645_v21, %v3626_v18  ;;  %10623 = vst [vmem:[#allocation135_spill] sm:$0xff] %v8877_v59  ;;  %v8887_v21 = vld [vmem:[#allocation9 + $0x238] sm:$0xff]  ;;  %v3685_v18 = vpop.f32.mrf.mxu3  ;;  %v8903_v59 = vld [vmem:[#allocation9 + $0x170] sm:$0xff] }
 0x68b   : > { %10626 = vst [vmem:[#allocation140_spill] sm:$0xff] %v8887_v21  ;;  %4184 = vmatpush.msra.mxu0 %v8889_v54  ;;  %4255 = vmatpush.msra.mxu3 %v8887_v21 }
 0x68c   : > { %v3769_v28 = vmul.f32 0.5, %v3646_v8  ;;  %v8901_v8 = vld [vmem:[#allocation9 + $0x218] sm:$0xff]  ;;  %10630 = vst [vmem:[#allocation144_spill] sm:$0xff] %v8903_v59 }
 0x68d   : > { %v3665_v24 = vpop.f32.mrf.mxu2  ;;  %10629 = vst [vmem:[#allocation143_spill] sm:$0xff] %v8901_v8  ;;  %4185 = vmatpush.msra.mxu0 %v8903_v59  ;;  %4256 = vmatpush.msra.mxu3 %v8901_v8  ;;  %v8931_v8 = vld [vmem:[#allocation9 + $0x118] sm:$0xff]  ;;  %v8968_v59 = vld [vmem:[#allocation9 + $0x50] sm:$0xff] }
 0x68e   : > { %v3666_v22 = vadd.f32 %v3665_v24, %v10509_v20  ;;  %5039 = vtanh.f32 %v3769_v28  ;;  %v8914_v20 = vld [vmem:[#allocation9 + $0x150] sm:$0xff]  ;;  %10637 = vst [vmem:[#allocation152_spill] sm:$0xff] %v8931_v8 }
 0x68f   : > { %v3705_v57 = vpop.f32.mrf.mxu0  ;;  %10632 = vst [vmem:[#allocation146_spill] sm:$0xff] %v8914_v20  ;;  %4186 = vmatpush.msra.mxu0 %v8914_v20  ;;  %v8961_v20 = vld [vmem:[#allocation9 + $0x70] sm:$0xff] }
 0x690   : > { %v3686_v24 = vadd.f32 %v3685_v18, %v3666_v22  ;;  %v3706_v32 = vadd.f32 %v3705_v57, %v10512_v4  ;;  %v8922_v57 = vld [vmem:[#allocation9 + $0x130] sm:$0xff]  ;;  %v8924_v22 = vld [vmem:[#allocation9 + $0x138] sm:$0xff]  ;;  %10645 = vst [vmem:[#allocation151_spill] sm:$0xff] %v8961_v20 }
 0x691   : > { %10634 = vst [vmem:[#allocation148_spill] sm:$0xff] %v8922_v57  ;;  %4187 = vmatpush.msra.mxu0 %v8922_v57  ;;  %4227 = vmatpush.msra.mxu2 %v8924_v22  ;;  %v8942_v57 = vld [vmem:[#allocation9 + $0xd0] sm:$0xff] }
 0x692   : > { %v3773_v28 = vmul.f32 0.5, %v3686_v24  ;;  %v3726_v18 = vadd.f32 %v3725_v25, %v3706_v32  ;;  %10635 = vst [vmem:[#allocation149_spill] sm:$0xff] %v8924_v22  ;;  %v3765_v24 = vpop.f32.mrf.mxu3 }
 0x693   : > { %4188 = vmatpush.msra.mxu0 %v8929_v43  ;;  %4228 = vmatpush.msra.mxu2 %v8931_v8  ;;  %10640 = vst [vmem:[#allocation123_spill] sm:$0xff] %v8942_v57  ;;  %v3799_v8 = vld [vmem:[%s8946_s2 + $0x8] sm:$0xff] }
 0x694   : > { %5041 = vtanh.f32 %v3773_v28  ;;  %v5040_v25 = vpop.eup %5039  ;;  %v8936_v28 = vld [vmem:[#allocation9 + $0xf0] sm:$0xff]  ;;  %10647 = vst [vmem:[#allocation126_spill] sm:$0xff] %v8968_v59 }
 0x695   : > { %v3745_v21 = vpop.f32.mrf.mxu2  ;;  %5043 = vtanh.f32 %v3726_v18  ;;  %10638 = vst [vmem:[#allocation153_spill] sm:$0xff] %v8936_v28  ;;  %4189 = vmatpush.msra.mxu0 %v8936_v28  ;;  %4229 = vmatpush.msra.mxu2 %v8938_v3  ;;  %v3771_v22 = vmul.f32 0.5, %v5040_v25  ;;  %v8944_v18 = vld [vmem:[#allocation9 + $0xd8] sm:$0xff]  ;;  %v8951_v28 = vld [vmem:[#allocation9 + $0xb0] sm:$0xff] }
 0x696   : > { %v3746_v32 = vadd.f32 %v3745_v21, %v10513_v19  ;;  %10641 = vst [vmem:[#allocation124_spill] sm:$0xff] %v8944_v18  ;;  %v8953_v3 = vld [vmem:[#allocation9 + $0xb8] sm:$0xff]  ;;  %v8955_v25 = vld [vmem:[#allocation9 + $0x90] sm:$0xff] }
 0x697   : > { %4190 = vmatpush.msra.mxu0 %v8942_v57  ;;  %4230 = vmatpush.msra.mxu2 %v8944_v18  ;;  %10642 = vst [vmem:[#allocation127_spill] sm:$0xff] %v8951_v28  ;;  %v3772_v10 = vadd.f32 0.5, %v3771_v22 }
 0x698   : > { %v3766_v4 = vadd.f32 %v3765_v24, %v3746_v32  ;;  %v3904_v24 = vpop.f32.mrf.mxu1  ;;  %10643 = vst [vmem:[#allocation130_spill] sm:$0xff] %v8955_v25 }
 0x699   : > { %4191 = vmatpush.msra.mxu0 %v8951_v28  ;;  %4231 = vmatpush.msra.mxu2 %v8953_v3  ;;  %v3948_v18 = vadd.f32 %v3904_v24, %v3799_v8  ;;  %v8970_v28 = vld [vmem:[#allocation9 + $0x58] sm:$0xff] }
 0x69a   : > { %v5042_v21 = vpop.eup %5041  ;;  %v3778_v19 = vmul.f32 0.5, %v3766_v4  ;;  %v8959_v4 = vld [vmem:[#allocation9 + $0x98] sm:$0xff]  ;;  %10648 = vst [vmem:[#allocation133_spill] sm:$0xff] %v8970_v28 }
 0x69b   : > { %v3775_v32 = vmul.f32 0.5, %v5042_v21  ;;  %v5044_v43 = vpop.eup %5043  ;;  %10644 = vst [vmem:[#allocation131_spill] sm:$0xff] %v8959_v4  ;;  %v8963_v21 = vld [vmem:[#allocation9 + $0x78] sm:$0xff]  ;;  %4192 = vmatpush.msra.mxu0 %v8955_v25  ;;  %4232 = vmatpush.msra.mxu2 %v8959_v4  ;;  %v3956_v4 = vmul.f32 0.5, %v3948_v18  ;;  %v3800_v25 = vld [vmem:[%s8946_s2 + $0x10] sm:$0xff] }
 0x69c   : > { %5045 = vtanh.f32 %v3778_v19  ;;  %10646 = vst [vmem:[#allocation125_spill] sm:$0xff] %v8963_v21  ;;  %v3783_v19 = vmul.f32 %v5044_v43, %v3772_v10  ;;  %v8978_v8 = vld [vmem:[#allocation9 + $0x38] sm:$0xff] }
 0x69d   : > { %v3776_v57 = vadd.f32 0.5, %v3775_v32  ;;  %4193 = vmatpush.msra.mxu0 %v8961_v20  ;;  %4233 = vmatpush.msra.mxu2 %v8963_v21  ;;  %v8976_v32 = vld [vmem:[#allocation9 + $0x30] sm:$0xff]  ;;  %v8985_v10 = vld [vmem:[#allocation9 + $0x18] sm:$0xff] }
 0x69e   : > { %10650 = vst [vmem:[#allocation136_spill] sm:$0xff] %v8976_v32 }
 0x69f   : > { %v3782_v5 = vmul.f32 %v3776_v57, %v8398_v12  ;;  %4194 = vmatpush.msra.mxu0 %v8968_v59  ;;  %4234 = vmatpush.msra.mxu2 %v8970_v28  ;;  %v8983_v12 = vld [vmem:[#allocation9 + $0x10] sm:$0xff]  ;;  %10652 = vst [vmem:[#allocation128_spill] sm:$0xff] %v8985_v10 }
 0x6a0   : > { %10651 = vst [vmem:[#allocation137_spill] sm:$0xff] %v8983_v12 }
 0x6a1   : > { %v8974_v22 = vadd.f32 %v3783_v19, %v3782_v5  ;;  %4195 = vmatpush.msra.mxu0 %v8976_v32  ;;  %4235 = vmatpush.msra.mxu2 %v8978_v8  ;;  %v3798_v5 = vld [vmem:[%s8946_s2] sm:$0xff]  ;;  %v3801_v19 = vld [vmem:[%s8946_s2 + $0x18] sm:$0xff] }
 0x6a2   : > { %v5046_v24 = vpop.eup %5045 }
 0x6a3   : > { %10649 = vst [vmem:[#allocation134_spill] sm:$0xff] %v8974_v22  ;;  %5047 = vtanh.f32 %v8974_v22  ;;  %v3780_v43 = vmul.f32 0.5, %v5046_v24  ;;  %4196 = vmatpush.msra.mxu0 %v8983_v12  ;;  %4236 = vmatpush.msra.mxu2 %v8985_v10  ;;  %v3944_v22 = vpop.f32.mrf.mxu3 }
 0x6a4   : > { %5049 = vtanh.f32 %v3956_v4  ;;  %v3950_v20 = vadd.f32 %v3944_v22, %v3801_v19  ;;  %v10694_v19 = vld [vmem:[#allocation22_spill] sm:$0xff] }
 0x6a5   : > { %v3781_v18 = vadd.f32 0.5, %v3780_v43 }
 0x6a6   : > { %v3961_v12 = vmul.f32 0.5, %v3950_v20 }
 0x6a7   : > { %v3884_v57 = vpop.f32.mrf.mxu0 }
 0x6a8   : > { %v3947_v28 = vadd.f32 %v3884_v57, %v3798_v5  ;;  %v10691_v5 = vld [vmem:[#allocation99_spill] sm:$0xff]  ;;  %v10692_v57 = vld [vmem:[#allocation101_spill] sm:$0xff] }
 0x6a9   : > { %v5048_v59 = vpop.eup %5047 }
 0x6aa   : > { %v3786_v21 = vmul.f32 %v5048_v59, %v3781_v18  ;;  %v3952_v24 = vmul.f32 0.5, %v3947_v28  ;;  %v5050_v32 = vpop.eup %5049  ;;  %v10693_v18 = vld [vmem:[#allocation105_spill] sm:$0xff] }
 0x6ab   : > { %v3958_v43 = vmul.f32 0.5, %v5050_v32  ;;  %v10688_v32 = vld [vmem:[#allocation24_spill] sm:$0xff] }
 0x6ac   : > { %4867 = vst [vmem:[%s6749_s5 + $0x28] sm:$0xff] %v3786_v21  ;;  %5051 = vtanh.f32 %v3952_v24  ;;  %4137 = vmatmul.f32.vlgmr.msrb.gmra.mxu1 %v3786_v21  ;;  %4177 = vmatmul.f32.vlgmr.msrb.gmra.mxu3 %v3786_v21  ;;  %v10695_v24 = vld [vmem:[#allocation103_spill] sm:$0xff] }
 0x6ad   : > { %v3924_v4 = vpop.f32.mrf.mxu2  ;;  %4380 = vmatpush.msrb.mxu1 %v8401_v6  ;;  %4420 = vmatpush.msrb.mxu3 %v8403_v41  ;;  %v3959_v28 = vadd.f32 0.5, %v3958_v43  ;;  %v10697_v43 = vld [vmem:[#allocation106_spill] sm:$0xff] }
 0x6ae   : > { %v3949_v10 = vadd.f32 %v3924_v4, %v3800_v25  ;;  %v10686_v25 = vld [vmem:[#allocation34_spill] sm:$0xff]  ;;  %v10696_v4 = vld [vmem:[#allocation36_spill] sm:$0xff] }
 0x6af   : > { %4381 = vmatpush.msrb.mxu1 %v8406_v61  ;;  %4421 = vmatpush.msrb.mxu3 %v8408_v46  ;;  %v3965_v41 = vmul.f32 %v3959_v28, %v8447_v31  ;;  %v10660_v31 = vld [vmem:[#allocation86_spill] sm:$0xff]  ;;  %v10699_v28 = vld [vmem:[#allocation37_spill] sm:$0xff] }
 0x6b0   : > { %5053 = vtanh.f32 %v3949_v10  ;;  %v10690_v10 = vld [vmem:[#allocation92_spill] sm:$0xff] }
 0x6b1   : > { %4382 = vmatpush.msrb.mxu1 %v8412_v11  ;;  %4422 = vmatpush.msrb.mxu3 %v8414_v0  ;;  %5055 = vtanh.f32 %v3961_v12  ;;  %v10689_v12 = vld [vmem:[#allocation20_spill] sm:$0xff] }
 0x6b2   : > { %v5052_v59 = vpop.eup %5051 }
 0x6b3   : > { %v3954_v22 = vmul.f32 0.5, %v5052_v59  ;;  %4383 = vmatpush.msrb.mxu1 %v8418_v34  ;;  %4423 = vmatpush.msrb.mxu3 %v8420_v58  ;;  %v10698_v59 = vld [vmem:[#allocation109_spill] sm:$0xff] }
 0x6b4   : > { %4217 = vmatmul.f32.vlgmr.msra.gmra.mxu1 %v3786_v21  ;;  %4257 = vmatmul.f32.vlgmr.msra.gmra.mxu3 %v3786_v21  ;;  %v10687_v21 = vld [vmem:[#allocation104_spill] sm:$0xff] }
 0x6b5   : > { %v3955_v20 = vadd.f32 0.5, %v3954_v22  ;;  %4384 = vmatpush.msrb.mxu1 %v8424_v42  ;;  %4424 = vmatpush.msrb.mxu3 %v8426_v16  ;;  %v10653_v16 = vld [vmem:[#allocation68_spill] sm:$0xff]  ;;  %v10700_v22 = vld [vmem:[#allocation38_spill] sm:$0xff] }
 0x6b6   : > { %v5054_v6 = vpop.eup %5053 }
 0x6b7   : > { %v3966_v61 = vmul.f32 %v5054_v6, %v3955_v20  ;;  %4385 = vmatpush.msrb.mxu1 %v8430_v53  ;;  %4425 = vmatpush.msrb.mxu3 %v8432_v7  ;;  %v5056_v46 = vpop.eup %5055  ;;  %v10654_v53 = vld [vmem:[#allocation74_spill] sm:$0xff]  ;;  %v10655_v7 = vld [vmem:[#allocation71_spill] sm:$0xff]  ;;  %v10701_v20 = vld [vmem:[#allocation108_spill] sm:$0xff] }
 0x6b8   : > { %v3963_v0 = vmul.f32 0.5, %v5056_v46  ;;  %v10702_v6 = vld [vmem:[#allocation44_spill] sm:$0xff]  ;;  %v10705_v46 = vld [vmem:[#allocation41_spill] sm:$0xff] }
 0x6b9   : > { %v9008_v11 = vadd.f32 %v3966_v61, %v3965_v41  ;;  %4386 = vmatpush.msrb.mxu1 %v8436_v49  ;;  %4426 = vmatpush.msrb.mxu3 %v8438_v36  ;;  %v10656_v49 = vld [vmem:[#allocation78_spill] sm:$0xff]  ;;  %v10657_v36 = vld [vmem:[#allocation75_spill] sm:$0xff]  ;;  %v10703_v41 = vld [vmem:[#allocation45_spill] sm:$0xff] }
 0x6ba   : > { %v3964_v34 = vadd.f32 0.5, %v3963_v0  ;;  %v10704_v61 = vld [vmem:[#allocation110_spill] sm:$0xff]  ;;  %v10706_v0 = vld [vmem:[#allocation48_spill] sm:$0xff] }
 0x6bb   : > { %5057 = vtanh.f32 %v9008_v11  ;;  %4387 = vmatpush.msrb.mxu1 %v8443_v27  ;;  %4427 = vmatpush.msrb.mxu3 %v8445_v33  ;;  %v10658_v27 = vld [vmem:[#allocation82_spill] sm:$0xff]  ;;  %v10659_v33 = vld [vmem:[#allocation79_spill] sm:$0xff] }
 0x6bd   : > { %4388 = vmatpush.msrb.mxu1 %v8451_v52  ;;  %4428 = vmatpush.msrb.mxu3 %v8453_v44  ;;  %v10661_v52 = vld [vmem:[#allocation83_spill] sm:$0xff]  ;;  %v10662_v44 = vld [vmem:[#allocation90_spill] sm:$0xff] }
 0x6bf   : > { %4389 = vmatpush.msrb.mxu1 %v8458_v26  ;;  %4429 = vmatpush.msrb.mxu3 %v8460_v17  ;;  %v10663_v26 = vld [vmem:[#allocation33_spill] sm:$0xff]  ;;  %v10664_v17 = vld [vmem:[#allocation31_spill] sm:$0xff] }
 0x6c1   : > { %v5058_v58 = vpop.eup %5057  ;;  %4390 = vmatpush.msrb.mxu1 %v8464_v39  ;;  %4430 = vmatpush.msrb.mxu3 %v8466_v56  ;;  %v10665_v39 = vld [vmem:[#allocation27_spill] sm:$0xff]  ;;  %v10666_v56 = vld [vmem:[#allocation29_spill] sm:$0xff] }
 0x6c2   : > { %v9021_v42 = vmul.f32 %v5058_v58, %v3964_v34  ;;  %v10707_v34 = vld [vmem:[#allocation49_spill] sm:$0xff]  ;;  %v10708_v58 = vld [vmem:[#allocation39_spill] sm:$0xff] }
 0x6c3   : > { %4391 = vmatpush.msrb.mxu1 %v8470_v50  ;;  %4431 = vmatpush.msrb.mxu3 %v8472_v23  ;;  %v10667_v50 = vld [vmem:[#allocation87_spill] sm:$0xff]  ;;  %v10668_v23 = vld [vmem:[#allocation17_spill] sm:$0xff] }
 0x6c4   : > { %4117 = vmatmul.f32.vlgmr.msrb.gmra.mxu0 %v9021_v42  ;;  %4157 = vmatmul.f32.vlgmr.msrb.gmra.mxu2 %v9021_v42 }
 0x6c5   : > { %4360 = vmatpush.msrb.mxu0 %v8478_v30  ;;  %4400 = vmatpush.msrb.mxu2 %v8480_v38  ;;  %v10669_v30 = vld [vmem:[#allocation88_spill] sm:$0xff]  ;;  %v10670_v38 = vld [vmem:[#allocation25_spill] sm:$0xff] }
 0x6c6   : > { %4392 = vmatpush.msrb.mxu1 %v8484_v40  ;;  %4432 = vmatpush.msrb.mxu3 %v8486_v48  ;;  %v10671_v40 = vld [vmem:[#allocation26_spill] sm:$0xff]  ;;  %v10672_v48 = vld [vmem:[#allocation96_spill] sm:$0xff] }
 0x6c7   : > { %4361 = vmatpush.msrb.mxu0 %v8490_v51  ;;  %4401 = vmatpush.msrb.mxu2 %v8492_v47  ;;  %v10673_v51 = vld [vmem:[#allocation18_spill] sm:$0xff] }
 0x6c8   : > { %4393 = vmatpush.msrb.mxu1 %v8496_v15  ;;  %4433 = vmatpush.msrb.mxu3 %v8498_v13  ;;  %v10674_v47 = vld [vmem:[#allocation94_spill] sm:$0xff]  ;;  %v10676_v13 = vld [vmem:[#allocation28_spill] sm:$0xff] }
 0x6c9   : > { %4362 = vmatpush.msrb.mxu0 %v8500_v29  ;;  %4402 = vmatpush.msrb.mxu2 %v8502_v2  ;;  %v10675_v15 = vld [vmem:[#allocation30_spill] sm:$0xff]  ;;  %v10677_v29 = vld [vmem:[#allocation32_spill] sm:$0xff]  ;;  %v10678_v2 = vld [vmem:[#allocation107_spill] sm:$0xff] }
 0x6ca   : > { %4394 = vmatpush.msrb.mxu1 %v8508_v62  ;;  %4434 = vmatpush.msrb.mxu3 %v8510_v45  ;;  %v10679_v62 = vld [vmem:[#allocation35_spill] sm:$0xff]  ;;  %v10680_v45 = vld [vmem:[#allocation102_spill] sm:$0xff] }
 0x6cb   : > { %4363 = vmatpush.msrb.mxu0 %v8512_v55  ;;  %4403 = vmatpush.msrb.mxu2 %v8514_v1  ;;  %v10681_v55 = vld [vmem:[#allocation97_spill] sm:$0xff]  ;;  %v10682_v1 = vld [vmem:[#allocation100_spill] sm:$0xff] }
 0x6cc   : > { %4197 = vmatmul.f32.vlgmr.msra.gmra.mxu0 %v9021_v42  ;;  %4237 = vmatmul.f32.vlgmr.msra.gmra.mxu2 %v9021_v42 }
 0x6cd   : > { %4364 = vmatpush.msrb.mxu0 %v10653_v16  ;;  %4404 = vmatpush.msrb.mxu2 %v8522_v9  ;;  %v10683_v9 = vld [vmem:[#allocation21_spill] sm:$0xff]  ;;  %v10710_v16 = vld [vmem:[#allocation52_spill] sm:$0xff] }
 0x6ce   : > { %4395 = vmatpush.msrb.mxu1 %v10654_v53  ;;  %4435 = vmatpush.msrb.mxu3 %v10655_v7  ;;  %v10711_v53 = vld [vmem:[#allocation53_spill] sm:$0xff]  ;;  %v10712_v7 = vld [vmem:[#allocation42_spill] sm:$0xff] }
 0x6cf   : > { %4365 = vmatpush.msrb.mxu0 %v10656_v49  ;;  %4405 = vmatpush.msrb.mxu2 %v10657_v36  ;;  %v10713_v49 = vld [vmem:[#allocation43_spill] sm:$0xff]  ;;  %v10714_v36 = vld [vmem:[#allocation56_spill] sm:$0xff] }
 0x6d0   : > { %4396 = vmatmul.f32.vlgmr.msrb.gmra.mxu1 %v9021_v42  ;;  %4436 = vmatmul.f32.vlgmr.msrb.gmra.mxu3 %v9021_v42 }
 0x6d1   : > { %4366 = vmatpush.msrb.mxu0 %v10658_v27  ;;  %4406 = vmatpush.msrb.mxu2 %v10659_v33  ;;  %v10715_v27 = vld [vmem:[#allocation57_spill] sm:$0xff]  ;;  %v10716_v33 = vld [vmem:[#allocation46_spill] sm:$0xff] }
 0x6d2   : > { %4614 = vmatpush.msra.mxu1 %v8548_v63  ;;  %4654 = vmatpush.msra.mxu3 %v10660_v31  ;;  %v10685_v63 = vld [vmem:[#allocation23_spill] sm:$0xff] }
 0x6d3   : > { %4367 = vmatpush.msrb.mxu0 %v10661_v52  ;;  %4407 = vmatpush.msrb.mxu2 %v10662_v44  ;;  %v10717_v31 = vld [vmem:[#allocation47_spill] sm:$0xff]  ;;  %v10718_v52 = vld [vmem:[#allocation60_spill] sm:$0xff]  ;;  %v10719_v44 = vld [vmem:[#allocation61_spill] sm:$0xff] }
 0x6d4   : > { %4615 = vmatpush.msra.mxu1 %v8614_v35  ;;  %4655 = vmatpush.msra.mxu3 %v10663_v26  ;;  %v10684_v35 = vld [vmem:[#allocation19_spill] sm:$0xff]  ;;  %v10720_v26 = vld [vmem:[#allocation50_spill] sm:$0xff] }
 0x6d5   : > { %4368 = vmatpush.msrb.mxu0 %v10664_v17  ;;  %4408 = vmatpush.msrb.mxu2 %v10665_v39  ;;  %v10721_v17 = vld [vmem:[#allocation51_spill] sm:$0xff]  ;;  %v10722_v39 = vld [vmem:[#allocation64_spill] sm:$0xff] }
 0x6d6   : > { %4616 = vmatpush.msra.mxu1 %v10666_v56  ;;  %4656 = vmatpush.msra.mxu3 %v10667_v50  ;;  %v10723_v56 = vld [vmem:[#allocation65_spill] sm:$0xff]  ;;  %v10724_v50 = vld [vmem:[#allocation54_spill] sm:$0xff] }
 0x6d7   : > { %4369 = vmatpush.msrb.mxu0 %v10668_v23  ;;  %4409 = vmatpush.msrb.mxu2 %v10669_v30  ;;  %v10725_v23 = vld [vmem:[#allocation55_spill] sm:$0xff]  ;;  %v10726_v30 = vld [vmem:[#allocation69_spill] sm:$0xff] }
 0x6d8   : > { %4617 = vmatpush.msra.mxu1 %v10670_v38  ;;  %4657 = vmatpush.msra.mxu3 %v10671_v40  ;;  %v10727_v38 = vld [vmem:[#allocation70_spill] sm:$0xff] }
 0x6d9   : > { %4370 = vmatpush.msrb.mxu0 %v10672_v48  ;;  %4410 = vmatpush.msrb.mxu2 %v10673_v51  ;;  %v10728_v40 = vld [vmem:[#allocation58_spill] sm:$0xff]  ;;  %v10729_v48 = vld [vmem:[#allocation59_spill] sm:$0xff]  ;;  %v10730_v51 = vld [vmem:[#allocation76_spill] sm:$0xff] }
 0x6da   : > { %4618 = vmatpush.msra.mxu1 %v10674_v47  ;;  %4658 = vmatpush.msra.mxu3 %v10675_v15  ;;  %v10731_v47 = vld [vmem:[#allocation77_spill] sm:$0xff]  ;;  %v10732_v15 = vld [vmem:[#allocation62_spill] sm:$0xff] }
 0x6db   : > { %4371 = vmatpush.msrb.mxu0 %v10676_v13  ;;  %4411 = vmatpush.msrb.mxu2 %v10677_v29  ;;  %v10733_v13 = vld [vmem:[#allocation63_spill] sm:$0xff]  ;;  %v10734_v29 = vld [vmem:[#allocation85_spill] sm:$0xff] }
 0x6dc   : > { %4619 = vmatpush.msra.mxu1 %v10678_v2  ;;  %4659 = vmatpush.msra.mxu3 %v10679_v62  ;;  %v10735_v2 = vld [vmem:[#allocation115_spill] sm:$0xff]  ;;  %v10736_v62 = vld [vmem:[#allocation66_spill] sm:$0xff] }
 0x6dd   : > { %4372 = vmatpush.msrb.mxu0 %v10680_v45  ;;  %4412 = vmatpush.msrb.mxu2 %v10681_v55  ;;  %v10737_v45 = vld [vmem:[#allocation67_spill] sm:$0xff]  ;;  %v10738_v55 = vld [vmem:[#allocation98_spill] sm:$0xff] }
 0x6de   : > { %4620 = vmatpush.msra.mxu1 %v10682_v1  ;;  %4660 = vmatpush.msra.mxu3 %v10683_v9  ;;  %v10739_v1 = vld [vmem:[#allocation73_spill] sm:$0xff]  ;;  %v10740_v9 = vld [vmem:[#allocation111_spill] sm:$0xff] }
 0x6df   : > { %4373 = vmatpush.msrb.mxu0 %v10684_v35  ;;  %4413 = vmatpush.msrb.mxu2 %v10685_v63  ;;  %v10741_v35 = vld [vmem:[#allocation117_spill] sm:$0xff]  ;;  %v10742_v63 = vld [vmem:[#allocation114_spill] sm:$0xff] }
 0x6e0   : > { %4621 = vmatpush.msra.mxu1 %v10686_v25  ;;  %4661 = vmatpush.msra.mxu3 %v10687_v21  ;;  %v10743_v25 = vld [vmem:[#allocation84_spill] sm:$0xff]  ;;  %v10744_v21 = vld [vmem:[#allocation91_spill] sm:$0xff] }
 0x6e1   : > { %4374 = vmatpush.msrb.mxu0 %v10688_v32  ;;  %4414 = vmatpush.msrb.mxu2 %v10689_v12  ;;  %v10745_v32 = vld [vmem:[#allocation93_spill] sm:$0xff]  ;;  %v10747_v12 = vld [vmem:[#allocation119_spill] sm:$0xff] }
 0x6e2   : > { %4622 = vmatpush.msra.mxu1 %v10690_v10  ;;  %4662 = vmatpush.msra.mxu3 %v10691_v5  ;;  %v10748_v10 = vld [vmem:[#allocation120_spill] sm:$0xff] }
 0x6e3   : > { %4375 = vmatpush.msrb.mxu0 %v10692_v57  ;;  %4415 = vmatpush.msrb.mxu2 %v10693_v18  ;;  %v10749_v5 = vld [vmem:[#allocation80_spill] sm:$0xff]  ;;  %v10752_v18 = vld [vmem:[#allocation113_spill] sm:$0xff] }
 0x6e4   : > { %4376 = vmatmul.f32.vlgmr.msrb.gmra.mxu0 %v9021_v42  ;;  %4416 = vmatmul.f32.vlgmr.msrb.gmra.mxu2 %v9021_v42  ;;  %v10709_v42 = vld [vmem:[#allocation40_spill] sm:$0xff] }
 0x6e5   : > { %4594 = vmatpush.msra.mxu0 %v10694_v19  ;;  %4634 = vmatpush.msra.mxu2 %v10695_v24  ;;  %v10751_v57 = vld [vmem:[#allocation112_spill] sm:$0xff]  ;;  %v10755_v24 = vld [vmem:[#allocation118_spill] sm:$0xff] }
 0x6e6   : > { %4623 = vmatpush.msra.mxu1 %v10696_v4  ;;  %4663 = vmatpush.msra.mxu3 %v10697_v43  ;;  %v10753_v19 = vld [vmem:[#allocation116_spill] sm:$0xff]  ;;  %v10756_v4 = vld [vmem:[#allocation89_spill] sm:$0xff] }
 0x6e7   : > { %4595 = vmatpush.msra.mxu0 %v10698_v59  ;;  %4635 = vmatpush.msra.mxu2 %v10699_v28  ;;  %v10757_v43 = vld [vmem:[#allocation121_spill] sm:$0xff]  ;;  %v10758_v59 = vld [vmem:[#allocation122_spill] sm:$0xff]  ;;  %v10759_v28 = vld [vmem:[#allocation135_spill] sm:$0xff] }
 0x6e8   : > { %4624 = vmatpush.msra.mxu1 %v10700_v22  ;;  %4664 = vmatpush.msra.mxu3 %v10701_v20  ;;  %v10760_v22 = vld [vmem:[#allocation138_spill] sm:$0xff]  ;;  %v10761_v20 = vld [vmem:[#allocation141_spill] sm:$0xff] }
 0x6e9   : > { %4596 = vmatpush.msra.mxu0 %v10702_v6  ;;  %4636 = vmatpush.msra.mxu2 %v10703_v41  ;;  %v10762_v6 = vld [vmem:[#allocation144_spill] sm:$0xff]  ;;  %v10763_v41 = vld [vmem:[#allocation145_spill] sm:$0xff] }
 0x6ea   : > { %4625 = vmatpush.msra.mxu1 %v10704_v61  ;;  %4665 = vmatpush.msra.mxu3 %v10705_v46  ;;  %v10764_v61 = vld [vmem:[#allocation146_spill] sm:$0xff]  ;;  %v10765_v46 = vld [vmem:[#allocation147_spill] sm:$0xff] }
 0x6eb   : > { %4597 = vmatpush.msra.mxu0 %v10706_v0  ;;  %4637 = vmatpush.msra.mxu2 %v10707_v34  ;;  %v10766_v0 = vld [vmem:[#allocation148_spill] sm:$0xff]  ;;  %v10767_v34 = vld [vmem:[#allocation149_spill] sm:$0xff] }
 0x6ec   : > { %4626 = vmatpush.msra.mxu1 %v10708_v58  ;;  %4666 = vmatpush.msra.mxu3 %v10709_v42  ;;  %v10768_v58 = vld [vmem:[#allocation150_spill] sm:$0xff]  ;;  %v10769_v42 = vld [vmem:[#allocation152_spill] sm:$0xff] }
 0x6ed   : > { %4598 = vmatpush.msra.mxu0 %v10710_v16  ;;  %4638 = vmatpush.msra.mxu2 %v10711_v53  ;;  %v10770_v16 = vld [vmem:[#allocation153_spill] sm:$0xff]  ;;  %v10772_v53 = vld [vmem:[#allocation123_spill] sm:$0xff] }
 0x6ee   : > { %4627 = vmatpush.msra.mxu1 %v10712_v7  ;;  %4667 = vmatpush.msra.mxu3 %v10713_v49  ;;  %v10773_v7 = vld [vmem:[#allocation124_spill] sm:$0xff]  ;;  %v10774_v49 = vld [vmem:[#allocation127_spill] sm:$0xff] }
 0x6ef   : > { %4599 = vmatpush.msra.mxu0 %v10714_v36  ;;  %4639 = vmatpush.msra.mxu2 %v10715_v27  ;;  %v10775_v36 = vld [vmem:[#allocation130_spill] sm:$0xff]  ;;  %v10776_v27 = vld [vmem:[#allocation131_spill] sm:$0xff] }
 0x6f0   : > { %4628 = vmatpush.msra.mxu1 %v10716_v33  ;;  %4668 = vmatpush.msra.mxu3 %v10717_v31  ;;  %v10777_v33 = vld [vmem:[#allocation151_spill] sm:$0xff]  ;;  %v10778_v31 = vld [vmem:[#allocation125_spill] sm:$0xff] }
 0x6f1   : > { %4600 = vmatpush.msra.mxu0 %v10718_v52  ;;  %4640 = vmatpush.msra.mxu2 %v10719_v44  ;;  %v10779_v52 = vld [vmem:[#allocation126_spill] sm:$0xff]  ;;  %v10780_v44 = vld [vmem:[#allocation133_spill] sm:$0xff] }
 0x6f2   : > { %4629 = vmatpush.msra.mxu1 %v10720_v26  ;;  %4669 = vmatpush.msra.mxu3 %v10721_v17  ;;  %v10781_v26 = vld [vmem:[#allocation136_spill] sm:$0xff]  ;;  %v10782_v17 = vld [vmem:[#allocation137_spill] sm:$0xff] }
 0x6f3   : > { %4601 = vmatpush.msra.mxu0 %v10722_v39  ;;  %4641 = vmatpush.msra.mxu2 %v10723_v56  ;;  %v10783_v39 = vld [vmem:[#allocation128_spill] sm:$0xff] }
 0x6f4   : > { %4694 = vmatpush.msrb.mxu1 %v10724_v50  ;;  %4734 = vmatpush.msrb.mxu3 %v10725_v23  ;;  %v10784_v50 = vld [vmem:[#allocation13_spill] sm:$0xff] }
 0x6f5   : > { %4602 = vmatpush.msra.mxu0 %v10726_v30  ;;  %4642 = vmatpush.msra.mxu2 %v10727_v38  ;;  %v4556_v38 = vld [vmem:[#allocation9 + $0x2d0] sm:$0xff] }
 0x6f6   : > { %4695 = vmatpush.msrb.mxu1 %v10728_v40  ;;  %4735 = vmatpush.msrb.mxu3 %v10729_v48  ;;  %v4557_v40 = vld [vmem:[#allocation9 + $0x2d8] sm:$0xff] }
 0x6f7   : > { %4603 = vmatpush.msra.mxu0 %v10730_v51  ;;  %4643 = vmatpush.msra.mxu2 %v10731_v47  ;;  %v4552_v51 = vld [vmem:[#allocation9 + $0x2b0] sm:$0xff]  ;;  %v4553_v47 = vld [vmem:[#allocation9 + $0x2b8] sm:$0xff] }
 0x6f8   : > { %4696 = vmatpush.msrb.mxu1 %v10732_v15  ;;  %4736 = vmatpush.msrb.mxu3 %v10733_v13 }
 0x6f9   : > { %4604 = vmatpush.msra.mxu0 %v10734_v29  ;;  %4644 = vmatpush.msra.mxu2 %v10735_v2  ;;  %v4548_v2 = vld [vmem:[#allocation9 + $0x290] sm:$0xff] }
 0x6fa   : > { %4697 = vmatpush.msrb.mxu1 %v10736_v62  ;;  %4737 = vmatpush.msrb.mxu3 %v10737_v45  ;;  %v4549_v62 = vld [vmem:[#allocation9 + $0x298] sm:$0xff] }
 0x6fb   : > { %4605 = vmatpush.msra.mxu0 %v8810_v14  ;;  %4645 = vmatpush.msra.mxu2 %v10738_v55  ;;  %v10746_v14 = vld [vmem:[#allocation72_spill] sm:$0xff] }
 0x6fc   : > { %4698 = vmatpush.msrb.mxu1 %v10739_v1  ;;  %4738 = vmatpush.msrb.mxu3 %v10740_v9  ;;  %v10786_v1 = vld [vmem:[#allocation15_spill] sm:$0xff] }
 0x6fd   : > { %4606 = vmatpush.msra.mxu0 %v8822_v37  ;;  %4646 = vmatpush.msra.mxu2 %v10741_v35  ;;  %v10750_v37 = vld [vmem:[#allocation81_spill] sm:$0xff]  ;;  %v4544_v35 = vld [vmem:[#allocation9 + $0x270] sm:$0xff] }
 0x6fe   : > { %4699 = vmatpush.msrb.mxu1 %v10742_v63  ;;  %4739 = vmatpush.msrb.mxu3 %v10743_v25  ;;  %v4545_v63 = vld [vmem:[#allocation9 + $0x278] sm:$0xff] }
 0x6ff   : > { %4607 = vmatpush.msra.mxu0 %v8834_v60  ;;  %4647 = vmatpush.msra.mxu2 %v10744_v21  ;;  %v10754_v60 = vld [vmem:[#allocation95_spill] sm:$0xff] }
 0x700   : > { %4700 = vmatpush.msrb.mxu1 %v10745_v32  ;;  %4740 = vmatpush.msrb.mxu3 %v10746_v14  ;;  %v10787_v14 = vld [vmem:[#allocation129_spill] sm:$0xff] }
 0x701   : > { %4608 = vmatpush.msra.mxu0 %v10747_v12  ;;  %4648 = vmatpush.msra.mxu2 %v10748_v10  ;;  %v10788_v12 = vld [vmem:[#allocation132_spill] sm:$0xff] }
 0x702   : > { %4701 = vmatpush.msrb.mxu1 %v10749_v5  ;;  %4741 = vmatpush.msrb.mxu3 %v10750_v37  ;;  %v10789_v5 = vld [vmem:[#allocation139_spill] sm:$0xff]  ;;  %v10790_v37 = vld [vmem:[#allocation140_spill] sm:$0xff] }
 0x703   : > { %4609 = vmatpush.msra.mxu0 %v10751_v57  ;;  %4649 = vmatpush.msra.mxu2 %v10752_v18  ;;  %v10791_v18 = vld [vmem:[#allocation16_spill] sm:$0xff] }
 0x704   : > { %4702 = vmatpush.msrb.mxu1 %v10755_v24  ;;  %4742 = vmatpush.msrb.mxu3 %v10756_v4  ;;  %v10792_v24 = vld [vmem:[#allocation142_spill] sm:$0xff]  ;;  %v10793_v4 = vld [vmem:[#allocation143_spill] sm:$0xff] }
 0x705   : > { %4674 = vmatpush.msrb.mxu0 %v10753_v19  ;;  %4714 = vmatpush.msrb.mxu2 %v10754_v60 }
 0x706   : > { %4703 = vmatpush.msrb.mxu1 %v4556_v38  ;;  %4743 = vmatpush.msrb.mxu3 %v4557_v40 }
 0x707   : > { %4675 = vmatpush.msrb.mxu0 %v10757_v43  ;;  %4715 = vmatpush.msrb.mxu2 %v10758_v59 }
 0x708   : > { %4704 = vmatpush.msrb.mxu1 %v4552_v51  ;;  %4744 = vmatpush.msrb.mxu3 %v4553_v47 }
 0x709   : > { %4676 = vmatpush.msrb.mxu0 %v10759_v28  ;;  %4716 = vmatpush.msrb.mxu2 %v10760_v22 }
 0x70a   : > { %4705 = vmatpush.msrb.mxu1 %v4548_v2  ;;  %4745 = vmatpush.msrb.mxu3 %v4549_v62 }
 0x70b   : > { %4677 = vmatpush.msrb.mxu0 %v8889_v54  ;;  %4717 = vmatpush.msrb.mxu2 %v10761_v20  ;;  %v10771_v54 = vld [vmem:[#allocation154_spill] sm:$0xff] }
 0x70c   : > { %4706 = vmatpush.msrb.mxu1 %v4544_v35  ;;  %4746 = vmatpush.msrb.mxu3 %v4545_v63 }
 0x70d   : > { %4678 = vmatpush.msrb.mxu0 %v10762_v6  ;;  %4718 = vmatpush.msrb.mxu2 %v10763_v41  ;;  %v4292_v6 = vld [vmem:[%s4290_s10 + $0x8] sm:$0xff] }
 0x70e   : > { %4707 = vmatpush.msrb.mxu1 %v10787_v14  ;;  %4747 = vmatpush.msrb.mxu3 %v10788_v12 }
 0x70f   : > { %4679 = vmatpush.msrb.mxu0 %v10764_v61  ;;  %4719 = vmatpush.msrb.mxu2 %v10765_v46 }
 0x710   : > { %4708 = vmatpush.msrb.mxu1 %v10789_v5  ;;  %4748 = vmatpush.msrb.mxu3 %v10790_v37 }
 0x711   : > { %4680 = vmatpush.msrb.mxu0 %v10766_v0  ;;  %4720 = vmatpush.msrb.mxu2 %v10767_v34 }
 0x712   : > { %4709 = vmatpush.msrb.mxu1 %v10792_v24  ;;  %4749 = vmatpush.msrb.mxu3 %v10793_v4 }
 0x713   : > { %4681 = vmatpush.msrb.mxu0 %v10768_v58  ;;  %4721 = vmatpush.msrb.mxu2 %v10769_v42  ;;  %v10794_v58 = vld [vmem:[#allocation134_spill] sm:$0xff] }
 0x715   : > { %4682 = vmatpush.msrb.mxu0 %v10770_v16  ;;  %4722 = vmatpush.msrb.mxu2 %v10771_v54 }
 0x717   : > { %4683 = vmatpush.msrb.mxu0 %v10772_v53  ;;  %4723 = vmatpush.msrb.mxu2 %v10773_v7 }
 0x719   : > { %4684 = vmatpush.msrb.mxu0 %v10774_v49  ;;  %4724 = vmatpush.msrb.mxu2 %v8953_v3 }
 0x71b   : > { %4685 = vmatpush.msrb.mxu0 %v10775_v36  ;;  %4725 = vmatpush.msrb.mxu2 %v10776_v27  ;;  %v4291_v36 = vld [vmem:[%s4290_s10] sm:$0xff] }
 0x71d   : > { %4686 = vmatpush.msrb.mxu0 %v10777_v33  ;;  %4726 = vmatpush.msrb.mxu2 %v10778_v31  ;;  %v4294_v31 = vld [vmem:[%s4290_s10 + $0x18] sm:$0xff] }
 0x71f   : > { %4687 = vmatpush.msrb.mxu0 %v10779_v52  ;;  %4727 = vmatpush.msrb.mxu2 %v10780_v44 }
 0x721   : > { %4688 = vmatpush.msrb.mxu0 %v10781_v26  ;;  %4728 = vmatpush.msrb.mxu2 %v8978_v8  ;;  %v10785_v8 = vld [vmem:[#allocation14_spill] sm:$0xff] }
 0x723   : > { %4689 = vmatpush.msrb.mxu0 %v10782_v17  ;;  %4729 = vmatpush.msrb.mxu2 %v10783_v39 }
 0x729   : > { %v4138_v3 = vpop.f32.mrf.mxu1 }
 0x72f   : > { %v4178_v15 = vpop.f32.mrf.mxu3 }
 0x731   : > { %v4218_v25 = vpop.f32.mrf.mxu1 }
 0x737   : > { %v4258_v60 = vpop.f32.mrf.mxu3 }
 0x741   : > { %v4118_v56 = vpop.f32.mrf.mxu0 }
 0x742   : > { %v4119_v23 = vadd.f32 %v4118_v56, %v10784_v50  ;;  %v4293_v56 = vld [vmem:[%s4290_s10 + $0x10] sm:$0xff] }
 0x744   : > { %v4139_v30 = vadd.f32 %v4138_v3, %v4119_v23 }
 0x746   : > { %v4262_v48 = vmul.f32 0.5, %v4139_v30 }
 0x747   : > { %v4158_v13 = vpop.f32.mrf.mxu2 }
 0x748   : > { %v4159_v29 = vadd.f32 %v4158_v13, %v10785_v8  ;;  %5059 = vtanh.f32 %v4262_v48 }
 0x749   : > { %v4198_v45 = vpop.f32.mrf.mxu0 }
 0x74a   : > { %v4179_v55 = vadd.f32 %v4178_v15, %v4159_v29  ;;  %v4199_v9 = vadd.f32 %v4198_v45, %v10786_v1 }
 0x74c   : > { %v4266_v21 = vmul.f32 0.5, %v4179_v55  ;;  %v4219_v32 = vadd.f32 %v4218_v25, %v4199_v9 }
 0x74d   : > { %v4397_v41 = vpop.f32.mrf.mxu1 }
 0x74e   : > { %5061 = vtanh.f32 %v4266_v21  ;;  %v5060_v57 = vpop.eup %5059  ;;  %v4441_v34 = vadd.f32 %v4397_v41, %v4292_v6 }
 0x74f   : > { %v4238_v10 = vpop.f32.mrf.mxu2  ;;  %5063 = vtanh.f32 %v4219_v32  ;;  %v4264_v59 = vmul.f32 0.5, %v5060_v57 }
 0x750   : > { %v4239_v19 = vadd.f32 %v4238_v10, %v10791_v18  ;;  %v4449_v7 = vmul.f32 0.5, %v4441_v34 }
 0x751   : > { %v4265_v46 = vadd.f32 0.5, %v4264_v59 }
 0x752   : > { %v4259_v43 = vadd.f32 %v4258_v60, %v4239_v19 }
 0x753   : > { %v4437_v52 = vpop.f32.mrf.mxu3 }
 0x754   : > { %v5062_v28 = vpop.eup %5061  ;;  %v4271_v22 = vmul.f32 0.5, %v4259_v43  ;;  %v4443_v3 = vadd.f32 %v4437_v52, %v4294_v31 }
 0x755   : > { %v4268_v20 = vmul.f32 0.5, %v5062_v28  ;;  %v5064_v61 = vpop.eup %5063 }
 0x756   : > { %5065 = vtanh.f32 %v4271_v22  ;;  %v4276_v16 = vmul.f32 %v5064_v61, %v4265_v46  ;;  %v4454_v48 = vmul.f32 0.5, %v4443_v3 }
 0x757   : > { %v4269_v0 = vadd.f32 0.5, %v4268_v20 }
 0x759   : > { %v4275_v42 = vmul.f32 %v4269_v0, %v10794_v58 }
 0x75b   : > { %v9199_v54 = vadd.f32 %v4276_v16, %v4275_v42 }
 0x75c   : > { %v5066_v53 = vpop.eup %5065 }
 0x75d   : > { %5067 = vtanh.f32 %v9199_v54  ;;  %v4273_v49 = vmul.f32 0.5, %v5066_v53 }
 0x75e   : > { %5069 = vtanh.f32 %v4449_v7 }
 0x75f   : > { %v4274_v33 = vadd.f32 0.5, %v4273_v49 }
 0x761   : > { %v4377_v27 = vpop.f32.mrf.mxu0 }
 0x762   : > { %v4440_v44 = vadd.f32 %v4377_v27, %v4291_v36 }
 0x763   : > { %v5068_v26 = vpop.eup %5067 }
 0x764   : > { %v4279_v17 = vmul.f32 %v5068_v26, %v4274_v33  ;;  %v4445_v39 = vmul.f32 0.5, %v4440_v44  ;;  %v5070_v23 = vpop.eup %5069 }
 0x765   : > { %v4451_v40 = vmul.f32 0.5, %v5070_v23 }
 0x766   : > { %4873 = vst [vmem:[%s6749_s5 + $0x30] sm:$0xff] %v4279_v17  ;;  %5071 = vtanh.f32 %v4445_v39  ;;  %4630 = vmatmul.f32.vlgmr.msra.gmra.mxu1 %v4279_v17  ;;  %4670 = vmatmul.f32.vlgmr.msra.gmra.mxu3 %v4279_v17 }
 0x767   : > { %v4417_v30 = vpop.f32.mrf.mxu2  ;;  %v4452_v47 = vadd.f32 0.5, %v4451_v40 }
 0x768   : > { %v4442_v38 = vadd.f32 %v4417_v30, %v4293_v56 }
 0x769   : > { %v4458_v2 = vmul.f32 %v4452_v47, %v9008_v11 }
 0x76a   : > { %5073 = vtanh.f32 %v4442_v38 }
 0x76b   : > { %5075 = vtanh.f32 %v4454_v48 }
 0x76c   : > { %v5072_v51 = vpop.eup %5071 }
 0x76d   : > { %v4447_v15 = vmul.f32 0.5, %v5072_v51 }
 0x76e   : > { %4710 = vmatmul.f32.vlgmr.msrb.gmra.mxu1 %v4279_v17  ;;  %4750 = vmatmul.f32.vlgmr.msrb.gmra.mxu3 %v4279_v17 }
 0x76f   : > { %v4448_v13 = vadd.f32 0.5, %v4447_v15 }
 0x770   : > { %v5074_v29 = vpop.eup %5073 }
 0x771   : > { %v4459_v62 = vmul.f32 %v5074_v29, %v4448_v13  ;;  %v5076_v45 = vpop.eup %5075 }
 0x772   : > { %v4456_v9 = vmul.f32 0.5, %v5076_v45 }
 0x773   : > { %v4460_v55 = vadd.f32 %v4459_v62, %v4458_v2 }
 0x774   : > { %v4457_v35 = vadd.f32 0.5, %v4456_v9 }
 0x775   : > { %5077 = vtanh.f32 %v4460_v55  ;;  %4464 = vst [vmem:[#allocation4] sm:$0xff] %v4460_v55 }
 0x77b   : > { %v5078_v63 = vpop.eup %5077 }
 0x77c   : > { %v4462_v25 = vmul.f32 %v5078_v63, %v4457_v35 }
 0x77e   : > { %4463 = vst [vmem:[#allocation3] sm:$0xff] %v4462_v25  ;;  %4610 = vmatmul.f32.vlgmr.msra.gmra.mxu0 %v4462_v25  ;;  %4650 = vmatmul.f32.vlgmr.msra.gmra.mxu2 %v4462_v25 }
 0x786   : > { %4690 = vmatmul.f32.vlgmr.msrb.gmra.mxu0 %v4462_v25  ;;  %4730 = vmatmul.f32.vlgmr.msrb.gmra.mxu2 %v4462_v25 }
 0x7e3   : > { %v4631_v21 = vpop.f32.mrf.mxu1 }
 0x7e9   : > { %v4671_v10 = vpop.f32.mrf.mxu3 }
 0x7eb   : > { %v4711_v24 = vpop.f32.mrf.mxu1 }
 0x7f1   : > { %v4751_v20 = vpop.f32.mrf.mxu3 }
 0x7fb   : > { %v4611_v32 = vpop.f32.mrf.mxu0 }
 0x7fc   : > { %v4612_v14 = vadd.f32 %v4611_v32, %v10784_v50 }
 0x7fe   : > { %v4632_v12 = vadd.f32 %v4631_v21, %v4612_v14 }
 0x800   : > { %v4755_v11 = vmul.f32 0.5, %v4632_v12 }
 0x801   : > { %v4651_v5 = vpop.f32.mrf.mxu2 }
 0x802   : > { %v4652_v37 = vadd.f32 %v4651_v5, %v10785_v8  ;;  %5079 = vtanh.f32 %v4755_v11 }
 0x803   : > { %v4691_v57 = vpop.f32.mrf.mxu0 }
 0x804   : > { %v4672_v19 = vadd.f32 %v4671_v10, %v4652_v37  ;;  %v4692_v60 = vadd.f32 %v4691_v57, %v10786_v1 }
 0x806   : > { %v4759_v4 = vmul.f32 0.5, %v4672_v19  ;;  %v4712_v43 = vadd.f32 %v4711_v24, %v4692_v60 }
 0x808   : > { %5081 = vtanh.f32 %v4759_v4  ;;  %v5080_v28 = vpop.eup %5079 }
 0x809   : > { %v4731_v59 = vpop.f32.mrf.mxu2  ;;  %5083 = vtanh.f32 %v4712_v43  ;;  %v4757_v41 = vmul.f32 0.5, %v5080_v28 }
 0x80a   : > { %v4732_v22 = vadd.f32 %v4731_v59, %v10791_v18 }
 0x80b   : > { %v4758_v58 = vadd.f32 0.5, %v4757_v41 }
 0x80c   : > { %v4752_v6 = vadd.f32 %v4751_v20, %v4732_v22 }
 0x80e   : > { %v5082_v61 = vpop.eup %5081  ;;  %v4764_v46 = vmul.f32 0.5, %v4752_v6 }
 0x80f   : > { %v4761_v0 = vmul.f32 0.5, %v5082_v61  ;;  %v5084_v34 = vpop.eup %5083 }
 0x810   : > { %5085 = vtanh.f32 %v4764_v46  ;;  %v4769_v53 = vmul.f32 %v5084_v34, %v4758_v58 }
 0x811   : > { %v4762_v42 = vadd.f32 0.5, %v4761_v0 }
 0x813   : > { %v4768_v16 = vmul.f32 %v4762_v42, %v9199_v54 }
 0x815   : > { %v4770_v7 = vadd.f32 %v4769_v53, %v4768_v16 }
 0x816   : > { %v5086_v49 = vpop.eup %5085 }
 0x817   : > { %5087 = vtanh.f32 %v4770_v7  ;;  %4774 = vst [vmem:[#allocation6] sm:$0xff] %v4770_v7  ;;  %v4766_v36 = vmul.f32 0.5, %v5086_v49 }
 0x819   : > { %v4767_v27 = vadd.f32 0.5, %v4766_v36 }
 0x81d   : > { %v5088_v33 = vpop.eup %5087  ;;  %831 = sbr.rel (!%p829_p0) target bundleno = 429 (0x1ad), region = 79 }
 0x81e   : > { %v4772_v31 = vmul.f32 %v5088_v33, %v4767_v27 }
 0x820   : > { %4773 = vst [vmem:[#allocation5] sm:$0xff] %v4772_v31 }
 0x821   : > { %4879 = vst [vmem:[%s6749_s5 + $0x38] sm:$0xff] %v4772_v31 }
 0x822   :  { %4781 = vsyncpa [#allocation8], 1 }
 0x823   :  { %4782 = vsyncpa [#allocation10], 1 }

</bundles_post_ra>
